<compile_context>
chip_gen: v6e
topology: v6e:2x2x1
jax: 0.10.0
libtpu: 0.0.40
codegen_flags: <defaults>
</compile_context>

<pallas_src>
import functools
import math

import jax
import jax.numpy as jnp
import numpy as np
from jax import lax
from jax.experimental import pallas as pl
from jax.experimental.pallas import tpu as pltpu


_DECONV_DIMS = ((128, 64), (64, 64), (64, 32), (32, 32), (32, 1))

# _KY[phase][tap_row]: which ConvTranspose2d kernel tap (ky) feeds output
# parity `phase` from input-patch row `tap_row` (derived from oy = 2*iy-1+ky).
_KY = ((2, 0), (3, 1))


# ----------------------------------------------------------------------------
# In-kernel helper: sub-pixel transposed conv = 4 accumulated MXU matmuls.
#   x_ref : (rows, Cin)   flattened padded NHWC activation (+ zero tail rows);
#                         rows enumerate (b, y, x) over the (H+2)x(W+2) grid,
#                         so the flat row stride of the y axis is ws = W+2.
#   w_ref : (4*Cin, 4*Cout) bf16; rows grouped by tap (r, c), cols by phase.
#   b_ref : (1, 4*Cout) f32.
#   result: (mq, 4*Cout) f32, mq = B*(H+2)*(W+2); row q holds the 4 output
#           parities generated by the 2x2 patch anchored at q.
# ----------------------------------------------------------------------------
def _subpixel_matmul(x_ref, w_ref, b_ref, mq, ws, cin, relu):
    cdt = w_ref.dtype
    acc = jnp.dot(x_ref[0:mq, :].astype(cdt), w_ref[0:cin, :],
                  preferred_element_type=jnp.float32)
    acc = acc + jnp.dot(x_ref[1:1 + mq, :].astype(cdt), w_ref[cin:2 * cin, :],
                        preferred_element_type=jnp.float32)
    acc = acc + jnp.dot(x_ref[ws:ws + mq, :].astype(cdt), w_ref[2 * cin:3 * cin, :],
                        preferred_element_type=jnp.float32)
    acc = acc + jnp.dot(x_ref[ws + 1:ws + 1 + mq, :].astype(cdt), w_ref[3 * cin:4 * cin, :],
                        preferred_element_type=jnp.float32)
    acc = acc + b_ref[...]
    if relu:
        acc = jnp.maximum(acc, 0.0)
    return acc


def _deconv_kernel(x_ref, w_ref, b_ref, o_ref, *, mq, ws, cin, relu):
    o_ref[...] = _subpixel_matmul(x_ref, w_ref, b_ref, mq, ws, cin, relu).astype(o_ref.dtype)


def _fc_deconv1_kernel(z_ref, wfc_ref, bfc_ref, w1_ref, b1_ref, o_ref, xpad_ref,
                       *, batch, mq, ws, cin):
    # fc (+ ReLU) in fp32; wfc columns are pre-permuted to (h, w, c) order.
    h = jnp.dot(z_ref[...], wfc_ref[...], preferred_element_type=jnp.float32)
    h = jnp.maximum(h + bfc_ref[...], 0.0)                       # (B, 512)
    # Scatter the (B, 2, 2, 128) activation into the zero-padded 4x4 grid held
    # (flattened to rows) in VMEM scratch, then run deconv1 straight from it.
    xpad_ref[...] = jnp.zeros(xpad_ref.shape, xpad_ref.dtype)
    for b in range(batch):
        for hy in range(2):
            for wx in range(2):
                row = (b * 4 + 1 + hy) * 4 + 1 + wx
                col = (hy * 2 + wx) * 128
                xpad_ref[row:row + 1, :] = h[b:b + 1, col:col + 128]
    o_ref[...] = _subpixel_matmul(xpad_ref, w1_ref, b1_ref, mq, ws, cin,
                                  relu=True).astype(o_ref.dtype)


def _deconv_last_kernel(xt_ref, w_ref, b_ref, o_ref, *, mq, ws):
    # Transposed (channel-major) formulation for Cout=1 so the long spatial
    # axis sits on lanes: out^T = W5^T @ patches^T  ->  (4 phases, mq).
    lhs = jnp.concatenate(
        [xt_ref[:, 0:mq], xt_ref[:, 1:1 + mq],
         xt_ref[:, ws:ws + mq], xt_ref[:, ws + 1:ws + 1 + mq]],
        axis=0).astype(w_ref.dtype)                              # (4*Cin, mq)
    acc = jnp.dot(w_ref[...], lhs, preferred_element_type=jnp.float32)
    o_ref[...] = (acc + b_ref[...]).astype(o_ref.dtype)          # (4, mq)


# ----------------------------------------------------------------------------
# Tiny XLA glue between layers (fused by XLA under jit): phase->space and
# flatten-with-padding.  All tensors here are <= ~600 KB.
# ----------------------------------------------------------------------------
def _phase_to_space(cand_flat, batch, h_in, cout):
    """(B*(h+2)^2, 4*cout) phase-major candidates -> (B, 2h, 2h, cout) NHWC."""
    g = h_in + 2
    cand = cand_flat.reshape(batch, g, g, 2, 2, cout)
    cand = cand[:, :h_in + 1, :h_in + 1]                  # valid patch anchors
    cand = cand.transpose(0, 1, 3, 2, 4, 5).reshape(
        batch, 2 * h_in + 2, 2 * h_in + 2, cout)
    return cand[:, 1:2 * h_in + 1, 1:2 * h_in + 1, :]


def _flatten_padded(x_nhwc, tail, channels_major=False):
    """Zero-pad spatially by 1, flatten (b,y,x) to rows, append zero tail rows."""
    b, h, w, c = x_nhwc.shape
    xp = jnp.pad(x_nhwc, ((0, 0), (1, 1), (1, 1), (0, 0)))
    xf = xp.reshape(b * (h + 2) * (w + 2), c)
    if channels_major:
        return jnp.pad(xf.T, ((0, 0), (0, tail)))
    return jnp.pad(xf, ((0, tail), (0, 0)))


# ----------------------------------------------------------------------------
# One-time parameter preparation (flip/transpose/tile/cast once, not per call)
# ----------------------------------------------------------------------------
def _make_subpixel_weight(w_t, cin, cout):
    """(Cin, Cout, 4, 4) ConvTranspose2d weight -> (4*Cin, 4*Cout) matmul weight."""
    w = jnp.zeros((4 * cin, 4 * cout), jnp.float32)
    for r in range(2):
        for c in range(2):
            t = r * 2 + c
            for py in range(2):
                for px in range(2):
                    p = py * 2 + px
                    sub = w_t[:, :, _KY[py][r], _KY[px][c]]        # (Cin, Cout)
                    w = w.at[t * cin:(t + 1) * cin, p * cout:(p + 1) * cout].set(sub)
    return w


def prepare_params(params):
    prep = {}
    # fc: permute output columns to NHWC (h, w, c) order so no transpose is
    # needed between the fc and deconv1 inside the fused kernel.
    perm = np.arange(512).reshape(128, 2, 2).transpose(1, 2, 0).reshape(-1)
    prep["fc_w"] = jnp.asarray(params["fc_w"])[perm, :].T.astype(jnp.float32)
    prep["fc_b"] = jnp.asarray(params["fc_b"])[perm].reshape(1, 512).astype(jnp.float32)
    for i, (cin, cout) in enumerate(_DECONV_DIMS, start=1):
        w = _make_subpixel_weight(params[f"deconv{i}_w"], cin, cout)
        b = jnp.tile(params[f"deconv{i}_b"], 4).reshape(1, 4 * cout).astype(jnp.float32)
        if i < 5:
            prep[f"w{i}"] = w.astype(jnp.bfloat16)
            prep[f"b{i}"] = b
        else:
            prep["w5"] = w.T.astype(jnp.bfloat16)                  # (4, 4*Cin)
            prep["b5"] = b.T                                       # (4, 1)
    return prep


# ----------------------------------------------------------------------------
# Forward pass (fc -> ReLU -> Unflatten -> 5x ConvTranspose2d, ReLU on 1..4)
# ----------------------------------------------------------------------------
@jax.jit
def conv_decoder_forward(z, prep):
    batch = z.shape[0]

    # ---- fc + deconv1 (fused; input spatial 2x2, Cin=128, Cout=64) ----
    h_in, ws = 2, 4
    mq = batch * (h_in + 2) ** 2
    out = pl.pallas_call(
        functools.partial(_fc_deconv1_kernel, batch=batch, mq=mq, ws=ws, cin=128),
        out_shape=jax.ShapeDtypeStruct((mq, 4 * 64), jnp.float32),
        scratch_shapes=[pltpu.VMEM((mq + 8, 128), jnp.float32)],
    )(z, prep["fc_w"], prep["fc_b"], prep["w1"], prep["b1"])

    # ---- deconv2 .. deconv4 (generic sub-pixel kernel, ReLU) ----
    for i in range(2, 5):
        cin, cout = _DECONV_DIMS[i - 1]
        x = _phase_to_space(out, batch, h_in, _DECONV_DIMS[i - 2][1])
        h_in *= 2
        ws = h_in + 2
        mq = batch * ws * ws
        xf = _flatten_padded(x, tail=ws + 8)
        out = pl.pallas_call(
            functools.partial(_deconv_kernel, mq=mq, ws=ws, cin=cin, relu=True),
            out_shape=jax.ShapeDtypeStruct((mq, 4 * cout), jnp.float32),
        )(xf, prep[f"w{i}"], prep[f"b{i}"])

    # ---- deconv5 (Cout=1, lane-dense transposed layout, no ReLU) ----
    x = _phase_to_space(out, batch, h_in, _DECONV_DIMS[3][1])
    h_in *= 2                                  # 32
    ws = h_in + 2                              # 34
    mq = batch * ws * ws                       # B * 1156
    xft = _flatten_padded(x, tail=ws + 8, channels_major=True)    # (32, mq+tail)
    out5 = pl.pallas_call(
        functools.partial(_deconv_last_kernel, mq=mq, ws=ws),
        out_shape=jax.ShapeDtypeStruct((4, mq), jnp.float32),
    )(xft, prep["w5"], prep["b5"])

    # ---- final depth-to-space -> NCHW (B, 1, 64, 64) ----
    cand = out5.reshape(2, 2, batch, ws, ws).transpose(2, 3, 0, 4, 1)
    cand = cand.reshape(batch, 2 * ws, 2 * ws)
    img = cand[:, 1:2 * h_in + 1, 1:2 * h_in + 1]
    return img[:, None, :, :]


# ----------------------------------------------------------------------------
# Deterministic PyTorch-style parameter init
# ----------------------------------------------------------------------------
def init_params(input_dim, key):
    ks = jax.random.split(key, 12)
    params = {}

    def u(k, shape, bound):
        return jax.random.uniform(k, shape, jnp.float32, -bound, bound)

    bound = 1.0 / math.sqrt(input_dim)
    params["fc_w"] = u(ks[0], (128 * 2 * 2, input_dim), bound)   # (out, in) like torch
    params["fc_b"] = u(ks[1], (128 * 2 * 2,), bound)
    for i, (cin, cout) in enumerate(_DECONV_DIMS):
        bound = 1.0 / math.sqrt(cin * 4 * 4)
        params[f"deconv{i + 1}_w"] = u(ks[2 + 2 * i], (cin, cout, 4, 4), bound)
        params[f"deconv{i + 1}_b"] = u(ks[3 + 2 * i], (cout,), bound)
    return params


# ----------------------------------------------------------------------------
# Pure-JAX reference with the same precision policy (bf16 MXU inputs, f32 acc)
# ----------------------------------------------------------------------------
def conv_decoder_reference(z, params):
    batch = z.shape[0]
    h = jnp.maximum(z @ params["fc_w"].T + params["fc_b"], 0.0)
    x = h.reshape(batch, 128, 2, 2).transpose(0, 2, 3, 1)
    for i in range(1, 6):
        w_t = params[f"deconv{i}_w"]                                      # (Cin,Cout,4,4)
        w_hwio = jnp.transpose(jnp.flip(w_t, axis=(2, 3)), (2, 3, 0, 1)).astype(jnp.bfloat16)
        y = lax.conv_general_dilated(
            x.astype(jnp.bfloat16), w_hwio,
            window_strides=(1, 1), padding=[(2, 2), (2, 2)], lhs_dilation=(2, 2),
            dimension_numbers=("NHWC", "HWIO", "NHWC"),
            preferred_element_type=jnp.float32,
        ) + params[f"deconv{i}_b"]
        x = jnp.maximum(y, 0.0) if i < 5 else y
    return x.transpose(0, 3, 1, 2)


if __name__ == "__main__":
    INPUT_DIM = 32
    BATCH = 2

    key = jax.random.PRNGKey(0)
    kp, kz = jax.random.split(key)
    params = init_params(INPUT_DIM, kp)
    z = jax.random.normal(kz, (BATCH, INPUT_DIM), jnp.float32)

    prep = prepare_params(params)
    out = jax.block_until_ready(conv_decoder_forward(z, prep))
    assert out.shape == (BATCH, 1, 64, 64), out.shape

    ref = jax.block_until_ready(conv_decoder_reference(z, params))
    max_err = float(jnp.max(jnp.abs(out - ref)))
    assert jnp.allclose(out, ref, atol=1e-2, rtol=1e-2), max_err

    print("KERNEL_OK")
</pallas_src>

<mosaic_0001>
module attributes {stable_mosaic.version = 11 : i64} {
  func.func @_fc_deconv1_kernel(%arg0: memref<2x32xf32, #tpu.memory_space<vmem>>, %arg1: memref<32x512xf32, #tpu.memory_space<vmem>>, %arg2: memref<1x512xf32, #tpu.memory_space<vmem>>, %arg3: memref<512x256xbf16, #tpu.memory_space<vmem>>, %arg4: memref<1x256xf32, #tpu.memory_space<vmem>>, %arg5: memref<32x256xf32, #tpu.memory_space<vmem>>, %arg6: memref<40x128xf32, #tpu.memory_space<vmem>>) attributes {dimension_semantics = [], scalar_prefetch = 0 : i64, scratch_operands = 1 : i64, tpu.core_type = #tpu.core_type<tc>} {
    %c0 = arith.constant 0 : index
    %c0_0 = arith.constant 0 : index
    %0 = vector.load %arg0[%c0, %c0_0] : memref<2x32xf32, #tpu.memory_space<vmem>>, vector<2x32xf32>
    %c0_1 = arith.constant 0 : index
    %c0_2 = arith.constant 0 : index
    %1 = vector.load %arg1[%c0_1, %c0_2] : memref<32x512xf32, #tpu.memory_space<vmem>>, vector<32x512xf32>
    %cst = arith.constant dense<0.000000e+00> : vector<2x512xf32>
    %2 = tpu.matmul %0, %1, %cst {dimension_numbers = #tpu.dot_dimension_numbers<[1], [0], [0], [1], [0, 0, 1, 1], [], []>} : vector<2x32xf32>, vector<32x512xf32>, vector<2x512xf32> -> vector<2x512xf32>
    %c0_3 = arith.constant 0 : index
    %c0_4 = arith.constant 0 : index
    %3 = vector.load %arg2[%c0_3, %c0_4] : memref<1x512xf32, #tpu.memory_space<vmem>>, vector<1x512xf32>
    %4 = vector.broadcast %3 : vector<1x512xf32> to vector<2x512xf32>
    %5 = arith.addf %2, %4 : vector<2x512xf32>
    %cst_5 = arith.constant 0.000000e+00 : f32
    %6 = vector.broadcast %cst_5 : f32 to vector<2x512xf32>
    %7 = arith.maximumf %5, %6 : vector<2x512xf32>
    %cst_6 = arith.constant 0.000000e+00 : f32
    %8 = vector.broadcast %cst_6 : f32 to vector<40x128xf32>
    %c0_7 = arith.constant 0 : index
    %c0_8 = arith.constant 0 : index
    %9 = vector.load %arg6[%c0_7, %c0_8] : memref<40x128xf32, #tpu.memory_space<vmem>>, vector<40x128xf32>
    tpu.vector_store %arg6[%c0_7, %c0_8], %8 {strides = array<i32>} : memref<40x128xf32, #tpu.memory_space<vmem>>, vector<40x128xf32>,
    %10 = vector.extract_strided_slice %7 {offsets = [0, 0], sizes = [1, 128], strides = [1, 1]} : vector<2x512xf32> to vector<1x128xf32>
    %c5 = arith.constant 5 : index
    %c0_9 = arith.constant 0 : index
    %11 = vector.load %arg6[%c5, %c0_9] : memref<40x128xf32, #tpu.memory_space<vmem>>, vector<1x128xf32>
    tpu.vector_store %arg6[%c5, %c0_9], %10 {strides = array<i32>} : memref<40x128xf32, #tpu.memory_space<vmem>>, vector<1x128xf32>,
    %12 = vector.extract_strided_slice %7 {offsets = [0, 128], sizes = [1, 128], strides = [1, 1]} : vector<2x512xf32> to vector<1x128xf32>
    %c6 = arith.constant 6 : index
    %c0_10 = arith.constant 0 : index
    %13 = vector.load %arg6[%c6, %c0_10] : memref<40x128xf32, #tpu.memory_space<vmem>>, vector<1x128xf32>
    tpu.vector_store %arg6[%c6, %c0_10], %12 {strides = array<i32>} : memref<40x128xf32, #tpu.memory_space<vmem>>, vector<1x128xf32>,
    %14 = vector.extract_strided_slice %7 {offsets = [0, 256], sizes = [1, 128], strides = [1, 1]} : vector<2x512xf32> to vector<1x128xf32>
    %c9 = arith.constant 9 : index
    %c0_11 = arith.constant 0 : index
    %15 = vector.load %arg6[%c9, %c0_11] : memref<40x128xf32, #tpu.memory_space<vmem>>, vector<1x128xf32>
    tpu.vector_store %arg6[%c9, %c0_11], %14 {strides = array<i32>} : memref<40x128xf32, #tpu.memory_space<vmem>>, vector<1x128xf32>,
    %16 = vector.extract_strided_slice %7 {offsets = [0, 384], sizes = [1, 128], strides = [1, 1]} : vector<2x512xf32> to vector<1x128xf32>
    %c10 = arith.constant 10 : index
    %c0_12 = arith.constant 0 : index
    %17 = vector.load %arg6[%c10, %c0_12] : memref<40x128xf32, #tpu.memory_space<vmem>>, vector<1x128xf32>
    tpu.vector_store %arg6[%c10, %c0_12], %16 {strides = array<i32>} : memref<40x128xf32, #tpu.memory_space<vmem>>, vector<1x128xf32>,
    %18 = vector.extract_strided_slice %7 {offsets = [1, 0], sizes = [1, 128], strides = [1, 1]} : vector<2x512xf32> to vector<1x128xf32>
    %c21 = arith.constant 21 : index
    %c0_13 = arith.constant 0 : index
    %19 = vector.load %arg6[%c21, %c0_13] : memref<40x128xf32, #tpu.memory_space<vmem>>, vector<1x128xf32>
    tpu.vector_store %arg6[%c21, %c0_13], %18 {strides = array<i32>} : memref<40x128xf32, #tpu.memory_space<vmem>>, vector<1x128xf32>,
    %20 = vector.extract_strided_slice %7 {offsets = [1, 128], sizes = [1, 128], strides = [1, 1]} : vector<2x512xf32> to vector<1x128xf32>
    %c22 = arith.constant 22 : index
    %c0_14 = arith.constant 0 : index
    %21 = vector.load %arg6[%c22, %c0_14] : memref<40x128xf32, #tpu.memory_space<vmem>>, vector<1x128xf32>
    tpu.vector_store %arg6[%c22, %c0_14], %20 {strides = array<i32>} : memref<40x128xf32, #tpu.memory_space<vmem>>, vector<1x128xf32>,
    %22 = vector.extract_strided_slice %7 {offsets = [1, 256], sizes = [1, 128], strides = [1, 1]} : vector<2x512xf32> to vector<1x128xf32>
    %c25 = arith.constant 25 : index
    %c0_15 = arith.constant 0 : index
    %23 = vector.load %arg6[%c25, %c0_15] : memref<40x128xf32, #tpu.memory_space<vmem>>, vector<1x128xf32>
    tpu.vector_store %arg6[%c25, %c0_15], %22 {strides = array<i32>} : memref<40x128xf32, #tpu.memory_space<vmem>>, vector<1x128xf32>,
    %24 = vector.extract_strided_slice %7 {offsets = [1, 384], sizes = [1, 128], strides = [1, 1]} : vector<2x512xf32> to vector<1x128xf32>
    %c26 = arith.constant 26 : index
    %c0_16 = arith.constant 0 : index
    %25 = vector.load %arg6[%c26, %c0_16] : memref<40x128xf32, #tpu.memory_space<vmem>>, vector<1x128xf32>
    tpu.vector_store %arg6[%c26, %c0_16], %24 {strides = array<i32>} : memref<40x128xf32, #tpu.memory_space<vmem>>, vector<1x128xf32>,
    %c0_17 = arith.constant 0 : index
    %c0_18 = arith.constant 0 : index
    %26 = vector.load %arg6[%c0_17, %c0_18] : memref<40x128xf32, #tpu.memory_space<vmem>>, vector<32x128xf32>
    %27 = arith.truncf %26 : vector<32x128xf32> to vector<32x128xbf16>
    %c0_19 = arith.constant 0 : index
    %c0_20 = arith.constant 0 : index
    %28 = vector.load %arg3[%c0_19, %c0_20] : memref<512x256xbf16, #tpu.memory_space<vmem>>, vector<128x256xbf16>
    %cst_21 = arith.constant dense<0.000000e+00> : vector<32x256xf32>
    %29 = tpu.matmul %27, %28, %cst_21 {dimension_numbers = #tpu.dot_dimension_numbers<[1], [0], [0], [1], [0, 0, 1, 1], [], []>} : vector<32x128xbf16>, vector<128x256xbf16>, vector<32x256xf32> -> vector<32x256xf32>
    %c1 = arith.constant 1 : index
    %c0_22 = arith.constant 0 : index
    %30 = vector.load %arg6[%c1, %c0_22] : memref<40x128xf32, #tpu.memory_space<vmem>>, vector<32x128xf32>
    %31 = arith.truncf %30 : vector<32x128xf32> to vector<32x128xbf16>
    %c128 = arith.constant 128 : index
    %c0_23 = arith.constant 0 : index
    %32 = vector.load %arg3[%c128, %c0_23] : memref<512x256xbf16, #tpu.memory_space<vmem>>, vector<128x256xbf16>
    %cst_24 = arith.constant dense<0.000000e+00> : vector<32x256xf32>
    %33 = tpu.matmul %31, %32, %cst_24 {dimension_numbers = #tpu.dot_dimension_numbers<[1], [0], [0], [1], [0, 0, 1, 1], [], []>} : vector<32x128xbf16>, vector<128x256xbf16>, vector<32x256xf32> -> vector<32x256xf32>
    %34 = arith.addf %29, %33 : vector<32x256xf32>
    %c4 = arith.constant 4 : index
    %c0_25 = arith.constant 0 : index
    %35 = vector.load %arg6[%c4, %c0_25] : memref<40x128xf32, #tpu.memory_space<vmem>>, vector<32x128xf32>
    %36 = arith.truncf %35 : vector<32x128xf32> to vector<32x128xbf16>
    %c256 = arith.constant 256 : index
    %c0_26 = arith.constant 0 : index
    %37 = vector.load %arg3[%c256, %c0_26] : memref<512x256xbf16, #tpu.memory_space<vmem>>, vector<128x256xbf16>
    %cst_27 = arith.constant dense<0.000000e+00> : vector<32x256xf32>
    %38 = tpu.matmul %36, %37, %cst_27 {dimension_numbers = #tpu.dot_dimension_numbers<[1], [0], [0], [1], [0, 0, 1, 1], [], []>} : vector<32x128xbf16>, vector<128x256xbf16>, vector<32x256xf32> -> vector<32x256xf32>
    %39 = arith.addf %34, %38 : vector<32x256xf32>
    %c5_28 = arith.constant 5 : index
    %c0_29 = arith.constant 0 : index
    %40 = vector.load %arg6[%c5_28, %c0_29] : memref<40x128xf32, #tpu.memory_space<vmem>>, vector<32x128xf32>
    %41 = arith.truncf %40 : vector<32x128xf32> to vector<32x128xbf16>
    %c384 = arith.constant 384 : index
    %c0_30 = arith.constant 0 : index
    %42 = vector.load %arg3[%c384, %c0_30] : memref<512x256xbf16, #tpu.memory_space<vmem>>, vector<128x256xbf16>
    %cst_31 = arith.constant dense<0.000000e+00> : vector<32x256xf32>
    %43 = tpu.matmul %41, %42, %cst_31 {dimension_numbers = #tpu.dot_dimension_numbers<[1], [0], [0], [1], [0, 0, 1, 1], [], []>} : vector<32x128xbf16>, vector<128x256xbf16>, vector<32x256xf32> -> vector<32x256xf32>
    %44 = arith.addf %39, %43 : vector<32x256xf32>
    %c0_32 = arith.constant 0 : index
    %c0_33 = arith.constant 0 : index
    %45 = vector.load %arg4[%c0_32, %c0_33] : memref<1x256xf32, #tpu.memory_space<vmem>>, vector<1x256xf32>
    %46 = vector.broadcast %45 : vector<1x256xf32> to vector<32x256xf32>
    %47 = arith.addf %44, %46 : vector<32x256xf32>
    %cst_34 = arith.constant 0.000000e+00 : f32
    %48 = vector.broadcast %cst_34 : f32 to vector<32x256xf32>
    %49 = arith.maximumf %47, %48 : vector<32x256xf32>
    %c0_35 = arith.constant 0 : index
    %c0_36 = arith.constant 0 : index
    %50 = vector.load %arg5[%c0_35, %c0_36] : memref<32x256xf32, #tpu.memory_space<vmem>>, vector<32x256xf32>
    tpu.vector_store %arg5[%c0_35, %c0_36], %49 {strides = array<i32>} : memref<32x256xf32, #tpu.memory_space<vmem>>, vector<32x256xf32>,
    return
  }
}

module attributes {stable_mosaic.version = 11 : i64} {
  func.func @_deconv_kernel(%arg0: memref<86x64xf32, #tpu.memory_space<vmem>>, %arg1: memref<256x256xbf16, #tpu.memory_space<vmem>>, %arg2: memref<1x256xf32, #tpu.memory_space<vmem>>, %arg3: memref<72x256xf32, #tpu.memory_space<vmem>>) attributes {dimension_semantics = [], scalar_prefetch = 0 : i64, scratch_operands = 0 : i64, tpu.core_type = #tpu.core_type<tc>} {
    %c0 = arith.constant 0 : index
    %c0_0 = arith.constant 0 : index
    %0 = vector.load %arg0[%c0, %c0_0] : memref<86x64xf32, #tpu.memory_space<vmem>>, vector<72x64xf32>
    %1 = arith.truncf %0 : vector<72x64xf32> to vector<72x64xbf16>
    %c0_1 = arith.constant 0 : index
    %c0_2 = arith.constant 0 : index
    %2 = vector.load %arg1[%c0_1, %c0_2] : memref<256x256xbf16, #tpu.memory_space<vmem>>, vector<64x256xbf16>
    %cst = arith.constant dense<0.000000e+00> : vector<72x256xf32>
    %3 = tpu.matmul %1, %2, %cst {dimension_numbers = #tpu.dot_dimension_numbers<[1], [0], [0], [1], [0, 0, 1, 1], [], []>} : vector<72x64xbf16>, vector<64x256xbf16>, vector<72x256xf32> -> vector<72x256xf32>
    %c1 = arith.constant 1 : index
    %c0_3 = arith.constant 0 : index
    %4 = vector.load %arg0[%c1, %c0_3] : memref<86x64xf32, #tpu.memory_space<vmem>>, vector<72x64xf32>
    %5 = arith.truncf %4 : vector<72x64xf32> to vector<72x64xbf16>
    %c64 = arith.constant 64 : index
    %c0_4 = arith.constant 0 : index
    %6 = vector.load %arg1[%c64, %c0_4] : memref<256x256xbf16, #tpu.memory_space<vmem>>, vector<64x256xbf16>
    %cst_5 = arith.constant dense<0.000000e+00> : vector<72x256xf32>
    %7 = tpu.matmul %5, %6, %cst_5 {dimension_numbers = #tpu.dot_dimension_numbers<[1], [0], [0], [1], [0, 0, 1, 1], [], []>} : vector<72x64xbf16>, vector<64x256xbf16>, vector<72x256xf32> -> vector<72x256xf32>
    %8 = arith.addf %3, %7 : vector<72x256xf32>
    %c6 = arith.constant 6 : index
    %c0_6 = arith.constant 0 : index
    %9 = vector.load %arg0[%c6, %c0_6] : memref<86x64xf32, #tpu.memory_space<vmem>>, vector<72x64xf32>
    %10 = arith.truncf %9 : vector<72x64xf32> to vector<72x64xbf16>
    %c128 = arith.constant 128 : index
    %c0_7 = arith.constant 0 : index
    %11 = vector.load %arg1[%c128, %c0_7] : memref<256x256xbf16, #tpu.memory_space<vmem>>, vector<64x256xbf16>
    %cst_8 = arith.constant dense<0.000000e+00> : vector<72x256xf32>
    %12 = tpu.matmul %10, %11, %cst_8 {dimension_numbers = #tpu.dot_dimension_numbers<[1], [0], [0], [1], [0, 0, 1, 1], [], []>} : vector<72x64xbf16>, vector<64x256xbf16>, vector<72x256xf32> -> vector<72x256xf32>
    %13 = arith.addf %8, %12 : vector<72x256xf32>
    %c7 = arith.constant 7 : index
    %c0_9 = arith.constant 0 : index
    %14 = vector.load %arg0[%c7, %c0_9] : memref<86x64xf32, #tpu.memory_space<vmem>>, vector<72x64xf32>
    %15 = arith.truncf %14 : vector<72x64xf32> to vector<72x64xbf16>
    %c192 = arith.constant 192 : index
    %c0_10 = arith.constant 0 : index
    %16 = vector.load %arg1[%c192, %c0_10] : memref<256x256xbf16, #tpu.memory_space<vmem>>, vector<64x256xbf16>
    %cst_11 = arith.constant dense<0.000000e+00> : vector<72x256xf32>
    %17 = tpu.matmul %15, %16, %cst_11 {dimension_numbers = #tpu.dot_dimension_numbers<[1], [0], [0], [1], [0, 0, 1, 1], [], []>} : vector<72x64xbf16>, vector<64x256xbf16>, vector<72x256xf32> -> vector<72x256xf32>
    %18 = arith.addf %13, %17 : vector<72x256xf32>
    %c0_12 = arith.constant 0 : index
    %c0_13 = arith.constant 0 : index
    %19 = vector.load %arg2[%c0_12, %c0_13] : memref<1x256xf32, #tpu.memory_space<vmem>>, vector<1x256xf32>
    %20 = vector.broadcast %19 : vector<1x256xf32> to vector<72x256xf32>
    %21 = arith.addf %18, %20 : vector<72x256xf32>
    %cst_14 = arith.constant 0.000000e+00 : f32
    %22 = vector.broadcast %cst_14 : f32 to vector<72x256xf32>
    %23 = arith.maximumf %21, %22 : vector<72x256xf32>
    %c0_15 = arith.constant 0 : index
    %c0_16 = arith.constant 0 : index
    %24 = vector.load %arg3[%c0_15, %c0_16] : memref<72x256xf32, #tpu.memory_space<vmem>>, vector<72x256xf32>
    tpu.vector_store %arg3[%c0_15, %c0_16], %23 {strides = array<i32>} : memref<72x256xf32, #tpu.memory_space<vmem>>, vector<72x256xf32>,
    return
  }
}

module attributes {stable_mosaic.version = 11 : i64} {
  func.func @_deconv_kernel(%arg0: memref<218x64xf32, #tpu.memory_space<vmem>>, %arg1: memref<256x128xbf16, #tpu.memory_space<vmem>>, %arg2: memref<1x128xf32, #tpu.memory_space<vmem>>, %arg3: memref<200x128xf32, #tpu.memory_space<vmem>>) attributes {dimension_semantics = [], scalar_prefetch = 0 : i64, scratch_operands = 0 : i64, tpu.core_type = #tpu.core_type<tc>} {
    %c0 = arith.constant 0 : index
    %c0_0 = arith.constant 0 : index
    %0 = vector.load %arg0[%c0, %c0_0] : memref<218x64xf32, #tpu.memory_space<vmem>>, vector<200x64xf32>
    %1 = arith.truncf %0 : vector<200x64xf32> to vector<200x64xbf16>
    %c0_1 = arith.constant 0 : index
    %c0_2 = arith.constant 0 : index
    %2 = vector.load %arg1[%c0_1, %c0_2] : memref<256x128xbf16, #tpu.memory_space<vmem>>, vector<64x128xbf16>
    %cst = arith.constant dense<0.000000e+00> : vector<200x128xf32>
    %3 = tpu.matmul %1, %2, %cst {dimension_numbers = #tpu.dot_dimension_numbers<[1], [0], [0], [1], [0, 0, 1, 1], [], []>} : vector<200x64xbf16>, vector<64x128xbf16>, vector<200x128xf32> -> vector<200x128xf32>
    %c1 = arith.constant 1 : index
    %c0_3 = arith.constant 0 : index
    %4 = vector.load %arg0[%c1, %c0_3] : memref<218x64xf32, #tpu.memory_space<vmem>>, vector<200x64xf32>
    %5 = arith.truncf %4 : vector<200x64xf32> to vector<200x64xbf16>
    %c64 = arith.constant 64 : index
    %c0_4 = arith.constant 0 : index
    %6 = vector.load %arg1[%c64, %c0_4] : memref<256x128xbf16, #tpu.memory_space<vmem>>, vector<64x128xbf16>
    %cst_5 = arith.constant dense<0.000000e+00> : vector<200x128xf32>
    %7 = tpu.matmul %5, %6, %cst_5 {dimension_numbers = #tpu.dot_dimension_numbers<[1], [0], [0], [1], [0, 0, 1, 1], [], []>} : vector<200x64xbf16>, vector<64x128xbf16>, vector<200x128xf32> -> vector<200x128xf32>
    %8 = arith.addf %3, %7 : vector<200x128xf32>
    %c10 = arith.constant 10 : index
    %c0_6 = arith.constant 0 : index
    %9 = vector.load %arg0[%c10, %c0_6] : memref<218x64xf32, #tpu.memory_space<vmem>>, vector<200x64xf32>
    %10 = arith.truncf %9 : vector<200x64xf32> to vector<200x64xbf16>
    %c128 = arith.constant 128 : index
    %c0_7 = arith.constant 0 : index
    %11 = vector.load %arg1[%c128, %c0_7] : memref<256x128xbf16, #tpu.memory_space<vmem>>, vector<64x128xbf16>
    %cst_8 = arith.constant dense<0.000000e+00> : vector<200x128xf32>
    %12 = tpu.matmul %10, %11, %cst_8 {dimension_numbers = #tpu.dot_dimension_numbers<[1], [0], [0], [1], [0, 0, 1, 1], [], []>} : vector<200x64xbf16>, vector<64x128xbf16>, vector<200x128xf32> -> vector<200x128xf32>
    %13 = arith.addf %8, %12 : vector<200x128xf32>
    %c11 = arith.constant 11 : index
    %c0_9 = arith.constant 0 : index
    %14 = vector.load %arg0[%c11, %c0_9] : memref<218x64xf32, #tpu.memory_space<vmem>>, vector<200x64xf32>
    %15 = arith.truncf %14 : vector<200x64xf32> to vector<200x64xbf16>
    %c192 = arith.constant 192 : index
    %c0_10 = arith.constant 0 : index
    %16 = vector.load %arg1[%c192, %c0_10] : memref<256x128xbf16, #tpu.memory_space<vmem>>, vector<64x128xbf16>
    %cst_11 = arith.constant dense<0.000000e+00> : vector<200x128xf32>
    %17 = tpu.matmul %15, %16, %cst_11 {dimension_numbers = #tpu.dot_dimension_numbers<[1], [0], [0], [1], [0, 0, 1, 1], [], []>} : vector<200x64xbf16>, vector<64x128xbf16>, vector<200x128xf32> -> vector<200x128xf32>
    %18 = arith.addf %13, %17 : vector<200x128xf32>
    %c0_12 = arith.constant 0 : index
    %c0_13 = arith.constant 0 : index
    %19 = vector.load %arg2[%c0_12, %c0_13] : memref<1x128xf32, #tpu.memory_space<vmem>>, vector<1x128xf32>
    %20 = vector.broadcast %19 : vector<1x128xf32> to vector<200x128xf32>
    %21 = arith.addf %18, %20 : vector<200x128xf32>
    %cst_14 = arith.constant 0.000000e+00 : f32
    %22 = vector.broadcast %cst_14 : f32 to vector<200x128xf32>
    %23 = arith.maximumf %21, %22 : vector<200x128xf32>
    %c0_15 = arith.constant 0 : index
    %c0_16 = arith.constant 0 : index
    %24 = vector.load %arg3[%c0_15, %c0_16] : memref<200x128xf32, #tpu.memory_space<vmem>>, vector<200x128xf32>
    tpu.vector_store %arg3[%c0_15, %c0_16], %23 {strides = array<i32>} : memref<200x128xf32, #tpu.memory_space<vmem>>, vector<200x128xf32>,
    return
  }
}

module attributes {stable_mosaic.version = 11 : i64} {
  func.func @_deconv_kernel(%arg0: memref<674x32xf32, #tpu.memory_space<vmem>>, %arg1: memref<128x128xbf16, #tpu.memory_space<vmem>>, %arg2: memref<1x128xf32, #tpu.memory_space<vmem>>, %arg3: memref<648x128xf32, #tpu.memory_space<vmem>>) attributes {dimension_semantics = [], scalar_prefetch = 0 : i64, scratch_operands = 0 : i64, tpu.core_type = #tpu.core_type<tc>} {
    %c0 = arith.constant 0 : index
    %c0_0 = arith.constant 0 : index
    %0 = vector.load %arg0[%c0, %c0_0] : memref<674x32xf32, #tpu.memory_space<vmem>>, vector<648x32xf32>
    %1 = arith.truncf %0 : vector<648x32xf32> to vector<648x32xbf16>
    %c0_1 = arith.constant 0 : index
    %c0_2 = arith.constant 0 : index
    %2 = vector.load %arg1[%c0_1, %c0_2] : memref<128x128xbf16, #tpu.memory_space<vmem>>, vector<32x128xbf16>
    %cst = arith.constant dense<0.000000e+00> : vector<648x128xf32>
    %3 = tpu.matmul %1, %2, %cst {dimension_numbers = #tpu.dot_dimension_numbers<[1], [0], [0], [1], [0, 0, 1, 1], [], []>} : vector<648x32xbf16>, vector<32x128xbf16>, vector<648x128xf32> -> vector<648x128xf32>
    %c1 = arith.constant 1 : index
    %c0_3 = arith.constant 0 : index
    %4 = vector.load %arg0[%c1, %c0_3] : memref<674x32xf32, #tpu.memory_space<vmem>>, vector<648x32xf32>
    %5 = arith.truncf %4 : vector<648x32xf32> to vector<648x32xbf16>
    %c32 = arith.constant 32 : index
    %c0_4 = arith.constant 0 : index
    %6 = vector.load %arg1[%c32, %c0_4] : memref<128x128xbf16, #tpu.memory_space<vmem>>, vector<32x128xbf16>
    %cst_5 = arith.constant dense<0.000000e+00> : vector<648x128xf32>
    %7 = tpu.matmul %5, %6, %cst_5 {dimension_numbers = #tpu.dot_dimension_numbers<[1], [0], [0], [1], [0, 0, 1, 1], [], []>} : vector<648x32xbf16>, vector<32x128xbf16>, vector<648x128xf32> -> vector<648x128xf32>
    %8 = arith.addf %3, %7 : vector<648x128xf32>
    %c18 = arith.constant 18 : index
    %c0_6 = arith.constant 0 : index
    %9 = vector.load %arg0[%c18, %c0_6] : memref<674x32xf32, #tpu.memory_space<vmem>>, vector<648x32xf32>
    %10 = arith.truncf %9 : vector<648x32xf32> to vector<648x32xbf16>
    %c64 = arith.constant 64 : index
    %c0_7 = arith.constant 0 : index
    %11 = vector.load %arg1[%c64, %c0_7] : memref<128x128xbf16, #tpu.memory_space<vmem>>, vector<32x128xbf16>
    %cst_8 = arith.constant dense<0.000000e+00> : vector<648x128xf32>
    %12 = tpu.matmul %10, %11, %cst_8 {dimension_numbers = #tpu.dot_dimension_numbers<[1], [0], [0], [1], [0, 0, 1, 1], [], []>} : vector<648x32xbf16>, vector<32x128xbf16>, vector<648x128xf32> -> vector<648x128xf32>
    %13 = arith.addf %8, %12 : vector<648x128xf32>
    %c19 = arith.constant 19 : index
    %c0_9 = arith.constant 0 : index
    %14 = vector.load %arg0[%c19, %c0_9] : memref<674x32xf32, #tpu.memory_space<vmem>>, vector<648x32xf32>
    %15 = arith.truncf %14 : vector<648x32xf32> to vector<648x32xbf16>
    %c96 = arith.constant 96 : index
    %c0_10 = arith.constant 0 : index
    %16 = vector.load %arg1[%c96, %c0_10] : memref<128x128xbf16, #tpu.memory_space<vmem>>, vector<32x128xbf16>
    %cst_11 = arith.constant dense<0.000000e+00> : vector<648x128xf32>
    %17 = tpu.matmul %15, %16, %cst_11 {dimension_numbers = #tpu.dot_dimension_numbers<[1], [0], [0], [1], [0, 0, 1, 1], [], []>} : vector<648x32xbf16>, vector<32x128xbf16>, vector<648x128xf32> -> vector<648x128xf32>
    %18 = arith.addf %13, %17 : vector<648x128xf32>
    %c0_12 = arith.constant 0 : index
    %c0_13 = arith.constant 0 : index
    %19 = vector.load %arg2[%c0_12, %c0_13] : memref<1x128xf32, #tpu.memory_space<vmem>>, vector<1x128xf32>
    %20 = vector.broadcast %19 : vector<1x128xf32> to vector<648x128xf32>
    %21 = arith.addf %18, %20 : vector<648x128xf32>
    %cst_14 = arith.constant 0.000000e+00 : f32
    %22 = vector.broadcast %cst_14 : f32 to vector<648x128xf32>
    %23 = arith.maximumf %21, %22 : vector<648x128xf32>
    %c0_15 = arith.constant 0 : index
    %c0_16 = arith.constant 0 : index
    %24 = vector.load %arg3[%c0_15, %c0_16] : memref<648x128xf32, #tpu.memory_space<vmem>>, vector<648x128xf32>
    tpu.vector_store %arg3[%c0_15, %c0_16], %23 {strides = array<i32>} : memref<648x128xf32, #tpu.memory_space<vmem>>, vector<648x128xf32>,
    return
  }
}

module attributes {stable_mosaic.version = 11 : i64} {
  func.func @_deconv_last_kernel(%arg0: memref<32x2354xf32, #tpu.memory_space<vmem>>, %arg1: memref<4x128xbf16, #tpu.memory_space<vmem>>, %arg2: memref<4x1xf32, #tpu.memory_space<vmem>>, %arg3: memref<4x2312xf32, #tpu.memory_space<vmem>>) attributes {dimension_semantics = [], scalar_prefetch = 0 : i64, scratch_operands = 0 : i64, tpu.core_type = #tpu.core_type<tc>} {
    %c0 = arith.constant 0 : index
    %c0_0 = arith.constant 0 : index
    %0 = vector.load %arg0[%c0, %c0_0] : memref<32x2354xf32, #tpu.memory_space<vmem>>, vector<32x2312xf32>
    %c0_1 = arith.constant 0 : index
    %c1 = arith.constant 1 : index
    %1 = vector.load %arg0[%c0_1, %c1] : memref<32x2354xf32, #tpu.memory_space<vmem>>, vector<32x2312xf32>
    %c0_2 = arith.constant 0 : index
    %c34 = arith.constant 34 : index
    %2 = vector.load %arg0[%c0_2, %c34] : memref<32x2354xf32, #tpu.memory_space<vmem>>, vector<32x2312xf32>
    %c0_3 = arith.constant 0 : index
    %c35 = arith.constant 35 : index
    %3 = vector.load %arg0[%c0_3, %c35] : memref<32x2354xf32, #tpu.memory_space<vmem>>, vector<32x2312xf32>
    %4 = tpu.concatenate %0, %1, %2, %3 in 0 : vector<32x2312xf32>, vector<32x2312xf32>, vector<32x2312xf32>, vector<32x2312xf32> -> vector<128x2312xf32>
    %5 = arith.truncf %4 : vector<128x2312xf32> to vector<128x2312xbf16>
    %c0_4 = arith.constant 0 : index
    %c0_5 = arith.constant 0 : index
    %6 = vector.load %arg1[%c0_4, %c0_5] : memref<4x128xbf16, #tpu.memory_space<vmem>>, vector<4x128xbf16>
    %cst = arith.constant dense<0.000000e+00> : vector<4x2312xf32>
    %7 = tpu.matmul %6, %5, %cst {dimension_numbers = #tpu.dot_dimension_numbers<[1], [0], [0], [1], [0, 0, 1, 1], [], []>} : vector<4x128xbf16>, vector<128x2312xbf16>, vector<4x2312xf32> -> vector<4x2312xf32>
    %c0_6 = arith.constant 0 : index
    %c0_7 = arith.constant 0 : index
    %8 = vector.load %arg2[%c0_6, %c0_7] : memref<4x1xf32, #tpu.memory_space<vmem>>, vector<4x1xf32>
    %9 = vector.broadcast %8 : vector<4x1xf32> to vector<4x2312xf32>
    %10 = arith.addf %7, %9 : vector<4x2312xf32>
    %c0_8 = arith.constant 0 : index
    %c0_9 = arith.constant 0 : index
    %11 = vector.load %arg3[%c0_8, %c0_9] : memref<4x2312xf32, #tpu.memory_space<vmem>>, vector<4x2312xf32>
    tpu.vector_store %arg3[%c0_8, %c0_9], %10 {strides = array<i32>} : memref<4x2312xf32, #tpu.memory_space<vmem>>, vector<4x2312xf32>,
    return
  }
}

</mosaic_0001>

<bundles_post_ra>
// kernel: conv_decoder_forward.6
= control target key start
LH: loop header
LB: loop body
LE: loop exit
PB: predicated region body
PF: predicated region fallthrough
CT: control target
= control target key end

     0   :  { %8 = vsyncpa [#allocation3], 0  ;;  %s1258_s0 = inlined_call_operand.vmem [shape: f32[86,64], index: 0, kind: input, shape index: {}]   ;;  %s1259_s1 = inlined_call_operand.hbm [shape: bf16[256,256], index: 1, kind: input, shape index: {}]   ;;  %s1260_s2 = inlined_call_operand.hbm [shape: f32[1,256], index: 2, kind: input, shape index: {}]   ;;  %s1261_s3 = inlined_call_operand.vmem [shape: f32[72,256], index: 3, kind: output, shape index: {}]  }
   0x1   :  { %9 = vsyncpa [#allocation5], 0  ;;  %s931_s12 = smov [#allocation2]  }
   0x2   :  { %s17_s13 = sshll.u32 %s931_s12, 4  ;;  %s18_s13 = int_to_ptr.vmem [resolvable:$true] %s17_s13 }
   0x3   :  { %s895_s14 = scalar_lea.vmem %s18_s13, 4096  ;;  %p900_p1 = scmp.lt.s32.totalorder %s18_s13, %s18_s13 }
   0x4   :  { %p896_p0 = scmp.ne.s32.totalorder %s18_s13, %s895_s14  ;;  %p901_p2 = scmp.lt.s32.totalorder %s895_s14, %s895_s14 }
   0x6   :  { %p902_p3 = por %p901_p2, %p900_p1 }
   0x8   :  { %p903_p4 = pnand %p902_p3, %p896_p0 }
   0xa   :  { %906 = shalt.err (!%p903_p4)
}
   0xb   :  { %s932_s15 = smov 128   ;;  %s933_s16 = smov 8  }
   0xc   :  { %23 = dma.hbm_to_vmem [thread:$0]  %s1259_s1, 4096, %s18_s13, [#allocation3], %s932_s15, %s932_s15, %s933_s16  }
   0xd   :  { %s934_s19 = smov [#allocation4]  }
   0xe   :  { %s30_s20 = sshll.u32 %s934_s19, 4  ;;  %s31_s20 = int_to_ptr.vmem [resolvable:$true] %s30_s20 }
   0xf   :  { %s915_s21 = scalar_lea.vmem %s31_s20, 32  ;;  %p920_p6 = scmp.lt.s32.totalorder %s31_s20, %s31_s20 }
  0x10   :  { %p916_p5 = scmp.ne.s32.totalorder %s31_s20, %s915_s21  ;;  %p921_p7 = scmp.lt.s32.totalorder %s915_s21, %s915_s21 }
  0x12   :  { %p922_p8 = por %p921_p7, %p920_p6 }
  0x14   :  { %p923_p9 = pnand %p922_p8, %p916_p5 }
  0x16   :  { %926 = shalt.err (!%p923_p9)
}
  0x17   :  { %33 = dma.hbm_to_vmem [thread:$0]  %s1260_s2, 32, %s31_s20, [#allocation5]  }
  0x18   :  { %927 = dma.done.wait [#allocation3], 4096  }
  0x19   :  { %928 = vsyncadd [#allocation3], 4294963200 }
  0x1a   :  { %929 = dma.done.wait [#allocation5], 32  }
  0x1b   :  { %930 = vsyncadd [#allocation5], 4294967264  ;;  %v935_v0 = vmov 0   ;;  %v839_v1 = vld [vmem:[#allocation2 + $0x74] ss:$8 sps:$4 sm:$0xff]   ;;  %v63_v17 = vld [vmem:[%s1258_s0 + $0x1] sm:$0xff] }
  0x1c   :  { %173 = vmatprep.mubr.bf16.mxu0 %v935_v0  ;;  %309 = vmatprep.mubr.bf16.mxu1 %v935_v0  ;;  %v841_v2 = vld [vmem:[#allocation2 + $0x34] ss:$8 sps:$4 sm:$0xff]   ;;  %v843_v3 = vld [vmem:[#allocation2 + $0x70] ss:$8 sps:$4 sm:$0xff]   ;;  %v845_v5 = vld [vmem:[#allocation2 + $0x64] ss:$8 sps:$4 sm:$0xff]  }
  0x1d   :  { %149 = vmatprep.subr.bf16.mxu0 %v839_v1  ;;  %v844_v4 = vld [vmem:[#allocation2 + $0x30] ss:$8 sps:$4 sm:$0xff]   ;;  %285 = vmatprep.subr.bf16.mxu1 %v841_v2  ;;  %v847_v6 = vld [vmem:[#allocation2 + $0x24] ss:$8 sps:$4 sm:$0xff]   ;;  %v849_v7 = vld [vmem:[#allocation2 + $0x60] ss:$8 sps:$4 sm:$0xff]  }
  0x1e   :  { %150 = vmatpush1.bf16.msra.mxu0 %v843_v3  ;;  %286 = vmatpush1.bf16.msra.mxu1 %v844_v4  ;;  %v850_v8 = vld [vmem:[#allocation2 + $0x20] ss:$8 sps:$4 sm:$0xff]   ;;  %v851_v9 = vld [vmem:[#allocation2 + $0x54] ss:$8 sps:$4 sm:$0xff]   ;;  %v855_v11 = vld [vmem:[#allocation2 + $0x50] ss:$8 sps:$4 sm:$0xff]  }
  0x1f   :  { %151 = vmatprep.subr.bf16.mxu0 %v845_v5  ;;  %287 = vmatprep.subr.bf16.mxu1 %v847_v6  ;;  %v853_v10 = vld [vmem:[#allocation2 + $0x14] ss:$8 sps:$4 sm:$0xff]   ;;  %v856_v12 = vld [vmem:[#allocation2 + $0x10] ss:$8 sps:$4 sm:$0xff]   ;;  %v857_v13 = vld [vmem:[#allocation2 + $0x44] ss:$8 sps:$4 sm:$0xff]  }
  0x20   :  { %v859_v14 = vld [vmem:[#allocation2 + $0x4] ss:$8 sps:$4 sm:$0xff]   ;;  %v861_v15 = vld [vmem:[#allocation2 + $0x40] ss:$8 sps:$4 sm:$0xff]   ;;  %v865_v21 = vld [vmem:[#allocation2 + $0xb4] ss:$8 sps:$4 sm:$0xff]  }
  0x21   :  { %v862_v16 = vld [vmem:[#allocation2] ss:$8 sps:$4 sm:$0xff]   ;;  %v868_v22 = vld [vmem:[#allocation2 + $0xf4] ss:$8 sps:$4 sm:$0xff]   ;;  %v863_v25 = vld [vmem:[#allocation2 + $0xb0] ss:$8 sps:$4 sm:$0xff]  }
  0x22   :  { %152 = vmatpush1.bf16.msra.mxu0 %v849_v7  ;;  %288 = vmatpush1.bf16.msra.mxu1 %v850_v8  ;;  %v64_v18 = vld [vmem:[%s1258_s0 + $0x9] sm:$0xff]  ;;  %v41_v19 = vld [vmem:[%s1258_s0] sm:$0xff]  ;;  %vm125_vm0 = vcmask 523264   ;;  %v65_v27 = vld [vmem:[%s1258_s0 + $0x11] sm:$0xff] }
  0x23   :  { %153 = vmatprep.subr.bf16.mxu0 %v851_v9  ;;  %289 = vmatprep.subr.bf16.mxu1 %v853_v10  ;;  %v42_v20 = vld [vmem:[%s1258_s0 + $0x8] sm:$0xff]  ;;  %v72_v23 = vpack.c.bf16 %v64_v18, %v63_v17  ;;  %v866_v26 = vld [vmem:[#allocation2 + $0xf0] ss:$8 sps:$4 sm:$0xff]   ;;  %v877_v35 = vld [vmem:[#allocation2 + $0x94] ss:$8 sps:$4 sm:$0xff]  }
  0x24   :  { %v50_v24 = vpack.c.bf16 %v42_v20, %v41_v19  ;;  %v66_v28 = vld [vmem:[%s1258_s0 + $0x19] sm:$0xff]  ;;  %v871_v29 = vld [vmem:[#allocation2 + $0xa4] ss:$8 sps:$4 sm:$0xff]   ;;  %v43_v31 = vld [vmem:[%s1258_s0 + $0x10] sm:$0xff] }
  0x25   :  { %v874_v30 = vld [vmem:[#allocation2 + $0xe4] ss:$8 sps:$4 sm:$0xff]   ;;  %v44_v32 = vld [vmem:[%s1258_s0 + $0x18] sm:$0xff]  ;;  %v869_v33 = vld [vmem:[#allocation2 + $0xa0] ss:$8 sps:$4 sm:$0xff]   ;;  %v73_v37 = vpack.c.bf16 %v66_v28, %v65_v27 }
  0x26   :  { %154 = vmatpush1.bf16.msra.mxu0 %v855_v11  ;;  %290 = vmatpush1.bf16.msra.mxu1 %v856_v12  ;;  %v872_v34 = vld [vmem:[#allocation2 + $0xe0] ss:$8 sps:$4 sm:$0xff]   ;;  %v880_v36 = vld [vmem:[#allocation2 + $0xd4] ss:$8 sps:$4 sm:$0xff]   ;;  %v51_v38 = vpack.c.bf16 %v44_v32, %v43_v31  ;;  %v875_v39 = vld [vmem:[#allocation2 + $0x90] ss:$8 sps:$4 sm:$0xff]  }
  0x27   :  { %155 = vmatprep.subr.bf16.mxu0 %v857_v13  ;;  %291 = vmatprep.subr.bf16.mxu1 %v859_v14  ;;  %v878_v40 = vld [vmem:[#allocation2 + $0xd0] ss:$8 sps:$4 sm:$0xff]   ;;  %v883_v41 = vld [vmem:[#allocation2 + $0x84] ss:$8 sps:$4 sm:$0xff]   ;;  %v881_v47 = vld [vmem:[#allocation2 + $0x80] ss:$8 sps:$4 sm:$0xff]  }
  0x28   :  { %v67_v42 = vld [vmem:[%s1258_s0 + $0x21] sm:$0xff]  ;;  %v68_v44 = vld [vmem:[%s1258_s0 + $0x29] sm:$0xff]  ;;  %v69_v51 = vld [vmem:[%s1258_s0 + $0x31] sm:$0xff] }
  0x29   :  { %v886_v43 = vld [vmem:[#allocation2 + $0xc4] ss:$8 sps:$4 sm:$0xff]   ;;  %v884_v48 = vld [vmem:[#allocation2 + $0xc0] ss:$8 sps:$4 sm:$0xff]   ;;  %v74_v49 = vpack.c.bf16 %v68_v44, %v67_v42  ;;  %v47_v53 = vld [vmem:[%s1258_s0 + $0x30] sm:$0xff] }
  0x2a   :  { %156 = vmatpush1.bf16.msra.mxu0 %v861_v15  ;;  %292 = vmatpush1.bf16.msra.mxu1 %v862_v16  ;;  %v45_v45 = vld [vmem:[%s1258_s0 + $0x20] sm:$0xff]  ;;  %v46_v46 = vld [vmem:[%s1258_s0 + $0x28] sm:$0xff]  ;;  %v48_v54 = vld [vmem:[%s1258_s0 + $0x38] sm:$0xff] }
  0x2b   :  { %443 = vmatprep.subr.bf16.mxu0 %v865_v21  ;;  %619 = vmatprep.subr.bf16.mxu1 %v868_v22  ;;  %v52_v50 = vpack.c.bf16 %v46_v46, %v45_v45  ;;  %v70_v52 = vld [vmem:[%s1258_s0 + $0x39] sm:$0xff]  ;;  %v53_v56 = vpack.c.bf16 %v48_v54, %v47_v53  ;;  %v71_v57 = vld [vmem:[%s1258_s0 + $0x41] sm:$0xff]  ;;  %v359_v62 = vld [vmem:[%s1258_s0 + $0xe] sm:$0xff] }
  0x2c   :  { %v75_v55 = vpack.c.bf16 %v70_v52, %v69_v51  ;;  %v49_v58 = vld [vmem:[%s1258_s0 + $0x40] sm:$0xff]  ;;  %v76_v59 = vpack.c.bf16 %v71_v57, %v71_v57  ;;  %v535_v1 = vld [vmem:[%s1258_s0 + $0xf] sm:$0xff]  ;;  %v536_v6 = vld [vmem:[%s1258_s0 + $0x17] sm:$0xff] }
  0x2d   :  { %790 = vmatmul.mubr.msk.bf16.vlgmr.msra.gmra.mxu0 %vm125_vm0, %v72_v23  ;;  %803 = vmatmul.mubr.msk.bf16.vlgmr.msra.gmra.mxu1 %vm125_vm0, %v50_v24  ;;  %v54_v60 = vpack.c.bf16 %v49_v58, %v49_v58  ;;  %v358_v61 = vld [vmem:[%s1258_s0 + $0x6] sm:$0xff]  ;;  %v360_v4 = vld [vmem:[%s1258_s0 + $0x16] sm:$0xff]  ;;  %v361_v5 = vld [vmem:[%s1258_s0 + $0x1e] sm:$0xff] }
  0x2e   :  { %444 = vmatpush1.bf16.msra.mxu0 %v863_v25  ;;  %620 = vmatpush1.bf16.msra.mxu1 %v866_v26  ;;  %v534_v63 = vld [vmem:[%s1258_s0 + $0x7] sm:$0xff]  ;;  %v367_v2 = vpack.c.bf16 %v359_v62, %v358_v61  ;;  %v537_v7 = vld [vmem:[%s1258_s0 + $0x1f] sm:$0xff]  ;;  %v368_v8 = vpack.c.bf16 %v361_v5, %v360_v4  ;;  %v539_v13 = vld [vmem:[%s1258_s0 + $0x2f] sm:$0xff] }
  0x2f   :  { %183 = vmatprep.mubr.bf16.mxu0 %v935_v0  ;;  %319 = vmatprep.mubr.bf16.mxu1 %v935_v0  ;;  %v543_v3 = vpack.c.bf16 %v535_v1, %v534_v63  ;;  %v544_v9 = vpack.c.bf16 %v537_v7, %v536_v6  ;;  %v362_v10 = vld [vmem:[%s1258_s0 + $0x26] sm:$0xff]  ;;  %v363_v11 = vld [vmem:[%s1258_s0 + $0x2e] sm:$0xff]  ;;  %v364_v16 = vld [vmem:[%s1258_s0 + $0x36] sm:$0xff] }
  0x30   :  { %445 = vmatprep.subr.bf16.mxu0 %v871_v29  ;;  %621 = vmatprep.subr.bf16.mxu1 %v874_v30  ;;  %v538_v12 = vld [vmem:[%s1258_s0 + $0x27] sm:$0xff]  ;;  %v369_v14 = vpack.c.bf16 %v363_v11, %v362_v10  ;;  %v365_v17 = vld [vmem:[%s1258_s0 + $0x3e] sm:$0xff] }
  0x31   :  { %v545_v15 = vpack.c.bf16 %v539_v13, %v538_v12  ;;  %v540_v18 = vld [vmem:[%s1258_s0 + $0x37] sm:$0xff]  ;;  %v541_v19 = vld [vmem:[%s1258_s0 + $0x3f] sm:$0xff]  ;;  %v370_v20 = vpack.c.bf16 %v365_v17, %v364_v16  ;;  %v542_v23 = vld [vmem:[%s1258_s0 + $0x47] sm:$0xff] }
  0x32   :  { %446 = vmatpush1.bf16.msra.mxu0 %v869_v33  ;;  %622 = vmatpush1.bf16.msra.mxu1 %v872_v34  ;;  %v546_v21 = vpack.c.bf16 %v541_v19, %v540_v18  ;;  %v366_v22 = vld [vmem:[%s1258_s0 + $0x46] sm:$0xff]  ;;  %v547_v25 = vpack.c.bf16 %v542_v23, %v542_v23  ;;  %v710_v5 = vld [vmem:[#allocation4] sm:$0x3] }
  0x33   :  { %447 = vmatprep.subr.bf16.mxu0 %v877_v35  ;;  %623 = vmatprep.subr.bf16.mxu1 %v880_v36  ;;  %v371_v24 = vpack.c.bf16 %v366_v22, %v366_v22 }
  0x35   :  { %791 = vmatmul.mubr.msk.bf16.gmra.mxu0 %vm125_vm0, %v73_v37  ;;  %804 = vmatmul.mubr.msk.bf16.gmra.mxu1 %vm125_vm0, %v51_v38 }
  0x36   :  { %193 = vmatprep.mubr.bf16.mxu0 %v935_v0  ;;  %329 = vmatprep.mubr.bf16.mxu1 %v935_v0 }
  0x37   :  { %448 = vmatpush1.bf16.msra.mxu0 %v875_v39  ;;  %624 = vmatpush1.bf16.msra.mxu1 %v878_v40 }
  0x38   :  { %449 = vmatprep.subr.bf16.mxu0 %v883_v41  ;;  %625 = vmatprep.subr.bf16.mxu1 %v886_v43 }
  0x3b   :  { %450 = vmatpush1.bf16.msra.mxu0 %v881_v47  ;;  %626 = vmatpush1.bf16.msra.mxu1 %v884_v48 }
  0x3d   :  { %792 = vmatmul.mubr.msk.bf16.gmra.mxu0 %vm125_vm0, %v74_v49  ;;  %805 = vmatmul.mubr.msk.bf16.gmra.mxu1 %vm125_vm0, %v52_v50 }
  0x3e   :  { %203 = vmatprep.mubr.bf16.mxu0 %v935_v0  ;;  %339 = vmatprep.mubr.bf16.mxu1 %v935_v0 }
  0x45   :  { %793 = vmatmul.mubr.msk.bf16.gmra.mxu0 %vm125_vm0, %v75_v55  ;;  %806 = vmatmul.mubr.msk.bf16.gmra.mxu1 %vm125_vm0, %v53_v56  ;;  %v712_v55 = vlaneseq }
  0x46   :  { %213 = vmatprep.mubr.bf16.mxu0 %v935_v0  ;;  %349 = vmatprep.mubr.bf16.mxu1 %v935_v0 }
  0x4d   :  { %794 = vmatmul.mubr.msk.bf16.gmra.mxu0 %vm125_vm0, %v76_v59  ;;  %807 = vmatmul.mubr.msk.bf16.gmra.mxu1 %vm125_vm0, %v54_v60  ;;  %v713_v60 = vshrl.u32 %v712_v55, 7 }
  0x4e   :  { %467 = vmatprep.mubr.bf16.mxu0 %v935_v0  ;;  %643 = vmatprep.mubr.bf16.mxu1 %v935_v0 }
  0x4f   :  { %v718_v7 = vsub.s32 1, %v713_v60 }
  0x51   :  { %v1160_v18 = vrot.slane %v710_v5, %v718_v7 }
  0x55   :  { %816 = vmatmul.mubr.msk.bf16.vlgmr.msra.gmra.mxu0 %vm125_vm0, %v367_v2  ;;  %829 = vmatmul.mubr.msk.bf16.vlgmr.msra.gmra.mxu1 %vm125_vm0, %v543_v3  ;;  %v714_v2 = vsub.s32 0, %v713_v60 }
  0x56   :  { %477 = vmatprep.mubr.bf16.mxu0 %v935_v0  ;;  %653 = vmatprep.mubr.bf16.mxu1 %v935_v0 }
  0x57   :  { %v1158_v12 = vrot.slane %v710_v5, %v714_v2 }
  0x5d   :  { %817 = vmatmul.mubr.msk.bf16.gmra.mxu0 %vm125_vm0, %v368_v8  ;;  %830 = vmatmul.mubr.msk.bf16.gmra.mxu1 %vm125_vm0, %v544_v9 }
  0x5e   :  { %487 = vmatprep.mubr.bf16.mxu0 %v935_v0  ;;  %663 = vmatprep.mubr.bf16.mxu1 %v935_v0 }
  0x65   :  { %818 = vmatmul.mubr.msk.bf16.gmra.mxu0 %vm125_vm0, %v369_v14  ;;  %831 = vmatmul.mubr.msk.bf16.gmra.mxu1 %vm125_vm0, %v545_v15 }
  0x66   :  { %497 = vmatprep.mubr.bf16.mxu0 %v935_v0  ;;  %673 = vmatprep.mubr.bf16.mxu1 %v935_v0 }
  0x6d   :  { %819 = vmatmul.mubr.msk.bf16.gmra.mxu0 %vm125_vm0, %v370_v20  ;;  %832 = vmatmul.mubr.msk.bf16.gmra.mxu1 %vm125_vm0, %v546_v21 }
  0x6e   :  { %507 = vmatprep.mubr.bf16.mxu0 %v935_v0  ;;  %683 = vmatprep.mubr.bf16.mxu1 %v935_v0 }
  0x75   :  { %820 = vmatmul.mubr.msk.bf16.gmra.mxu0 %vm125_vm0, %v371_v24  ;;  %833 = vmatmul.mubr.msk.bf16.gmra.mxu1 %vm125_vm0, %v547_v25 }
  0xed   :  { %v175_v26 = vpop.f32.mrf.mxu0  ;;  %v311_v27 = vpop.f32.mrf.mxu1 }
  0xee   :  { %v312_v6 = vadd.f32 %v311_v27, %v175_v26 }
  0xef   :  { %v177_v28 = vpop.f32.mrf.mxu0  ;;  %v313_v29 = vpop.f32.mrf.mxu1 }
  0xf0   :  { %v314_v10 = vadd.f32 %v313_v29, %v177_v28 }
  0xf1   :  { %v179_v30 = vpop.f32.mrf.mxu0  ;;  %v315_v0 = vpop.f32.mrf.mxu1 }
  0xf2   :  { %v316_v15 = vadd.f32 %v315_v0, %v179_v30 }
  0xf3   :  { %v181_v31 = vpop.f32.mrf.mxu0  ;;  %v317_v32 = vpop.f32.mrf.mxu1 }
  0xf4   :  { %v318_v21 = vadd.f32 %v317_v32, %v181_v31 }
  0xf5   :  { %v185_v33 = vpop.f32.mrf.mxu0  ;;  %v321_v34 = vpop.f32.mrf.mxu1 }
  0xf6   :  { %v322_v25 = vadd.f32 %v321_v34, %v185_v33 }
  0xf7   :  { %v187_v35 = vpop.f32.mrf.mxu0  ;;  %v323_v36 = vpop.f32.mrf.mxu1 }
  0xf8   :  { %v324_v30 = vadd.f32 %v323_v36, %v187_v35 }
  0xf9   :  { %v1110_v37 = vpop.f32.mrf.mxu0  ;;  %v1112_v38 = vpop.f32.mrf.mxu1 }
  0xfa   :  { %v326_v33 = vadd.f32 %v1112_v38, %v1110_v37 }
  0xfb   :  { %v1114_v39 = vpop.f32.mrf.mxu0  ;;  %v1116_v40 = vpop.f32.mrf.mxu1 }
  0xfd   :  { %v1118_v41 = vpop.f32.mrf.mxu0  ;;  %v1120_v42 = vpop.f32.mrf.mxu1 }
  0xff   :  { %v1122_v43 = vpop.f32.mrf.mxu0  ;;  %v1124_v44 = vpop.f32.mrf.mxu1 }
 0x101   :  { %v1126_v45 = vpop.f32.mrf.mxu0  ;;  %v1128_v46 = vpop.f32.mrf.mxu1 }
 0x103   :  { %v1130_v47 = vpop.f32.mrf.mxu0  ;;  %v1132_v48 = vpop.f32.mrf.mxu1 }
 0x105   :  { %v1134_v49 = vpop.f32.mrf.mxu0  ;;  %v1136_v50 = vpop.f32.mrf.mxu1 }
 0x107   :  { %v1138_v51 = vpop.f32.mrf.mxu0  ;;  %v1140_v52 = vpop.f32.mrf.mxu1 }
 0x109   :  { %v1142_v53 = vpop.f32.mrf.mxu0  ;;  %v1144_v54 = vpop.f32.mrf.mxu1 }
 0x10b   :  { %v1146_v56 = vpop.f32.mrf.mxu0  ;;  %v1148_v57 = vpop.f32.mrf.mxu1 }
 0x10d   :  { %v1150_v58 = vpop.f32.mrf.mxu0  ;;  %v1152_v59 = vpop.f32.mrf.mxu1 }
 0x10f   :  { %v1154_v61 = vpop.f32.mrf.mxu0  ;;  %v1156_v62 = vpop.f32.mrf.mxu1 }
 0x111   :  { %v219_v63 = vpop.f32.mrf.mxu0  ;;  %v355_v1 = vpop.f32.mrf.mxu1 }
 0x113   :  { %v220_v3 = vpop.f32.mrf.mxu0  ;;  %v356_v4 = vpop.f32.mrf.mxu1 }
 0x115   :  { %v469_v8 = vpop.f32.mrf.mxu0  ;;  %v645_v9 = vpop.f32.mrf.mxu1 }
 0x116   :  { %v516_v11 = vadd.f32 %v469_v8, %v312_v6  ;;  %v328_v6 = vadd.f32 %v1116_v40, %v1114_v39 }
 0x117   :  { %v471_v13 = vpop.f32.mrf.mxu0  ;;  %v647_v14 = vpop.f32.mrf.mxu1 }
 0x118   :  { %v692_v16 = vadd.f32 %v645_v9, %v516_v11  ;;  %v517_v17 = vadd.f32 %v471_v13, %v314_v10  ;;  %v332_v11 = vadd.f32 %v1120_v42, %v1118_v41 }
 0x119   :  { %v473_v19 = vpop.f32.mrf.mxu0  ;;  %v649_v20 = vpop.f32.mrf.mxu1 }
 0x11a   :  { %v722_v22 = vadd.f32 %v1158_v12, %v692_v16  ;;  %v693_v23 = vadd.f32 %v647_v14, %v517_v17  ;;  %v518_v24 = vadd.f32 %v473_v19, %v316_v15  ;;  %v334_v17 = vadd.f32 %v1124_v44, %v1122_v43 }
 0x11b   :  { %v475_v26 = vpop.f32.mrf.mxu0  ;;  %v651_v27 = vpop.f32.mrf.mxu1 }
 0x11c   :  { %v740_v28 = vmax.f32 %v722_v22, 0.0  ;;  %v723_v29 = vadd.f32 %v1160_v18, %v693_v23  ;;  %v694_v55 = vadd.f32 %v649_v20, %v518_v24  ;;  %v519_v60 = vadd.f32 %v475_v26, %v318_v21 }
 0x11d   :  { %v479_v0 = vpop.f32.mrf.mxu0  ;;  %v655_v63 = vpop.f32.mrf.mxu1  ;;  %v336_v23 = vadd.f32 %v1128_v46, %v1126_v45 }
 0x11e   :  { %758 = vst [vmem:[%s1261_s3] sm:$0xff] %v740_v28  ;;  %v741_v31 = vmax.f32 %v723_v29, 0.0  ;;  %v724_v32 = vadd.f32 %v1158_v12, %v694_v55  ;;  %v695_v1 = vadd.f32 %v651_v27, %v519_v60  ;;  %v520_v2 = vadd.f32 %v479_v0, %v322_v25 }
 0x11f   :  { %v481_v34 = vpop.f32.mrf.mxu0  ;;  %v657_v3 = vpop.f32.mrf.mxu1  ;;  %v338_v28 = vadd.f32 %v1132_v48, %v1130_v47  ;;  %v342_v0 = vadd.f32 %v1136_v50, %v1134_v49 }
 0x120   :  { %759 = vst [vmem:[%s1261_s3 + $0x8] sm:$0xff] %v741_v31  ;;  %v742_v35 = vmax.f32 %v724_v32, 0.0  ;;  %v725_v36 = vadd.f32 %v1160_v18, %v695_v1  ;;  %v696_v4 = vadd.f32 %v655_v63, %v520_v2  ;;  %v521_v5 = vadd.f32 %v481_v34, %v324_v30 }
 0x121   :  { %v483_v7 = vpop.f32.mrf.mxu0  ;;  %v659_v8 = vpop.f32.mrf.mxu1  ;;  %v344_v2 = vadd.f32 %v1140_v52, %v1138_v51 }
 0x122   :  { %760 = vst [vmem:[%s1261_s3 + $0x10] sm:$0xff] %v742_v35  ;;  %v743_v37 = vmax.f32 %v725_v36, 0.0  ;;  %v726_v38 = vadd.f32 %v1158_v12, %v696_v4  ;;  %v697_v9 = vadd.f32 %v657_v3, %v521_v5  ;;  %v522_v10 = vadd.f32 %v483_v7, %v326_v33 }
 0x123   :  { %v485_v13 = vpop.f32.mrf.mxu0  ;;  %v661_v14 = vpop.f32.mrf.mxu1  ;;  %v346_v36 = vadd.f32 %v1144_v54, %v1142_v53 }
 0x124   :  { %761 = vst [vmem:[%s1261_s3 + $0x18] sm:$0xff] %v743_v37  ;;  %v744_v39 = vmax.f32 %v726_v38, 0.0  ;;  %v727_v40 = vadd.f32 %v1160_v18, %v697_v9  ;;  %v698_v15 = vadd.f32 %v659_v8, %v522_v10  ;;  %v523_v16 = vadd.f32 %v485_v13, %v328_v6 }
 0x125   :  { %v489_v19 = vpop.f32.mrf.mxu0  ;;  %v665_v20 = vpop.f32.mrf.mxu1  ;;  %v348_v8 = vadd.f32 %v1148_v57, %v1146_v56 }
 0x126   :  { %762 = vst [vmem:[%s1261_s3 + $0x20] sm:$0xff] %v744_v39  ;;  %v745_v41 = vmax.f32 %v727_v40, 0.0  ;;  %v728_v42 = vadd.f32 %v1158_v12, %v698_v15  ;;  %v699_v21 = vadd.f32 %v661_v14, %v523_v16  ;;  %v524_v22 = vadd.f32 %v489_v19, %v332_v11 }
 0x127   :  { %v491_v24 = vpop.f32.mrf.mxu0  ;;  %v667_v25 = vpop.f32.mrf.mxu1  ;;  %v352_v11 = vadd.f32 %v1152_v59, %v1150_v58  ;;  %v354_v15 = vadd.f32 %v1156_v62, %v1154_v61 }
 0x128   :  { %763 = vst [vmem:[%s1261_s3 + $0x28] sm:$0xff] %v745_v41  ;;  %v746_v43 = vmax.f32 %v728_v42, 0.0  ;;  %v729_v44 = vadd.f32 %v1160_v18, %v699_v21  ;;  %v700_v26 = vadd.f32 %v665_v20, %v524_v22  ;;  %v525_v27 = vadd.f32 %v491_v24, %v334_v17 }
 0x129   :  { %v493_v29 = vpop.f32.mrf.mxu0  ;;  %v669_v55 = vpop.f32.mrf.mxu1 }
 0x12a   :  { %764 = vst [vmem:[%s1261_s3 + $0x30] sm:$0xff] %v746_v43  ;;  %v747_v45 = vmax.f32 %v729_v44, 0.0  ;;  %v730_v46 = vadd.f32 %v1158_v12, %v700_v26  ;;  %v701_v60 = vadd.f32 %v667_v25, %v525_v27  ;;  %v526_v30 = vadd.f32 %v493_v29, %v336_v23 }
 0x12b   :  { %v495_v63 = vpop.f32.mrf.mxu0  ;;  %v671_v31 = vpop.f32.mrf.mxu1 }
 0x12c   :  { %765 = vst [vmem:[%s1261_s3 + $0x38] sm:$0xff] %v747_v45  ;;  %v748_v47 = vmax.f32 %v730_v46, 0.0  ;;  %v731_v48 = vadd.f32 %v1160_v18, %v701_v60  ;;  %v702_v32 = vadd.f32 %v669_v55, %v526_v30  ;;  %v527_v1 = vadd.f32 %v495_v63, %v338_v28 }
 0x12d   :  { %v499_v33 = vpop.f32.mrf.mxu0  ;;  %v675_v34 = vpop.f32.mrf.mxu1 }
 0x12e   :  { %766 = vst [vmem:[%s1261_s3 + $0x40] sm:$0xff] %v748_v47  ;;  %v749_v49 = vmax.f32 %v731_v48, 0.0  ;;  %v732_v50 = vadd.f32 %v1158_v12, %v702_v32  ;;  %v703_v3 = vadd.f32 %v671_v31, %v527_v1  ;;  %v528_v35 = vadd.f32 %v499_v33, %v342_v0 }
 0x12f   :  { %v501_v4 = vpop.f32.mrf.mxu0  ;;  %v677_v5 = vpop.f32.mrf.mxu1 }
 0x130   :  { %767 = vst [vmem:[%s1261_s3 + $0x48] sm:$0xff] %v749_v49  ;;  %v750_v51 = vmax.f32 %v732_v50, 0.0  ;;  %v733_v52 = vadd.f32 %v1160_v18, %v703_v3  ;;  %v704_v6 = vadd.f32 %v675_v34, %v528_v35  ;;  %v529_v7 = vadd.f32 %v501_v4, %v344_v2 }
 0x131   :  { %v503_v37 = vpop.f32.mrf.mxu0  ;;  %v679_v38 = vpop.f32.mrf.mxu1 }
 0x132   :  { %768 = vst [vmem:[%s1261_s3 + $0x50] sm:$0xff] %v750_v51  ;;  %v751_v53 = vmax.f32 %v733_v52, 0.0  ;;  %v734_v54 = vadd.f32 %v1158_v12, %v704_v6  ;;  %v705_v9 = vadd.f32 %v677_v5, %v529_v7  ;;  %v530_v10 = vadd.f32 %v503_v37, %v346_v36 }
 0x133   :  { %v505_v13 = vpop.f32.mrf.mxu0  ;;  %v681_v14 = vpop.f32.mrf.mxu1 }
 0x134   :  { %769 = vst [vmem:[%s1261_s3 + $0x58] sm:$0xff] %v751_v53  ;;  %v752_v56 = vmax.f32 %v734_v54, 0.0  ;;  %v735_v57 = vadd.f32 %v1160_v18, %v705_v9  ;;  %v706_v39 = vadd.f32 %v679_v38, %v530_v10  ;;  %v531_v40 = vadd.f32 %v505_v13, %v348_v8 }
 0x135   :  { %v509_v16 = vpop.f32.mrf.mxu0  ;;  %v685_v17 = vpop.f32.mrf.mxu1 }
 0x136   :  { %770 = vst [vmem:[%s1261_s3 + $0x60] sm:$0xff] %v752_v56  ;;  %v753_v58 = vmax.f32 %v735_v57, 0.0  ;;  %v736_v59 = vadd.f32 %v1158_v12, %v706_v39  ;;  %v707_v19 = vadd.f32 %v681_v14, %v531_v40  ;;  %v532_v20 = vadd.f32 %v509_v16, %v352_v11 }
 0x137   :  { %v511_v41 = vpop.f32.mrf.mxu0  ;;  %v687_v42 = vpop.f32.mrf.mxu1 }
 0x138   :  { %771 = vst [vmem:[%s1261_s3 + $0x68] sm:$0xff] %v753_v58  ;;  %v754_v21 = vmax.f32 %v736_v59, 0.0  ;;  %v737_v61 = vadd.f32 %v1160_v18, %v707_v19  ;;  %v708_v62 = vadd.f32 %v685_v17, %v532_v20  ;;  %v533_v22 = vadd.f32 %v511_v41, %v354_v15 }
 0x139   :  { %v513_v23 = vpop.f32.mrf.mxu0  ;;  %v689_v24 = vpop.f32.mrf.mxu1 }
 0x13a   :  { %772 = vst [vmem:[%s1261_s3 + $0x70] sm:$0xff] %v754_v21  ;;  %v755_v25 = vmax.f32 %v737_v61, 0.0  ;;  %v738_v43 = vadd.f32 %v1158_v12, %v708_v62  ;;  %v709_v44 = vadd.f32 %v687_v42, %v533_v22 }
 0x13b   :  { %v514_v26 = vpop.f32.mrf.mxu0  ;;  %v690_v27 = vpop.f32.mrf.mxu1 }
 0x13c   :  { %773 = vst [vmem:[%s1261_s3 + $0x78] sm:$0xff] %v755_v25  ;;  %v756_v28 = vmax.f32 %v738_v43, 0.0  ;;  %v739_v29 = vadd.f32 %v1160_v18, %v709_v44 }
 0x13e   :  { %774 = vst [vmem:[%s1261_s3 + $0x80] sm:$0xff] %v756_v28  ;;  %v757_v55 = vmax.f32 %v739_v29, 0.0 }
 0x140   :  { %775 = vst [vmem:[%s1261_s3 + $0x88] sm:$0xff] %v757_v55 }
 0x141   :  { %780 = vsyncpa [#allocation3], 1 }
 0x142   :  { %781 = vsyncpa [#allocation5], 1 }

// kernel: conv_decoder_forward.5
= control target key start
LH: loop header
LB: loop body
LE: loop exit
PB: predicated region body
PF: predicated region fallthrough
CT: control target
= control target key end

     0   :  { %10 = vsyncpa [#allocation4], 0  ;;  %s1345_s0 = inlined_call_operand.hbm [shape: f32[2,32], index: 0, kind: input, shape index: {}]   ;;  %s1346_s1 = inlined_call_operand.hbm [shape: f32[32,512], index: 1, kind: input, shape index: {}]   ;;  %s1347_s2 = inlined_call_operand.hbm [shape: f32[1,512], index: 2, kind: input, shape index: {}]   ;;  %s1348_s3 = inlined_call_operand.hbm [shape: bf16[512,256], index: 3, kind: input, shape index: {}]   ;;  %s1349_s4 = inlined_call_operand.hbm [shape: f32[1,256], index: 4, kind: input, shape index: {}]   ;;  %s1350_s5 = inlined_call_operand.vmem [shape: f32[32,256], index: 5, kind: output, shape index: {}]  }
   0x1   :  { %11 = vsyncpa [#allocation6], 0 }
   0x2   :  { %12 = vsyncpa [#allocation9], 0  ;;  %s1243_s18 = smov [#allocation5]  }
   0x3   :  { %s28_s19 = sshll.u32 %s1243_s18, 4  ;;  %s29_s19 = int_to_ptr.vmem [resolvable:$true] %s28_s19 }
   0x4   :  { %s1145_s20 = scalar_lea.vmem %s29_s19, 2048  ;;  %p1150_p1 = scmp.lt.s32.totalorder %s29_s19, %s29_s19 }
   0x5   :  { %p1146_p0 = scmp.ne.s32.totalorder %s29_s19, %s1145_s20  ;;  %p1151_p2 = scmp.lt.s32.totalorder %s1145_s20, %s1145_s20 }
   0x7   :  { %p1152_p3 = por %p1151_p2, %p1150_p1 }
   0x9   :  { %p1153_p4 = pnand %p1152_p3, %p1146_p0 }
   0xb   :  { %1156 = shalt.err (!%p1153_p4)
}
   0xc   :  { %s1244_s21 = smov 512   ;;  %s1245_s22 = smov 32  }
   0xd   :  { %34 = dma.hbm_to_vmem [thread:$0]  %s1346_s1, 2048, %s29_s19, [#allocation6], %s1244_s21, %s1244_s21, %s1245_s22  }
   0xe   :  { %s1246_s25 = smov [#allocation8]  }
   0xf   :  { %s50_s26 = sshll.u32 %s1246_s25, 4  ;;  %s51_s26 = int_to_ptr.vmem [resolvable:$true] %s50_s26 }
  0x10   :  { %s1165_s27 = scalar_lea.vmem %s51_s26, 8192  ;;  %p1170_p6 = scmp.lt.s32.totalorder %s51_s26, %s51_s26 }
  0x11   :  { %p1166_p5 = scmp.ne.s32.totalorder %s51_s26, %s1165_s27  ;;  %p1171_p7 = scmp.lt.s32.totalorder %s1165_s27, %s1165_s27 }
  0x13   :  { %p1172_p8 = por %p1171_p7, %p1170_p6 }
  0x15   :  { %p1173_p9 = pnand %p1172_p8, %p1166_p5 }
  0x17   :  { %1176 = shalt.err (!%p1173_p9)
}
  0x18   :  { %s1247_s28 = smov 128   ;;  %s1248_s29 = smov 8  }
  0x19   :  { %56 = dma.hbm_to_vmem [thread:$0]  %s1348_s3, 8192, %s51_s26, [#allocation9], %s1247_s28, %s1247_s28, %s1248_s29  }
  0x1a   :  { %s1249_s7 = smov [#allocation3]   ;;  %s1250_s9 = smov [#allocation7]  }
  0x1b   :  { %s19_s8 = sshll.u32 %s1249_s7, 4  ;;  %s41_s1 = sshll.u32 %s1250_s9, 4  ;;  %s20_s8 = int_to_ptr.vmem [resolvable:$true] %s19_s8  ;;  %s42_s1 = int_to_ptr.vmem [resolvable:$true] %s41_s1 }
  0x1c   :  { %s1185_s10 = scalar_lea.vmem %s20_s8, 32  ;;  %p1190_p11 = scmp.lt.s32.totalorder %s20_s8, %s20_s8 }
  0x1d   :  { %p1186_p10 = scmp.ne.s32.totalorder %s20_s8, %s1185_s10  ;;  %p1191_p12 = scmp.lt.s32.totalorder %s1185_s10, %s1185_s10 }
  0x1f   :  { %p1192_p13 = por %p1191_p12, %p1190_p11 }
  0x21   :  { %p1193_p0 = pnand %p1192_p13, %p1186_p10 }
  0x23   :  { %1196 = shalt.err (!%p1193_p0)
}
  0x24   :  { %22 = dma.hbm_to_vmem [thread:$0]  %s1345_s0, 32, %s20_s8, [#allocation4]  }
  0x25   :  { %s1205_s13 = scalar_lea.vmem %s42_s1, 64  ;;  %p1210_p2 = scmp.lt.s32.totalorder %s42_s1, %s42_s1 }
  0x26   :  { %p1206_p1 = scmp.ne.s32.totalorder %s42_s1, %s1205_s13  ;;  %p1211_p3 = scmp.lt.s32.totalorder %s1205_s13, %s1205_s13 }
  0x28   :  { %p1212_p4 = por %p1211_p3, %p1210_p2 }
  0x2a   :  { %p1213_p5 = pnand %p1212_p4, %p1206_p1 }
  0x2c   :  { %1216 = shalt.err (!%p1213_p5)
}
  0x2d   :  { %44 = dma.hbm_to_vmem [thread:$0]  %s1347_s2, 64, %s42_s1, [#allocation6]  }
  0x2e   :  { %s1251_s15 = smov [#allocation10]  }
  0x2f   :  { %s63_s16 = sshll.u32 %s1251_s15, 4  ;;  %s64_s16 = int_to_ptr.vmem [resolvable:$true] %s63_s16 }
  0x30   :  { %s1225_s17 = scalar_lea.vmem %s64_s16, 32  ;;  %p1230_p7 = scmp.lt.s32.totalorder %s64_s16, %s64_s16 }
  0x31   :  { %p1226_p6 = scmp.ne.s32.totalorder %s64_s16, %s1225_s17  ;;  %p1231_p8 = scmp.lt.s32.totalorder %s1225_s17, %s1225_s17 }
  0x33   :  { %p1232_p9 = por %p1231_p8, %p1230_p7 }
  0x35   :  { %p1233_p10 = pnand %p1232_p9, %p1226_p6 }
  0x37   :  { %1236 = shalt.err (!%p1233_p10)
}
  0x38   :  { %66 = dma.hbm_to_vmem [thread:$0]  %s1349_s4, 32, %s64_s16, [#allocation9]  }
  0x39   :  { %1237 = dma.done.wait [#allocation4], 32  }
  0x3a   :  { %1238 = vsyncadd [#allocation4], 4294967264 }
  0x3b   :  { %1239 = dma.done.wait [#allocation6], 2112  }
  0x3c   :  { %1240 = vsyncadd [#allocation6], 4294965184 }
  0x3d   :  { %1241 = dma.done.wait [#allocation9], 8224  }
  0x3e   :  { %1242 = vsyncadd [#allocation9], 4294959072  ;;  %v1252_v0 = vmov 0.0   ;;  %v97_v1 = vld [vmem:[#allocation5 + $0x68] sm:$0xff]  ;;  %v99_v2 = vld [vmem:[#allocation5 + $0x78] sm:$0xff]  ;;  %vm122_vm0 = vcmask 261120   ;;  %v102_v53 = vlaneseq }
  0x3f   :  { %190 = vmatprep.mubr.f32.mxu0 %v1252_v0  ;;  %273 = vst [vmem:[#allocation2 + $0x8] sm:$0xff] %v1252_v0  ;;  %274 = vst [vmem:[#allocation2 + $0x10] sm:$0xff] %v1252_v0  ;;  %261 = vmatprep.mubr.f32.mxu1 %v1252_v0  ;;  %v96_v3 = vld [vmem:[#allocation5 + $0x60] sm:$0xff]  ;;  %v98_v4 = vld [vmem:[#allocation5 + $0x70] sm:$0xff]  ;;  %v1253_v52 = vmov 0  }
  0x40   :  { %275 = vst [vmem:[#allocation2 + $0x18] sm:$0xff] %v1252_v0  ;;  %276 = vst [vmem:[#allocation2 + $0x20] sm:$0xff] %v1252_v0  ;;  %150 = vmatprep.subr.mxu0 %v97_v1  ;;  %221 = vmatprep.subr.mxu1 %v99_v2  ;;  %v93_v5 = vld [vmem:[#allocation5 + $0x48] sm:$0xff]  ;;  %v95_v6 = vld [vmem:[#allocation5 + $0x58] sm:$0xff]  ;;  %v1301_v54 = vshrl.u32 %v102_v53, 7 }
  0x41   :  { %272 = vst [vmem:[#allocation2] sm:$0xff] %v1252_v0  ;;  %151 = vmatpush1.msra.mxu0 %v96_v3  ;;  %222 = vmatpush1.msra.mxu1 %v98_v4  ;;  %v92_v7 = vld [vmem:[#allocation5 + $0x40] sm:$0xff]  ;;  %v94_v8 = vld [vmem:[#allocation5 + $0x50] sm:$0xff]  ;;  %v89_v9 = vld [vmem:[#allocation5 + $0x28] sm:$0xff] }
  0x42   :  { %152 = vmatprep.subr.mxu0 %v93_v5  ;;  %223 = vmatprep.subr.mxu1 %v95_v6  ;;  %v91_v10 = vld [vmem:[#allocation5 + $0x38] sm:$0xff]  ;;  %v88_v11 = vld [vmem:[#allocation5 + $0x20] sm:$0xff]  ;;  %v90_v12 = vld [vmem:[#allocation5 + $0x30] sm:$0xff]  ;;  %v104_v55 = vsub.s32 0, %v1301_v54  ;;  %v112_v56 = vsub.s32 2, %v1301_v54  ;;  %v108_v58 = vsub.s32 1, %v1301_v54 }
  0x43   :  { %153 = vmatpush1.msra.mxu0 %v92_v7  ;;  %224 = vmatpush1.msra.mxu1 %v94_v8  ;;  %v85_v13 = vld [vmem:[#allocation5 + $0x8] sm:$0xff]  ;;  %v87_v14 = vld [vmem:[#allocation5 + $0x18] sm:$0xff]  ;;  %v84_v15 = vld [vmem:[#allocation5] sm:$0xff]  ;;  %v116_v59 = vsub.s32 3, %v1301_v54 }
  0x44   :  { %154 = vmatprep.subr.mxu0 %v89_v9  ;;  %225 = vmatprep.subr.mxu1 %v91_v10  ;;  %v86_v16 = vld [vmem:[#allocation5 + $0x10] sm:$0xff]  ;;  %v83_v17 = vld [vmem:[#allocation3] sm:$0x3]  ;;  %v1043_v19 = vld [vmem:[#allocation8 + $0xf4] ss:$8 sps:$4 sm:$0xff]  }
  0x45   :  { %155 = vmatpush1.msra.mxu0 %v88_v11  ;;  %226 = vmatpush1.msra.mxu1 %v90_v12  ;;  %v1041_v18 = vld [vmem:[#allocation8 + $0xf0] ss:$8 sps:$4 sm:$0xff]   ;;  %v1046_v21 = vld [vmem:[#allocation8 + $0x74] ss:$8 sps:$4 sm:$0xff]   ;;  %v1049_v22 = vld [vmem:[#allocation8 + $0xe4] ss:$8 sps:$4 sm:$0xff]  }
  0x46   :  { %156 = vmatprep.subr.mxu0 %v85_v13  ;;  %227 = vmatprep.subr.mxu1 %v87_v14  ;;  %v1044_v20 = vld [vmem:[#allocation8 + $0x70] ss:$8 sps:$4 sm:$0xff]   ;;  %v1047_v23 = vld [vmem:[#allocation8 + $0xe0] ss:$8 sps:$4 sm:$0xff]   ;;  %v1052_v24 = vld [vmem:[#allocation8 + $0x64] ss:$8 sps:$4 sm:$0xff]  }
  0x47   :  { %157 = vmatpush1.msra.mxu0 %v84_v15  ;;  %228 = vmatpush1.msra.mxu1 %v86_v16  ;;  %v1050_v25 = vld [vmem:[#allocation8 + $0x60] ss:$8 sps:$4 sm:$0xff]   ;;  %v1055_v26 = vld [vmem:[#allocation8 + $0xd4] ss:$8 sps:$4 sm:$0xff]   ;;  %v1053_v28 = vld [vmem:[#allocation8 + $0xd0] ss:$8 sps:$4 sm:$0xff]  }
  0x48   :  { %964 = vmatmul.mubr.msk.f32.vlgmr.msra.gmra.mxu0 %vm122_vm0, %v83_v17  ;;  %965 = vmatmul.mubr.msk.f32.vlgmr.msra.gmra.mxu1 %vm122_vm0, %v83_v17  ;;  %v1058_v27 = vld [vmem:[#allocation8 + $0x54] ss:$8 sps:$4 sm:$0xff]   ;;  %v1056_v29 = vld [vmem:[#allocation8 + $0x50] ss:$8 sps:$4 sm:$0xff]   ;;  %v1061_v30 = vld [vmem:[#allocation8 + $0xc4] ss:$8 sps:$4 sm:$0xff]  }
  0x49   :  { %409 = vmatprep.subr.bf16.mxu0 %v1043_v19  ;;  %542 = vmatprep.subr.bf16.mxu1 %v1046_v21  ;;  %v1064_v31 = vld [vmem:[#allocation8 + $0x44] ss:$8 sps:$4 sm:$0xff]   ;;  %v1059_v32 = vld [vmem:[#allocation8 + $0xc0] ss:$8 sps:$4 sm:$0xff]   ;;  %v1067_v34 = vld [vmem:[#allocation8 + $0xb4] ss:$8 sps:$4 sm:$0xff]  }
  0x4a   :  { %410 = vmatpush1.bf16.msra.mxu0 %v1041_v18  ;;  %543 = vmatpush1.bf16.msra.mxu1 %v1044_v20  ;;  %v1062_v33 = vld [vmem:[#allocation8 + $0x40] ss:$8 sps:$4 sm:$0xff]   ;;  %v1070_v35 = vld [vmem:[#allocation8 + $0x34] ss:$8 sps:$4 sm:$0xff]   ;;  %v1065_v36 = vld [vmem:[#allocation8 + $0xb0] ss:$8 sps:$4 sm:$0xff]  }
  0x4b   :  { %411 = vmatprep.subr.bf16.mxu0 %v1049_v22  ;;  %544 = vmatprep.subr.bf16.mxu1 %v1052_v24  ;;  %v1068_v37 = vld [vmem:[#allocation8 + $0x30] ss:$8 sps:$4 sm:$0xff]   ;;  %v1073_v38 = vld [vmem:[#allocation8 + $0xa4] ss:$8 sps:$4 sm:$0xff]   ;;  %v1071_v40 = vld [vmem:[#allocation8 + $0xa0] ss:$8 sps:$4 sm:$0xff]  }
  0x4c   :  { %v1076_v39 = vld [vmem:[#allocation8 + $0x24] ss:$8 sps:$4 sm:$0xff]   ;;  %v1074_v41 = vld [vmem:[#allocation8 + $0x20] ss:$8 sps:$4 sm:$0xff]   ;;  %v1079_v42 = vld [vmem:[#allocation8 + $0x94] ss:$8 sps:$4 sm:$0xff]   ;;  %441 = vmatprep.mubr.bf16.mxu0 %v1253_v52  ;;  %574 = vmatprep.mubr.bf16.mxu1 %v1253_v52 }
  0x4d   :  { %v1082_v43 = vld [vmem:[#allocation8 + $0x14] ss:$8 sps:$4 sm:$0xff]   ;;  %v1077_v44 = vld [vmem:[#allocation8 + $0x90] ss:$8 sps:$4 sm:$0xff]   ;;  %v1085_v46 = vld [vmem:[#allocation8 + $0x84] ss:$8 sps:$4 sm:$0xff]  }
  0x4e   :  { %412 = vmatpush1.bf16.msra.mxu0 %v1047_v23  ;;  %545 = vmatpush1.bf16.msra.mxu1 %v1050_v25  ;;  %v1080_v45 = vld [vmem:[#allocation8 + $0x10] ss:$8 sps:$4 sm:$0xff]   ;;  %v1088_v47 = vld [vmem:[#allocation8 + $0x4] ss:$8 sps:$4 sm:$0xff]   ;;  %v1083_v48 = vld [vmem:[#allocation8 + $0x80] ss:$8 sps:$4 sm:$0xff]  }
  0x4f   :  { %413 = vmatprep.subr.bf16.mxu0 %v1055_v26  ;;  %546 = vmatprep.subr.bf16.mxu1 %v1058_v27  ;;  %v1086_v49 = vld [vmem:[#allocation8] ss:$8 sps:$4 sm:$0xff]   ;;  %v1091_v50 = vld [vmem:[#allocation8 + $0x174] ss:$8 sps:$4 sm:$0xff]   ;;  %v1089_v12 = vld [vmem:[#allocation8 + $0x170] ss:$8 sps:$4 sm:$0xff]  }
  0x50   :  { %v1094_v51 = vld [vmem:[#allocation8 + $0x1f4] ss:$8 sps:$4 sm:$0xff]   ;;  %v1092_v16 = vld [vmem:[#allocation8 + $0x1f0] ss:$8 sps:$4 sm:$0xff]   ;;  %v1097_v19 = vld [vmem:[#allocation8 + $0x164] ss:$8 sps:$4 sm:$0xff]  }
  0x51   :  { %v100_v57 = vld [vmem:[#allocation7] sm:$0xf]  ;;  %v1100_v21 = vld [vmem:[#allocation8 + $0x1e4] ss:$8 sps:$4 sm:$0xff]   ;;  %v1095_v22 = vld [vmem:[#allocation8 + $0x160] ss:$8 sps:$4 sm:$0xff]  }
  0x52   :  { %414 = vmatpush1.bf16.msra.mxu0 %v1053_v28  ;;  %547 = vmatpush1.bf16.msra.mxu1 %v1056_v29  ;;  %v105_v60 = vrot.slane %v100_v57, %v104_v55  ;;  %v113_v61 = vrot.slane %v100_v57, %v112_v56  ;;  %v109_v62 = vrot.slane %v100_v57, %v108_v58  ;;  %v1098_v23 = vld [vmem:[#allocation8 + $0x1e0] ss:$8 sps:$4 sm:$0xff]   ;;  %v1103_v24 = vld [vmem:[#allocation8 + $0x154] ss:$8 sps:$4 sm:$0xff]  }
  0x53   :  { %415 = vmatprep.subr.bf16.mxu0 %v1061_v30  ;;  %548 = vmatprep.subr.bf16.mxu1 %v1064_v31  ;;  %v117_v63 = vrot.slane %v100_v57, %v116_v59  ;;  %v1106_v25 = vld [vmem:[#allocation8 + $0x1d4] ss:$8 sps:$4 sm:$0xff]   ;;  %v1101_v30 = vld [vmem:[#allocation8 + $0x150] ss:$8 sps:$4 sm:$0xff]   ;;  %v1131_v53 = vld [vmem:[#allocation8 + $0x100] ss:$8 sps:$4 sm:$0xff]  }
  0x54   :  { %v1104_v31 = vld [vmem:[#allocation8 + $0x1d0] ss:$8 sps:$4 sm:$0xff]   ;;  %v1134_v56 = vld [vmem:[#allocation8 + $0x180] ss:$8 sps:$4 sm:$0xff]  }
  0x55   :  { %v596_v59 = vld [vmem:[#allocation2 + $0xc] sm:$0xff] }
  0x56   :  { %416 = vmatpush1.bf16.msra.mxu0 %v1059_v32  ;;  %549 = vmatpush1.bf16.msra.mxu1 %v1062_v33  ;;  %v1109_v33 = vld [vmem:[#allocation8 + $0x144] ss:$8 sps:$4 sm:$0xff]  }
  0x57   :  { %417 = vmatprep.subr.bf16.mxu0 %v1067_v34  ;;  %550 = vmatprep.subr.bf16.mxu1 %v1070_v35  ;;  %v1112_v35 = vld [vmem:[#allocation8 + $0x1c4] ss:$8 sps:$4 sm:$0xff]  }
  0x5a   :  { %418 = vmatpush1.bf16.msra.mxu0 %v1065_v36  ;;  %551 = vmatpush1.bf16.msra.mxu1 %v1068_v37  ;;  %v1107_v36 = vld [vmem:[#allocation8 + $0x140] ss:$8 sps:$4 sm:$0xff]  }
  0x5b   :  { %419 = vmatprep.subr.bf16.mxu0 %v1073_v38  ;;  %552 = vmatprep.subr.bf16.mxu1 %v1076_v39  ;;  %v1110_v37 = vld [vmem:[#allocation8 + $0x1c0] ss:$8 sps:$4 sm:$0xff]   ;;  %v1115_v38 = vld [vmem:[#allocation8 + $0x134] ss:$8 sps:$4 sm:$0xff]  }
  0x5c   :  { %v1118_v39 = vld [vmem:[#allocation8 + $0x1b4] ss:$8 sps:$4 sm:$0xff]  }
  0x5e   :  { %420 = vmatpush1.bf16.msra.mxu0 %v1071_v40  ;;  %553 = vmatpush1.bf16.msra.mxu1 %v1074_v41  ;;  %v1113_v40 = vld [vmem:[#allocation8 + $0x130] ss:$8 sps:$4 sm:$0xff]  }
  0x5f   :  { %421 = vmatprep.subr.bf16.mxu0 %v1079_v42  ;;  %554 = vmatprep.subr.bf16.mxu1 %v1082_v43  ;;  %v1116_v41 = vld [vmem:[#allocation8 + $0x1b0] ss:$8 sps:$4 sm:$0xff]   ;;  %v1121_v42 = vld [vmem:[#allocation8 + $0x124] ss:$8 sps:$4 sm:$0xff]  }
  0x60   :  { %v1124_v43 = vld [vmem:[#allocation8 + $0x1a4] ss:$8 sps:$4 sm:$0xff]  }
  0x62   :  { %422 = vmatpush1.bf16.msra.mxu0 %v1077_v44  ;;  %555 = vmatpush1.bf16.msra.mxu1 %v1080_v45  ;;  %v1119_v44 = vld [vmem:[#allocation8 + $0x120] ss:$8 sps:$4 sm:$0xff]  }
  0x63   :  { %423 = vmatprep.subr.bf16.mxu0 %v1085_v46  ;;  %556 = vmatprep.subr.bf16.mxu1 %v1088_v47  ;;  %v1122_v45 = vld [vmem:[#allocation8 + $0x1a0] ss:$8 sps:$4 sm:$0xff]   ;;  %v1127_v46 = vld [vmem:[#allocation8 + $0x114] ss:$8 sps:$4 sm:$0xff]  }
  0x64   :  { %v1130_v47 = vld [vmem:[#allocation8 + $0x194] ss:$8 sps:$4 sm:$0xff]  }
  0x66   :  { %424 = vmatpush1.bf16.msra.mxu0 %v1083_v48  ;;  %557 = vmatpush1.bf16.msra.mxu1 %v1086_v49  ;;  %v1125_v48 = vld [vmem:[#allocation8 + $0x110] ss:$8 sps:$4 sm:$0xff]  }
  0x67   :  { %697 = vmatprep.subr.bf16.mxu0 %v1091_v50  ;;  %860 = vmatprep.subr.bf16.mxu1 %v1094_v51  ;;  %v1128_v49 = vld [vmem:[#allocation8 + $0x190] ss:$8 sps:$4 sm:$0xff]   ;;  %v1133_v50 = vld [vmem:[#allocation8 + $0x104] ss:$8 sps:$4 sm:$0xff]  }
  0x68   :  { %v1136_v51 = vld [vmem:[#allocation8 + $0x184] ss:$8 sps:$4 sm:$0xff]  }
 0x108   :  { %v192_v0 = vpop.f32.mrf.mxu0  ;;  %v263_v1 = vpop.f32.mrf.mxu1 }
 0x109   :  { %v193_v2 = vadd.f32 %v192_v0, %v105_v60  ;;  %v264_v3 = vadd.f32 %v263_v1, %v113_v61  ;;  %v759_v61 = vld [vmem:[#allocation2 + $0xd] sm:$0xff]  ;;  %v598_v1 = vld [vmem:[#allocation2 + $0x1c] sm:$0xff] }
 0x10a   :  { %v194_v4 = vpop.f32.mrf.mxu0  ;;  %v265_v5 = vpop.f32.mrf.mxu1 }
 0x10b   :  { %v268_v6 = vmax.f32 %v193_v2, 0.0  ;;  %v270_v7 = vmax.f32 %v264_v3, 0.0  ;;  %v195_v8 = vadd.f32 %v194_v4, %v109_v62  ;;  %v266_v9 = vadd.f32 %v265_v5, %v117_v63  ;;  %v761_v3 = vld [vmem:[#allocation2 + $0x1d] sm:$0xff] }
 0x10d   :  { %277 = vst [vmem:[#allocation2 + $0x5] sm:$0x1] %v268_v6  ;;  %281 = vst [vmem:[#allocation2 + $0x14] sm:$0x2] %v268_v6  ;;  %v269_v10 = vmax.f32 %v195_v8, 0.0  ;;  %v271_v11 = vmax.f32 %v266_v9, 0.0 }
 0x10e   :  { %279 = vst [vmem:[#allocation2 + $0x9] sm:$0x1] %v270_v7  ;;  %283 = vst [vmem:[#allocation2 + $0x18] sm:$0x2] %v270_v7 }
 0x10f   :  { %278 = vst [vmem:[#allocation2 + $0x6] sm:$0x1] %v269_v10  ;;  %282 = vst [vmem:[#allocation2 + $0x15] sm:$0x2] %v269_v10 }
 0x110   :  { %280 = vst [vmem:[#allocation2 + $0xa] sm:$0x1] %v271_v11  ;;  %284 = vst [vmem:[#allocation2 + $0x19] sm:$0x2] %v271_v11 }
 0x116   :  { %v307_v13 = vld [vmem:[#allocation2 + $0x1] sm:$0xff]  ;;  %v309_v26 = vld [vmem:[#allocation2 + $0x11] sm:$0xff] }
 0x117   :  { %v308_v14 = vld [vmem:[#allocation2 + $0x9] sm:$0xff]  ;;  %v285_v15 = vld [vmem:[#allocation2] sm:$0xff]  ;;  %v288_v29 = vld [vmem:[#allocation2 + $0x18] sm:$0xff] }
 0x118   :  { %v311_v17 = vpack.c.bf16 %v308_v14, %v307_v13  ;;  %v286_v18 = vld [vmem:[#allocation2 + $0x8] sm:$0xff]  ;;  %v310_v27 = vld [vmem:[#allocation2 + $0x19] sm:$0xff]  ;;  %v287_v28 = vld [vmem:[#allocation2 + $0x10] sm:$0xff] }
 0x119   :  { %v289_v20 = vpack.c.bf16 %v286_v18, %v285_v15  ;;  %v312_v32 = vpack.c.bf16 %v310_v27, %v309_v26  ;;  %v290_v34 = vpack.c.bf16 %v288_v29, %v287_v28  ;;  %v595_v57 = vld [vmem:[#allocation2 + $0x4] sm:$0xff]  ;;  %v597_v0 = vld [vmem:[#allocation2 + $0x14] sm:$0xff] }
 0x11a   :  { %442 = vmatmul.mubr.bf16.vlgmr.msra.gmra.mxu0 %v311_v17  ;;  %v758_v60 = vld [vmem:[#allocation2 + $0x5] sm:$0xff]  ;;  %v599_v62 = vpack.c.bf16 %v596_v59, %v595_v57  ;;  %v760_v2 = vld [vmem:[#allocation2 + $0x15] sm:$0xff]  ;;  %v600_v4 = vpack.c.bf16 %v598_v1, %v597_v0 }
 0x11b   :  { %575 = vmatmul.mubr.bf16.vlgmr.msra.gmra.mxu1 %v289_v20  ;;  %698 = vmatpush1.bf16.msra.mxu0 %v1089_v12  ;;  %v762_v63 = vpack.c.bf16 %v759_v61, %v758_v60  ;;  %v763_v5 = vpack.c.bf16 %v761_v3, %v760_v2 }
 0x11c   :  { %861 = vmatpush1.bf16.msra.mxu1 %v1092_v16  ;;  %699 = vmatprep.subr.bf16.mxu0 %v1097_v19  ;;  %v921_v19 = vld [vmem:[#allocation10] sm:$0x3] }
 0x11d   :  { %862 = vmatprep.subr.bf16.mxu1 %v1100_v21  ;;  %451 = vmatprep.mubr.bf16.mxu0 %v1253_v52  ;;  %v930_v29 = vrot.slane %v921_v19, %v108_v58 }
 0x11e   :  { %584 = vmatprep.mubr.bf16.mxu1 %v1253_v52 }
 0x11f   :  { %700 = vmatpush1.bf16.msra.mxu0 %v1095_v22 }
 0x120   :  { %863 = vmatpush1.bf16.msra.mxu1 %v1098_v23  ;;  %701 = vmatprep.subr.bf16.mxu0 %v1103_v24  ;;  %v926_v24 = vrot.slane %v921_v19, %v104_v55 }
 0x121   :  { %864 = vmatprep.subr.bf16.mxu1 %v1106_v25 }
 0x122   :  { %452 = vmatmul.mubr.bf16.gmra.mxu0 %v312_v32 }
 0x123   :  { %585 = vmatmul.mubr.bf16.gmra.mxu1 %v290_v34  ;;  %702 = vmatpush1.bf16.msra.mxu0 %v1101_v30 }
 0x124   :  { %865 = vmatpush1.bf16.msra.mxu1 %v1104_v31  ;;  %703 = vmatprep.subr.bf16.mxu0 %v1109_v33 }
 0x125   :  { %866 = vmatprep.subr.bf16.mxu1 %v1112_v35  ;;  %729 = vmatprep.mubr.bf16.mxu0 %v1253_v52 }
 0x126   :  { %892 = vmatprep.mubr.bf16.mxu1 %v1253_v52 }
 0x127   :  { %704 = vmatpush1.bf16.msra.mxu0 %v1107_v36 }
 0x128   :  { %867 = vmatpush1.bf16.msra.mxu1 %v1110_v37  ;;  %705 = vmatprep.subr.bf16.mxu0 %v1115_v38 }
 0x129   :  { %868 = vmatprep.subr.bf16.mxu1 %v1118_v39 }
 0x12b   :  { %706 = vmatpush1.bf16.msra.mxu0 %v1113_v40 }
 0x12c   :  { %869 = vmatpush1.bf16.msra.mxu1 %v1116_v41  ;;  %707 = vmatprep.subr.bf16.mxu0 %v1121_v42 }
 0x12d   :  { %870 = vmatprep.subr.bf16.mxu1 %v1124_v43 }
 0x12f   :  { %708 = vmatpush1.bf16.msra.mxu0 %v1119_v44 }
 0x130   :  { %871 = vmatpush1.bf16.msra.mxu1 %v1122_v45  ;;  %709 = vmatprep.subr.bf16.mxu0 %v1127_v46 }
 0x131   :  { %872 = vmatprep.subr.bf16.mxu1 %v1130_v47 }
 0x133   :  { %710 = vmatpush1.bf16.msra.mxu0 %v1125_v48 }
 0x134   :  { %873 = vmatpush1.bf16.msra.mxu1 %v1128_v49  ;;  %711 = vmatprep.subr.bf16.mxu0 %v1133_v50 }
 0x135   :  { %874 = vmatprep.subr.bf16.mxu1 %v1136_v51 }
 0x137   :  { %712 = vmatpush1.bf16.msra.mxu0 %v1131_v53 }
 0x138   :  { %875 = vmatpush1.bf16.msra.mxu1 %v1134_v56 }
 0x13a   :  { %730 = vmatmul.mubr.bf16.vlgmr.msra.gmra.mxu0 %v599_v62 }
 0x13b   :  { %893 = vmatmul.mubr.bf16.vlgmr.msra.gmra.mxu1 %v762_v63  ;;  %739 = vmatprep.mubr.bf16.mxu0 %v1253_v52 }
 0x13c   :  { %902 = vmatprep.mubr.bf16.mxu1 %v1253_v52 }
 0x142   :  { %740 = vmatmul.mubr.bf16.gmra.mxu0 %v600_v4 }
 0x143   :  { %903 = vmatmul.mubr.bf16.gmra.mxu1 %v763_v5 }
 0x1da   :  { %v443_v6 = vpop.f32.mrf.mxu0 }
 0x1db   :  { %v576_v7 = vpop.f32.mrf.mxu1 }
 0x1dc   :  { %v445_v8 = vpop.f32.mrf.mxu0  ;;  %v577_v21 = vadd.f32 %v576_v7, %v443_v6 }
 0x1dd   :  { %v578_v9 = vpop.f32.mrf.mxu1 }
 0x1de   :  { %v447_v10 = vpop.f32.mrf.mxu0  ;;  %v579_v25 = vadd.f32 %v578_v9, %v445_v8 }
 0x1df   :  { %v580_v11 = vpop.f32.mrf.mxu1 }
 0x1e0   :  { %v449_v12 = vpop.f32.mrf.mxu0  ;;  %v581_v30 = vadd.f32 %v580_v11, %v447_v10 }
 0x1e1   :  { %v582_v13 = vpop.f32.mrf.mxu1 }
 0x1e2   :  { %v453_v14 = vpop.f32.mrf.mxu0  ;;  %v583_v35 = vadd.f32 %v582_v13, %v449_v12 }
 0x1e3   :  { %v586_v15 = vpop.f32.mrf.mxu1 }
 0x1e4   :  { %v455_v16 = vpop.f32.mrf.mxu0  ;;  %v587_v40 = vadd.f32 %v586_v15, %v453_v14 }
 0x1e5   :  { %v588_v52 = vpop.f32.mrf.mxu1 }
 0x1e6   :  { %v457_v17 = vpop.f32.mrf.mxu0  ;;  %v589_v46 = vadd.f32 %v588_v52, %v455_v16 }
 0x1e7   :  { %v590_v18 = vpop.f32.mrf.mxu1 }
 0x1e8   :  { %v459_v20 = vpop.f32.mrf.mxu0  ;;  %v591_v51 = vadd.f32 %v590_v18, %v457_v17 }
 0x1e9   :  { %v592_v22 = vpop.f32.mrf.mxu1 }
 0x1ea   :  { %v593_v62 = vadd.f32 %v592_v22, %v459_v20 }
 0x1fa   :  { %v731_v23 = vpop.f32.mrf.mxu0 }
 0x1fb   :  { %v750_v26 = vadd.f32 %v731_v23, %v577_v21  ;;  %v894_v27 = vpop.f32.mrf.mxu1 }
 0x1fc   :  { %v733_v28 = vpop.f32.mrf.mxu0 }
 0x1fd   :  { %v913_v31 = vadd.f32 %v894_v27, %v750_v26  ;;  %v751_v32 = vadd.f32 %v733_v28, %v579_v25  ;;  %v896_v33 = vpop.f32.mrf.mxu1 }
 0x1fe   :  { %v735_v34 = vpop.f32.mrf.mxu0 }
 0x1ff   :  { %v933_v36 = vadd.f32 %v926_v24, %v913_v31  ;;  %v914_v37 = vadd.f32 %v896_v33, %v751_v32  ;;  %v752_v38 = vadd.f32 %v735_v34, %v581_v30  ;;  %v898_v39 = vpop.f32.mrf.mxu1 }
 0x200   :  { %v737_v41 = vpop.f32.mrf.mxu0 }
 0x201   :  { %v941_v55 = vmax.f32 %v933_v36, 0.0  ;;  %v934_v42 = vadd.f32 %v930_v29, %v914_v37  ;;  %v915_v43 = vadd.f32 %v898_v39, %v752_v38  ;;  %v753_v44 = vadd.f32 %v737_v41, %v583_v35  ;;  %v900_v45 = vpop.f32.mrf.mxu1 }
 0x202   :  { %v741_v54 = vpop.f32.mrf.mxu0 }
 0x203   :  { %949 = vst [vmem:[%s1350_s5] sm:$0xff] %v941_v55  ;;  %v942_v58 = vmax.f32 %v934_v42, 0.0  ;;  %v935_v47 = vadd.f32 %v926_v24, %v915_v43  ;;  %v916_v48 = vadd.f32 %v900_v45, %v753_v44  ;;  %v754_v49 = vadd.f32 %v741_v54, %v587_v40  ;;  %v904_v50 = vpop.f32.mrf.mxu1 }
 0x204   :  { %v743_v53 = vpop.f32.mrf.mxu0 }
 0x205   :  { %950 = vst [vmem:[%s1350_s5 + $0x8] sm:$0xff] %v942_v58  ;;  %v943_v56 = vmax.f32 %v935_v47, 0.0  ;;  %v936_v57 = vadd.f32 %v930_v29, %v916_v48  ;;  %v917_v59 = vadd.f32 %v904_v50, %v754_v49  ;;  %v755_v60 = vadd.f32 %v743_v53, %v589_v46  ;;  %v906_v61 = vpop.f32.mrf.mxu1 }
 0x206   :  { %v745_v63 = vpop.f32.mrf.mxu0 }
 0x207   :  { %951 = vst [vmem:[%s1350_s5 + $0x10] sm:$0xff] %v943_v56  ;;  %v944_v0 = vmax.f32 %v936_v57, 0.0  ;;  %v937_v1 = vadd.f32 %v926_v24, %v917_v59  ;;  %v918_v2 = vadd.f32 %v906_v61, %v755_v60  ;;  %v756_v3 = vadd.f32 %v745_v63, %v591_v51  ;;  %v908_v4 = vpop.f32.mrf.mxu1 }
 0x208   :  { %v747_v5 = vpop.f32.mrf.mxu0 }
 0x209   :  { %952 = vst [vmem:[%s1350_s5 + $0x18] sm:$0xff] %v944_v0  ;;  %v945_v6 = vmax.f32 %v937_v1, 0.0  ;;  %v938_v7 = vadd.f32 %v930_v29, %v918_v2  ;;  %v919_v8 = vadd.f32 %v908_v4, %v756_v3  ;;  %v757_v9 = vadd.f32 %v747_v5, %v593_v62  ;;  %v910_v10 = vpop.f32.mrf.mxu1 }
 0x20b   :  { %953 = vst [vmem:[%s1350_s5 + $0x20] sm:$0xff] %v945_v6  ;;  %v946_v11 = vmax.f32 %v938_v7, 0.0  ;;  %v939_v12 = vadd.f32 %v926_v24, %v919_v8  ;;  %v920_v13 = vadd.f32 %v910_v10, %v757_v9 }
 0x20d   :  { %954 = vst [vmem:[%s1350_s5 + $0x28] sm:$0xff] %v946_v11  ;;  %v947_v14 = vmax.f32 %v939_v12, 0.0  ;;  %v940_v15 = vadd.f32 %v930_v29, %v920_v13 }
 0x20f   :  { %955 = vst [vmem:[%s1350_s5 + $0x30] sm:$0xff] %v947_v14  ;;  %v948_v16 = vmax.f32 %v940_v15, 0.0 }
 0x211   :  { %956 = vst [vmem:[%s1350_s5 + $0x38] sm:$0xff] %v948_v16 }
 0x212   :  { %961 = vsyncpa [#allocation4], 1 }
 0x213   :  { %962 = vsyncpa [#allocation6], 1 }
 0x214   :  { %963 = vsyncpa [#allocation9], 1 }

// kernel: conv_decoder_forward.7
= control target key start
LH: loop header
LB: loop body
LE: loop exit
PB: predicated region body
PF: predicated region fallthrough
CT: control target
= control target key end

     0   :  { %v1527_v0 = vmov 0.0   ;;  %vm1528_vm0 = vmmov 0   ;;  %vm131_vm1 = vcmask 523264   ;;  %s2249_s1 = inlined_call_operand.vmem [shape: bf16[256,128], index: 1, kind: input, shape index: {}]   ;;  %s2250_s0 = inlined_call_operand.vmem [shape: f32[218,64], index: 0, kind: input, shape index: {}]   ;;  %s2251_s2 = inlined_call_operand.vmem [shape: f32[1,128], index: 2, kind: input, shape index: {}]   ;;  %s2252_s3 = inlined_call_operand.vmem [shape: f32[200,128], index: 3, kind: output, shape index: {}]  }
   0x1   :  { %1269 = vmatprep.subr.bf16.mxu0 %v1527_v0  ;;  %1329 = vmatprep.subr.bf16.mxu1 %v1527_v0  ;;  %v1511_v1 = vld [vmem:[%s2249_s1 + $0x38] sm:$0xff]   ;;  %v1513_v3 = vld [vmem:[%s2249_s1 + $0x30] sm:$0xff]   ;;  %v1515_v5 = vld [vmem:[%s2249_s1 + $0x28] sm:$0xff]  }
   0x2   :  { %v1512_v2 = vld [vmem:[%s2249_s1 + $0x18] sm:$0xff]   ;;  %1277 = vmatprep.mubr.msk.bf16.mxu0 %vm1528_vm0, %v1527_v0  ;;  %1337 = vmatprep.mubr.msk.bf16.mxu1 %vm1528_vm0, %v1527_v0  ;;  %v1514_v4 = vld [vmem:[%s2249_s1 + $0x10] sm:$0xff]   ;;  %v1516_v6 = vld [vmem:[%s2249_s1 + $0x8] sm:$0xff]  }
   0x3   :  { %1270 = vmatpush3.bf16.msra.mxu0 %v1511_v1  ;;  %1330 = vmatpush3.bf16.msra.mxu1 %v1512_v2  ;;  %v1517_v7 = vld [vmem:[%s2249_s1 + $0x20] sm:$0xff]   ;;  %v62_v9 = vld [vmem:[%s2250_s0 + $0x9] sm:$0xff]  ;;  %v1519_v15 = vld [vmem:[%s2249_s1 + $0x58] sm:$0xff]  }
   0x4   :  { %1271 = vmatprep.subr.bf16.mxu0 %v1527_v0  ;;  %1331 = vmatprep.subr.bf16.mxu1 %v1527_v0  ;;  %v61_v8 = vld [vmem:[%s2250_s0 + $0x1] sm:$0xff]  ;;  %v1520_v16 = vld [vmem:[%s2249_s1 + $0x78] sm:$0xff]   ;;  %v1521_v19 = vld [vmem:[%s2249_s1 + $0x50] sm:$0xff]  }
   0x5   :  { %v1518_v10 = vld [vmem:[%s2249_s1] sm:$0xff]   ;;  %v16_v12 = vld [vmem:[%s2250_s0 + $0x8] sm:$0xff]  ;;  %v86_v13 = vpack.c.bf16 %v62_v9, %v61_v8  ;;  %v63_v17 = vld [vmem:[%s2250_s0 + $0x11] sm:$0xff] }
   0x6   :  { %v15_v11 = vld [vmem:[%s2250_s0] sm:$0xff]  ;;  %v17_v20 = vld [vmem:[%s2250_s0 + $0x10] sm:$0xff]  ;;  %v18_v21 = vld [vmem:[%s2250_s0 + $0x18] sm:$0xff] }
   0x7   :  { %1272 = vmatpush3.bf16.msra.mxu0 %v1513_v3  ;;  %1332 = vmatpush3.bf16.msra.mxu1 %v1514_v4  ;;  %v40_v14 = vpack.c.bf16 %v16_v12, %v15_v11  ;;  %v64_v18 = vld [vmem:[%s2250_s0 + $0x19] sm:$0xff]  ;;  %v1522_v22 = vld [vmem:[%s2249_s1 + $0x70] sm:$0xff]   ;;  %v41_v24 = vpack.c.bf16 %v18_v21, %v17_v20  ;;  %v1523_v25 = vld [vmem:[%s2249_s1 + $0x48] sm:$0xff]  }
   0x8   :  { %1273 = vmatprep.subr.bf16.mxu0 %v1527_v0  ;;  %1333 = vmatprep.subr.bf16.mxu1 %v1527_v0  ;;  %v87_v23 = vpack.c.bf16 %v64_v18, %v63_v17  ;;  %v1524_v26 = vld [vmem:[%s2249_s1 + $0x68] sm:$0xff]   ;;  %v19_v29 = vld [vmem:[%s2250_s0 + $0x20] sm:$0xff]  ;;  %v67_v35 = vld [vmem:[%s2250_s0 + $0x31] sm:$0xff] }
   0x9   :  { %v65_v27 = vld [vmem:[%s2250_s0 + $0x21] sm:$0xff]  ;;  %v66_v28 = vld [vmem:[%s2250_s0 + $0x29] sm:$0xff]  ;;  %v68_v36 = vld [vmem:[%s2250_s0 + $0x39] sm:$0xff] }
   0xa   :  { %v20_v30 = vld [vmem:[%s2250_s0 + $0x28] sm:$0xff]  ;;  %v1525_v31 = vld [vmem:[%s2249_s1 + $0x40] sm:$0xff]   ;;  %v88_v32 = vpack.c.bf16 %v66_v28, %v65_v27  ;;  %v21_v37 = vld [vmem:[%s2250_s0 + $0x30] sm:$0xff]  ;;  %v89_v39 = vpack.c.bf16 %v68_v36, %v67_v35 }
   0xb   :  { %1274 = vmatpush3.bf16.msra.mxu0 %v1515_v5  ;;  %1334 = vmatpush3.bf16.msra.mxu1 %v1516_v6  ;;  %v42_v33 = vpack.c.bf16 %v20_v30, %v19_v29  ;;  %v1526_v34 = vld [vmem:[%s2249_s1 + $0x60] sm:$0xff]   ;;  %v22_v38 = vld [vmem:[%s2250_s0 + $0x38] sm:$0xff]  ;;  %v70_v42 = vld [vmem:[%s2250_s0 + $0x49] sm:$0xff] }
   0xc   :  { %1275 = vmatprep.subr.bf16.mxu0 %v1527_v0  ;;  %1335 = vmatprep.subr.bf16.mxu1 %v1527_v0  ;;  %v43_v40 = vpack.c.bf16 %v22_v38, %v21_v37  ;;  %v69_v41 = vld [vmem:[%s2250_s0 + $0x41] sm:$0xff]  ;;  %v71_v47 = vld [vmem:[%s2250_s0 + $0x51] sm:$0xff]  ;;  %v72_v48 = vld [vmem:[%s2250_s0 + $0x59] sm:$0xff] }
   0xd   :  { %v23_v43 = vld [vmem:[%s2250_s0 + $0x40] sm:$0xff]  ;;  %v24_v44 = vld [vmem:[%s2250_s0 + $0x48] sm:$0xff]  ;;  %v90_v45 = vpack.c.bf16 %v70_v42, %v69_v41  ;;  %v25_v49 = vld [vmem:[%s2250_s0 + $0x50] sm:$0xff]  ;;  %v91_v51 = vpack.c.bf16 %v72_v48, %v71_v47 }
   0xe   :  { %v44_v46 = vpack.c.bf16 %v24_v44, %v23_v43  ;;  %v26_v50 = vld [vmem:[%s2250_s0 + $0x58] sm:$0xff]  ;;  %v73_v53 = vld [vmem:[%s2250_s0 + $0x61] sm:$0xff]  ;;  %v74_v54 = vld [vmem:[%s2250_s0 + $0x69] sm:$0xff] }
   0xf   :  { %1276 = vmatpush3.bf16.msra.mxu0 %v1517_v7  ;;  %1336 = vmatpush3.bf16.msra.mxu1 %v1518_v10  ;;  %v45_v52 = vpack.c.bf16 %v26_v50, %v25_v49  ;;  %v27_v55 = vld [vmem:[%s2250_s0 + $0x60] sm:$0xff]  ;;  %v28_v56 = vld [vmem:[%s2250_s0 + $0x68] sm:$0xff]  ;;  %v92_v57 = vpack.c.bf16 %v74_v54, %v73_v53  ;;  %v75_v59 = vld [vmem:[%s2250_s0 + $0x71] sm:$0xff] }
  0x10   :  { %1389 = vmatprep.subr.bf16.mxu0 %v1527_v0  ;;  %1449 = vmatprep.subr.bf16.mxu1 %v1527_v0  ;;  %v46_v58 = vpack.c.bf16 %v28_v56, %v27_v55  ;;  %v76_v60 = vld [vmem:[%s2250_s0 + $0x79] sm:$0xff]  ;;  %v29_v61 = vld [vmem:[%s2250_s0 + $0x70] sm:$0xff]  ;;  %v77_v2 = vld [vmem:[%s2250_s0 + $0x81] sm:$0xff] }
  0x11   :  { %v30_v62 = vld [vmem:[%s2250_s0 + $0x78] sm:$0xff]  ;;  %v93_v63 = vpack.c.bf16 %v76_v60, %v75_v59  ;;  %v78_v3 = vld [vmem:[%s2250_s0 + $0x89] sm:$0xff]  ;;  %v31_v4 = vld [vmem:[%s2250_s0 + $0x80] sm:$0xff] }
  0x12   :  { %1278 = vmatmul.mubr.msk.bf16.vlgmr.msra.gmra.mxu0 %vm131_vm1, %v86_v13  ;;  %1338 = vmatmul.mubr.msk.bf16.vlgmr.msra.gmra.mxu1 %vm131_vm1, %v40_v14  ;;  %v47_v1 = vpack.c.bf16 %v30_v62, %v29_v61  ;;  %v32_v5 = vld [vmem:[%s2250_s0 + $0x88] sm:$0xff]  ;;  %v94_v6 = vpack.c.bf16 %v78_v3, %v77_v2  ;;  %v79_v8 = vld [vmem:[%s2250_s0 + $0x91] sm:$0xff]  ;;  %v80_v9 = vld [vmem:[%s2250_s0 + $0x99] sm:$0xff] }
  0x13   :  { %1390 = vmatpush3.bf16.msra.mxu0 %v1519_v15  ;;  %1450 = vmatpush3.bf16.msra.mxu1 %v1520_v16  ;;  %v48_v7 = vpack.c.bf16 %v32_v5, %v31_v4  ;;  %v33_v10 = vld [vmem:[%s2250_s0 + $0x90] sm:$0xff]  ;;  %v34_v11 = vld [vmem:[%s2250_s0 + $0x98] sm:$0xff]  ;;  %v95_v12 = vpack.c.bf16 %v80_v9, %v79_v8  ;;  %v81_v14 = vld [vmem:[%s2250_s0 + $0xa1] sm:$0xff] }
  0x14   :  { %1281 = vmatprep.mubr.msk.bf16.mxu0 %vm1528_vm0, %v1527_v0  ;;  %1341 = vmatprep.mubr.msk.bf16.mxu1 %vm1528_vm0, %v1527_v0  ;;  %v49_v13 = vpack.c.bf16 %v34_v11, %v33_v10  ;;  %v82_v15 = vld [vmem:[%s2250_s0 + $0xa9] sm:$0xff]  ;;  %v35_v16 = vld [vmem:[%s2250_s0 + $0xa0] sm:$0xff]  ;;  %v83_v20 = vld [vmem:[%s2250_s0 + $0xb1] sm:$0xff] }
  0x15   :  { %1391 = vmatprep.subr.bf16.mxu0 %v1527_v0  ;;  %1451 = vmatprep.subr.bf16.mxu1 %v1527_v0  ;;  %v36_v17 = vld [vmem:[%s2250_s0 + $0xa8] sm:$0xff]  ;;  %v96_v18 = vpack.c.bf16 %v82_v15, %v81_v14  ;;  %v84_v21 = vld [vmem:[%s2250_s0 + $0xb9] sm:$0xff] }
  0x16   :  { %v39_v27 = vld [vmem:[%s2250_s0 + $0xc0] sm:$0xff]  ;;  %v506_v30 = vld [vmem:[%s2250_s0 + $0xa] sm:$0xff]  ;;  %v511_v43 = vld [vmem:[%s2250_s0 + $0x32] sm:$0xff] }
  0x17   :  { %1392 = vmatpush3.bf16.msra.mxu0 %v1521_v19  ;;  %1452 = vmatpush3.bf16.msra.mxu1 %v1522_v22  ;;  %v50_v19 = vpack.c.bf16 %v36_v17, %v35_v16  ;;  %v37_v22 = vld [vmem:[%s2250_s0 + $0xb0] sm:$0xff]  ;;  %v52_v29 = vpack.c.bf16 %v39_v27, %v39_v27  ;;  %v508_v36 = vld [vmem:[%s2250_s0 + $0x1a] sm:$0xff]  ;;  %v509_v37 = vld [vmem:[%s2250_s0 + $0x22] sm:$0xff] }
  0x18   :  { %1393 = vmatprep.subr.bf16.mxu0 %v1527_v0  ;;  %1453 = vmatprep.subr.bf16.mxu1 %v1527_v0  ;;  %v778_v38 = vld [vmem:[%s2250_s0 + $0x1b] sm:$0xff]  ;;  %v510_v42 = vld [vmem:[%s2250_s0 + $0x2a] sm:$0xff]  ;;  %v515_v55 = vld [vmem:[%s2250_s0 + $0x52] sm:$0xff] }
  0x19   :  { %v780_v44 = vld [vmem:[%s2250_s0 + $0x2b] sm:$0xff]  ;;  %v512_v48 = vld [vmem:[%s2250_s0 + $0x3a] sm:$0xff]  ;;  %v513_v49 = vld [vmem:[%s2250_s0 + $0x42] sm:$0xff] }
  0x1a   :  { %1282 = vmatmul.mubr.msk.bf16.gmra.mxu0 %vm131_vm1, %v87_v23  ;;  %1342 = vmatmul.mubr.msk.bf16.gmra.mxu1 %vm131_vm1, %v41_v24  ;;  %v38_v23 = vld [vmem:[%s2250_s0 + $0xb8] sm:$0xff]  ;;  %v97_v24 = vpack.c.bf16 %v84_v21, %v83_v20  ;;  %v514_v54 = vld [vmem:[%s2250_s0 + $0x4a] sm:$0xff]  ;;  %v517_v61 = vld [vmem:[%s2250_s0 + $0x62] sm:$0xff] }
  0x1b   :  { %1285 = vmatprep.mubr.msk.bf16.mxu0 %vm1528_vm0, %v1527_v0  ;;  %1345 = vmatprep.mubr.msk.bf16.mxu1 %vm1528_vm0, %v1527_v0  ;;  %v782_v50 = vld [vmem:[%s2250_s0 + $0x3b] sm:$0xff]  ;;  %v784_v56 = vld [vmem:[%s2250_s0 + $0x4b] sm:$0xff] }
  0x1c   :  { %1394 = vmatpush3.bf16.msra.mxu0 %v1523_v25  ;;  %1454 = vmatpush3.bf16.msra.mxu1 %v1524_v26  ;;  %v51_v25 = vpack.c.bf16 %v38_v23, %v37_v22  ;;  %v85_v26 = vld [vmem:[%s2250_s0 + $0xc1] sm:$0xff]  ;;  %v518_v3 = vld [vmem:[%s2250_s0 + $0x6a] sm:$0xff]  ;;  %v519_v4 = vld [vmem:[%s2250_s0 + $0x72] sm:$0xff] }
  0x1d   :  { %1395 = vmatprep.subr.bf16.mxu0 %v1527_v0  ;;  %1455 = vmatprep.subr.bf16.mxu1 %v1527_v0  ;;  %v98_v28 = vpack.c.bf16 %v85_v26, %v85_v26  ;;  %v516_v60 = vld [vmem:[%s2250_s0 + $0x5a] sm:$0xff]  ;;  %v788_v5 = vld [vmem:[%s2250_s0 + $0x6b] sm:$0xff]  ;;  %v521_v10 = vld [vmem:[%s2250_s0 + $0x82] sm:$0xff] }
  0x1e   :  { %v786_v62 = vld [vmem:[%s2250_s0 + $0x5b] sm:$0xff]  ;;  %v522_v15 = vld [vmem:[%s2250_s0 + $0x8a] sm:$0xff]  ;;  %v523_v16 = vld [vmem:[%s2250_s0 + $0x92] sm:$0xff] }
  0x1f   :  { %v520_v9 = vld [vmem:[%s2250_s0 + $0x7a] sm:$0xff]  ;;  %v792_v17 = vld [vmem:[%s2250_s0 + $0x8b] sm:$0xff]  ;;  %v525_v22 = vld [vmem:[%s2250_s0 + $0xa2] sm:$0xff] }
  0x20   :  { %1396 = vmatpush3.bf16.msra.mxu0 %v1525_v31  ;;  %1456 = vmatpush3.bf16.msra.mxu1 %v1526_v34  ;;  %v507_v31 = vld [vmem:[%s2250_s0 + $0x12] sm:$0xff]  ;;  %v790_v11 = vld [vmem:[%s2250_s0 + $0x7b] sm:$0xff]  ;;  %v526_v27 = vld [vmem:[%s2250_s0 + $0xaa] sm:$0xff] }
  0x21   :  { %v531_v34 = vpack.c.bf16 %v507_v31, %v506_v30  ;;  %v524_v21 = vld [vmem:[%s2250_s0 + $0x9a] sm:$0xff] }
  0x22   :  { %1286 = vmatmul.mubr.msk.bf16.gmra.mxu0 %vm131_vm1, %v88_v32  ;;  %1346 = vmatmul.mubr.msk.bf16.gmra.mxu1 %vm131_vm1, %v42_v33  ;;  %v776_v32 = vld [vmem:[%s2250_s0 + $0xb] sm:$0xff]  ;;  %v777_v33 = vld [vmem:[%s2250_s0 + $0x13] sm:$0xff]  ;;  %v794_v23 = vld [vmem:[%s2250_s0 + $0x9b] sm:$0xff] }
  0x23   :  { %1289 = vmatprep.mubr.msk.bf16.mxu0 %vm1528_vm0, %v1527_v0  ;;  %1349 = vmatprep.mubr.msk.bf16.mxu1 %vm1528_vm0, %v1527_v0  ;;  %v801_v35 = vpack.c.bf16 %v777_v33, %v776_v32  ;;  %v797_v30 = vld [vmem:[%s2250_s0 + $0xb3] sm:$0xff] }
  0x24   :  { %v528_v33 = vld [vmem:[%s2250_s0 + $0xba] sm:$0xff] }
  0x2a   :  { %1290 = vmatmul.mubr.msk.bf16.gmra.mxu0 %vm131_vm1, %v89_v39  ;;  %1350 = vmatmul.mubr.msk.bf16.gmra.mxu1 %vm131_vm1, %v43_v40  ;;  %v779_v39 = vld [vmem:[%s2250_s0 + $0x23] sm:$0xff]  ;;  %v532_v40 = vpack.c.bf16 %v509_v37, %v508_v36 }
  0x2b   :  { %1293 = vmatprep.mubr.msk.bf16.mxu0 %vm1528_vm0, %v1527_v0  ;;  %1353 = vmatprep.mubr.msk.bf16.mxu1 %vm1528_vm0, %v1527_v0  ;;  %v802_v41 = vpack.c.bf16 %v779_v39, %v778_v38  ;;  %v799_v36 = vld [vmem:[%s2250_s0 + $0xc3] sm:$0xff] }
  0x32   :  { %1294 = vmatmul.mubr.msk.bf16.gmra.mxu0 %vm131_vm1, %v90_v45  ;;  %1354 = vmatmul.mubr.msk.bf16.gmra.mxu1 %vm131_vm1, %v44_v46  ;;  %v781_v45 = vld [vmem:[%s2250_s0 + $0x33] sm:$0xff]  ;;  %v533_v46 = vpack.c.bf16 %v511_v43, %v510_v42 }
  0x33   :  { %1297 = vmatprep.mubr.msk.bf16.mxu0 %vm1528_vm0, %v1527_v0  ;;  %1357 = vmatprep.mubr.msk.bf16.mxu1 %vm1528_vm0, %v1527_v0  ;;  %v803_v47 = vpack.c.bf16 %v781_v45, %v780_v44  ;;  %v800_v44 = vld [vmem:[%s2250_s0 + $0xcb] sm:$0xff] }
  0x3a   :  { %1298 = vmatmul.mubr.msk.bf16.gmra.mxu0 %vm131_vm1, %v91_v51  ;;  %1358 = vmatmul.mubr.msk.bf16.gmra.mxu1 %vm131_vm1, %v45_v52  ;;  %v783_v51 = vld [vmem:[%s2250_s0 + $0x43] sm:$0xff]  ;;  %v534_v52 = vpack.c.bf16 %v513_v49, %v512_v48  ;;  %v813_v49 = vpack.c.bf16 %v800_v44, %v800_v44 }
  0x3b   :  { %1301 = vmatprep.mubr.msk.bf16.mxu0 %vm1528_vm0, %v1527_v0  ;;  %1361 = vmatprep.mubr.msk.bf16.mxu1 %vm1528_vm0, %v1527_v0  ;;  %v804_v53 = vpack.c.bf16 %v783_v51, %v782_v50 }
  0x42   :  { %1302 = vmatmul.mubr.msk.bf16.gmra.mxu0 %vm131_vm1, %v92_v57  ;;  %1362 = vmatmul.mubr.msk.bf16.gmra.mxu1 %vm131_vm1, %v46_v58  ;;  %v785_v57 = vld [vmem:[%s2250_s0 + $0x53] sm:$0xff]  ;;  %v535_v58 = vpack.c.bf16 %v515_v55, %v514_v54 }
  0x43   :  { %1305 = vmatprep.mubr.msk.bf16.mxu0 %vm1528_vm0, %v1527_v0  ;;  %1365 = vmatprep.mubr.msk.bf16.mxu1 %vm1528_vm0, %v1527_v0  ;;  %v805_v59 = vpack.c.bf16 %v785_v57, %v784_v56 }
  0x4a   :  { %1306 = vmatmul.mubr.msk.bf16.gmra.mxu0 %vm131_vm1, %v93_v63  ;;  %1366 = vmatmul.mubr.msk.bf16.gmra.mxu1 %vm131_vm1, %v47_v1  ;;  %v787_v63 = vld [vmem:[%s2250_s0 + $0x63] sm:$0xff]  ;;  %v536_v1 = vpack.c.bf16 %v517_v61, %v516_v60 }
  0x4b   :  { %1309 = vmatprep.mubr.msk.bf16.mxu0 %vm1528_vm0, %v1527_v0  ;;  %1369 = vmatprep.mubr.msk.bf16.mxu1 %vm1528_vm0, %v1527_v0  ;;  %v806_v2 = vpack.c.bf16 %v787_v63, %v786_v62 }
  0x52   :  { %1310 = vmatmul.mubr.msk.bf16.gmra.mxu0 %vm131_vm1, %v94_v6  ;;  %1370 = vmatmul.mubr.msk.bf16.gmra.mxu1 %vm131_vm1, %v48_v7  ;;  %v789_v6 = vld [vmem:[%s2250_s0 + $0x73] sm:$0xff]  ;;  %v537_v7 = vpack.c.bf16 %v519_v4, %v518_v3 }
  0x53   :  { %1313 = vmatprep.mubr.msk.bf16.mxu0 %vm1528_vm0, %v1527_v0  ;;  %1373 = vmatprep.mubr.msk.bf16.mxu1 %vm1528_vm0, %v1527_v0  ;;  %v807_v8 = vpack.c.bf16 %v789_v6, %v788_v5 }
  0x5a   :  { %1314 = vmatmul.mubr.msk.bf16.gmra.mxu0 %vm131_vm1, %v95_v12  ;;  %1374 = vmatmul.mubr.msk.bf16.gmra.mxu1 %vm131_vm1, %v49_v13  ;;  %v791_v12 = vld [vmem:[%s2250_s0 + $0x83] sm:$0xff]  ;;  %v538_v13 = vpack.c.bf16 %v521_v10, %v520_v9 }
  0x5b   :  { %1317 = vmatprep.mubr.msk.bf16.mxu0 %vm1528_vm0, %v1527_v0  ;;  %1377 = vmatprep.mubr.msk.bf16.mxu1 %vm1528_vm0, %v1527_v0  ;;  %v808_v14 = vpack.c.bf16 %v791_v12, %v790_v11 }
  0x62   :  { %1318 = vmatmul.mubr.msk.bf16.gmra.mxu0 %vm131_vm1, %v96_v18  ;;  %1378 = vmatmul.mubr.msk.bf16.gmra.mxu1 %vm131_vm1, %v50_v19  ;;  %v793_v18 = vld [vmem:[%s2250_s0 + $0x93] sm:$0xff]  ;;  %v539_v19 = vpack.c.bf16 %v523_v16, %v522_v15 }
  0x63   :  { %1321 = vmatprep.mubr.msk.bf16.mxu0 %vm1528_vm0, %v1527_v0  ;;  %1381 = vmatprep.mubr.msk.bf16.mxu1 %vm1528_vm0, %v1527_v0  ;;  %v809_v20 = vpack.c.bf16 %v793_v18, %v792_v17 }
  0x6a   :  { %1322 = vmatmul.mubr.msk.bf16.gmra.mxu0 %vm131_vm1, %v97_v24  ;;  %1382 = vmatmul.mubr.msk.bf16.gmra.mxu1 %vm131_vm1, %v51_v25  ;;  %v795_v24 = vld [vmem:[%s2250_s0 + $0xa3] sm:$0xff]  ;;  %v540_v25 = vpack.c.bf16 %v525_v22, %v524_v21 }
  0x6b   :  { %1325 = vmatprep.mubr.msk.bf16.mxu0 %vm1528_vm0, %v1527_v0  ;;  %1385 = vmatprep.mubr.msk.bf16.mxu1 %vm1528_vm0, %v1527_v0  ;;  %v810_v26 = vpack.c.bf16 %v795_v24, %v794_v23 }
  0x72   :  { %1326 = vmatmul.mubr.msk.bf16.gmra.mxu0 %vm131_vm1, %v98_v28  ;;  %1386 = vmatmul.mubr.msk.bf16.gmra.mxu1 %vm131_vm1, %v52_v29  ;;  %v527_v28 = vld [vmem:[%s2250_s0 + $0xb2] sm:$0xff] }
  0x73   :  { %1397 = vmatprep.mubr.msk.bf16.mxu0 %vm1528_vm0, %v1527_v0  ;;  %1457 = vmatprep.mubr.msk.bf16.mxu1 %vm1528_vm0, %v1527_v0  ;;  %v796_v29 = vld [vmem:[%s2250_s0 + $0xab] sm:$0xff]  ;;  %v541_v31 = vpack.c.bf16 %v527_v28, %v526_v27 }
  0x74   :  { %v811_v32 = vpack.c.bf16 %v797_v30, %v796_v29 }
  0x7a   :  { %1398 = vmatmul.mubr.msk.bf16.vlgmr.msra.gmra.mxu0 %vm131_vm1, %v531_v34  ;;  %1458 = vmatmul.mubr.msk.bf16.vlgmr.msra.gmra.mxu1 %vm131_vm1, %v801_v35  ;;  %v529_v34 = vld [vmem:[%s2250_s0 + $0xc2] sm:$0xff] }
  0x7b   :  { %1401 = vmatprep.mubr.msk.bf16.mxu0 %vm1528_vm0, %v1527_v0  ;;  %1461 = vmatprep.mubr.msk.bf16.mxu1 %vm1528_vm0, %v1527_v0  ;;  %v798_v35 = vld [vmem:[%s2250_s0 + $0xbb] sm:$0xff]  ;;  %v542_v37 = vpack.c.bf16 %v529_v34, %v528_v33 }
  0x7c   :  { %v812_v38 = vpack.c.bf16 %v799_v36, %v798_v35 }
  0x82   :  { %1402 = vmatmul.mubr.msk.bf16.gmra.mxu0 %vm131_vm1, %v532_v40  ;;  %1462 = vmatmul.mubr.msk.bf16.gmra.mxu1 %vm131_vm1, %v802_v41  ;;  %v530_v41 = vld [vmem:[%s2250_s0 + $0xca] sm:$0xff] }
  0x83   :  { %1405 = vmatprep.mubr.msk.bf16.mxu0 %vm1528_vm0, %v1527_v0  ;;  %1465 = vmatprep.mubr.msk.bf16.mxu1 %vm1528_vm0, %v1527_v0 }
  0x8a   :  { %1406 = vmatmul.mubr.msk.bf16.gmra.mxu0 %vm131_vm1, %v533_v46  ;;  %1466 = vmatmul.mubr.msk.bf16.gmra.mxu1 %vm131_vm1, %v803_v47  ;;  %v543_v47 = vpack.c.bf16 %v530_v41, %v530_v41 }
  0x8b   :  { %1409 = vmatprep.mubr.msk.bf16.mxu0 %vm1528_vm0, %v1527_v0  ;;  %1469 = vmatprep.mubr.msk.bf16.mxu1 %vm1528_vm0, %v1527_v0 }
  0x92   :  { %1410 = vmatmul.mubr.msk.bf16.gmra.mxu0 %vm131_vm1, %v534_v52  ;;  %1470 = vmatmul.mubr.msk.bf16.gmra.mxu1 %vm131_vm1, %v804_v53 }
  0x93   :  { %1413 = vmatprep.mubr.msk.bf16.mxu0 %vm1528_vm0, %v1527_v0  ;;  %1473 = vmatprep.mubr.msk.bf16.mxu1 %vm1528_vm0, %v1527_v0 }
  0x9a   :  { %1414 = vmatmul.mubr.msk.bf16.gmra.mxu0 %vm131_vm1, %v535_v58  ;;  %1474 = vmatmul.mubr.msk.bf16.gmra.mxu1 %vm131_vm1, %v805_v59 }
  0x9b   :  { %1417 = vmatprep.mubr.msk.bf16.mxu0 %vm1528_vm0, %v1527_v0  ;;  %1477 = vmatprep.mubr.msk.bf16.mxu1 %vm1528_vm0, %v1527_v0 }
  0xa2   :  { %1418 = vmatmul.mubr.msk.bf16.gmra.mxu0 %vm131_vm1, %v536_v1  ;;  %1478 = vmatmul.mubr.msk.bf16.gmra.mxu1 %vm131_vm1, %v806_v2 }
  0xa3   :  { %1421 = vmatprep.mubr.msk.bf16.mxu0 %vm1528_vm0, %v1527_v0  ;;  %1481 = vmatprep.mubr.msk.bf16.mxu1 %vm1528_vm0, %v1527_v0 }
  0xaa   :  { %1422 = vmatmul.mubr.msk.bf16.gmra.mxu0 %vm131_vm1, %v537_v7  ;;  %1482 = vmatmul.mubr.msk.bf16.gmra.mxu1 %vm131_vm1, %v807_v8 }
  0xab   :  { %1425 = vmatprep.mubr.msk.bf16.mxu0 %vm1528_vm0, %v1527_v0  ;;  %1485 = vmatprep.mubr.msk.bf16.mxu1 %vm1528_vm0, %v1527_v0 }
  0xb2   :  { %1426 = vmatmul.mubr.msk.bf16.gmra.mxu0 %vm131_vm1, %v538_v13  ;;  %1486 = vmatmul.mubr.msk.bf16.gmra.mxu1 %vm131_vm1, %v808_v14 }
  0xb3   :  { %1429 = vmatprep.mubr.msk.bf16.mxu0 %vm1528_vm0, %v1527_v0  ;;  %1489 = vmatprep.mubr.msk.bf16.mxu1 %vm1528_vm0, %v1527_v0 }
  0xba   :  { %1430 = vmatmul.mubr.msk.bf16.gmra.mxu0 %vm131_vm1, %v539_v19  ;;  %1490 = vmatmul.mubr.msk.bf16.gmra.mxu1 %vm131_vm1, %v809_v20 }
  0xbb   :  { %1433 = vmatprep.mubr.msk.bf16.mxu0 %vm1528_vm0, %v1527_v0  ;;  %1493 = vmatprep.mubr.msk.bf16.mxu1 %vm1528_vm0, %v1527_v0 }
  0xc2   :  { %1434 = vmatmul.mubr.msk.bf16.gmra.mxu0 %vm131_vm1, %v540_v25  ;;  %1494 = vmatmul.mubr.msk.bf16.gmra.mxu1 %vm131_vm1, %v810_v26 }
  0xc3   :  { %1437 = vmatprep.mubr.msk.bf16.mxu0 %vm1528_vm0, %v1527_v0  ;;  %1497 = vmatprep.mubr.msk.bf16.mxu1 %vm1528_vm0, %v1527_v0 }
  0xca   :  { %1438 = vmatmul.mubr.msk.bf16.gmra.mxu0 %vm131_vm1, %v541_v31  ;;  %1498 = vmatmul.mubr.msk.bf16.gmra.mxu1 %vm131_vm1, %v811_v32 }
  0xcb   :  { %1441 = vmatprep.mubr.msk.bf16.mxu0 %vm1528_vm0, %v1527_v0  ;;  %1501 = vmatprep.mubr.msk.bf16.mxu1 %vm1528_vm0, %v1527_v0 }
  0xd2   :  { %v205_v39 = vpop.f32.mrf.mxu0  ;;  %1442 = vmatmul.mubr.msk.bf16.gmra.mxu0 %vm131_vm1, %v542_v37  ;;  %v404_v40 = vpop.f32.mrf.mxu1  ;;  %1502 = vmatmul.mubr.msk.bf16.gmra.mxu1 %vm131_vm1, %v812_v38 }
  0xd3   :  { %1445 = vmatprep.mubr.msk.bf16.mxu0 %vm1528_vm0, %v1527_v0  ;;  %v2062_v42 = vadd.f32 %v404_v40, %v205_v39  ;;  %1505 = vmatprep.mubr.msk.bf16.mxu1 %vm1528_vm0, %v1527_v0 }
  0xd4   :  { %v1279_v43 = vpop.f32.mrf.mxu0  ;;  %v1339_v45 = vpop.f32.mrf.mxu1 }
  0xd6   :  { %v208_v46 = vpop.f32.mrf.mxu0  ;;  %v407_v48 = vpop.f32.mrf.mxu1 }
  0xd7   :  { %v2069_v50 = vadd.f32 %v407_v48, %v208_v46 }
  0xd8   :  { %v1280_v51 = vpop.f32.mrf.mxu0  ;;  %v1340_v52 = vpop.f32.mrf.mxu1 }
  0xda   :  { %v213_v53 = vpop.f32.mrf.mxu0  ;;  %1446 = vmatmul.mubr.msk.bf16.gmra.mxu0 %vm131_vm1, %v543_v47  ;;  %v412_v54 = vpop.f32.mrf.mxu1  ;;  %1506 = vmatmul.mubr.msk.bf16.gmra.mxu1 %vm131_vm1, %v813_v49 }
  0xdb   :  { %v2073_v0 = vadd.f32 %v412_v54, %v213_v53 }
  0xdc   :  { %v1283_v55 = vpop.f32.mrf.mxu0  ;;  %v1343_v56 = vpop.f32.mrf.mxu1 }
  0xde   :  { %v216_v57 = vpop.f32.mrf.mxu0  ;;  %v415_v58 = vpop.f32.mrf.mxu1 }
  0xdf   :  { %v2075_v59 = vadd.f32 %v415_v58, %v216_v57 }
  0xe0   :  { %v1284_v60 = vpop.f32.mrf.mxu0  ;;  %v1344_v61 = vpop.f32.mrf.mxu1 }
  0xe2   :  { %v221_v62 = vpop.f32.mrf.mxu0  ;;  %v420_v63 = vpop.f32.mrf.mxu1 }
  0xe3   :  { %v2077_v1 = vadd.f32 %v420_v63, %v221_v62 }
  0xe4   :  { %v1287_v2 = vpop.f32.mrf.mxu0  ;;  %v1347_v3 = vpop.f32.mrf.mxu1 }
  0xe6   :  { %v224_v4 = vpop.f32.mrf.mxu0  ;;  %v423_v5 = vpop.f32.mrf.mxu1 }
  0xe7   :  { %v2079_v6 = vadd.f32 %v423_v5, %v224_v4 }
  0xe8   :  { %v1288_v7 = vpop.f32.mrf.mxu0  ;;  %v1348_v8 = vpop.f32.mrf.mxu1 }
  0xea   :  { %v229_v9 = vpop.f32.mrf.mxu0  ;;  %v428_v10 = vpop.f32.mrf.mxu1 }
  0xeb   :  { %v2081_v11 = vadd.f32 %v428_v10, %v229_v9 }
  0xec   :  { %v1291_v12 = vpop.f32.mrf.mxu0  ;;  %v1351_v13 = vpop.f32.mrf.mxu1 }
  0xee   :  { %v232_v14 = vpop.f32.mrf.mxu0  ;;  %v431_v15 = vpop.f32.mrf.mxu1 }
  0xef   :  { %v2083_v16 = vadd.f32 %v431_v15, %v232_v14 }
  0xf0   :  { %v1292_v17 = vpop.f32.mrf.mxu0  ;;  %v1352_v18 = vpop.f32.mrf.mxu1 }
  0xf2   :  { %v237_v19 = vpop.f32.mrf.mxu0  ;;  %v436_v20 = vpop.f32.mrf.mxu1 }
  0xf3   :  { %v2085_v21 = vadd.f32 %v436_v20, %v237_v19 }
  0xf4   :  { %v1295_v22 = vpop.f32.mrf.mxu0  ;;  %v1355_v23 = vpop.f32.mrf.mxu1 }
  0xf6   :  { %v240_v24 = vpop.f32.mrf.mxu0  ;;  %v439_v25 = vpop.f32.mrf.mxu1 }
  0xf7   :  { %v2087_v26 = vadd.f32 %v439_v25, %v240_v24 }
  0xf8   :  { %v1296_v27 = vpop.f32.mrf.mxu0  ;;  %v1356_v28 = vpop.f32.mrf.mxu1 }
  0xfa   :  { %v245_v29 = vpop.f32.mrf.mxu0  ;;  %v444_v30 = vpop.f32.mrf.mxu1 }
  0xfb   :  { %v2089_v31 = vadd.f32 %v444_v30, %v245_v29 }
  0xfc   :  { %v1299_v32 = vpop.f32.mrf.mxu0  ;;  %v1359_v33 = vpop.f32.mrf.mxu1 }
  0xfe   :  { %v248_v34 = vpop.f32.mrf.mxu0  ;;  %v447_v35 = vpop.f32.mrf.mxu1 }
  0xff   :  { %v2091_v36 = vadd.f32 %v447_v35, %v248_v34 }
 0x100   :  { %v1300_v37 = vpop.f32.mrf.mxu0  ;;  %v1360_v38 = vpop.f32.mrf.mxu1 }
 0x102   :  { %v253_v39 = vpop.f32.mrf.mxu0  ;;  %v452_v40 = vpop.f32.mrf.mxu1 }
 0x103   :  { %v2093_v41 = vadd.f32 %v452_v40, %v253_v39 }
 0x104   :  { %v1303_v43 = vpop.f32.mrf.mxu0  ;;  %v1363_v44 = vpop.f32.mrf.mxu1 }
 0x106   :  { %v256_v45 = vpop.f32.mrf.mxu0  ;;  %v455_v46 = vpop.f32.mrf.mxu1 }
 0x107   :  { %v2095_v47 = vadd.f32 %v455_v46, %v256_v45 }
 0x108   :  { %v1304_v48 = vpop.f32.mrf.mxu0  ;;  %v1364_v49 = vpop.f32.mrf.mxu1 }
 0x10a   :  { %v261_v51 = vpop.f32.mrf.mxu0  ;;  %v460_v52 = vpop.f32.mrf.mxu1 }
 0x10b   :  { %v2097_v53 = vadd.f32 %v460_v52, %v261_v51 }
 0x10c   :  { %v1307_v54 = vpop.f32.mrf.mxu0  ;;  %v1367_v55 = vpop.f32.mrf.mxu1 }
 0x10e   :  { %v264_v56 = vpop.f32.mrf.mxu0  ;;  %v463_v57 = vpop.f32.mrf.mxu1 }
 0x10f   :  { %v2099_v58 = vadd.f32 %v463_v57, %v264_v56 }
 0x110   :  { %v1308_v60 = vpop.f32.mrf.mxu0  ;;  %v1368_v61 = vpop.f32.mrf.mxu1 }
 0x112   :  { %v269_v62 = vpop.f32.mrf.mxu0  ;;  %v468_v63 = vpop.f32.mrf.mxu1 }
 0x113   :  { %v2101_v2 = vadd.f32 %v468_v63, %v269_v62 }
 0x114   :  { %v1311_v3 = vpop.f32.mrf.mxu0  ;;  %v1371_v4 = vpop.f32.mrf.mxu1 }
 0x116   :  { %v272_v5 = vpop.f32.mrf.mxu0  ;;  %v471_v7 = vpop.f32.mrf.mxu1 }
 0x117   :  { %v2103_v8 = vadd.f32 %v471_v7, %v272_v5  ;;  %v2123_v5 = vld [vmem:[%s2251_s2] ss:$0 sm:$0xff] }
 0x118   :  { %v1312_v9 = vpop.f32.mrf.mxu0  ;;  %v1372_v10 = vpop.f32.mrf.mxu1 }
 0x11a   :  { %v277_v12 = vpop.f32.mrf.mxu0  ;;  %v476_v13 = vpop.f32.mrf.mxu1 }
 0x11b   :  { %v2105_v14 = vadd.f32 %v476_v13, %v277_v12 }
 0x11c   :  { %v1315_v15 = vpop.f32.mrf.mxu0  ;;  %v1375_v17 = vpop.f32.mrf.mxu1 }
 0x11e   :  { %v280_v18 = vpop.f32.mrf.mxu0  ;;  %v479_v19 = vpop.f32.mrf.mxu1 }
 0x11f   :  { %v2107_v20 = vadd.f32 %v479_v19, %v280_v18 }
 0x120   :  { %v1316_v22 = vpop.f32.mrf.mxu0  ;;  %v1376_v23 = vpop.f32.mrf.mxu1 }
 0x122   :  { %v285_v24 = vpop.f32.mrf.mxu0  ;;  %v484_v25 = vpop.f32.mrf.mxu1 }
 0x123   :  { %v2109_v27 = vadd.f32 %v484_v25, %v285_v24 }
 0x124   :  { %v1319_v28 = vpop.f32.mrf.mxu0  ;;  %v1379_v29 = vpop.f32.mrf.mxu1 }
 0x126   :  { %v288_v30 = vpop.f32.mrf.mxu0  ;;  %v487_v32 = vpop.f32.mrf.mxu1 }
 0x127   :  { %v2111_v33 = vadd.f32 %v487_v32, %v288_v30 }
 0x128   :  { %v1320_v34 = vpop.f32.mrf.mxu0  ;;  %v1380_v35 = vpop.f32.mrf.mxu1 }
 0x12a   :  { %v293_v37 = vpop.f32.mrf.mxu0  ;;  %v492_v38 = vpop.f32.mrf.mxu1 }
 0x12b   :  { %v2113_v39 = vadd.f32 %v492_v38, %v293_v37 }
 0x12c   :  { %v1323_v40 = vpop.f32.mrf.mxu0  ;;  %v1383_v43 = vpop.f32.mrf.mxu1 }
 0x12e   :  { %v296_v44 = vpop.f32.mrf.mxu0  ;;  %v495_v45 = vpop.f32.mrf.mxu1 }
 0x12f   :  { %v2115_v46 = vadd.f32 %v495_v45, %v296_v44 }
 0x130   :  { %v1324_v48 = vpop.f32.mrf.mxu0  ;;  %v1384_v49 = vpop.f32.mrf.mxu1 }
 0x132   :  { %v301_v51 = vpop.f32.mrf.mxu0  ;;  %v500_v52 = vpop.f32.mrf.mxu1 }
 0x133   :  { %v2117_v54 = vadd.f32 %v500_v52, %v301_v51 }
 0x134   :  { %v1327_v55 = vpop.f32.mrf.mxu0  ;;  %v1387_v56 = vpop.f32.mrf.mxu1 }
 0x136   :  { %v304_v57 = vpop.f32.mrf.mxu0  ;;  %v503_v60 = vpop.f32.mrf.mxu1 }
 0x138   :  { %v1328_v61 = vpop.f32.mrf.mxu0  ;;  %v1388_v62 = vpop.f32.mrf.mxu1 }
 0x13a   :  { %v649_v63 = vpop.f32.mrf.mxu0  ;;  %v919_v4 = vpop.f32.mrf.mxu1 }
 0x13b   :  { %v751_v3 = vadd.f32 %v649_v63, %v2062_v42 }
 0x13c   :  { %v1399_v7 = vpop.f32.mrf.mxu0  ;;  %v1459_v10 = vpop.f32.mrf.mxu1 }
 0x13d   :  { %v1021_v9 = vadd.f32 %v919_v4, %v751_v3 }
 0x13e   :  { %v652_v12 = vpop.f32.mrf.mxu0  ;;  %v922_v17 = vpop.f32.mrf.mxu1 }
 0x13f   :  { %v1053_v13 = vadd.f32 %v2123_v5, %v1021_v9  ;;  %v752_v15 = vadd.f32 %v652_v12, %v2069_v50 }
 0x140   :  { %v1400_v18 = vpop.f32.mrf.mxu0  ;;  %v1460_v23 = vpop.f32.mrf.mxu1 }
 0x141   :  { %v1078_v19 = vmax.f32 %v1053_v13, 0.0  ;;  %v1022_v22 = vadd.f32 %v922_v17, %v752_v15 }
 0x142   :  { %v657_v42 = vpop.f32.mrf.mxu0  ;;  %v927_v28 = vpop.f32.mrf.mxu1 }
 0x143   :  { %1103 = vst [vmem:[%s2252_s3] sm:$0xff] %v1078_v19  ;;  %v1054_v24 = vadd.f32 %v2123_v5, %v1022_v22  ;;  %v753_v25 = vadd.f32 %v657_v42, %v2073_v0 }
 0x144   :  { %v1403_v29 = vpop.f32.mrf.mxu0  ;;  %v1463_v34 = vpop.f32.mrf.mxu1 }
 0x145   :  { %v1079_v30 = vmax.f32 %v1054_v24, 0.0  ;;  %v1023_v32 = vadd.f32 %v927_v28, %v753_v25 }
 0x146   :  { %v660_v50 = vpop.f32.mrf.mxu0  ;;  %v930_v38 = vpop.f32.mrf.mxu1 }
 0x147   :  { %1104 = vst [vmem:[%s2252_s3 + $0x8] sm:$0xff] %v1079_v30  ;;  %v1055_v35 = vadd.f32 %v2123_v5, %v1023_v32  ;;  %v754_v37 = vadd.f32 %v660_v50, %v2075_v59 }
 0x148   :  { %v1404_v40 = vpop.f32.mrf.mxu0  ;;  %v1464_v45 = vpop.f32.mrf.mxu1 }
 0x149   :  { %v1080_v43 = vmax.f32 %v1055_v35, 0.0  ;;  %v1024_v44 = vadd.f32 %v930_v38, %v754_v37 }
 0x14a   :  { %v665_v0 = vpop.f32.mrf.mxu0  ;;  %v935_v51 = vpop.f32.mrf.mxu1 }
 0x14b   :  { %1105 = vst [vmem:[%s2252_s3 + $0x10] sm:$0xff] %v1080_v43  ;;  %v1056_v48 = vadd.f32 %v2123_v5, %v1024_v44  ;;  %v755_v49 = vadd.f32 %v665_v0, %v2077_v1 }
 0x14c   :  { %v1407_v52 = vpop.f32.mrf.mxu0  ;;  %v1467_v57 = vpop.f32.mrf.mxu1 }
 0x14d   :  { %v1081_v55 = vmax.f32 %v1056_v48, 0.0  ;;  %v1025_v56 = vadd.f32 %v935_v51, %v755_v49 }
 0x14e   :  { %v668_v59 = vpop.f32.mrf.mxu0  ;;  %v938_v62 = vpop.f32.mrf.mxu1 }
 0x14f   :  { %1106 = vst [vmem:[%s2252_s3 + $0x18] sm:$0xff] %v1081_v55  ;;  %v1057_v60 = vadd.f32 %v2123_v5, %v1025_v56  ;;  %v756_v61 = vadd.f32 %v668_v59, %v2079_v6 }
 0x150   :  { %v1408_v63 = vpop.f32.mrf.mxu0  ;;  %v1468_v7 = vpop.f32.mrf.mxu1 }
 0x151   :  { %v1082_v3 = vmax.f32 %v1057_v60, 0.0  ;;  %v1026_v4 = vadd.f32 %v938_v62, %v756_v61 }
 0x152   :  { %v673_v1 = vpop.f32.mrf.mxu0  ;;  %v943_v12 = vpop.f32.mrf.mxu1 }
 0x153   :  { %1107 = vst [vmem:[%s2252_s3 + $0x20] sm:$0xff] %v1082_v3  ;;  %v1058_v9 = vadd.f32 %v2123_v5, %v1026_v4  ;;  %v757_v10 = vadd.f32 %v673_v1, %v2081_v11 }
 0x154   :  { %v1411_v13 = vpop.f32.mrf.mxu0  ;;  %v1471_v18 = vpop.f32.mrf.mxu1 }
 0x155   :  { %v1083_v15 = vmax.f32 %v1058_v9, 0.0  ;;  %v1027_v17 = vadd.f32 %v943_v12, %v757_v10 }
 0x156   :  { %v676_v6 = vpop.f32.mrf.mxu0  ;;  %v946_v23 = vpop.f32.mrf.mxu1 }
 0x157   :  { %1108 = vst [vmem:[%s2252_s3 + $0x28] sm:$0xff] %v1083_v15  ;;  %v1059_v19 = vadd.f32 %v2123_v5, %v1027_v17  ;;  %v758_v22 = vadd.f32 %v676_v6, %v2083_v16 }
 0x158   :  { %v1412_v42 = vpop.f32.mrf.mxu0  ;;  %v1472_v28 = vpop.f32.mrf.mxu1 }
 0x159   :  { %v1084_v24 = vmax.f32 %v1059_v19, 0.0  ;;  %v1028_v25 = vadd.f32 %v946_v23, %v758_v22 }
 0x15a   :  { %v681_v11 = vpop.f32.mrf.mxu0  ;;  %v951_v32 = vpop.f32.mrf.mxu1 }
 0x15b   :  { %1109 = vst [vmem:[%s2252_s3 + $0x30] sm:$0xff] %v1084_v24  ;;  %v1060_v29 = vadd.f32 %v2123_v5, %v1028_v25  ;;  %v759_v30 = vadd.f32 %v681_v11, %v2085_v21 }
 0x15c   :  { %v1415_v34 = vpop.f32.mrf.mxu0  ;;  %v1475_v37 = vpop.f32.mrf.mxu1 }
 0x15d   :  { %v1085_v50 = vmax.f32 %v1060_v29, 0.0  ;;  %v1029_v35 = vadd.f32 %v951_v32, %v759_v30 }
 0x15e   :  { %v684_v16 = vpop.f32.mrf.mxu0  ;;  %v954_v43 = vpop.f32.mrf.mxu1 }
 0x15f   :  { %1110 = vst [vmem:[%s2252_s3 + $0x38] sm:$0xff] %v1085_v50  ;;  %v1061_v38 = vadd.f32 %v2123_v5, %v1029_v35  ;;  %v760_v40 = vadd.f32 %v684_v16, %v2087_v26 }
 0x160   :  { %v1416_v44 = vpop.f32.mrf.mxu0  ;;  %v1476_v48 = vpop.f32.mrf.mxu1 }
 0x161   :  { %v1086_v45 = vmax.f32 %v1061_v38, 0.0  ;;  %v1030_v0 = vadd.f32 %v954_v43, %v760_v40 }
 0x162   :  { %v689_v21 = vpop.f32.mrf.mxu0  ;;  %v959_v52 = vpop.f32.mrf.mxu1 }
 0x163   :  { %1111 = vst [vmem:[%s2252_s3 + $0x40] sm:$0xff] %v1086_v45  ;;  %v1062_v49 = vadd.f32 %v2123_v5, %v1030_v0  ;;  %v761_v51 = vadd.f32 %v689_v21, %v2089_v31 }
 0x164   :  { %v1419_v55 = vpop.f32.mrf.mxu0  ;;  %v1479_v59 = vpop.f32.mrf.mxu1 }
 0x165   :  { %v1087_v56 = vmax.f32 %v1062_v49, 0.0  ;;  %v1031_v57 = vadd.f32 %v959_v52, %v761_v51 }
 0x166   :  { %v692_v26 = vpop.f32.mrf.mxu0  ;;  %v962_v62 = vpop.f32.mrf.mxu1 }
 0x167   :  { %1112 = vst [vmem:[%s2252_s3 + $0x48] sm:$0xff] %v1087_v56  ;;  %v1063_v60 = vadd.f32 %v2123_v5, %v1031_v57  ;;  %v762_v61 = vadd.f32 %v692_v26, %v2091_v36 }
 0x168   :  { %v1420_v63 = vpop.f32.mrf.mxu0  ;;  %v1480_v7 = vpop.f32.mrf.mxu1 }
 0x169   :  { %v1088_v3 = vmax.f32 %v1063_v60, 0.0  ;;  %v1032_v4 = vadd.f32 %v962_v62, %v762_v61 }
 0x16a   :  { %v697_v31 = vpop.f32.mrf.mxu0  ;;  %v967_v10 = vpop.f32.mrf.mxu1 }
 0x16b   :  { %1113 = vst [vmem:[%s2252_s3 + $0x50] sm:$0xff] %v1088_v3  ;;  %v1064_v1 = vadd.f32 %v2123_v5, %v1032_v4  ;;  %v763_v9 = vadd.f32 %v697_v31, %v2093_v41 }
 0x16c   :  { %v1423_v12 = vpop.f32.mrf.mxu0  ;;  %v1483_v17 = vpop.f32.mrf.mxu1 }
 0x16d   :  { %v1089_v13 = vmax.f32 %v1064_v1, 0.0  ;;  %v1033_v15 = vadd.f32 %v967_v10, %v763_v9 }
 0x16e   :  { %v700_v36 = vpop.f32.mrf.mxu0  ;;  %v970_v19 = vpop.f32.mrf.mxu1 }
 0x16f   :  { %1114 = vst [vmem:[%s2252_s3 + $0x58] sm:$0xff] %v1089_v13  ;;  %v1065_v18 = vadd.f32 %v2123_v5, %v1033_v15  ;;  %v764_v6 = vadd.f32 %v700_v36, %v2095_v47 }
 0x170   :  { %v1424_v22 = vpop.f32.mrf.mxu0  ;;  %v1484_v24 = vpop.f32.mrf.mxu1 }
 0x171   :  { %v1090_v23 = vmax.f32 %v1065_v18, 0.0  ;;  %v1034_v42 = vadd.f32 %v970_v19, %v764_v6 }
 0x172   :  { %v705_v41 = vpop.f32.mrf.mxu0  ;;  %v975_v11 = vpop.f32.mrf.mxu1 }
 0x173   :  { %1115 = vst [vmem:[%s2252_s3 + $0x60] sm:$0xff] %v1090_v23  ;;  %v1066_v25 = vadd.f32 %v2123_v5, %v1034_v42  ;;  %v765_v28 = vadd.f32 %v705_v41, %v2097_v53 }
 0x174   :  { %v1427_v29 = vpop.f32.mrf.mxu0  ;;  %v1487_v34 = vpop.f32.mrf.mxu1 }
 0x175   :  { %v1091_v30 = vmax.f32 %v1066_v25, 0.0  ;;  %v1035_v32 = vadd.f32 %v975_v11, %v765_v28 }
 0x176   :  { %v708_v47 = vpop.f32.mrf.mxu0  ;;  %v978_v37 = vpop.f32.mrf.mxu1 }
 0x177   :  { %1116 = vst [vmem:[%s2252_s3 + $0x68] sm:$0xff] %v1091_v30  ;;  %v1067_v50 = vadd.f32 %v2123_v5, %v1035_v32  ;;  %v766_v35 = vadd.f32 %v708_v47, %v2099_v58 }
 0x178   :  { %v1428_v16 = vpop.f32.mrf.mxu0  ;;  %v1488_v43 = vpop.f32.mrf.mxu1 }
 0x179   :  { %v1092_v38 = vmax.f32 %v1067_v50, 0.0  ;;  %v1036_v40 = vadd.f32 %v978_v37, %v766_v35 }
 0x17a   :  { %v713_v53 = vpop.f32.mrf.mxu0  ;;  %v983_v0 = vpop.f32.mrf.mxu1 }
 0x17b   :  { %1117 = vst [vmem:[%s2252_s3 + $0x70] sm:$0xff] %v1092_v38  ;;  %v1068_v44 = vadd.f32 %v2123_v5, %v1036_v40  ;;  %v767_v45 = vadd.f32 %v713_v53, %v2101_v2 }
 0x17c   :  { %v1431_v48 = vpop.f32.mrf.mxu0  ;;  %v1491_v51 = vpop.f32.mrf.mxu1 }
 0x17d   :  { %v1093_v21 = vmax.f32 %v1068_v44, 0.0  ;;  %v1037_v49 = vadd.f32 %v983_v0, %v767_v45 }
 0x17e   :  { %v716_v58 = vpop.f32.mrf.mxu0  ;;  %v986_v56 = vpop.f32.mrf.mxu1 }
 0x17f   :  { %1118 = vst [vmem:[%s2252_s3 + $0x78] sm:$0xff] %v1093_v21  ;;  %v1069_v52 = vadd.f32 %v2123_v5, %v1037_v49  ;;  %v768_v55 = vadd.f32 %v716_v58, %v2103_v8 }
 0x180   :  { %v1432_v57 = vpop.f32.mrf.mxu0  ;;  %v1492_v60 = vpop.f32.mrf.mxu1 }
 0x181   :  { %v1094_v59 = vmax.f32 %v1069_v52, 0.0  ;;  %v1038_v26 = vadd.f32 %v986_v56, %v768_v55 }
 0x182   :  { %v721_v2 = vpop.f32.mrf.mxu0  ;;  %v991_v63 = vpop.f32.mrf.mxu1 }
 0x183   :  { %1119 = vst [vmem:[%s2252_s3 + $0x80] sm:$0xff] %v1094_v59  ;;  %v1070_v61 = vadd.f32 %v2123_v5, %v1038_v26  ;;  %v769_v62 = vadd.f32 %v721_v2, %v2105_v14 }
 0x184   :  { %v1435_v3 = vpop.f32.mrf.mxu0  ;;  %v1495_v31 = vpop.f32.mrf.mxu1 }
 0x185   :  { %v1095_v4 = vmax.f32 %v1070_v61, 0.0  ;;  %v1039_v7 = vadd.f32 %v991_v63, %v769_v62 }
 0x186   :  { %v724_v8 = vpop.f32.mrf.mxu0  ;;  %v994_v10 = vpop.f32.mrf.mxu1 }
 0x187   :  { %1120 = vst [vmem:[%s2252_s3 + $0x88] sm:$0xff] %v1095_v4  ;;  %v1071_v1 = vadd.f32 %v2123_v5, %v1039_v7  ;;  %v770_v9 = vadd.f32 %v724_v8, %v2107_v20 }
 0x188   :  { %v1436_v12 = vpop.f32.mrf.mxu0  ;;  %v1496_v17 = vpop.f32.mrf.mxu1 }
 0x189   :  { %v1096_v13 = vmax.f32 %v1071_v1, 0.0  ;;  %v1040_v15 = vadd.f32 %v994_v10, %v770_v9 }
 0x18a   :  { %v729_v14 = vpop.f32.mrf.mxu0  ;;  %v999_v6 = vpop.f32.mrf.mxu1 }
 0x18b   :  { %1121 = vst [vmem:[%s2252_s3 + $0x90] sm:$0xff] %v1096_v13  ;;  %v1072_v36 = vadd.f32 %v2123_v5, %v1040_v15  ;;  %v771_v18 = vadd.f32 %v729_v14, %v2109_v27 }
 0x18c   :  { %v1439_v19 = vpop.f32.mrf.mxu0  ;;  %v1499_v42 = vpop.f32.mrf.mxu1 }
 0x18d   :  { %v1097_v22 = vmax.f32 %v1072_v36, 0.0  ;;  %v1041_v23 = vadd.f32 %v999_v6, %v771_v18 }
 0x18e   :  { %v732_v20 = vpop.f32.mrf.mxu0  ;;  %v1002_v25 = vpop.f32.mrf.mxu1 }
 0x18f   :  { %1122 = vst [vmem:[%s2252_s3 + $0x98] sm:$0xff] %v1097_v22  ;;  %v1073_v24 = vadd.f32 %v2123_v5, %v1041_v23  ;;  %v772_v41 = vadd.f32 %v732_v20, %v2111_v33 }
 0x190   :  { %v1440_v28 = vpop.f32.mrf.mxu0  ;;  %v1500_v30 = vpop.f32.mrf.mxu1 }
 0x191   :  { %v1098_v11 = vmax.f32 %v1073_v24, 0.0  ;;  %v1042_v29 = vadd.f32 %v1002_v25, %v772_v41 }
 0x192   :  { %v737_v27 = vpop.f32.mrf.mxu0  ;;  %v1007_v47 = vpop.f32.mrf.mxu1 }
 0x193   :  { %1123 = vst [vmem:[%s2252_s3 + $0xa0] sm:$0xff] %v1098_v11  ;;  %v1074_v32 = vadd.f32 %v2123_v5, %v1042_v29  ;;  %v773_v34 = vadd.f32 %v737_v27, %v2113_v39 }
 0x194   :  { %v1443_v50 = vpop.f32.mrf.mxu0  ;;  %v1503_v16 = vpop.f32.mrf.mxu1 }
 0x195   :  { %v1099_v35 = vmax.f32 %v1074_v32, 0.0  ;;  %v1043_v37 = vadd.f32 %v1007_v47, %v773_v34 }
 0x196   :  { %v740_v33 = vpop.f32.mrf.mxu0  ;;  %v1010_v43 = vpop.f32.mrf.mxu1 }
 0x197   :  { %1124 = vst [vmem:[%s2252_s3 + $0xa8] sm:$0xff] %v1099_v35  ;;  %v1075_v38 = vadd.f32 %v2123_v5, %v1043_v37  ;;  %v774_v40 = vadd.f32 %v740_v33, %v2115_v46 }
 0x198   :  { %v1444_v53 = vpop.f32.mrf.mxu0  ;;  %v1504_v0 = vpop.f32.mrf.mxu1 }
 0x199   :  { %v1100_v44 = vmax.f32 %v1075_v38, 0.0  ;;  %v1044_v45 = vadd.f32 %v1010_v43, %v774_v40 }
 0x19a   :  { %v745_v39 = vpop.f32.mrf.mxu0  ;;  %v1015_v49 = vpop.f32.mrf.mxu1 }
 0x19b   :  { %1125 = vst [vmem:[%s2252_s3 + $0xb0] sm:$0xff] %v1100_v44  ;;  %v1076_v48 = vadd.f32 %v2123_v5, %v1044_v45  ;;  %v775_v21 = vadd.f32 %v745_v39, %v2117_v54 }
 0x19c   :  { %v1447_v51 = vpop.f32.mrf.mxu0  ;;  %v1507_v55 = vpop.f32.mrf.mxu1 }
 0x19d   :  { %v1101_v58 = vmax.f32 %v1076_v48, 0.0  ;;  %v1045_v52 = vadd.f32 %v1015_v49, %v775_v21 }
 0x19e   :  { %v748_v46 = vpop.f32.mrf.mxu0  ;;  %v1018_v57 = vpop.f32.mrf.mxu1 }
 0x19f   :  { %1126 = vst [vmem:[%s2252_s3 + $0xb8] sm:$0xff] %v1101_v58  ;;  %v1077_v56 = vadd.f32 %v2123_v5, %v1045_v52 }
 0x1a0   :  { %v1448_v59 = vpop.f32.mrf.mxu0  ;;  %v1508_v60 = vpop.f32.mrf.mxu1 }
 0x1a1   :  { %v1102_v26 = vmax.f32 %v1077_v56, 0.0 }
 0x1a3   :  { %1127 = vst [vmem:[%s2252_s3 + $0xc0] sm:$0xff] %v1102_v26 }

// kernel: conv_decoder_forward.8
= control target key start
LH: loop header
LB: loop body
LE: loop exit
PB: predicated region body
PF: predicated region fallthrough
CT: control target
= control target key end

     0   :  { %v6043_v0 = vmov 0.0   ;;  %vm3945_vm0 = vmmov 0   ;;  %vm279_vm1 = vcmask 261120   ;;  %s6039_s1 = inlined_call_operand.vmem [shape: bf16[128,128], index: 1, kind: input, shape index: {}]   ;;  %s6040_s0 = inlined_call_operand.vmem [shape: f32[674,32], index: 0, kind: input, shape index: {}]   ;;  %s6041_s2 = inlined_call_operand.vmem [shape: f32[1,128], index: 2, kind: input, shape index: {}]   ;;  %s6042_s3 = inlined_call_operand.vmem [shape: f32[648,128], index: 3, kind: output, shape index: {}]  }
   0x1   :  { %3261 = vmatprep.subr.bf16.mxu0 %v6043_v0  ;;  %3429 = vmatprep.subr.bf16.mxu1 %v6043_v0  ;;  %v3935_v1 = vld [vmem:[%s6039_s1 + $0x18] sm:$0xff]   ;;  %v3936_v2 = vld [vmem:[%s6039_s1 + $0x8] sm:$0xff]   ;;  %v3937_v3 = vld [vmem:[%s6039_s1 + $0x10] sm:$0xff]  }
   0x2   :  { %3265 = vmatprep.mubr.msk.bf16.mxu0 %vm3945_vm0, %v6043_v0  ;;  %3433 = vmatprep.mubr.msk.bf16.mxu1 %vm3945_vm0, %v6043_v0  ;;  %v3938_v4 = vld [vmem:[%s6039_s1] sm:$0xff]   ;;  %v142_v6 = vld [vmem:[%s6040_s0 + $0x9] sm:$0xff]  ;;  %v3940_v12 = vld [vmem:[%s6039_s1 + $0x38] sm:$0xff]  }
   0x3   :  { %3262 = vmatpush3.bf16.msra.mxu0 %v3935_v1  ;;  %3430 = vmatpush3.bf16.msra.mxu1 %v3936_v2  ;;  %v141_v5 = vld [vmem:[%s6040_s0 + $0x1] sm:$0xff]  ;;  %v143_v13 = vld [vmem:[%s6040_s0 + $0x11] sm:$0xff]  ;;  %v144_v14 = vld [vmem:[%s6040_s0 + $0x19] sm:$0xff] }
   0x4   :  { %3263 = vmatprep.subr.bf16.mxu0 %v6043_v0  ;;  %3431 = vmatprep.subr.bf16.mxu1 %v6043_v0  ;;  %v15_v7 = vld [vmem:[%s6040_s0] sm:$0xff]  ;;  %v222_v8 = vpack.c.bf16 %v142_v6, %v141_v5  ;;  %v16_v9 = vld [vmem:[%s6040_s0 + $0x8] sm:$0xff]  ;;  %v17_v15 = vld [vmem:[%s6040_s0 + $0x10] sm:$0xff]  ;;  %v223_v17 = vpack.c.bf16 %v144_v14, %v143_v13 }
   0x5   :  { %v96_v10 = vpack.c.bf16 %v16_v9, %v15_v7  ;;  %v3939_v11 = vld [vmem:[%s6039_s1 + $0x28] sm:$0xff]   ;;  %v18_v16 = vld [vmem:[%s6040_s0 + $0x18] sm:$0xff]  ;;  %v19_v21 = vld [vmem:[%s6040_s0 + $0x20] sm:$0xff] }
   0x6   :  { %v97_v18 = vpack.c.bf16 %v18_v16, %v17_v15  ;;  %v145_v19 = vld [vmem:[%s6040_s0 + $0x21] sm:$0xff]  ;;  %v146_v20 = vld [vmem:[%s6040_s0 + $0x29] sm:$0xff]  ;;  %v147_v25 = vld [vmem:[%s6040_s0 + $0x31] sm:$0xff] }
   0x7   :  { %3264 = vmatpush3.bf16.msra.mxu0 %v3937_v3  ;;  %3432 = vmatpush3.bf16.msra.mxu1 %v3938_v4  ;;  %v20_v22 = vld [vmem:[%s6040_s0 + $0x28] sm:$0xff]  ;;  %v224_v23 = vpack.c.bf16 %v146_v20, %v145_v19  ;;  %v148_v26 = vld [vmem:[%s6040_s0 + $0x39] sm:$0xff]  ;;  %v21_v27 = vld [vmem:[%s6040_s0 + $0x30] sm:$0xff] }
   0x8   :  { %3597 = vmatprep.subr.bf16.mxu0 %v6043_v0  ;;  %3765 = vmatprep.subr.bf16.mxu1 %v6043_v0  ;;  %v98_v24 = vpack.c.bf16 %v20_v22, %v19_v21  ;;  %v22_v28 = vld [vmem:[%s6040_s0 + $0x38] sm:$0xff]  ;;  %v225_v29 = vpack.c.bf16 %v148_v26, %v147_v25  ;;  %v149_v31 = vld [vmem:[%s6040_s0 + $0x41] sm:$0xff]  ;;  %v150_v32 = vld [vmem:[%s6040_s0 + $0x49] sm:$0xff] }
   0x9   :  { %v99_v30 = vpack.c.bf16 %v22_v28, %v21_v27  ;;  %v23_v33 = vld [vmem:[%s6040_s0 + $0x40] sm:$0xff]  ;;  %v24_v34 = vld [vmem:[%s6040_s0 + $0x48] sm:$0xff]  ;;  %v226_v35 = vpack.c.bf16 %v150_v32, %v149_v31  ;;  %v151_v37 = vld [vmem:[%s6040_s0 + $0x51] sm:$0xff] }
   0xa   :  { %3266 = vmatmul.mubr.msk.bf16.vlgmr.msra.gmra.mxu0 %vm279_vm1, %v222_v8  ;;  %3434 = vmatmul.mubr.msk.bf16.vlgmr.msra.gmra.mxu1 %vm279_vm1, %v96_v10  ;;  %v100_v36 = vpack.c.bf16 %v24_v34, %v23_v33  ;;  %v152_v38 = vld [vmem:[%s6040_s0 + $0x59] sm:$0xff]  ;;  %v25_v40 = vld [vmem:[%s6040_s0 + $0x50] sm:$0xff]  ;;  %v153_v45 = vld [vmem:[%s6040_s0 + $0x61] sm:$0xff] }
   0xb   :  { %3598 = vmatpush3.bf16.msra.mxu0 %v3939_v11  ;;  %3766 = vmatpush3.bf16.msra.mxu1 %v3940_v12  ;;  %v3941_v39 = vld [vmem:[%s6039_s1 + $0x20] sm:$0xff]   ;;  %v26_v41 = vld [vmem:[%s6040_s0 + $0x58] sm:$0xff]  ;;  %v3942_v42 = vld [vmem:[%s6039_s1 + $0x30] sm:$0xff]   ;;  %v227_v43 = vpack.c.bf16 %v152_v38, %v151_v37 }
   0xc   :  { %3269 = vmatprep.mubr.msk.bf16.mxu0 %vm3945_vm0, %v6043_v0  ;;  %3437 = vmatprep.mubr.msk.bf16.mxu1 %vm3945_vm0, %v6043_v0  ;;  %v101_v44 = vpack.c.bf16 %v26_v41, %v25_v40  ;;  %v154_v46 = vld [vmem:[%s6040_s0 + $0x69] sm:$0xff]  ;;  %v27_v47 = vld [vmem:[%s6040_s0 + $0x60] sm:$0xff]  ;;  %v155_v51 = vld [vmem:[%s6040_s0 + $0x71] sm:$0xff] }
   0xd   :  { %3599 = vmatprep.subr.bf16.mxu0 %v6043_v0  ;;  %3767 = vmatprep.subr.bf16.mxu1 %v6043_v0  ;;  %v28_v48 = vld [vmem:[%s6040_s0 + $0x68] sm:$0xff]  ;;  %v228_v49 = vpack.c.bf16 %v154_v46, %v153_v45  ;;  %v156_v52 = vld [vmem:[%s6040_s0 + $0x79] sm:$0xff]  ;;  %v29_v53 = vld [vmem:[%s6040_s0 + $0x70] sm:$0xff] }
   0xe   :  { %v102_v50 = vpack.c.bf16 %v28_v48, %v27_v47  ;;  %v30_v54 = vld [vmem:[%s6040_s0 + $0x78] sm:$0xff]  ;;  %v229_v55 = vpack.c.bf16 %v156_v52, %v155_v51  ;;  %v157_v57 = vld [vmem:[%s6040_s0 + $0x81] sm:$0xff]  ;;  %v158_v58 = vld [vmem:[%s6040_s0 + $0x89] sm:$0xff] }
   0xf   :  { %3600 = vmatpush3.bf16.msra.mxu0 %v3941_v39  ;;  %3768 = vmatpush3.bf16.msra.mxu1 %v3942_v42  ;;  %v103_v56 = vpack.c.bf16 %v30_v54, %v29_v53  ;;  %v31_v59 = vld [vmem:[%s6040_s0 + $0x80] sm:$0xff]  ;;  %v32_v60 = vld [vmem:[%s6040_s0 + $0x88] sm:$0xff]  ;;  %v230_v61 = vpack.c.bf16 %v158_v58, %v157_v57  ;;  %v159_v63 = vld [vmem:[%s6040_s0 + $0x91] sm:$0xff] }
  0x10   :  { %v104_v62 = vpack.c.bf16 %v32_v60, %v31_v59  ;;  %v160_v1 = vld [vmem:[%s6040_s0 + $0x99] sm:$0xff]  ;;  %v33_v2 = vld [vmem:[%s6040_s0 + $0x90] sm:$0xff]  ;;  %v161_v6 = vld [vmem:[%s6040_s0 + $0xa1] sm:$0xff] }
  0x11   :  { %v34_v3 = vld [vmem:[%s6040_s0 + $0x98] sm:$0xff]  ;;  %v231_v4 = vpack.c.bf16 %v160_v1, %v159_v63  ;;  %v162_v7 = vld [vmem:[%s6040_s0 + $0xa9] sm:$0xff]  ;;  %v35_v8 = vld [vmem:[%s6040_s0 + $0xa0] sm:$0xff] }
  0x12   :  { %3270 = vmatmul.mubr.msk.bf16.gmra.mxu0 %vm279_vm1, %v223_v17  ;;  %3438 = vmatmul.mubr.msk.bf16.gmra.mxu1 %vm279_vm1, %v97_v18  ;;  %v105_v5 = vpack.c.bf16 %v34_v3, %v33_v2  ;;  %v36_v9 = vld [vmem:[%s6040_s0 + $0xa8] sm:$0xff]  ;;  %v232_v10 = vpack.c.bf16 %v162_v7, %v161_v6  ;;  %v163_v12 = vld [vmem:[%s6040_s0 + $0xb1] sm:$0xff]  ;;  %v164_v13 = vld [vmem:[%s6040_s0 + $0xb9] sm:$0xff] }
  0x13   :  { %3273 = vmatprep.mubr.msk.bf16.mxu0 %vm3945_vm0, %v6043_v0  ;;  %3441 = vmatprep.mubr.msk.bf16.mxu1 %vm3945_vm0, %v6043_v0  ;;  %v106_v11 = vpack.c.bf16 %v36_v9, %v35_v8  ;;  %v37_v14 = vld [vmem:[%s6040_s0 + $0xb0] sm:$0xff]  ;;  %v38_v15 = vld [vmem:[%s6040_s0 + $0xb8] sm:$0xff]  ;;  %v233_v16 = vpack.c.bf16 %v164_v13, %v163_v12  ;;  %v165_v18 = vld [vmem:[%s6040_s0 + $0xc1] sm:$0xff] }
  0x14   :  { %v107_v17 = vpack.c.bf16 %v38_v15, %v37_v14  ;;  %v166_v19 = vld [vmem:[%s6040_s0 + $0xc9] sm:$0xff]  ;;  %v39_v20 = vld [vmem:[%s6040_s0 + $0xc0] sm:$0xff]  ;;  %v42_v27 = vld [vmem:[%s6040_s0 + $0xd8] sm:$0xff] }
  0x15   :  { %v40_v21 = vld [vmem:[%s6040_s0 + $0xc8] sm:$0xff]  ;;  %v234_v22 = vpack.c.bf16 %v166_v19, %v165_v18  ;;  %v168_v25 = vld [vmem:[%s6040_s0 + $0xd9] sm:$0xff]  ;;  %v41_v26 = vld [vmem:[%s6040_s0 + $0xd0] sm:$0xff] }
  0x16   :  { %v170_v31 = vld [vmem:[%s6040_s0 + $0xe9] sm:$0xff]  ;;  %v43_v32 = vld [vmem:[%s6040_s0 + $0xe0] sm:$0xff]  ;;  %v46_v39 = vld [vmem:[%s6040_s0 + $0xf8] sm:$0xff] }
  0x17   :  { %v44_v33 = vld [vmem:[%s6040_s0 + $0xe8] sm:$0xff]  ;;  %v172_v37 = vld [vmem:[%s6040_s0 + $0xf9] sm:$0xff]  ;;  %v45_v38 = vld [vmem:[%s6040_s0 + $0xf0] sm:$0xff] }
  0x18   :  { %v111_v41 = vpack.c.bf16 %v46_v39, %v45_v38  ;;  %v173_v42 = vld [vmem:[%s6040_s0 + $0x101] sm:$0xff]  ;;  %v175_v48 = vld [vmem:[%s6040_s0 + $0x111] sm:$0xff] }
  0x19   :  { %v48_v45 = vld [vmem:[%s6040_s0 + $0x108] sm:$0xff]  ;;  %v50_v51 = vld [vmem:[%s6040_s0 + $0x118] sm:$0xff]  ;;  %v65_v39 = vld [vmem:[%s6040_s0 + $0x190] sm:$0xff] }
  0x1a   :  { %3274 = vmatmul.mubr.msk.bf16.gmra.mxu0 %vm279_vm1, %v224_v23  ;;  %3442 = vmatmul.mubr.msk.bf16.gmra.mxu1 %vm279_vm1, %v98_v24  ;;  %v108_v23 = vpack.c.bf16 %v40_v21, %v39_v20  ;;  %v167_v24 = vld [vmem:[%s6040_s0 + $0xd1] sm:$0xff]  ;;  %v177_v54 = vld [vmem:[%s6040_s0 + $0x121] sm:$0xff] }
  0x1b   :  { %3277 = vmatprep.mubr.msk.bf16.mxu0 %vm3945_vm0, %v6043_v0  ;;  %3445 = vmatprep.mubr.msk.bf16.mxu1 %vm3945_vm0, %v6043_v0  ;;  %v235_v28 = vpack.c.bf16 %v168_v25, %v167_v24  ;;  %v52_v57 = vld [vmem:[%s6040_s0 + $0x128] sm:$0xff]  ;;  %v179_v60 = vld [vmem:[%s6040_s0 + $0x131] sm:$0xff] }
  0x1c   :  { %v54_v63 = vld [vmem:[%s6040_s0 + $0x138] sm:$0xff]  ;;  %v181_v3 = vld [vmem:[%s6040_s0 + $0x141] sm:$0xff] }
  0x1d   :  { %v56_v6 = vld [vmem:[%s6040_s0 + $0x148] sm:$0xff]  ;;  %v183_v9 = vld [vmem:[%s6040_s0 + $0x151] sm:$0xff] }
  0x1e   :  { %v58_v12 = vld [vmem:[%s6040_s0 + $0x158] sm:$0xff]  ;;  %v185_v15 = vld [vmem:[%s6040_s0 + $0x161] sm:$0xff] }
  0x1f   :  { %v60_v18 = vld [vmem:[%s6040_s0 + $0x168] sm:$0xff]  ;;  %v187_v21 = vld [vmem:[%s6040_s0 + $0x171] sm:$0xff] }
  0x20   :  { %v62_v24 = vld [vmem:[%s6040_s0 + $0x178] sm:$0xff] }
  0x22   :  { %3278 = vmatmul.mubr.msk.bf16.gmra.mxu0 %vm279_vm1, %v225_v29  ;;  %3446 = vmatmul.mubr.msk.bf16.gmra.mxu1 %vm279_vm1, %v99_v30  ;;  %v109_v29 = vpack.c.bf16 %v42_v27, %v41_v26  ;;  %v169_v30 = vld [vmem:[%s6040_s0 + $0xe1] sm:$0xff] }
  0x23   :  { %3281 = vmatprep.mubr.msk.bf16.mxu0 %vm3945_vm0, %v6043_v0  ;;  %3449 = vmatprep.mubr.msk.bf16.mxu1 %vm3945_vm0, %v6043_v0  ;;  %v236_v34 = vpack.c.bf16 %v170_v31, %v169_v30  ;;  %v189_v27 = vld [vmem:[%s6040_s0 + $0x181] sm:$0xff] }
  0x24   :  { %v64_v30 = vld [vmem:[%s6040_s0 + $0x188] sm:$0xff] }
  0x2a   :  { %3282 = vmatmul.mubr.msk.bf16.gmra.mxu0 %vm279_vm1, %v226_v35  ;;  %3450 = vmatmul.mubr.msk.bf16.gmra.mxu1 %vm279_vm1, %v100_v36  ;;  %v110_v35 = vpack.c.bf16 %v44_v33, %v43_v32  ;;  %v171_v36 = vld [vmem:[%s6040_s0 + $0xf1] sm:$0xff] }
  0x2b   :  { %3285 = vmatprep.mubr.msk.bf16.mxu0 %vm3945_vm0, %v6043_v0  ;;  %3453 = vmatprep.mubr.msk.bf16.mxu1 %vm3945_vm0, %v6043_v0  ;;  %v237_v40 = vpack.c.bf16 %v172_v37, %v171_v36  ;;  %v192_v36 = vld [vmem:[%s6040_s0 + $0x199] sm:$0xff] }
  0x32   :  { %3286 = vmatmul.mubr.msk.bf16.gmra.mxu0 %vm279_vm1, %v227_v43  ;;  %3454 = vmatmul.mubr.msk.bf16.gmra.mxu1 %vm279_vm1, %v101_v44  ;;  %v174_v43 = vld [vmem:[%s6040_s0 + $0x109] sm:$0xff]  ;;  %v47_v44 = vld [vmem:[%s6040_s0 + $0x100] sm:$0xff] }
  0x33   :  { %3289 = vmatprep.mubr.msk.bf16.mxu0 %vm3945_vm0, %v6043_v0  ;;  %3457 = vmatprep.mubr.msk.bf16.mxu1 %vm3945_vm0, %v6043_v0  ;;  %v238_v46 = vpack.c.bf16 %v174_v43, %v173_v42  ;;  %v112_v47 = vpack.c.bf16 %v48_v45, %v47_v44 }
  0x3a   :  { %3290 = vmatmul.mubr.msk.bf16.gmra.mxu0 %vm279_vm1, %v228_v49  ;;  %3458 = vmatmul.mubr.msk.bf16.gmra.mxu1 %vm279_vm1, %v102_v50  ;;  %v176_v49 = vld [vmem:[%s6040_s0 + $0x119] sm:$0xff]  ;;  %v49_v50 = vld [vmem:[%s6040_s0 + $0x110] sm:$0xff] }
  0x3b   :  { %3293 = vmatprep.mubr.msk.bf16.mxu0 %vm3945_vm0, %v6043_v0  ;;  %3461 = vmatprep.mubr.msk.bf16.mxu1 %vm3945_vm0, %v6043_v0  ;;  %v239_v52 = vpack.c.bf16 %v176_v49, %v175_v48  ;;  %v113_v53 = vpack.c.bf16 %v50_v51, %v49_v50  ;;  %v193_v51 = vld [vmem:[%s6040_s0 + $0x1a1] sm:$0xff] }
  0x42   :  { %3294 = vmatmul.mubr.msk.bf16.gmra.mxu0 %vm279_vm1, %v229_v55  ;;  %3462 = vmatmul.mubr.msk.bf16.gmra.mxu1 %vm279_vm1, %v103_v56  ;;  %v178_v55 = vld [vmem:[%s6040_s0 + $0x129] sm:$0xff]  ;;  %v51_v56 = vld [vmem:[%s6040_s0 + $0x120] sm:$0xff] }
  0x43   :  { %3297 = vmatprep.mubr.msk.bf16.mxu0 %vm3945_vm0, %v6043_v0  ;;  %3465 = vmatprep.mubr.msk.bf16.mxu1 %vm3945_vm0, %v6043_v0  ;;  %v240_v58 = vpack.c.bf16 %v178_v55, %v177_v54  ;;  %v114_v59 = vpack.c.bf16 %v52_v57, %v51_v56  ;;  %v67_v55 = vld [vmem:[%s6040_s0 + $0x1a0] sm:$0xff]  ;;  %v68_v56 = vld [vmem:[%s6040_s0 + $0x1a8] sm:$0xff] }
  0x4a   :  { %3298 = vmatmul.mubr.msk.bf16.gmra.mxu0 %vm279_vm1, %v230_v61  ;;  %3466 = vmatmul.mubr.msk.bf16.gmra.mxu1 %vm279_vm1, %v104_v62  ;;  %v180_v61 = vld [vmem:[%s6040_s0 + $0x139] sm:$0xff]  ;;  %v53_v62 = vld [vmem:[%s6040_s0 + $0x130] sm:$0xff] }
  0x4b   :  { %3301 = vmatprep.mubr.msk.bf16.mxu0 %vm3945_vm0, %v6043_v0  ;;  %3469 = vmatprep.mubr.msk.bf16.mxu1 %vm3945_vm0, %v6043_v0  ;;  %v241_v1 = vpack.c.bf16 %v180_v61, %v179_v60  ;;  %v115_v2 = vpack.c.bf16 %v54_v63, %v53_v62  ;;  %v122_v61 = vpack.c.bf16 %v68_v56, %v67_v55  ;;  %v201_v55 = vld [vmem:[%s6040_s0 + $0x1e1] sm:$0xff]  ;;  %v202_v56 = vld [vmem:[%s6040_s0 + $0x1e9] sm:$0xff] }
  0x52   :  { %3302 = vmatmul.mubr.msk.bf16.gmra.mxu0 %vm279_vm1, %v231_v4  ;;  %3470 = vmatmul.mubr.msk.bf16.gmra.mxu1 %vm279_vm1, %v105_v5  ;;  %v182_v4 = vld [vmem:[%s6040_s0 + $0x149] sm:$0xff]  ;;  %v55_v5 = vld [vmem:[%s6040_s0 + $0x140] sm:$0xff] }
  0x53   :  { %3305 = vmatprep.mubr.msk.bf16.mxu0 %vm3945_vm0, %v6043_v0  ;;  %3473 = vmatprep.mubr.msk.bf16.mxu1 %vm3945_vm0, %v6043_v0  ;;  %v242_v7 = vpack.c.bf16 %v182_v4, %v181_v3  ;;  %v116_v8 = vpack.c.bf16 %v56_v6, %v55_v5  ;;  %v195_v4 = vld [vmem:[%s6040_s0 + $0x1b1] sm:$0xff]  ;;  %v196_v5 = vld [vmem:[%s6040_s0 + $0x1b9] sm:$0xff] }
  0x5a   :  { %3306 = vmatmul.mubr.msk.bf16.gmra.mxu0 %vm279_vm1, %v232_v10  ;;  %3474 = vmatmul.mubr.msk.bf16.gmra.mxu1 %vm279_vm1, %v106_v11  ;;  %v184_v10 = vld [vmem:[%s6040_s0 + $0x159] sm:$0xff]  ;;  %v57_v11 = vld [vmem:[%s6040_s0 + $0x150] sm:$0xff] }
  0x5b   :  { %3309 = vmatprep.mubr.msk.bf16.mxu0 %vm3945_vm0, %v6043_v0  ;;  %3477 = vmatprep.mubr.msk.bf16.mxu1 %vm3945_vm0, %v6043_v0  ;;  %v243_v13 = vpack.c.bf16 %v184_v10, %v183_v9  ;;  %v117_v14 = vpack.c.bf16 %v58_v12, %v57_v11  ;;  %v70_v9 = vld [vmem:[%s6040_s0 + $0x1b8] sm:$0xff]  ;;  %v249_v12 = vpack.c.bf16 %v196_v5, %v195_v4 }
  0x62   :  { %3310 = vmatmul.mubr.msk.bf16.gmra.mxu0 %vm279_vm1, %v233_v16  ;;  %3478 = vmatmul.mubr.msk.bf16.gmra.mxu1 %vm279_vm1, %v107_v17  ;;  %v186_v16 = vld [vmem:[%s6040_s0 + $0x169] sm:$0xff]  ;;  %v59_v17 = vld [vmem:[%s6040_s0 + $0x160] sm:$0xff] }
  0x63   :  { %3313 = vmatprep.mubr.msk.bf16.mxu0 %vm3945_vm0, %v6043_v0  ;;  %3481 = vmatprep.mubr.msk.bf16.mxu1 %vm3945_vm0, %v6043_v0  ;;  %v244_v19 = vpack.c.bf16 %v186_v16, %v185_v15  ;;  %v118_v20 = vpack.c.bf16 %v60_v18, %v59_v17 }
  0x6a   :  { %3314 = vmatmul.mubr.msk.bf16.gmra.mxu0 %vm279_vm1, %v234_v22  ;;  %3482 = vmatmul.mubr.msk.bf16.gmra.mxu1 %vm279_vm1, %v108_v23  ;;  %v188_v22 = vld [vmem:[%s6040_s0 + $0x179] sm:$0xff]  ;;  %v61_v23 = vld [vmem:[%s6040_s0 + $0x170] sm:$0xff] }
  0x6b   :  { %3317 = vmatprep.mubr.msk.bf16.mxu0 %vm3945_vm0, %v6043_v0  ;;  %3485 = vmatprep.mubr.msk.bf16.mxu1 %vm3945_vm0, %v6043_v0  ;;  %v245_v25 = vpack.c.bf16 %v188_v22, %v187_v21  ;;  %v119_v26 = vpack.c.bf16 %v62_v24, %v61_v23  ;;  %v198_v21 = vld [vmem:[%s6040_s0 + $0x1c9] sm:$0xff]  ;;  %v71_v24 = vld [vmem:[%s6040_s0 + $0x1c0] sm:$0xff] }
  0x72   :  { %3318 = vmatmul.mubr.msk.bf16.gmra.mxu0 %vm279_vm1, %v235_v28  ;;  %3486 = vmatmul.mubr.msk.bf16.gmra.mxu1 %vm279_vm1, %v109_v29  ;;  %v190_v28 = vld [vmem:[%s6040_s0 + $0x189] sm:$0xff]  ;;  %v63_v29 = vld [vmem:[%s6040_s0 + $0x180] sm:$0xff] }
  0x73   :  { %3321 = vmatprep.mubr.msk.bf16.mxu0 %vm3945_vm0, %v6043_v0  ;;  %3489 = vmatprep.mubr.msk.bf16.mxu1 %vm3945_vm0, %v6043_v0  ;;  %v246_v31 = vpack.c.bf16 %v190_v28, %v189_v27  ;;  %v120_v32 = vpack.c.bf16 %v64_v30, %v63_v29 }
  0x7a   :  { %3322 = vmatmul.mubr.msk.bf16.gmra.mxu0 %vm279_vm1, %v236_v34  ;;  %3490 = vmatmul.mubr.msk.bf16.gmra.mxu1 %vm279_vm1, %v110_v35  ;;  %v191_v35 = vld [vmem:[%s6040_s0 + $0x191] sm:$0xff] }
  0x7b   :  { %3325 = vmatprep.mubr.msk.bf16.mxu0 %vm3945_vm0, %v6043_v0  ;;  %3493 = vmatprep.mubr.msk.bf16.mxu1 %vm3945_vm0, %v6043_v0  ;;  %v247_v43 = vpack.c.bf16 %v192_v36, %v191_v35  ;;  %v199_v36 = vld [vmem:[%s6040_s0 + $0x1d1] sm:$0xff] }
  0x82   :  { %3326 = vmatmul.mubr.msk.bf16.gmra.mxu0 %vm279_vm1, %v237_v40  ;;  %3494 = vmatmul.mubr.msk.bf16.gmra.mxu1 %vm279_vm1, %v111_v41  ;;  %v66_v40 = vld [vmem:[%s6040_s0 + $0x198] sm:$0xff] }
  0x83   :  { %3329 = vmatprep.mubr.msk.bf16.mxu0 %vm3945_vm0, %v6043_v0  ;;  %3497 = vmatprep.mubr.msk.bf16.mxu1 %vm3945_vm0, %v6043_v0  ;;  %v121_v45 = vpack.c.bf16 %v66_v40, %v65_v39 }
  0x8a   :  { %3330 = vmatmul.mubr.msk.bf16.gmra.mxu0 %vm279_vm1, %v238_v46  ;;  %3498 = vmatmul.mubr.msk.bf16.gmra.mxu1 %vm279_vm1, %v112_v47 }
  0x8b   :  { %3333 = vmatprep.mubr.msk.bf16.mxu0 %vm3945_vm0, %v6043_v0  ;;  %3501 = vmatprep.mubr.msk.bf16.mxu1 %vm3945_vm0, %v6043_v0 }
  0x92   :  { %3334 = vmatmul.mubr.msk.bf16.gmra.mxu0 %vm279_vm1, %v239_v52  ;;  %3502 = vmatmul.mubr.msk.bf16.gmra.mxu1 %vm279_vm1, %v113_v53  ;;  %v194_v52 = vld [vmem:[%s6040_s0 + $0x1a9] sm:$0xff] }
  0x93   :  { %3337 = vmatprep.mubr.msk.bf16.mxu0 %vm3945_vm0, %v6043_v0  ;;  %3505 = vmatprep.mubr.msk.bf16.mxu1 %vm3945_vm0, %v6043_v0 }
  0x9a   :  { %3338 = vmatmul.mubr.msk.bf16.gmra.mxu0 %vm279_vm1, %v240_v58  ;;  %3506 = vmatmul.mubr.msk.bf16.gmra.mxu1 %vm279_vm1, %v114_v59  ;;  %v248_v59 = vpack.c.bf16 %v194_v52, %v193_v51 }
  0x9b   :  { %3341 = vmatprep.mubr.msk.bf16.mxu0 %vm3945_vm0, %v6043_v0  ;;  %3509 = vmatprep.mubr.msk.bf16.mxu1 %vm3945_vm0, %v6043_v0 }
  0xa2   :  { %3342 = vmatmul.mubr.msk.bf16.gmra.mxu0 %vm279_vm1, %v241_v1  ;;  %3510 = vmatmul.mubr.msk.bf16.gmra.mxu1 %vm279_vm1, %v115_v2 }
  0xa3   :  { %3345 = vmatprep.mubr.msk.bf16.mxu0 %vm3945_vm0, %v6043_v0  ;;  %3513 = vmatprep.mubr.msk.bf16.mxu1 %vm3945_vm0, %v6043_v0 }
  0xaa   :  { %3346 = vmatmul.mubr.msk.bf16.gmra.mxu0 %vm279_vm1, %v242_v7  ;;  %3514 = vmatmul.mubr.msk.bf16.gmra.mxu1 %vm279_vm1, %v116_v8  ;;  %v69_v8 = vld [vmem:[%s6040_s0 + $0x1b0] sm:$0xff] }
  0xab   :  { %3349 = vmatprep.mubr.msk.bf16.mxu0 %vm3945_vm0, %v6043_v0  ;;  %3517 = vmatprep.mubr.msk.bf16.mxu1 %vm3945_vm0, %v6043_v0 }
  0xb2   :  { %3350 = vmatmul.mubr.msk.bf16.gmra.mxu0 %vm279_vm1, %v243_v13  ;;  %3518 = vmatmul.mubr.msk.bf16.gmra.mxu1 %vm279_vm1, %v117_v14  ;;  %v123_v14 = vpack.c.bf16 %v70_v9, %v69_v8 }
  0xb3   :  { %3353 = vmatprep.mubr.msk.bf16.mxu0 %vm3945_vm0, %v6043_v0  ;;  %3521 = vmatprep.mubr.msk.bf16.mxu1 %vm3945_vm0, %v6043_v0 }
  0xba   :  { %3354 = vmatmul.mubr.msk.bf16.gmra.mxu0 %vm279_vm1, %v244_v19  ;;  %3522 = vmatmul.mubr.msk.bf16.gmra.mxu1 %vm279_vm1, %v118_v20  ;;  %v197_v20 = vld [vmem:[%s6040_s0 + $0x1c1] sm:$0xff] }
  0xbb   :  { %3357 = vmatprep.mubr.msk.bf16.mxu0 %vm3945_vm0, %v6043_v0  ;;  %3525 = vmatprep.mubr.msk.bf16.mxu1 %vm3945_vm0, %v6043_v0  ;;  %v250_v28 = vpack.c.bf16 %v198_v21, %v197_v20 }
  0xc2   :  { %3358 = vmatmul.mubr.msk.bf16.gmra.mxu0 %vm279_vm1, %v245_v25  ;;  %3526 = vmatmul.mubr.msk.bf16.gmra.mxu1 %vm279_vm1, %v119_v26  ;;  %v72_v25 = vld [vmem:[%s6040_s0 + $0x1c8] sm:$0xff] }
  0xc3   :  { %3361 = vmatprep.mubr.msk.bf16.mxu0 %vm3945_vm0, %v6043_v0  ;;  %3529 = vmatprep.mubr.msk.bf16.mxu1 %vm3945_vm0, %v6043_v0  ;;  %v124_v30 = vpack.c.bf16 %v72_v25, %v71_v24 }
  0xca   :  { %v437_v33 = vpop.f32.mrf.mxu0  ;;  %3362 = vmatmul.mubr.msk.bf16.gmra.mxu0 %vm279_vm1, %v246_v31  ;;  %v932_v34 = vpop.f32.mrf.mxu1  ;;  %3530 = vmatmul.mubr.msk.bf16.gmra.mxu1 %vm279_vm1, %v120_v32 }
  0xcb   :  { %3365 = vmatprep.mubr.msk.bf16.mxu0 %vm3945_vm0, %v6043_v0  ;;  %v4456_v37 = vadd.f32 %v932_v34, %v437_v33  ;;  %3533 = vmatprep.mubr.msk.bf16.mxu1 %vm3945_vm0, %v6043_v0 }
  0xcc   :  { %v3267_v38 = vpop.f32.mrf.mxu0  ;;  %v3435_v41 = vpop.f32.mrf.mxu1 }
  0xcd   :  { %v200_v38 = vld [vmem:[%s6040_s0 + $0x1d9] sm:$0xff]  ;;  %v73_v41 = vld [vmem:[%s6040_s0 + $0x1d0] sm:$0xff] }
  0xce   :  { %v440_v42 = vpop.f32.mrf.mxu0  ;;  %v935_v44 = vpop.f32.mrf.mxu1 }
  0xcf   :  { %v4466_v46 = vadd.f32 %v935_v44, %v440_v42  ;;  %v74_v42 = vld [vmem:[%s6040_s0 + $0x1d8] sm:$0xff] }
  0xd0   :  { %v3268_v47 = vpop.f32.mrf.mxu0  ;;  %v3436_v48 = vpop.f32.mrf.mxu1 }
  0xd1   :  { %v125_v48 = vpack.c.bf16 %v74_v42, %v73_v41 }
  0xd2   :  { %v445_v49 = vpop.f32.mrf.mxu0  ;;  %3366 = vmatmul.mubr.msk.bf16.gmra.mxu0 %vm279_vm1, %v247_v43  ;;  %v940_v50 = vpop.f32.mrf.mxu1  ;;  %3534 = vmatmul.mubr.msk.bf16.gmra.mxu1 %vm279_vm1, %v121_v45  ;;  %v251_v45 = vpack.c.bf16 %v200_v38, %v199_v36 }
  0xd3   :  { %3369 = vmatprep.mubr.msk.bf16.mxu0 %vm3945_vm0, %v6043_v0  ;;  %v4478_v53 = vadd.f32 %v940_v50, %v445_v49  ;;  %3537 = vmatprep.mubr.msk.bf16.mxu1 %vm3945_vm0, %v6043_v0 }
  0xd4   :  { %v3271_v54 = vpop.f32.mrf.mxu0  ;;  %v3439_v57 = vpop.f32.mrf.mxu1 }
  0xd6   :  { %v448_v58 = vpop.f32.mrf.mxu0  ;;  %v943_v60 = vpop.f32.mrf.mxu1 }
  0xd7   :  { %v4488_v62 = vadd.f32 %v943_v60, %v448_v58  ;;  %v76_v60 = vld [vmem:[%s6040_s0 + $0x1e8] sm:$0xff] }
  0xd8   :  { %v3272_v63 = vpop.f32.mrf.mxu0  ;;  %v3440_v1 = vpop.f32.mrf.mxu1 }
  0xd9   :  { %v252_v1 = vpack.c.bf16 %v202_v56, %v201_v55  ;;  %v82_v55 = vld [vmem:[%s6040_s0 + $0x218] sm:$0xff] }
  0xda   :  { %v453_v2 = vpop.f32.mrf.mxu0  ;;  %3370 = vmatmul.mubr.msk.bf16.gmra.mxu0 %vm279_vm1, %v248_v59  ;;  %v948_v3 = vpop.f32.mrf.mxu1  ;;  %3538 = vmatmul.mubr.msk.bf16.gmra.mxu1 %vm279_vm1, %v122_v61  ;;  %v75_v59 = vld [vmem:[%s6040_s0 + $0x1e0] sm:$0xff] }
  0xdb   :  { %3373 = vmatprep.mubr.msk.bf16.mxu0 %vm3945_vm0, %v6043_v0  ;;  %v4500_v6 = vadd.f32 %v948_v3, %v453_v2  ;;  %3541 = vmatprep.mubr.msk.bf16.mxu1 %vm3945_vm0, %v6043_v0  ;;  %v126_v3 = vpack.c.bf16 %v76_v60, %v75_v59 }
  0xdc   :  { %v3275_v7 = vpop.f32.mrf.mxu0  ;;  %v3443_v10 = vpop.f32.mrf.mxu1 }
  0xdd   :  { %v203_v10 = vld [vmem:[%s6040_s0 + $0x1f1] sm:$0xff] }
  0xde   :  { %v456_v11 = vpop.f32.mrf.mxu0  ;;  %v951_v13 = vpop.f32.mrf.mxu1 }
  0xdf   :  { %v4510_v15 = vadd.f32 %v951_v13, %v456_v11  ;;  %v204_v11 = vld [vmem:[%s6040_s0 + $0x1f9] sm:$0xff] }
  0xe0   :  { %v3276_v16 = vpop.f32.mrf.mxu0  ;;  %v3444_v17 = vpop.f32.mrf.mxu1 }
  0xe1   :  { %v78_v16 = vld [vmem:[%s6040_s0 + $0x1f8] sm:$0xff] }
  0xe2   :  { %v461_v18 = vpop.f32.mrf.mxu0  ;;  %3374 = vmatmul.mubr.msk.bf16.gmra.mxu0 %vm279_vm1, %v249_v12  ;;  %v956_v19 = vpop.f32.mrf.mxu1  ;;  %3542 = vmatmul.mubr.msk.bf16.gmra.mxu1 %vm279_vm1, %v123_v14  ;;  %v77_v14 = vld [vmem:[%s6040_s0 + $0x1f0] sm:$0xff] }
  0xe3   :  { %3377 = vmatprep.mubr.msk.bf16.mxu0 %vm3945_vm0, %v6043_v0  ;;  %v4522_v22 = vadd.f32 %v956_v19, %v461_v18  ;;  %3545 = vmatprep.mubr.msk.bf16.mxu1 %vm3945_vm0, %v6043_v0  ;;  %v253_v19 = vpack.c.bf16 %v204_v11, %v203_v10  ;;  %v127_v21 = vpack.c.bf16 %v78_v16, %v77_v14  ;;  %v83_v11 = vld [vmem:[%s6040_s0 + $0x220] sm:$0xff] }
  0xe4   :  { %v3279_v23 = vpop.f32.mrf.mxu0  ;;  %v3447_v26 = vpop.f32.mrf.mxu1 }
  0xe6   :  { %v464_v27 = vpop.f32.mrf.mxu0  ;;  %v959_v29 = vpop.f32.mrf.mxu1 }
  0xe7   :  { %v4532_v31 = vadd.f32 %v959_v29, %v464_v27  ;;  %v206_v29 = vld [vmem:[%s6040_s0 + $0x209] sm:$0xff] }
  0xe8   :  { %v3280_v32 = vpop.f32.mrf.mxu0  ;;  %v3448_v33 = vpop.f32.mrf.mxu1 }
  0xe9   :  { %v79_v33 = vld [vmem:[%s6040_s0 + $0x200] sm:$0xff] }
  0xea   :  { %v469_v34 = vpop.f32.mrf.mxu0  ;;  %3378 = vmatmul.mubr.msk.bf16.gmra.mxu0 %vm279_vm1, %v250_v28  ;;  %v964_v35 = vpop.f32.mrf.mxu1  ;;  %3546 = vmatmul.mubr.msk.bf16.gmra.mxu1 %vm279_vm1, %v124_v30  ;;  %v205_v28 = vld [vmem:[%s6040_s0 + $0x201] sm:$0xff] }
  0xeb   :  { %3381 = vmatprep.mubr.msk.bf16.mxu0 %vm3945_vm0, %v6043_v0  ;;  %v4544_v39 = vadd.f32 %v964_v35, %v469_v34  ;;  %3549 = vmatprep.mubr.msk.bf16.mxu1 %vm3945_vm0, %v6043_v0  ;;  %v80_v34 = vld [vmem:[%s6040_s0 + $0x208] sm:$0xff]  ;;  %v254_v38 = vpack.c.bf16 %v206_v29, %v205_v28  ;;  %v212_v28 = vld [vmem:[%s6040_s0 + $0x239] sm:$0xff] }
  0xec   :  { %v3283_v40 = vpop.f32.mrf.mxu0  ;;  %v3451_v43 = vpop.f32.mrf.mxu1  ;;  %v128_v41 = vpack.c.bf16 %v80_v34, %v79_v33  ;;  %v85_v33 = vld [vmem:[%s6040_s0 + $0x230] sm:$0xff]  ;;  %v86_v34 = vld [vmem:[%s6040_s0 + $0x238] sm:$0xff] }
  0xee   :  { %v472_v44 = vpop.f32.mrf.mxu0  ;;  %v967_v47 = vpop.f32.mrf.mxu1 }
  0xef   :  { %v4554_v49 = vadd.f32 %v967_v47, %v472_v44 }
  0xf0   :  { %v3284_v50 = vpop.f32.mrf.mxu0  ;;  %v3452_v51 = vpop.f32.mrf.mxu1 }
  0xf1   :  { %v208_v50 = vld [vmem:[%s6040_s0 + $0x219] sm:$0xff] }
  0xf2   :  { %v477_v52 = vpop.f32.mrf.mxu0  ;;  %3382 = vmatmul.mubr.msk.bf16.gmra.mxu0 %vm279_vm1, %v251_v45  ;;  %v972_v54 = vpop.f32.mrf.mxu1  ;;  %3550 = vmatmul.mubr.msk.bf16.gmra.mxu1 %vm279_vm1, %v125_v48  ;;  %v207_v48 = vld [vmem:[%s6040_s0 + $0x211] sm:$0xff] }
  0xf3   :  { %3385 = vmatprep.mubr.msk.bf16.mxu0 %vm3945_vm0, %v6043_v0  ;;  %v4566_v57 = vadd.f32 %v972_v54, %v477_v52  ;;  %3553 = vmatprep.mubr.msk.bf16.mxu1 %vm3945_vm0, %v6043_v0  ;;  %v81_v54 = vld [vmem:[%s6040_s0 + $0x210] sm:$0xff]  ;;  %v255_v59 = vpack.c.bf16 %v208_v50, %v207_v48  ;;  %v213_v50 = vld [vmem:[%s6040_s0 + $0x241] sm:$0xff] }
  0xf4   :  { %v3287_v58 = vpop.f32.mrf.mxu0  ;;  %v3455_v61 = vpop.f32.mrf.mxu1 }
  0xf5   :  { %v129_v61 = vpack.c.bf16 %v82_v55, %v81_v54 }
  0xf6   :  { %v480_v63 = vpop.f32.mrf.mxu0  ;;  %v975_v2 = vpop.f32.mrf.mxu1 }
  0xf7   :  { %v4576_v4 = vadd.f32 %v975_v2, %v480_v63 }
  0xf8   :  { %v3288_v5 = vpop.f32.mrf.mxu0  ;;  %v3456_v7 = vpop.f32.mrf.mxu1 }
  0xf9   :  { %v209_v7 = vld [vmem:[%s6040_s0 + $0x221] sm:$0xff] }
  0xfa   :  { %v485_v8 = vpop.f32.mrf.mxu0  ;;  %3386 = vmatmul.mubr.msk.bf16.gmra.mxu0 %vm279_vm1, %v252_v1  ;;  %v980_v9 = vpop.f32.mrf.mxu1  ;;  %3554 = vmatmul.mubr.msk.bf16.gmra.mxu1 %vm279_vm1, %v126_v3 }
  0xfb   :  { %3389 = vmatprep.mubr.msk.bf16.mxu0 %vm3945_vm0, %v6043_v0  ;;  %v4588_v12 = vadd.f32 %v980_v9, %v485_v8  ;;  %3557 = vmatprep.mubr.msk.bf16.mxu1 %vm3945_vm0, %v6043_v0  ;;  %v210_v8 = vld [vmem:[%s6040_s0 + $0x229] sm:$0xff] }
  0xfc   :  { %v3291_v13 = vpop.f32.mrf.mxu0  ;;  %v3459_v17 = vpop.f32.mrf.mxu1 }
  0xfd   :  { %v84_v13 = vld [vmem:[%s6040_s0 + $0x228] sm:$0xff]  ;;  %v256_v17 = vpack.c.bf16 %v210_v8, %v209_v7 }
  0xfe   :  { %v488_v18 = vpop.f32.mrf.mxu0  ;;  %v983_v20 = vpop.f32.mrf.mxu1 }
  0xff   :  { %v4598_v23 = vadd.f32 %v983_v20, %v488_v18 }
 0x100   :  { %v3292_v24 = vpop.f32.mrf.mxu0  ;;  %v3460_v25 = vpop.f32.mrf.mxu1 }
 0x102   :  { %v493_v26 = vpop.f32.mrf.mxu0  ;;  %3390 = vmatmul.mubr.msk.bf16.gmra.mxu0 %vm279_vm1, %v253_v19  ;;  %v988_v27 = vpop.f32.mrf.mxu1  ;;  %3558 = vmatmul.mubr.msk.bf16.gmra.mxu1 %vm279_vm1, %v127_v21  ;;  %v130_v19 = vpack.c.bf16 %v84_v13, %v83_v11  ;;  %v215_v11 = vld [vmem:[%s6040_s0 + $0x251] sm:$0xff]  ;;  %v216_v13 = vld [vmem:[%s6040_s0 + $0x259] sm:$0xff] }
 0x103   :  { %3393 = vmatprep.mubr.msk.bf16.mxu0 %vm3945_vm0, %v6043_v0  ;;  %v4610_v30 = vadd.f32 %v988_v27, %v493_v26  ;;  %3561 = vmatprep.mubr.msk.bf16.mxu1 %vm3945_vm0, %v6043_v0  ;;  %v211_v27 = vld [vmem:[%s6040_s0 + $0x231] sm:$0xff] }
 0x104   :  { %v3295_v32 = vpop.f32.mrf.mxu0  ;;  %v3463_v35 = vpop.f32.mrf.mxu1 }
 0x106   :  { %v496_v36 = vpop.f32.mrf.mxu0  ;;  %v991_v40 = vpop.f32.mrf.mxu1 }
 0x107   :  { %v4620_v42 = vadd.f32 %v991_v40, %v496_v36 }
 0x108   :  { %v3296_v43 = vpop.f32.mrf.mxu0  ;;  %v3464_v44 = vpop.f32.mrf.mxu1 }
 0x10a   :  { %v501_v45 = vpop.f32.mrf.mxu0  ;;  %3394 = vmatmul.mubr.msk.bf16.gmra.mxu0 %vm279_vm1, %v254_v38  ;;  %v996_v47 = vpop.f32.mrf.mxu1  ;;  %3562 = vmatmul.mubr.msk.bf16.gmra.mxu1 %vm279_vm1, %v128_v41  ;;  %v257_v38 = vpack.c.bf16 %v212_v28, %v211_v27  ;;  %v131_v41 = vpack.c.bf16 %v86_v34, %v85_v33 }
 0x10b   :  { %3397 = vmatprep.mubr.msk.bf16.mxu0 %vm3945_vm0, %v6043_v0  ;;  %v4632_v51 = vadd.f32 %v996_v47, %v501_v45  ;;  %3565 = vmatprep.mubr.msk.bf16.mxu1 %vm3945_vm0, %v6043_v0 }
 0x10c   :  { %v3299_v52 = vpop.f32.mrf.mxu0  ;;  %v3467_v56 = vpop.f32.mrf.mxu1 }
 0x10d   :  { %v214_v52 = vld [vmem:[%s6040_s0 + $0x249] sm:$0xff]  ;;  %v87_v56 = vld [vmem:[%s6040_s0 + $0x240] sm:$0xff] }
 0x10e   :  { %v504_v58 = vpop.f32.mrf.mxu0  ;;  %v999_v60 = vpop.f32.mrf.mxu1 }
 0x10f   :  { %v4642_v63 = vadd.f32 %v999_v60, %v504_v58  ;;  %v88_v58 = vld [vmem:[%s6040_s0 + $0x248] sm:$0xff] }
 0x110   :  { %v3300_v1 = vpop.f32.mrf.mxu0  ;;  %v3468_v2 = vpop.f32.mrf.mxu1 }
 0x111   :  { %v132_v2 = vpack.c.bf16 %v88_v58, %v87_v56 }
 0x112   :  { %v509_v3 = vpop.f32.mrf.mxu0  ;;  %3398 = vmatmul.mubr.msk.bf16.gmra.mxu0 %vm279_vm1, %v255_v59  ;;  %v1004_v5 = vpop.f32.mrf.mxu1  ;;  %3566 = vmatmul.mubr.msk.bf16.gmra.mxu1 %vm279_vm1, %v129_v61  ;;  %v258_v61 = vpack.c.bf16 %v214_v52, %v213_v50 }
 0x113   :  { %3401 = vmatprep.mubr.msk.bf16.mxu0 %vm3945_vm0, %v6043_v0  ;;  %v4654_v9 = vadd.f32 %v1004_v5, %v509_v3  ;;  %3569 = vmatprep.mubr.msk.bf16.mxu1 %vm3945_vm0, %v6043_v0 }
 0x114   :  { %v3303_v10 = vpop.f32.mrf.mxu0  ;;  %v3471_v14 = vpop.f32.mrf.mxu1 }
 0x116   :  { %v512_v16 = vpop.f32.mrf.mxu0  ;;  %v1007_v18 = vpop.f32.mrf.mxu1 }
 0x117   :  { %v4664_v20 = vadd.f32 %v1007_v18, %v512_v16  ;;  %v90_v18 = vld [vmem:[%s6040_s0 + $0x258] sm:$0xff] }
 0x118   :  { %v3304_v21 = vpop.f32.mrf.mxu0  ;;  %v3472_v24 = vpop.f32.mrf.mxu1 }
 0x119   :  { %v259_v24 = vpack.c.bf16 %v216_v13, %v215_v11 }
 0x11a   :  { %v517_v25 = vpop.f32.mrf.mxu0  ;;  %3402 = vmatmul.mubr.msk.bf16.gmra.mxu0 %vm279_vm1, %v256_v17  ;;  %v1012_v26 = vpop.f32.mrf.mxu1  ;;  %3570 = vmatmul.mubr.msk.bf16.gmra.mxu1 %vm279_vm1, %v130_v19  ;;  %v89_v17 = vld [vmem:[%s6040_s0 + $0x250] sm:$0xff] }
 0x11b   :  { %3405 = vmatprep.mubr.msk.bf16.mxu0 %vm3945_vm0, %v6043_v0  ;;  %v4676_v29 = vadd.f32 %v1012_v26, %v517_v25  ;;  %3573 = vmatprep.mubr.msk.bf16.mxu1 %vm3945_vm0, %v6043_v0  ;;  %v133_v26 = vpack.c.bf16 %v90_v18, %v89_v17 }
 0x11c   :  { %v3307_v32 = vpop.f32.mrf.mxu0  ;;  %v3475_v35 = vpop.f32.mrf.mxu1 }
 0x11d   :  { %v217_v35 = vld [vmem:[%s6040_s0 + $0x261] sm:$0xff] }
 0x11e   :  { %v520_v36 = vpop.f32.mrf.mxu0  ;;  %v1015_v40 = vpop.f32.mrf.mxu1 }
 0x11f   :  { %v4686_v43 = vadd.f32 %v1015_v40, %v520_v36  ;;  %v218_v36 = vld [vmem:[%s6040_s0 + $0x269] sm:$0xff] }
 0x120   :  { %v3308_v44 = vpop.f32.mrf.mxu0  ;;  %v3476_v45 = vpop.f32.mrf.mxu1 }
 0x121   :  { %v92_v44 = vld [vmem:[%s6040_s0 + $0x268] sm:$0xff] }
 0x122   :  { %v525_v47 = vpop.f32.mrf.mxu0  ;;  %3406 = vmatmul.mubr.msk.bf16.gmra.mxu0 %vm279_vm1, %v257_v38  ;;  %v1020_v48 = vpop.f32.mrf.mxu1  ;;  %3574 = vmatmul.mubr.msk.bf16.gmra.mxu1 %vm279_vm1, %v131_v41  ;;  %v91_v41 = vld [vmem:[%s6040_s0 + $0x260] sm:$0xff] }
 0x123   :  { %3409 = vmatprep.mubr.msk.bf16.mxu0 %vm3945_vm0, %v6043_v0  ;;  %v4698_v54 = vadd.f32 %v1020_v48, %v525_v47  ;;  %3577 = vmatprep.mubr.msk.bf16.mxu1 %vm3945_vm0, %v6043_v0  ;;  %v260_v48 = vpack.c.bf16 %v218_v36, %v217_v35  ;;  %v134_v52 = vpack.c.bf16 %v92_v44, %v91_v41 }
 0x124   :  { %v3311_v55 = vpop.f32.mrf.mxu0  ;;  %v3479_v59 = vpop.f32.mrf.mxu1 }
 0x126   :  { %v528_v60 = vpop.f32.mrf.mxu0  ;;  %v1023_v1 = vpop.f32.mrf.mxu1 }
 0x127   :  { %v4708_v3 = vadd.f32 %v1023_v1, %v528_v60  ;;  %v220_v1 = vld [vmem:[%s6040_s0 + $0x279] sm:$0xff] }
 0x128   :  { %v3312_v5 = vpop.f32.mrf.mxu0  ;;  %v3480_v7 = vpop.f32.mrf.mxu1 }
 0x129   :  { %v93_v7 = vld [vmem:[%s6040_s0 + $0x270] sm:$0xff] }
 0x12a   :  { %v533_v8 = vpop.f32.mrf.mxu0  ;;  %3410 = vmatmul.mubr.msk.bf16.gmra.mxu0 %vm279_vm1, %v258_v61  ;;  %v1028_v10 = vpop.f32.mrf.mxu1  ;;  %3578 = vmatmul.mubr.msk.bf16.gmra.mxu1 %vm279_vm1, %v132_v2  ;;  %v219_v61 = vld [vmem:[%s6040_s0 + $0x271] sm:$0xff] }
 0x12b   :  { %3413 = vmatprep.mubr.msk.bf16.mxu0 %vm3945_vm0, %v6043_v0  ;;  %v4720_v14 = vadd.f32 %v1028_v10, %v533_v8  ;;  %3581 = vmatprep.mubr.msk.bf16.mxu1 %vm3945_vm0, %v6043_v0  ;;  %v94_v8 = vld [vmem:[%s6040_s0 + $0x278] sm:$0xff]  ;;  %v261_v13 = vpack.c.bf16 %v220_v1, %v219_v61 }
 0x12c   :  { %v3315_v16 = vpop.f32.mrf.mxu0  ;;  %v3483_v19 = vpop.f32.mrf.mxu1  ;;  %v135_v17 = vpack.c.bf16 %v94_v8, %v93_v7  ;;  %v1961_v61 = vld [vmem:[%s6040_s0 + $0x1b] sm:$0xff] }
 0x12e   :  { %v536_v21 = vpop.f32.mrf.mxu0  ;;  %v1031_v25 = vpop.f32.mrf.mxu1 }
 0x12f   :  { %v4730_v27 = vadd.f32 %v1031_v25, %v536_v21 }
 0x130   :  { %v3316_v28 = vpop.f32.mrf.mxu0  ;;  %v3484_v32 = vpop.f32.mrf.mxu1 }
 0x132   :  { %v541_v33 = vpop.f32.mrf.mxu0  ;;  %3414 = vmatmul.mubr.msk.bf16.gmra.mxu0 %vm279_vm1, %v259_v24  ;;  %v1036_v34 = vpop.f32.mrf.mxu1  ;;  %3582 = vmatmul.mubr.msk.bf16.gmra.mxu1 %vm279_vm1, %v133_v26  ;;  %v221_v26 = vld [vmem:[%s6040_s0 + $0x281] sm:$0xff] }
 0x133   :  { %3417 = vmatprep.mubr.msk.bf16.mxu0 %vm3945_vm0, %v6043_v0  ;;  %v4742_v38 = vadd.f32 %v1036_v34, %v541_v33  ;;  %3585 = vmatprep.mubr.msk.bf16.mxu1 %vm3945_vm0, %v6043_v0  ;;  %v95_v33 = vld [vmem:[%s6040_s0 + $0x280] sm:$0xff]  ;;  %v262_v36 = vpack.c.bf16 %v221_v26, %v221_v26 }
 0x134   :  { %v3319_v40 = vpop.f32.mrf.mxu0  ;;  %v3487_v45 = vpop.f32.mrf.mxu1  ;;  %v136_v41 = vpack.c.bf16 %v95_v33, %v95_v33  ;;  %v1963_v33 = vld [vmem:[%s6040_s0 + $0x2b] sm:$0xff] }
 0x136   :  { %v544_v47 = vpop.f32.mrf.mxu0  ;;  %v1039_v50 = vpop.f32.mrf.mxu1 }
 0x137   :  { %v4752_v55 = vadd.f32 %v1039_v50, %v544_v47 }
 0x138   :  { %v3320_v56 = vpop.f32.mrf.mxu0  ;;  %v3488_v58 = vpop.f32.mrf.mxu1 }
 0x139   :  { %v1259_v56 = vld [vmem:[%s6040_s0 + $0x1a] sm:$0xff] }
 0x13a   :  { %v549_v59 = vpop.f32.mrf.mxu0  ;;  %3418 = vmatmul.mubr.msk.bf16.gmra.mxu0 %vm279_vm1, %v260_v48  ;;  %v1044_v60 = vpop.f32.mrf.mxu1  ;;  %3586 = vmatmul.mubr.msk.bf16.gmra.mxu1 %vm279_vm1, %v134_v52  ;;  %v1258_v52 = vld [vmem:[%s6040_s0 + $0x12] sm:$0xff] }
 0x13b   :  { %3421 = vmatprep.mubr.msk.bf16.mxu0 %vm3945_vm0, %v6043_v0  ;;  %v4764_v2 = vadd.f32 %v1044_v60, %v549_v59  ;;  %3589 = vmatprep.mubr.msk.bf16.mxu1 %vm3945_vm0, %v6043_v0  ;;  %v1960_v60 = vld [vmem:[%s6040_s0 + $0x13] sm:$0xff]  ;;  %v1339_v7 = vpack.c.bf16 %v1259_v56, %v1258_v52 }
 0x13c   :  { %v3323_v5 = vpop.f32.mrf.mxu0  ;;  %v3491_v10 = vpop.f32.mrf.mxu1  ;;  %v1262_v56 = vld [vmem:[%s6040_s0 + $0x32] sm:$0xff] }
 0x13d   :  { %v2041_v10 = vpack.c.bf16 %v1961_v61, %v1960_v60 }
 0x13e   :  { %v552_v11 = vpop.f32.mrf.mxu0  ;;  %v1047_v16 = vpop.f32.mrf.mxu1 }
 0x13f   :  { %v4774_v18 = vadd.f32 %v1047_v16, %v552_v11 }
 0x140   :  { %v3324_v19 = vpop.f32.mrf.mxu0  ;;  %v3492_v21 = vpop.f32.mrf.mxu1 }
 0x141   :  { %v1260_v21 = vld [vmem:[%s6040_s0 + $0x22] sm:$0xff] }
 0x142   :  { %v557_v24 = vpop.f32.mrf.mxu0  ;;  %3422 = vmatmul.mubr.msk.bf16.gmra.mxu0 %vm279_vm1, %v261_v13  ;;  %v1052_v25 = vpop.f32.mrf.mxu1  ;;  %3590 = vmatmul.mubr.msk.bf16.gmra.mxu1 %vm279_vm1, %v135_v17 }
 0x143   :  { %3425 = vmatprep.mubr.msk.bf16.mxu0 %vm3945_vm0, %v6043_v0  ;;  %v4783_v28 = vadd.f32 %v1052_v25, %v557_v24  ;;  %3593 = vmatprep.mubr.msk.bf16.mxu1 %vm3945_vm0, %v6043_v0  ;;  %v1261_v24 = vld [vmem:[%s6040_s0 + $0x2a] sm:$0xff] }
 0x144   :  { %v3327_v32 = vpop.f32.mrf.mxu0  ;;  %v3495_v34 = vpop.f32.mrf.mxu1 }
 0x145   :  { %v1962_v32 = vld [vmem:[%s6040_s0 + $0x23] sm:$0xff] }
 0x146   :  { %v560_v35 = vpop.f32.mrf.mxu0  ;;  %v1055_v40 = vpop.f32.mrf.mxu1 }
 0x147   :  { %v4790_v44 = vadd.f32 %v1055_v40, %v560_v35 }
 0x148   :  { %v3328_v45 = vpop.f32.mrf.mxu0  ;;  %v3496_v47 = vpop.f32.mrf.mxu1 }
 0x14a   :  { %v565_v48 = vpop.f32.mrf.mxu0  ;;  %3426 = vmatmul.mubr.msk.bf16.gmra.mxu0 %vm279_vm1, %v262_v36  ;;  %v1060_v50 = vpop.f32.mrf.mxu1  ;;  %3594 = vmatmul.mubr.msk.bf16.gmra.mxu1 %vm279_vm1, %v136_v41  ;;  %v1340_v36 = vpack.c.bf16 %v1261_v24, %v1260_v21  ;;  %v2042_v41 = vpack.c.bf16 %v1963_v33, %v1962_v32  ;;  %v1264_v32 = vld [vmem:[%s6040_s0 + $0x42] sm:$0xff]  ;;  %v1265_v33 = vld [vmem:[%s6040_s0 + $0x4a] sm:$0xff] }
 0x14b   :  { %3601 = vmatprep.mubr.msk.bf16.mxu0 %vm3945_vm0, %v6043_v0  ;;  %v4802_v58 = vadd.f32 %v1060_v50, %v565_v48  ;;  %3769 = vmatprep.mubr.msk.bf16.mxu1 %vm3945_vm0, %v6043_v0 }
 0x14c   :  { %v3331_v59 = vpop.f32.mrf.mxu0  ;;  %v3499_v1 = vpop.f32.mrf.mxu1 }
 0x14d   :  { %v1263_v59 = vld [vmem:[%s6040_s0 + $0x3a] sm:$0xff] }
 0x14e   :  { %v568_v5 = vpop.f32.mrf.mxu0  ;;  %v1063_v8 = vpop.f32.mrf.mxu1  ;;  %v1964_v1 = vld [vmem:[%s6040_s0 + $0x33] sm:$0xff] }
 0x14f   :  { %v4812_v11 = vadd.f32 %v1063_v8, %v568_v5  ;;  %v1965_v5 = vld [vmem:[%s6040_s0 + $0x3b] sm:$0xff] }
 0x150   :  { %v3332_v13 = vpop.f32.mrf.mxu0  ;;  %v3500_v16 = vpop.f32.mrf.mxu1 }
 0x151   :  { %v2043_v16 = vpack.c.bf16 %v1965_v5, %v1964_v1 }
 0x152   :  { %v573_v17 = vpop.f32.mrf.mxu0  ;;  %3602 = vmatmul.mubr.msk.bf16.vlgmr.msra.gmra.mxu0 %vm279_vm1, %v1339_v7  ;;  %v1068_v19 = vpop.f32.mrf.mxu1  ;;  %3770 = vmatmul.mubr.msk.bf16.vlgmr.msra.gmra.mxu1 %vm279_vm1, %v2041_v10  ;;  %v1341_v10 = vpack.c.bf16 %v1263_v59, %v1262_v56 }
 0x153   :  { %3605 = vmatprep.mubr.msk.bf16.mxu0 %vm3945_vm0, %v6043_v0  ;;  %v4824_v25 = vadd.f32 %v1068_v19, %v573_v17  ;;  %3773 = vmatprep.mubr.msk.bf16.mxu1 %vm3945_vm0, %v6043_v0 }
 0x154   :  { %v3335_v26 = vpop.f32.mrf.mxu0  ;;  %v3503_v34 = vpop.f32.mrf.mxu1 }
 0x156   :  { %v576_v35 = vpop.f32.mrf.mxu0  ;;  %v1071_v40 = vpop.f32.mrf.mxu1 }
 0x157   :  { %v4834_v45 = vadd.f32 %v1071_v40, %v576_v35  ;;  %v1967_v40 = vld [vmem:[%s6040_s0 + $0x4b] sm:$0xff] }
 0x158   :  { %v3336_v47 = vpop.f32.mrf.mxu0  ;;  %v3504_v48 = vpop.f32.mrf.mxu1 }
 0x159   :  { %v1342_v48 = vpack.c.bf16 %v1265_v33, %v1264_v32 }
 0x15a   :  { %v581_v50 = vpop.f32.mrf.mxu0  ;;  %3606 = vmatmul.mubr.msk.bf16.gmra.mxu0 %vm279_vm1, %v1340_v36  ;;  %v1076_v52 = vpop.f32.mrf.mxu1  ;;  %3774 = vmatmul.mubr.msk.bf16.gmra.mxu1 %vm279_vm1, %v2042_v41  ;;  %v1966_v36 = vld [vmem:[%s6040_s0 + $0x43] sm:$0xff] }
 0x15b   :  { %3609 = vmatprep.mubr.msk.bf16.mxu0 %vm3945_vm0, %v6043_v0  ;;  %v4846_v60 = vadd.f32 %v1076_v52, %v581_v50  ;;  %3777 = vmatprep.mubr.msk.bf16.mxu1 %vm3945_vm0, %v6043_v0  ;;  %v2044_v52 = vpack.c.bf16 %v1967_v40, %v1966_v36 }
 0x15c   :  { %v3339_v61 = vpop.f32.mrf.mxu0  ;;  %v3507_v7 = vpop.f32.mrf.mxu1 }
 0x15d   :  { %v1266_v7 = vld [vmem:[%s6040_s0 + $0x52] sm:$0xff] }
 0x15e   :  { %v584_v8 = vpop.f32.mrf.mxu0  ;;  %v1079_v13 = vpop.f32.mrf.mxu1 }
 0x15f   :  { %v4856_v17 = vadd.f32 %v1079_v13, %v584_v8  ;;  %v1267_v8 = vld [vmem:[%s6040_s0 + $0x5a] sm:$0xff] }
 0x160   :  { %v3340_v19 = vpop.f32.mrf.mxu0  ;;  %v3508_v21 = vpop.f32.mrf.mxu1 }
 0x161   :  { %v1969_v19 = vld [vmem:[%s6040_s0 + $0x5b] sm:$0xff] }
 0x162   :  { %v589_v24 = vpop.f32.mrf.mxu0  ;;  %3610 = vmatmul.mubr.msk.bf16.gmra.mxu0 %vm279_vm1, %v1341_v10  ;;  %v1084_v26 = vpop.f32.mrf.mxu1  ;;  %3778 = vmatmul.mubr.msk.bf16.gmra.mxu1 %vm279_vm1, %v2043_v16  ;;  %v1968_v16 = vld [vmem:[%s6040_s0 + $0x53] sm:$0xff] }
 0x163   :  { %3613 = vmatprep.mubr.msk.bf16.mxu0 %vm3945_vm0, %v6043_v0  ;;  %v4868_v34 = vadd.f32 %v1084_v26, %v589_v24  ;;  %3781 = vmatprep.mubr.msk.bf16.mxu1 %vm3945_vm0, %v6043_v0  ;;  %v1343_v26 = vpack.c.bf16 %v1267_v8, %v1266_v7  ;;  %v2045_v33 = vpack.c.bf16 %v1969_v19, %v1968_v16 }
 0x164   :  { %v3343_v35 = vpop.f32.mrf.mxu0  ;;  %v3511_v41 = vpop.f32.mrf.mxu1 }
 0x166   :  { %v592_v47 = vpop.f32.mrf.mxu0  ;;  %v1087_v50 = vpop.f32.mrf.mxu1 }
 0x167   :  { %v4878_v56 = vadd.f32 %v1087_v50, %v592_v47  ;;  %v1269_v50 = vld [vmem:[%s6040_s0 + $0x6a] sm:$0xff] }
 0x168   :  { %v3344_v59 = vpop.f32.mrf.mxu0  ;;  %v3512_v61 = vpop.f32.mrf.mxu1 }
 0x169   :  { %v1970_v61 = vld [vmem:[%s6040_s0 + $0x63] sm:$0xff] }
 0x16a   :  { %v597_v1 = vpop.f32.mrf.mxu0  ;;  %3614 = vmatmul.mubr.msk.bf16.gmra.mxu0 %vm279_vm1, %v1342_v48  ;;  %v1092_v5 = vpop.f32.mrf.mxu1  ;;  %3782 = vmatmul.mubr.msk.bf16.gmra.mxu1 %vm279_vm1, %v2044_v52  ;;  %v1268_v48 = vld [vmem:[%s6040_s0 + $0x62] sm:$0xff] }
 0x16b   :  { %3617 = vmatprep.mubr.msk.bf16.mxu0 %vm3945_vm0, %v6043_v0  ;;  %v4890_v10 = vadd.f32 %v1092_v5, %v597_v1  ;;  %3785 = vmatprep.mubr.msk.bf16.mxu1 %vm3945_vm0, %v6043_v0  ;;  %v1971_v1 = vld [vmem:[%s6040_s0 + $0x6b] sm:$0xff]  ;;  %v1344_v8 = vpack.c.bf16 %v1269_v50, %v1268_v48  ;;  %v1973_v48 = vld [vmem:[%s6040_s0 + $0x7b] sm:$0xff] }
 0x16c   :  { %v3347_v13 = vpop.f32.mrf.mxu0  ;;  %v3515_v21 = vpop.f32.mrf.mxu1  ;;  %v2046_v16 = vpack.c.bf16 %v1971_v1, %v1970_v61 }
 0x16e   :  { %v600_v24 = vpop.f32.mrf.mxu0  ;;  %v1095_v32 = vpop.f32.mrf.mxu1 }
 0x16f   :  { %v4900_v35 = vadd.f32 %v1095_v32, %v600_v24 }
 0x170   :  { %v3348_v36 = vpop.f32.mrf.mxu0  ;;  %v3516_v40 = vpop.f32.mrf.mxu1 }
 0x171   :  { %v1271_v36 = vld [vmem:[%s6040_s0 + $0x7a] sm:$0xff] }
 0x172   :  { %v605_v41 = vpop.f32.mrf.mxu0  ;;  %3618 = vmatmul.mubr.msk.bf16.gmra.mxu0 %vm279_vm1, %v1343_v26  ;;  %v1100_v47 = vpop.f32.mrf.mxu1  ;;  %3786 = vmatmul.mubr.msk.bf16.gmra.mxu1 %vm279_vm1, %v2045_v33  ;;  %v1270_v33 = vld [vmem:[%s6040_s0 + $0x72] sm:$0xff] }
 0x173   :  { %3621 = vmatprep.mubr.msk.bf16.mxu0 %vm3945_vm0, %v6043_v0  ;;  %v4912_v52 = vadd.f32 %v1100_v47, %v605_v41  ;;  %3789 = vmatprep.mubr.msk.bf16.mxu1 %vm3945_vm0, %v6043_v0  ;;  %v1972_v47 = vld [vmem:[%s6040_s0 + $0x73] sm:$0xff]  ;;  %v1345_v61 = vpack.c.bf16 %v1271_v36, %v1270_v33  ;;  %v1974_v36 = vld [vmem:[%s6040_s0 + $0x83] sm:$0xff] }
 0x174   :  { %v3351_v59 = vpop.f32.mrf.mxu0  ;;  %v3519_v5 = vpop.f32.mrf.mxu1 }
 0x175   :  { %v2047_v5 = vpack.c.bf16 %v1973_v48, %v1972_v47 }
 0x176   :  { %v608_v7 = vpop.f32.mrf.mxu0  ;;  %v1103_v13 = vpop.f32.mrf.mxu1 }
 0x177   :  { %v4922_v19 = vadd.f32 %v1103_v13, %v608_v7 }
 0x178   :  { %v3352_v21 = vpop.f32.mrf.mxu0  ;;  %v3520_v24 = vpop.f32.mrf.mxu1 }
 0x179   :  { %v1272_v24 = vld [vmem:[%s6040_s0 + $0x82] sm:$0xff] }
 0x17a   :  { %v613_v26 = vpop.f32.mrf.mxu0  ;;  %3622 = vmatmul.mubr.msk.bf16.gmra.mxu0 %vm279_vm1, %v1344_v8  ;;  %v1108_v32 = vpop.f32.mrf.mxu1  ;;  %3790 = vmatmul.mubr.msk.bf16.gmra.mxu1 %vm279_vm1, %v2046_v16 }
 0x17b   :  { %3625 = vmatprep.mubr.msk.bf16.mxu0 %vm3945_vm0, %v6043_v0  ;;  %v4934_v40 = vadd.f32 %v1108_v32, %v613_v26  ;;  %3793 = vmatprep.mubr.msk.bf16.mxu1 %vm3945_vm0, %v6043_v0  ;;  %v1273_v26 = vld [vmem:[%s6040_s0 + $0x8a] sm:$0xff] }
 0x17c   :  { %v3355_v41 = vpop.f32.mrf.mxu0  ;;  %v3523_v50 = vpop.f32.mrf.mxu1 }
 0x17d   :  { %6045 = vst [vmem:[#allocation2_spill] sm:$0xff] %v4934_v40  ;;  %v1975_v41 = vld [vmem:[%s6040_s0 + $0x8b] sm:$0xff]  ;;  %v1346_v50 = vpack.c.bf16 %v1273_v26, %v1272_v24  ;;  %v1275_v24 = vld [vmem:[%s6040_s0 + $0x9a] sm:$0xff] }
 0x17e   :  { %v616_v59 = vpop.f32.mrf.mxu0  ;;  %v1111_v1 = vpop.f32.mrf.mxu1 }
 0x17f   :  { %v4944_v7 = vadd.f32 %v1111_v1, %v616_v59 }
 0x180   :  { %v3356_v8 = vpop.f32.mrf.mxu0  ;;  %v3524_v13 = vpop.f32.mrf.mxu1 }
 0x181   :  { %6046 = vst [vmem:[#allocation3_spill] sm:$0xff] %v4944_v7 }
 0x182   :  { %v621_v16 = vpop.f32.mrf.mxu0  ;;  %3626 = vmatmul.mubr.msk.bf16.gmra.mxu0 %vm279_vm1, %v1345_v61  ;;  %v1116_v21 = vpop.f32.mrf.mxu1  ;;  %3794 = vmatmul.mubr.msk.bf16.gmra.mxu1 %vm279_vm1, %v2047_v5  ;;  %v2048_v61 = vpack.c.bf16 %v1975_v41, %v1974_v36  ;;  %v1976_v36 = vld [vmem:[%s6040_s0 + $0x93] sm:$0xff]  ;;  %v1977_v41 = vld [vmem:[%s6040_s0 + $0x9b] sm:$0xff] }
 0x183   :  { %3629 = vmatprep.mubr.msk.bf16.mxu0 %vm3945_vm0, %v6043_v0  ;;  %v4956_v32 = vadd.f32 %v1116_v21, %v621_v16  ;;  %3797 = vmatprep.mubr.msk.bf16.mxu1 %vm3945_vm0, %v6043_v0  ;;  %v1274_v21 = vld [vmem:[%s6040_s0 + $0x92] sm:$0xff] }
 0x184   :  { %v3359_v33 = vpop.f32.mrf.mxu0  ;;  %v3527_v47 = vpop.f32.mrf.mxu1 }
 0x185   :  { %6047 = vst [vmem:[#allocation4_spill] sm:$0xff] %v4956_v32 }
 0x186   :  { %v624_v48 = vpop.f32.mrf.mxu0  ;;  %v1119_v59 = vpop.f32.mrf.mxu1 }
 0x187   :  { %v4966_v1 = vadd.f32 %v1119_v59, %v624_v48 }
 0x188   :  { %v3360_v5 = vpop.f32.mrf.mxu0  ;;  %v3528_v8 = vpop.f32.mrf.mxu1 }
 0x189   :  { %6048 = vst [vmem:[#allocation5_spill] sm:$0xff] %v4966_v1 }
 0x18a   :  { %v629_v13 = vpop.f32.mrf.mxu0  ;;  %3630 = vmatmul.mubr.msk.bf16.gmra.mxu0 %vm279_vm1, %v1346_v50  ;;  %v1124_v16 = vpop.f32.mrf.mxu1  ;;  %3798 = vmatmul.mubr.msk.bf16.gmra.mxu1 %vm279_vm1, %v2048_v61  ;;  %v1347_v50 = vpack.c.bf16 %v1275_v24, %v1274_v21  ;;  %v2049_v61 = vpack.c.bf16 %v1977_v41, %v1976_v36  ;;  %v1277_v21 = vld [vmem:[%s6040_s0 + $0xaa] sm:$0xff] }
 0x18b   :  { %3633 = vmatprep.mubr.msk.bf16.mxu0 %vm3945_vm0, %v6043_v0  ;;  %v4978_v26 = vadd.f32 %v1124_v16, %v629_v13  ;;  %3801 = vmatprep.mubr.msk.bf16.mxu1 %vm3945_vm0, %v6043_v0  ;;  %v1978_v41 = vld [vmem:[%s6040_s0 + $0xa3] sm:$0xff] }
 0x18c   :  { %v3363_v33 = vpop.f32.mrf.mxu0  ;;  %v3531_v47 = vpop.f32.mrf.mxu1 }
 0x18d   :  { %6049 = vst [vmem:[#allocation6_spill] sm:$0xff] %v4978_v26  ;;  %v1276_v47 = vld [vmem:[%s6040_s0 + $0xa2] sm:$0xff] }
 0x18e   :  { %v632_v48 = vpop.f32.mrf.mxu0  ;;  %v1127_v59 = vpop.f32.mrf.mxu1 }
 0x18f   :  { %v4988_v5 = vadd.f32 %v1127_v59, %v632_v48  ;;  %v1979_v48 = vld [vmem:[%s6040_s0 + $0xab] sm:$0xff] }
 0x190   :  { %v3364_v8 = vpop.f32.mrf.mxu0  ;;  %v3532_v13 = vpop.f32.mrf.mxu1 }
 0x191   :  { %6050 = vst [vmem:[#allocation7_spill] sm:$0xff] %v4988_v5  ;;  %v2050_v13 = vpack.c.bf16 %v1979_v48, %v1978_v41  ;;  %v1980_v48 = vld [vmem:[%s6040_s0 + $0xb3] sm:$0xff] }
 0x192   :  { %v637_v16 = vpop.f32.mrf.mxu0  ;;  %3634 = vmatmul.mubr.msk.bf16.gmra.mxu0 %vm279_vm1, %v1347_v50  ;;  %v1132_v33 = vpop.f32.mrf.mxu1  ;;  %3802 = vmatmul.mubr.msk.bf16.gmra.mxu1 %vm279_vm1, %v2049_v61  ;;  %v1348_v61 = vpack.c.bf16 %v1277_v21, %v1276_v47  ;;  %v1279_v47 = vld [vmem:[%s6040_s0 + $0xba] sm:$0xff] }
 0x193   :  { %3637 = vmatprep.mubr.msk.bf16.mxu0 %vm3945_vm0, %v6043_v0  ;;  %v5000_v24 = vadd.f32 %v1132_v33, %v637_v16  ;;  %3805 = vmatprep.mubr.msk.bf16.mxu1 %vm3945_vm0, %v6043_v0 }
 0x194   :  { %v3367_v36 = vpop.f32.mrf.mxu0  ;;  %v3535_v50 = vpop.f32.mrf.mxu1 }
 0x195   :  { %6051 = vst [vmem:[#allocation8_spill] sm:$0xff] %v5000_v24  ;;  %v6053_v24 = vmov 0.0   ;;  %v1278_v50 = vld [vmem:[%s6040_s0 + $0xb2] sm:$0xff] }
 0x196   :  { %v640_v59 = vpop.f32.mrf.mxu0  ;;  %v1135_v8 = vpop.f32.mrf.mxu1 }
 0x197   :  { %v5010_v5 = vadd.f32 %v1135_v8, %v640_v59  ;;  %v1981_v59 = vld [vmem:[%s6040_s0 + $0xbb] sm:$0xff] }
 0x198   :  { %v3368_v16 = vpop.f32.mrf.mxu0  ;;  %v3536_v33 = vpop.f32.mrf.mxu1 }
 0x199   :  { %6052 = vst [vmem:[#allocation9_spill] sm:$0xff] %v5010_v5  ;;  %v2051_v33 = vpack.c.bf16 %v1981_v59, %v1980_v48  ;;  %v1982_v59 = vld [vmem:[%s6040_s0 + $0xc3] sm:$0xff] }
 0x19a   :  { %v645_v36 = vpop.f32.mrf.mxu0  ;;  %3638 = vmatmul.mubr.msk.bf16.gmra.mxu0 %vm279_vm1, %v1348_v61  ;;  %v1140_v0 = vpop.f32.mrf.mxu1  ;;  %3806 = vmatmul.mubr.msk.bf16.gmra.mxu1 %vm279_vm1, %v2050_v13  ;;  %v1349_v13 = vpack.c.bf16 %v1279_v47, %v1278_v50  ;;  %v1281_v50 = vld [vmem:[%s6040_s0 + $0xca] sm:$0xff] }
 0x19b   :  { %3641 = vmatprep.mubr.msk.bf16.mxu0 %vm3945_vm0, %v6053_v24  ;;  %v5022_v21 = vadd.f32 %v1140_v0, %v645_v36  ;;  %3809 = vmatprep.mubr.msk.bf16.mxu1 %vm3945_vm0, %v6053_v24 }
 0x19c   :  { %v3371_v41 = vpop.f32.mrf.mxu0  ;;  %v3539_v61 = vpop.f32.mrf.mxu1 }
 0x19d   :  { %6054 = vst [vmem:[#allocation10_spill] sm:$0xff] %v5022_v21  ;;  %v1280_v61 = vld [vmem:[%s6040_s0 + $0xc2] sm:$0xff] }
 0x19e   :  { %v648_v8 = vpop.f32.mrf.mxu0  ;;  %v1143_v16 = vpop.f32.mrf.mxu1 }
 0x19f   :  { %v5032_v5 = vadd.f32 %v1143_v16, %v648_v8  ;;  %v1983_v8 = vld [vmem:[%s6040_s0 + $0xcb] sm:$0xff] }
 0x1a0   :  { %v3372_v0 = vpop.f32.mrf.mxu0  ;;  %v3540_v36 = vpop.f32.mrf.mxu1 }
 0x1a1   :  { %6055 = vst [vmem:[#allocation11_spill] sm:$0xff] %v5032_v5  ;;  %v2052_v36 = vpack.c.bf16 %v1983_v8, %v1982_v59  ;;  %v1984_v8 = vld [vmem:[%s6040_s0 + $0xd3] sm:$0xff] }
 0x1a2   :  { %v653_v41 = vpop.f32.mrf.mxu0  ;;  %3642 = vmatmul.mubr.msk.bf16.gmra.mxu0 %vm279_vm1, %v1349_v13  ;;  %v1148_v21 = vpop.f32.mrf.mxu1  ;;  %3810 = vmatmul.mubr.msk.bf16.gmra.mxu1 %vm279_vm1, %v2051_v33  ;;  %v1350_v33 = vpack.c.bf16 %v1281_v50, %v1280_v61  ;;  %v1283_v61 = vld [vmem:[%s6040_s0 + $0xda] sm:$0xff] }
 0x1a3   :  { %3645 = vmatprep.mubr.msk.bf16.mxu0 %vm3945_vm0, %v6053_v24  ;;  %v5044_v47 = vadd.f32 %v1148_v21, %v653_v41  ;;  %3813 = vmatprep.mubr.msk.bf16.mxu1 %vm3945_vm0, %v6053_v24 }
 0x1a4   :  { %v3375_v48 = vpop.f32.mrf.mxu0  ;;  %v3543_v13 = vpop.f32.mrf.mxu1 }
 0x1a5   :  { %6056 = vst [vmem:[#allocation12_spill] sm:$0xff] %v5044_v47  ;;  %v1282_v13 = vld [vmem:[%s6040_s0 + $0xd2] sm:$0xff] }
 0x1a6   :  { %v656_v16 = vpop.f32.mrf.mxu0  ;;  %v1151_v0 = vpop.f32.mrf.mxu1 }
 0x1a7   :  { %v5054_v5 = vadd.f32 %v1151_v0, %v656_v16  ;;  %v1985_v16 = vld [vmem:[%s6040_s0 + $0xdb] sm:$0xff] }
 0x1a8   :  { %v3376_v21 = vpop.f32.mrf.mxu0  ;;  %v3544_v41 = vpop.f32.mrf.mxu1 }
 0x1a9   :  { %6057 = vst [vmem:[#allocation13_spill] sm:$0xff] %v5054_v5  ;;  %v2053_v41 = vpack.c.bf16 %v1985_v16, %v1984_v8  ;;  %v1986_v16 = vld [vmem:[%s6040_s0 + $0xe3] sm:$0xff] }
 0x1aa   :  { %v661_v48 = vpop.f32.mrf.mxu0  ;;  %3646 = vmatmul.mubr.msk.bf16.gmra.mxu0 %vm279_vm1, %v1350_v33  ;;  %v1156_v47 = vpop.f32.mrf.mxu1  ;;  %3814 = vmatmul.mubr.msk.bf16.gmra.mxu1 %vm279_vm1, %v2052_v36  ;;  %v1351_v36 = vpack.c.bf16 %v1283_v61, %v1282_v13  ;;  %v1285_v13 = vld [vmem:[%s6040_s0 + $0xea] sm:$0xff] }
 0x1ab   :  { %3649 = vmatprep.mubr.msk.bf16.mxu0 %vm3945_vm0, %v6053_v24  ;;  %v5066_v50 = vadd.f32 %v1156_v47, %v661_v48  ;;  %3817 = vmatprep.mubr.msk.bf16.mxu1 %vm3945_vm0, %v6053_v24 }
 0x1ac   :  { %v3379_v59 = vpop.f32.mrf.mxu0  ;;  %v3547_v33 = vpop.f32.mrf.mxu1 }
 0x1ad   :  { %6058 = vst [vmem:[#allocation14_spill] sm:$0xff] %v5066_v50  ;;  %v1284_v33 = vld [vmem:[%s6040_s0 + $0xe2] sm:$0xff] }
 0x1ae   :  { %v664_v0 = vpop.f32.mrf.mxu0  ;;  %v1159_v21 = vpop.f32.mrf.mxu1 }
 0x1af   :  { %v5076_v5 = vadd.f32 %v1159_v21, %v664_v0  ;;  %v1987_v0 = vld [vmem:[%s6040_s0 + $0xeb] sm:$0xff] }
 0x1b0   :  { %v3380_v47 = vpop.f32.mrf.mxu0  ;;  %v3548_v48 = vpop.f32.mrf.mxu1 }
 0x1b1   :  { %6059 = vst [vmem:[#allocation15_spill] sm:$0xff] %v5076_v5  ;;  %v2054_v48 = vpack.c.bf16 %v1987_v0, %v1986_v16  ;;  %v1988_v0 = vld [vmem:[%s6040_s0 + $0xf3] sm:$0xff] }
 0x1b2   :  { %v669_v59 = vpop.f32.mrf.mxu0  ;;  %3650 = vmatmul.mubr.msk.bf16.gmra.mxu0 %vm279_vm1, %v1351_v36  ;;  %v1164_v50 = vpop.f32.mrf.mxu1  ;;  %3818 = vmatmul.mubr.msk.bf16.gmra.mxu1 %vm279_vm1, %v2053_v41  ;;  %v1352_v41 = vpack.c.bf16 %v1285_v13, %v1284_v33  ;;  %v1287_v33 = vld [vmem:[%s6040_s0 + $0xfa] sm:$0xff] }
 0x1b3   :  { %3653 = vmatprep.mubr.msk.bf16.mxu0 %vm3945_vm0, %v6053_v24  ;;  %v5088_v61 = vadd.f32 %v1164_v50, %v669_v59  ;;  %3821 = vmatprep.mubr.msk.bf16.mxu1 %vm3945_vm0, %v6053_v24 }
 0x1b4   :  { %v3383_v8 = vpop.f32.mrf.mxu0  ;;  %v3551_v36 = vpop.f32.mrf.mxu1 }
 0x1b5   :  { %6060 = vst [vmem:[#allocation16_spill] sm:$0xff] %v5088_v61  ;;  %v1286_v36 = vld [vmem:[%s6040_s0 + $0xf2] sm:$0xff] }
 0x1b6   :  { %v672_v21 = vpop.f32.mrf.mxu0  ;;  %v1167_v47 = vpop.f32.mrf.mxu1 }
 0x1b7   :  { %v5098_v5 = vadd.f32 %v1167_v47, %v672_v21  ;;  %v1989_v21 = vld [vmem:[%s6040_s0 + $0xfb] sm:$0xff] }
 0x1b8   :  { %v3384_v50 = vpop.f32.mrf.mxu0  ;;  %v3552_v59 = vpop.f32.mrf.mxu1 }
 0x1b9   :  { %6061 = vst [vmem:[#allocation17_spill] sm:$0xff] %v5098_v5  ;;  %v2055_v59 = vpack.c.bf16 %v1989_v21, %v1988_v0  ;;  %v1990_v21 = vld [vmem:[%s6040_s0 + $0x103] sm:$0xff] }
 0x1ba   :  { %v677_v8 = vpop.f32.mrf.mxu0  ;;  %3654 = vmatmul.mubr.msk.bf16.gmra.mxu0 %vm279_vm1, %v1352_v41  ;;  %v1172_v61 = vpop.f32.mrf.mxu1  ;;  %3822 = vmatmul.mubr.msk.bf16.gmra.mxu1 %vm279_vm1, %v2054_v48  ;;  %v1353_v48 = vpack.c.bf16 %v1287_v33, %v1286_v36  ;;  %v1289_v36 = vld [vmem:[%s6040_s0 + $0x10a] sm:$0xff] }
 0x1bb   :  { %3657 = vmatprep.mubr.msk.bf16.mxu0 %vm3945_vm0, %v6053_v24  ;;  %v5110_v13 = vadd.f32 %v1172_v61, %v677_v8  ;;  %3825 = vmatprep.mubr.msk.bf16.mxu1 %vm3945_vm0, %v6053_v24 }
 0x1bc   :  { %v3387_v16 = vpop.f32.mrf.mxu0  ;;  %v3555_v41 = vpop.f32.mrf.mxu1 }
 0x1bd   :  { %6062 = vst [vmem:[#allocation18_spill] sm:$0xff] %v5110_v13  ;;  %v1288_v41 = vld [vmem:[%s6040_s0 + $0x102] sm:$0xff] }
 0x1be   :  { %v680_v47 = vpop.f32.mrf.mxu0  ;;  %v1175_v50 = vpop.f32.mrf.mxu1 }
 0x1bf   :  { %v5120_v5 = vadd.f32 %v1175_v50, %v680_v47  ;;  %v1991_v47 = vld [vmem:[%s6040_s0 + $0x10b] sm:$0xff] }
 0x1c0   :  { %v3388_v61 = vpop.f32.mrf.mxu0  ;;  %v3556_v8 = vpop.f32.mrf.mxu1 }
 0x1c1   :  { %6063 = vst [vmem:[#allocation19_spill] sm:$0xff] %v5120_v5  ;;  %v2056_v8 = vpack.c.bf16 %v1991_v47, %v1990_v21  ;;  %v1992_v47 = vld [vmem:[%s6040_s0 + $0x113] sm:$0xff] }
 0x1c2   :  { %v685_v16 = vpop.f32.mrf.mxu0  ;;  %3658 = vmatmul.mubr.msk.bf16.gmra.mxu0 %vm279_vm1, %v1353_v48  ;;  %v1180_v13 = vpop.f32.mrf.mxu1  ;;  %3826 = vmatmul.mubr.msk.bf16.gmra.mxu1 %vm279_vm1, %v2055_v59  ;;  %v1354_v59 = vpack.c.bf16 %v1289_v36, %v1288_v41  ;;  %v1291_v41 = vld [vmem:[%s6040_s0 + $0x11a] sm:$0xff] }
 0x1c3   :  { %3661 = vmatprep.mubr.msk.bf16.mxu0 %vm3945_vm0, %v6053_v24  ;;  %v5132_v33 = vadd.f32 %v1180_v13, %v685_v16  ;;  %3829 = vmatprep.mubr.msk.bf16.mxu1 %vm3945_vm0, %v6053_v24 }
 0x1c4   :  { %v3391_v0 = vpop.f32.mrf.mxu0  ;;  %v3559_v48 = vpop.f32.mrf.mxu1 }
 0x1c5   :  { %6064 = vst [vmem:[#allocation20_spill] sm:$0xff] %v5132_v33  ;;  %v1290_v48 = vld [vmem:[%s6040_s0 + $0x112] sm:$0xff] }
 0x1c6   :  { %v688_v50 = vpop.f32.mrf.mxu0  ;;  %v1183_v61 = vpop.f32.mrf.mxu1 }
 0x1c7   :  { %v5142_v5 = vadd.f32 %v1183_v61, %v688_v50  ;;  %v1993_v50 = vld [vmem:[%s6040_s0 + $0x11b] sm:$0xff] }
 0x1c8   :  { %v3392_v13 = vpop.f32.mrf.mxu0  ;;  %v3560_v16 = vpop.f32.mrf.mxu1 }
 0x1c9   :  { %6065 = vst [vmem:[#allocation21_spill] sm:$0xff] %v5142_v5  ;;  %v2057_v16 = vpack.c.bf16 %v1993_v50, %v1992_v47  ;;  %v1994_v50 = vld [vmem:[%s6040_s0 + $0x123] sm:$0xff] }
 0x1ca   :  { %v693_v0 = vpop.f32.mrf.mxu0  ;;  %3662 = vmatmul.mubr.msk.bf16.gmra.mxu0 %vm279_vm1, %v1354_v59  ;;  %v1188_v33 = vpop.f32.mrf.mxu1  ;;  %3830 = vmatmul.mubr.msk.bf16.gmra.mxu1 %vm279_vm1, %v2056_v8  ;;  %v1355_v8 = vpack.c.bf16 %v1291_v41, %v1290_v48  ;;  %v1293_v48 = vld [vmem:[%s6040_s0 + $0x12a] sm:$0xff] }
 0x1cb   :  { %3665 = vmatprep.mubr.msk.bf16.mxu0 %vm3945_vm0, %v6053_v24  ;;  %v5154_v36 = vadd.f32 %v1188_v33, %v693_v0  ;;  %3833 = vmatprep.mubr.msk.bf16.mxu1 %vm3945_vm0, %v6053_v24 }
 0x1cc   :  { %v3395_v21 = vpop.f32.mrf.mxu0  ;;  %v3563_v59 = vpop.f32.mrf.mxu1 }
 0x1cd   :  { %6066 = vst [vmem:[#allocation22_spill] sm:$0xff] %v5154_v36  ;;  %v1292_v59 = vld [vmem:[%s6040_s0 + $0x122] sm:$0xff] }
 0x1ce   :  { %v696_v61 = vpop.f32.mrf.mxu0  ;;  %v1191_v13 = vpop.f32.mrf.mxu1 }
 0x1cf   :  { %v5164_v5 = vadd.f32 %v1191_v13, %v696_v61  ;;  %v1995_v61 = vld [vmem:[%s6040_s0 + $0x12b] sm:$0xff] }
 0x1d0   :  { %v3396_v33 = vpop.f32.mrf.mxu0  ;;  %v3564_v0 = vpop.f32.mrf.mxu1 }
 0x1d1   :  { %6067 = vst [vmem:[#allocation23_spill] sm:$0xff] %v5164_v5  ;;  %v2058_v0 = vpack.c.bf16 %v1995_v61, %v1994_v50  ;;  %v1996_v61 = vld [vmem:[%s6040_s0 + $0x133] sm:$0xff] }
 0x1d2   :  { %v701_v21 = vpop.f32.mrf.mxu0  ;;  %3666 = vmatmul.mubr.msk.bf16.gmra.mxu0 %vm279_vm1, %v1355_v8  ;;  %v1196_v36 = vpop.f32.mrf.mxu1  ;;  %3834 = vmatmul.mubr.msk.bf16.gmra.mxu1 %vm279_vm1, %v2057_v16  ;;  %v1356_v16 = vpack.c.bf16 %v1293_v48, %v1292_v59  ;;  %v1295_v59 = vld [vmem:[%s6040_s0 + $0x13a] sm:$0xff] }
 0x1d3   :  { %3669 = vmatprep.mubr.msk.bf16.mxu0 %vm3945_vm0, %v6053_v24  ;;  %v5176_v41 = vadd.f32 %v1196_v36, %v701_v21  ;;  %3837 = vmatprep.mubr.msk.bf16.mxu1 %vm3945_vm0, %v6053_v24 }
 0x1d4   :  { %v3399_v47 = vpop.f32.mrf.mxu0  ;;  %v3567_v8 = vpop.f32.mrf.mxu1 }
 0x1d5   :  { %6068 = vst [vmem:[#allocation24_spill] sm:$0xff] %v5176_v41  ;;  %v1294_v8 = vld [vmem:[%s6040_s0 + $0x132] sm:$0xff] }
 0x1d6   :  { %v704_v13 = vpop.f32.mrf.mxu0  ;;  %v1199_v33 = vpop.f32.mrf.mxu1 }
 0x1d7   :  { %v5186_v5 = vadd.f32 %v1199_v33, %v704_v13  ;;  %v1997_v13 = vld [vmem:[%s6040_s0 + $0x13b] sm:$0xff] }
 0x1d8   :  { %v3400_v36 = vpop.f32.mrf.mxu0  ;;  %v3568_v21 = vpop.f32.mrf.mxu1 }
 0x1d9   :  { %6069 = vst [vmem:[#allocation25_spill] sm:$0xff] %v5186_v5  ;;  %v2059_v21 = vpack.c.bf16 %v1997_v13, %v1996_v61  ;;  %v1998_v13 = vld [vmem:[%s6040_s0 + $0x143] sm:$0xff] }
 0x1da   :  { %v709_v47 = vpop.f32.mrf.mxu0  ;;  %3670 = vmatmul.mubr.msk.bf16.gmra.mxu0 %vm279_vm1, %v1356_v16  ;;  %v1204_v41 = vpop.f32.mrf.mxu1  ;;  %3838 = vmatmul.mubr.msk.bf16.gmra.mxu1 %vm279_vm1, %v2058_v0  ;;  %v1357_v0 = vpack.c.bf16 %v1295_v59, %v1294_v8  ;;  %v1297_v8 = vld [vmem:[%s6040_s0 + $0x14a] sm:$0xff] }
 0x1db   :  { %3673 = vmatprep.mubr.msk.bf16.mxu0 %vm3945_vm0, %v6053_v24  ;;  %v5198_v48 = vadd.f32 %v1204_v41, %v709_v47  ;;  %3841 = vmatprep.mubr.msk.bf16.mxu1 %vm3945_vm0, %v6053_v24 }
 0x1dc   :  { %v3403_v50 = vpop.f32.mrf.mxu0  ;;  %v3571_v16 = vpop.f32.mrf.mxu1 }
 0x1dd   :  { %6070 = vst [vmem:[#allocation26_spill] sm:$0xff] %v5198_v48  ;;  %v1296_v16 = vld [vmem:[%s6040_s0 + $0x142] sm:$0xff] }
 0x1de   :  { %v712_v33 = vpop.f32.mrf.mxu0  ;;  %v1207_v36 = vpop.f32.mrf.mxu1 }
 0x1df   :  { %v5208_v5 = vadd.f32 %v1207_v36, %v712_v33  ;;  %v1999_v33 = vld [vmem:[%s6040_s0 + $0x14b] sm:$0xff] }
 0x1e0   :  { %v3404_v41 = vpop.f32.mrf.mxu0  ;;  %v3572_v47 = vpop.f32.mrf.mxu1 }
 0x1e1   :  { %6071 = vst [vmem:[#allocation27_spill] sm:$0xff] %v5208_v5  ;;  %v2060_v47 = vpack.c.bf16 %v1999_v33, %v1998_v13  ;;  %v2000_v33 = vld [vmem:[%s6040_s0 + $0x153] sm:$0xff] }
 0x1e2   :  { %v717_v50 = vpop.f32.mrf.mxu0  ;;  %3674 = vmatmul.mubr.msk.bf16.gmra.mxu0 %vm279_vm1, %v1357_v0  ;;  %v1212_v48 = vpop.f32.mrf.mxu1  ;;  %3842 = vmatmul.mubr.msk.bf16.gmra.mxu1 %vm279_vm1, %v2059_v21  ;;  %v1358_v21 = vpack.c.bf16 %v1297_v8, %v1296_v16  ;;  %v1299_v16 = vld [vmem:[%s6040_s0 + $0x15a] sm:$0xff] }
 0x1e3   :  { %3677 = vmatprep.mubr.msk.bf16.mxu0 %vm3945_vm0, %v6053_v24  ;;  %v5220_v59 = vadd.f32 %v1212_v48, %v717_v50  ;;  %3845 = vmatprep.mubr.msk.bf16.mxu1 %vm3945_vm0, %v6053_v24 }
 0x1e4   :  { %v3407_v61 = vpop.f32.mrf.mxu0  ;;  %v3575_v0 = vpop.f32.mrf.mxu1 }
 0x1e5   :  { %6072 = vst [vmem:[#allocation28_spill] sm:$0xff] %v5220_v59  ;;  %v1298_v0 = vld [vmem:[%s6040_s0 + $0x152] sm:$0xff] }
 0x1e6   :  { %v720_v36 = vpop.f32.mrf.mxu0  ;;  %v1215_v41 = vpop.f32.mrf.mxu1 }
 0x1e7   :  { %v5230_v5 = vadd.f32 %v1215_v41, %v720_v36  ;;  %v2001_v36 = vld [vmem:[%s6040_s0 + $0x15b] sm:$0xff] }
 0x1e8   :  { %v3408_v48 = vpop.f32.mrf.mxu0  ;;  %v3576_v50 = vpop.f32.mrf.mxu1 }
 0x1e9   :  { %6073 = vst [vmem:[#allocation29_spill] sm:$0xff] %v5230_v5  ;;  %v2061_v50 = vpack.c.bf16 %v2001_v36, %v2000_v33  ;;  %v2002_v36 = vld [vmem:[%s6040_s0 + $0x163] sm:$0xff] }
 0x1ea   :  { %v725_v61 = vpop.f32.mrf.mxu0  ;;  %3678 = vmatmul.mubr.msk.bf16.gmra.mxu0 %vm279_vm1, %v1358_v21  ;;  %v1220_v59 = vpop.f32.mrf.mxu1  ;;  %3846 = vmatmul.mubr.msk.bf16.gmra.mxu1 %vm279_vm1, %v2060_v47  ;;  %v1359_v47 = vpack.c.bf16 %v1299_v16, %v1298_v0  ;;  %v1301_v0 = vld [vmem:[%s6040_s0 + $0x16a] sm:$0xff] }
 0x1eb   :  { %3681 = vmatprep.mubr.msk.bf16.mxu0 %vm3945_vm0, %v6053_v24  ;;  %v5242_v8 = vadd.f32 %v1220_v59, %v725_v61  ;;  %3849 = vmatprep.mubr.msk.bf16.mxu1 %vm3945_vm0, %v6053_v24 }
 0x1ec   :  { %v3411_v13 = vpop.f32.mrf.mxu0  ;;  %v3579_v21 = vpop.f32.mrf.mxu1 }
 0x1ed   :  { %6074 = vst [vmem:[#allocation30_spill] sm:$0xff] %v5242_v8  ;;  %v1300_v21 = vld [vmem:[%s6040_s0 + $0x162] sm:$0xff] }
 0x1ee   :  { %v728_v41 = vpop.f32.mrf.mxu0  ;;  %v1223_v48 = vpop.f32.mrf.mxu1 }
 0x1ef   :  { %v5252_v5 = vadd.f32 %v1223_v48, %v728_v41  ;;  %v2003_v41 = vld [vmem:[%s6040_s0 + $0x16b] sm:$0xff] }
 0x1f0   :  { %v3412_v59 = vpop.f32.mrf.mxu0  ;;  %v3580_v61 = vpop.f32.mrf.mxu1 }
 0x1f1   :  { %6075 = vst [vmem:[#allocation31_spill] sm:$0xff] %v5252_v5  ;;  %v2062_v61 = vpack.c.bf16 %v2003_v41, %v2002_v36  ;;  %v2004_v41 = vld [vmem:[%s6040_s0 + $0x173] sm:$0xff] }
 0x1f2   :  { %v733_v13 = vpop.f32.mrf.mxu0  ;;  %3682 = vmatmul.mubr.msk.bf16.gmra.mxu0 %vm279_vm1, %v1359_v47  ;;  %v1228_v8 = vpop.f32.mrf.mxu1  ;;  %3850 = vmatmul.mubr.msk.bf16.gmra.mxu1 %vm279_vm1, %v2061_v50  ;;  %v1360_v50 = vpack.c.bf16 %v1301_v0, %v1300_v21  ;;  %v1303_v21 = vld [vmem:[%s6040_s0 + $0x17a] sm:$0xff] }
 0x1f3   :  { %3685 = vmatprep.mubr.msk.bf16.mxu0 %vm3945_vm0, %v6053_v24  ;;  %v5264_v16 = vadd.f32 %v1228_v8, %v733_v13  ;;  %3853 = vmatprep.mubr.msk.bf16.mxu1 %vm3945_vm0, %v6053_v24 }
 0x1f4   :  { %v3415_v33 = vpop.f32.mrf.mxu0  ;;  %v3583_v47 = vpop.f32.mrf.mxu1 }
 0x1f5   :  { %6076 = vst [vmem:[#allocation32_spill] sm:$0xff] %v5264_v16  ;;  %v1302_v47 = vld [vmem:[%s6040_s0 + $0x172] sm:$0xff] }
 0x1f6   :  { %v736_v48 = vpop.f32.mrf.mxu0  ;;  %v1231_v59 = vpop.f32.mrf.mxu1 }
 0x1f7   :  { %v5274_v5 = vadd.f32 %v1231_v59, %v736_v48  ;;  %v2005_v48 = vld [vmem:[%s6040_s0 + $0x17b] sm:$0xff] }
 0x1f8   :  { %v3416_v8 = vpop.f32.mrf.mxu0  ;;  %v3584_v13 = vpop.f32.mrf.mxu1 }
 0x1f9   :  { %6077 = vst [vmem:[#allocation33_spill] sm:$0xff] %v5274_v5  ;;  %v2063_v13 = vpack.c.bf16 %v2005_v48, %v2004_v41  ;;  %v2006_v48 = vld [vmem:[%s6040_s0 + $0x183] sm:$0xff] }
 0x1fa   :  { %v741_v33 = vpop.f32.mrf.mxu0  ;;  %3686 = vmatmul.mubr.msk.bf16.gmra.mxu0 %vm279_vm1, %v1360_v50  ;;  %v1236_v16 = vpop.f32.mrf.mxu1  ;;  %3854 = vmatmul.mubr.msk.bf16.gmra.mxu1 %vm279_vm1, %v2062_v61  ;;  %v1361_v61 = vpack.c.bf16 %v1303_v21, %v1302_v47  ;;  %v1305_v47 = vld [vmem:[%s6040_s0 + $0x18a] sm:$0xff] }
 0x1fb   :  { %3689 = vmatprep.mubr.msk.bf16.mxu0 %vm3945_vm0, %v6053_v24  ;;  %v5286_v0 = vadd.f32 %v1236_v16, %v741_v33  ;;  %3857 = vmatprep.mubr.msk.bf16.mxu1 %vm3945_vm0, %v6053_v24 }
 0x1fc   :  { %v3419_v36 = vpop.f32.mrf.mxu0  ;;  %v3587_v50 = vpop.f32.mrf.mxu1 }
 0x1fd   :  { %6078 = vst [vmem:[#allocation34_spill] sm:$0xff] %v5286_v0  ;;  %v1304_v50 = vld [vmem:[%s6040_s0 + $0x182] sm:$0xff] }
 0x1fe   :  { %v744_v59 = vpop.f32.mrf.mxu0  ;;  %v1239_v8 = vpop.f32.mrf.mxu1 }
 0x1ff   :  { %v5296_v5 = vadd.f32 %v1239_v8, %v744_v59  ;;  %v2007_v59 = vld [vmem:[%s6040_s0 + $0x18b] sm:$0xff] }
 0x200   :  { %v3420_v16 = vpop.f32.mrf.mxu0  ;;  %v3588_v33 = vpop.f32.mrf.mxu1 }
 0x201   :  { %6079 = vst [vmem:[#allocation35_spill] sm:$0xff] %v5296_v5  ;;  %v2064_v33 = vpack.c.bf16 %v2007_v59, %v2006_v48  ;;  %v2008_v59 = vld [vmem:[%s6040_s0 + $0x193] sm:$0xff] }
 0x202   :  { %v749_v36 = vpop.f32.mrf.mxu0  ;;  %3690 = vmatmul.mubr.msk.bf16.gmra.mxu0 %vm279_vm1, %v1361_v61  ;;  %v1244_v0 = vpop.f32.mrf.mxu1  ;;  %3858 = vmatmul.mubr.msk.bf16.gmra.mxu1 %vm279_vm1, %v2063_v13  ;;  %v1362_v13 = vpack.c.bf16 %v1305_v47, %v1304_v50  ;;  %v1307_v50 = vld [vmem:[%s6040_s0 + $0x19a] sm:$0xff] }
 0x203   :  { %3693 = vmatprep.mubr.msk.bf16.mxu0 %vm3945_vm0, %v6053_v24  ;;  %v5308_v21 = vadd.f32 %v1244_v0, %v749_v36  ;;  %3861 = vmatprep.mubr.msk.bf16.mxu1 %vm3945_vm0, %v6053_v24 }
 0x204   :  { %v3423_v41 = vpop.f32.mrf.mxu0  ;;  %v3591_v61 = vpop.f32.mrf.mxu1 }
 0x205   :  { %6080 = vst [vmem:[#allocation36_spill] sm:$0xff] %v5308_v21  ;;  %v1306_v61 = vld [vmem:[%s6040_s0 + $0x192] sm:$0xff] }
 0x206   :  { %v752_v8 = vpop.f32.mrf.mxu0  ;;  %v1247_v16 = vpop.f32.mrf.mxu1 }
 0x207   :  { %v5318_v5 = vadd.f32 %v1247_v16, %v752_v8  ;;  %v2009_v8 = vld [vmem:[%s6040_s0 + $0x19b] sm:$0xff] }
 0x208   :  { %v3424_v0 = vpop.f32.mrf.mxu0  ;;  %v3592_v36 = vpop.f32.mrf.mxu1 }
 0x209   :  { %6081 = vst [vmem:[#allocation37_spill] sm:$0xff] %v5318_v5  ;;  %v2065_v36 = vpack.c.bf16 %v2009_v8, %v2008_v59  ;;  %v2011_v59 = vld [vmem:[%s6040_s0 + $0x1ab] sm:$0xff] }
 0x20a   :  { %v757_v41 = vpop.f32.mrf.mxu0  ;;  %3694 = vmatmul.mubr.msk.bf16.gmra.mxu0 %vm279_vm1, %v1362_v13  ;;  %v1252_v21 = vpop.f32.mrf.mxu1  ;;  %3862 = vmatmul.mubr.msk.bf16.gmra.mxu1 %vm279_vm1, %v2064_v33  ;;  %v1363_v33 = vpack.c.bf16 %v1307_v50, %v1306_v61  ;;  %v5354_v61 = vld [vmem:[%s6041_s2] ss:$0 sm:$0xff]  ;;  %v2010_v50 = vld [vmem:[%s6040_s0 + $0x1a3] sm:$0xff] }
 0x20b   :  { %3697 = vmatprep.mubr.msk.bf16.mxu0 %vm3945_vm0, %v6053_v24  ;;  %v5330_v47 = vadd.f32 %v1252_v21, %v757_v41  ;;  %3865 = vmatprep.mubr.msk.bf16.mxu1 %vm3945_vm0, %v6053_v24 }
 0x20c   :  { %v3427_v48 = vpop.f32.mrf.mxu0  ;;  %v3595_v13 = vpop.f32.mrf.mxu1 }
 0x20d   :  { %6082 = vst [vmem:[#allocation38_spill] sm:$0xff] %v5330_v47  ;;  %v1308_v13 = vld [vmem:[%s6040_s0 + $0x1a2] sm:$0xff] }
 0x20e   :  { %v760_v16 = vpop.f32.mrf.mxu0  ;;  %v1255_v0 = vpop.f32.mrf.mxu1 }
 0x210   :  { %v3428_v5 = vpop.f32.mrf.mxu0  ;;  %v3596_v21 = vpop.f32.mrf.mxu1 }
 0x211   :  { %v1309_v5 = vld [vmem:[%s6040_s0 + $0x1aa] sm:$0xff] }
 0x212   :  { %v1553_v41 = vpop.f32.mrf.mxu0  ;;  %3698 = vmatmul.mubr.msk.bf16.gmra.mxu0 %vm279_vm1, %v1363_v33  ;;  %v2255_v47 = vpop.f32.mrf.mxu1  ;;  %3866 = vmatmul.mubr.msk.bf16.gmra.mxu1 %vm279_vm1, %v2065_v36  ;;  %v1364_v0 = vpack.c.bf16 %v1309_v5, %v1308_v13 }
 0x213   :  { %v1879_v48 = vadd.f32 %v1553_v41, %v4456_v37  ;;  %3701 = vmatprep.mubr.msk.bf16.mxu0 %vm3945_vm0, %v6053_v24  ;;  %3869 = vmatprep.mubr.msk.bf16.mxu1 %vm3945_vm0, %v6053_v24 }
 0x214   :  { %v3603_v37 = vpop.f32.mrf.mxu0  ;;  %v3771_v16 = vpop.f32.mrf.mxu1 }
 0x215   :  { %v2581_v8 = vadd.f32 %v2255_v47, %v1879_v48  ;;  %v2066_v37 = vpack.c.bf16 %v2011_v59, %v2010_v50 }
 0x216   :  { %v1556_v33 = vpop.f32.mrf.mxu0  ;;  %v2258_v41 = vpop.f32.mrf.mxu1 }
 0x217   :  { %v2669_v36 = vadd.f32 %v5354_v61, %v2581_v8  ;;  %v1880_v21 = vadd.f32 %v1556_v33, %v4466_v46  ;;  %v1310_v46 = vld [vmem:[%s6040_s0 + $0x1b2] sm:$0xff] }
 0x218   :  { %v3604_v26 = vpop.f32.mrf.mxu0  ;;  %v3772_v7 = vpop.f32.mrf.mxu1 }
 0x219   :  { %v2750_v1 = vmax.f32 %v2669_v36, 0.0  ;;  %v2582_v32 = vadd.f32 %v2258_v41, %v1880_v21  ;;  %v1311_v7 = vld [vmem:[%s6040_s0 + $0x1ba] sm:$0xff] }
 0x21a   :  { %v1561_v40 = vpop.f32.mrf.mxu0  ;;  %3702 = vmatmul.mubr.msk.bf16.gmra.mxu0 %vm279_vm1, %v1364_v0  ;;  %v2263_v13 = vpop.f32.mrf.mxu1  ;;  %3870 = vmatmul.mubr.msk.bf16.gmra.mxu1 %vm279_vm1, %v2066_v37  ;;  %v1365_v59 = vpack.c.bf16 %v1311_v7, %v1310_v46  ;;  %v1313_v46 = vld [vmem:[%s6040_s0 + $0x1ca] sm:$0xff] }
 0x21b   :  { %2831 = vst [vmem:[%s6042_s3] sm:$0xff] %v2750_v1  ;;  %v2670_v47 = vadd.f32 %v5354_v61, %v2582_v32  ;;  %v1881_v48 = vadd.f32 %v1561_v40, %v4478_v53  ;;  %3705 = vmatprep.mubr.msk.bf16.mxu0 %vm3945_vm0, %v6053_v24  ;;  %3873 = vmatprep.mubr.msk.bf16.mxu1 %vm3945_vm0, %v6053_v24  ;;  %v2012_v53 = vld [vmem:[%s6040_s0 + $0x1b3] sm:$0xff]  ;;  %v2013_v40 = vld [vmem:[%s6040_s0 + $0x1bb] sm:$0xff] }
 0x21c   :  { %v3607_v26 = vpop.f32.mrf.mxu0  ;;  %v3775_v5 = vpop.f32.mrf.mxu1  ;;  %v2067_v0 = vpack.c.bf16 %v2013_v40, %v2012_v53  ;;  %v2015_v53 = vld [vmem:[%s6040_s0 + $0x1cb] sm:$0xff] }
 0x21d   :  { %v2751_v32 = vmax.f32 %v2670_v47, 0.0  ;;  %v2583_v1 = vadd.f32 %v2263_v13, %v1881_v48 }
 0x21e   :  { %v1564_v50 = vpop.f32.mrf.mxu0  ;;  %v2266_v33 = vpop.f32.mrf.mxu1 }
 0x21f   :  { %2832 = vst [vmem:[%s6042_s3 + $0x8] sm:$0xff] %v2751_v32  ;;  %v2671_v8 = vadd.f32 %v5354_v61, %v2583_v1  ;;  %v1882_v16 = vadd.f32 %v1564_v50, %v4488_v62  ;;  %v1312_v62 = vld [vmem:[%s6040_s0 + $0x1c2] sm:$0xff] }
 0x220   :  { %v3608_v36 = vpop.f32.mrf.mxu0  ;;  %v3776_v37 = vpop.f32.mrf.mxu1  ;;  %v1366_v50 = vpack.c.bf16 %v1313_v46, %v1312_v62  ;;  %v2017_v46 = vld [vmem:[%s6040_s0 + $0x1db] sm:$0xff] }
 0x221   :  { %v2752_v21 = vmax.f32 %v2671_v8, 0.0  ;;  %v2584_v41 = vadd.f32 %v2266_v33, %v1882_v16 }
 0x222   :  { %v1569_v26 = vpop.f32.mrf.mxu0  ;;  %3706 = vmatmul.mubr.msk.bf16.gmra.mxu0 %vm279_vm1, %v1365_v59  ;;  %v2271_v13 = vpop.f32.mrf.mxu1  ;;  %3874 = vmatmul.mubr.msk.bf16.gmra.mxu1 %vm279_vm1, %v2067_v0 }
 0x223   :  { %2833 = vst [vmem:[%s6042_s3 + $0x10] sm:$0xff] %v2752_v21  ;;  %v2672_v47 = vadd.f32 %v5354_v61, %v2584_v41  ;;  %v1883_v48 = vadd.f32 %v1569_v26, %v4500_v6  ;;  %3709 = vmatprep.mubr.msk.bf16.mxu0 %vm3945_vm0, %v6053_v24  ;;  %3877 = vmatprep.mubr.msk.bf16.mxu1 %vm3945_vm0, %v6053_v24  ;;  %v2014_v6 = vld [vmem:[%s6040_s0 + $0x1c3] sm:$0xff] }
 0x224   :  { %v3611_v7 = vpop.f32.mrf.mxu0  ;;  %v3779_v1 = vpop.f32.mrf.mxu1  ;;  %v2068_v33 = vpack.c.bf16 %v2015_v53, %v2014_v6 }
 0x225   :  { %v2753_v40 = vmax.f32 %v2672_v47, 0.0  ;;  %v2585_v32 = vadd.f32 %v2271_v13, %v1883_v48  ;;  %v1315_v13 = vld [vmem:[%s6040_s0 + $0x1da] sm:$0xff] }
 0x226   :  { %v1572_v5 = vpop.f32.mrf.mxu0  ;;  %v2274_v16 = vpop.f32.mrf.mxu1 }
 0x227   :  { %2834 = vst [vmem:[%s6042_s3 + $0x18] sm:$0xff] %v2753_v40  ;;  %v2673_v59 = vadd.f32 %v5354_v61, %v2585_v32  ;;  %v1884_v8 = vadd.f32 %v1572_v5, %v4510_v15  ;;  %v1314_v15 = vld [vmem:[%s6040_s0 + $0x1d2] sm:$0xff] }
 0x228   :  { %v3612_v0 = vpop.f32.mrf.mxu0  ;;  %v3780_v41 = vpop.f32.mrf.mxu1  ;;  %v1367_v32 = vpack.c.bf16 %v1315_v13, %v1314_v15 }
 0x229   :  { %v2754_v36 = vmax.f32 %v2673_v59, 0.0  ;;  %v2586_v21 = vadd.f32 %v2274_v16, %v1884_v8 }
 0x22a   :  { %v1577_v37 = vpop.f32.mrf.mxu0  ;;  %3710 = vmatmul.mubr.msk.bf16.gmra.mxu0 %vm279_vm1, %v1366_v50  ;;  %v2279_v48 = vpop.f32.mrf.mxu1  ;;  %3878 = vmatmul.mubr.msk.bf16.gmra.mxu1 %vm279_vm1, %v2068_v33 }
 0x22b   :  { %2835 = vst [vmem:[%s6042_s3 + $0x20] sm:$0xff] %v2754_v36  ;;  %v2674_v26 = vadd.f32 %v5354_v61, %v2586_v21  ;;  %v1885_v47 = vadd.f32 %v1577_v37, %v4522_v22  ;;  %3713 = vmatprep.mubr.msk.bf16.mxu0 %vm3945_vm0, %v6053_v24  ;;  %3881 = vmatprep.mubr.msk.bf16.mxu1 %vm3945_vm0, %v6053_v24  ;;  %v2016_v22 = vld [vmem:[%s6040_s0 + $0x1d3] sm:$0xff] }
 0x22c   :  { %v3615_v62 = vpop.f32.mrf.mxu0  ;;  %v3783_v53 = vpop.f32.mrf.mxu1  ;;  %v2069_v59 = vpack.c.bf16 %v2017_v46, %v2016_v22 }
 0x22d   :  { %v2755_v7 = vmax.f32 %v2674_v26, 0.0  ;;  %v2587_v6 = vadd.f32 %v2279_v48, %v1885_v47  ;;  %v1317_v26 = vld [vmem:[%s6040_s0 + $0x1ea] sm:$0xff] }
 0x22e   :  { %v1580_v40 = vpop.f32.mrf.mxu0  ;;  %v2282_v50 = vpop.f32.mrf.mxu1  ;;  %v2019_v48 = vld [vmem:[%s6040_s0 + $0x1eb] sm:$0xff] }
 0x22f   :  { %2836 = vst [vmem:[%s6042_s3 + $0x28] sm:$0xff] %v2755_v7  ;;  %v2675_v1 = vadd.f32 %v5354_v61, %v2587_v6  ;;  %v1886_v5 = vadd.f32 %v1580_v40, %v4532_v31  ;;  %v1316_v31 = vld [vmem:[%s6040_s0 + $0x1e2] sm:$0xff] }
 0x230   :  { %v3616_v8 = vpop.f32.mrf.mxu0  ;;  %v3784_v0 = vpop.f32.mrf.mxu1  ;;  %v1368_v46 = vpack.c.bf16 %v1317_v26, %v1316_v31 }
 0x231   :  { %v2756_v16 = vmax.f32 %v2675_v1, 0.0  ;;  %v2588_v33 = vadd.f32 %v2282_v50, %v1886_v5  ;;  %v1319_v0 = vld [vmem:[%s6040_s0 + $0x1fa] sm:$0xff] }
 0x232   :  { %v1585_v36 = vpop.f32.mrf.mxu0  ;;  %3714 = vmatmul.mubr.msk.bf16.gmra.mxu0 %vm279_vm1, %v1367_v32  ;;  %v2287_v37 = vpop.f32.mrf.mxu1  ;;  %3882 = vmatmul.mubr.msk.bf16.gmra.mxu1 %vm279_vm1, %v2069_v59 }
 0x233   :  { %2837 = vst [vmem:[%s6042_s3 + $0x30] sm:$0xff] %v2756_v16  ;;  %v2676_v21 = vadd.f32 %v5354_v61, %v2588_v33  ;;  %v1887_v41 = vadd.f32 %v1585_v36, %v4544_v39  ;;  %3717 = vmatprep.mubr.msk.bf16.mxu0 %vm3945_vm0, %v6053_v24  ;;  %3885 = vmatprep.mubr.msk.bf16.mxu1 %vm3945_vm0, %v6053_v24  ;;  %v2018_v39 = vld [vmem:[%s6040_s0 + $0x1e3] sm:$0xff] }
 0x234   :  { %v3619_v47 = vpop.f32.mrf.mxu0  ;;  %v3787_v62 = vpop.f32.mrf.mxu1  ;;  %v2070_v40 = vpack.c.bf16 %v2019_v48, %v2018_v39 }
 0x235   :  { %v2757_v15 = vmax.f32 %v2676_v21, 0.0  ;;  %v2589_v13 = vadd.f32 %v2287_v37, %v1887_v41  ;;  %v2021_v21 = vld [vmem:[%s6040_s0 + $0x1fb] sm:$0xff] }
 0x236   :  { %v1588_v22 = vpop.f32.mrf.mxu0  ;;  %v2290_v53 = vpop.f32.mrf.mxu1 }
 0x237   :  { %2838 = vst [vmem:[%s6042_s3 + $0x38] sm:$0xff] %v2757_v15  ;;  %v2677_v7 = vadd.f32 %v5354_v61, %v2589_v13  ;;  %v1888_v6 = vadd.f32 %v1588_v22, %v4554_v49  ;;  %v1318_v49 = vld [vmem:[%s6040_s0 + $0x1f2] sm:$0xff] }
 0x238   :  { %v3620_v32 = vpop.f32.mrf.mxu0  ;;  %v3788_v50 = vpop.f32.mrf.mxu1  ;;  %v1369_v47 = vpack.c.bf16 %v1319_v0, %v1318_v49 }
 0x239   :  { %v2758_v1 = vmax.f32 %v2677_v7, 0.0  ;;  %v2590_v5 = vadd.f32 %v2290_v53, %v1888_v6  ;;  %v2023_v50 = vld [vmem:[%s6040_s0 + $0x20b] sm:$0xff] }
 0x23a   :  { %v1593_v59 = vpop.f32.mrf.mxu0  ;;  %3718 = vmatmul.mubr.msk.bf16.gmra.mxu0 %vm279_vm1, %v1368_v46  ;;  %v2295_v33 = vpop.f32.mrf.mxu1  ;;  %3886 = vmatmul.mubr.msk.bf16.gmra.mxu1 %vm279_vm1, %v2070_v40 }
 0x23b   :  { %2839 = vst [vmem:[%s6042_s3 + $0x40] sm:$0xff] %v2758_v1  ;;  %v2678_v8 = vadd.f32 %v5354_v61, %v2590_v5  ;;  %v1889_v16 = vadd.f32 %v1593_v59, %v4566_v57  ;;  %3721 = vmatprep.mubr.msk.bf16.mxu0 %vm3945_vm0, %v6053_v24  ;;  %3889 = vmatprep.mubr.msk.bf16.mxu1 %vm3945_vm0, %v6053_v24  ;;  %v2020_v57 = vld [vmem:[%s6040_s0 + $0x1f3] sm:$0xff]  ;;  %v1321_v1 = vld [vmem:[%s6040_s0 + $0x20a] sm:$0xff] }
 0x23c   :  { %v3623_v36 = vpop.f32.mrf.mxu0  ;;  %v3791_v31 = vpop.f32.mrf.mxu1  ;;  %v2071_v13 = vpack.c.bf16 %v2021_v21, %v2020_v57 }
 0x23d   :  { %v2759_v41 = vmax.f32 %v2678_v8, 0.0  ;;  %v2591_v37 = vadd.f32 %v2295_v33, %v1889_v16 }
 0x23e   :  { %v1596_v26 = vpop.f32.mrf.mxu0  ;;  %v2298_v15 = vpop.f32.mrf.mxu1 }
 0x23f   :  { %2840 = vst [vmem:[%s6042_s3 + $0x48] sm:$0xff] %v2759_v41  ;;  %v2679_v39 = vadd.f32 %v5354_v61, %v2591_v37  ;;  %v1890_v48 = vadd.f32 %v1596_v26, %v4576_v4  ;;  %v1320_v4 = vld [vmem:[%s6040_s0 + $0x202] sm:$0xff] }
 0x240   :  { %v3624_v62 = vpop.f32.mrf.mxu0  ;;  %v3792_v7 = vpop.f32.mrf.mxu1  ;;  %v1370_v49 = vpack.c.bf16 %v1321_v1, %v1320_v4 }
 0x241   :  { %v2760_v22 = vmax.f32 %v2679_v39, 0.0  ;;  %v2592_v46 = vadd.f32 %v2298_v15, %v1890_v48 }
 0x242   :  { %v1601_v6 = vpop.f32.mrf.mxu0  ;;  %3722 = vmatmul.mubr.msk.bf16.gmra.mxu0 %vm279_vm1, %v1369_v47  ;;  %v2303_v32 = vpop.f32.mrf.mxu1  ;;  %3890 = vmatmul.mubr.msk.bf16.gmra.mxu1 %vm279_vm1, %v2071_v13  ;;  %v1323_v13 = vld [vmem:[%s6040_s0 + $0x21a] sm:$0xff] }
 0x243   :  { %2841 = vst [vmem:[%s6042_s3 + $0x50] sm:$0xff] %v2760_v22  ;;  %v2680_v53 = vadd.f32 %v5354_v61, %v2592_v46  ;;  %v1891_v40 = vadd.f32 %v1601_v6, %v4588_v12  ;;  %3725 = vmatprep.mubr.msk.bf16.mxu0 %vm3945_vm0, %v6053_v24  ;;  %3893 = vmatprep.mubr.msk.bf16.mxu1 %vm3945_vm0, %v6053_v24  ;;  %v2022_v12 = vld [vmem:[%s6040_s0 + $0x203] sm:$0xff]  ;;  %v2025_v22 = vld [vmem:[%s6040_s0 + $0x21b] sm:$0xff] }
 0x244   :  { %v3627_v5 = vpop.f32.mrf.mxu0  ;;  %v3795_v16 = vpop.f32.mrf.mxu1  ;;  %v2072_v21 = vpack.c.bf16 %v2023_v50, %v2022_v12 }
 0x245   :  { %v2761_v59 = vmax.f32 %v2680_v53, 0.0  ;;  %v2593_v8 = vadd.f32 %v2303_v32, %v1891_v40 }
 0x246   :  { %v1604_v33 = vpop.f32.mrf.mxu0  ;;  %v2306_v57 = vpop.f32.mrf.mxu1 }
 0x247   :  { %2842 = vst [vmem:[%s6042_s3 + $0x58] sm:$0xff] %v2761_v59  ;;  %v2681_v0 = vadd.f32 %v5354_v61, %v2593_v8  ;;  %v1892_v36 = vadd.f32 %v1604_v33, %v4598_v23  ;;  %v1322_v23 = vld [vmem:[%s6040_s0 + $0x212] sm:$0xff] }
 0x248   :  { %v3628_v41 = vpop.f32.mrf.mxu0  ;;  %v3796_v26 = vpop.f32.mrf.mxu1  ;;  %v1371_v40 = vpack.c.bf16 %v1323_v13, %v1322_v23 }
 0x249   :  { %v2762_v37 = vmax.f32 %v2681_v0, 0.0  ;;  %v2594_v31 = vadd.f32 %v2306_v57, %v1892_v36  ;;  %v1325_v36 = vld [vmem:[%s6040_s0 + $0x22a] sm:$0xff] }
 0x24a   :  { %v1609_v47 = vpop.f32.mrf.mxu0  ;;  %3726 = vmatmul.mubr.msk.bf16.gmra.mxu0 %vm279_vm1, %v1370_v49  ;;  %v2311_v15 = vpop.f32.mrf.mxu1  ;;  %3894 = vmatmul.mubr.msk.bf16.gmra.mxu1 %vm279_vm1, %v2072_v21  ;;  %v2027_v21 = vld [vmem:[%s6040_s0 + $0x22b] sm:$0xff] }
 0x24b   :  { %2843 = vst [vmem:[%s6042_s3 + $0x60] sm:$0xff] %v2762_v37  ;;  %v2682_v39 = vadd.f32 %v5354_v61, %v2594_v31  ;;  %v1893_v48 = vadd.f32 %v1609_v47, %v4610_v30  ;;  %3729 = vmatprep.mubr.msk.bf16.mxu0 %vm3945_vm0, %v6053_v24  ;;  %3897 = vmatprep.mubr.msk.bf16.mxu1 %vm3945_vm0, %v6053_v24  ;;  %v2024_v30 = vld [vmem:[%s6040_s0 + $0x213] sm:$0xff] }
 0x24c   :  { %v3631_v62 = vpop.f32.mrf.mxu0  ;;  %v3799_v6 = vpop.f32.mrf.mxu1  ;;  %v2073_v5 = vpack.c.bf16 %v2025_v22, %v2024_v30 }
 0x24d   :  { %v2763_v46 = vmax.f32 %v2682_v39, 0.0  ;;  %v2595_v7 = vadd.f32 %v2311_v15, %v1893_v48 }
 0x24e   :  { %v1612_v53 = vpop.f32.mrf.mxu0  ;;  %v2314_v1 = vpop.f32.mrf.mxu1 }
 0x24f   :  { %2844 = vst [vmem:[%s6042_s3 + $0x68] sm:$0xff] %v2763_v46  ;;  %v2683_v32 = vadd.f32 %v5354_v61, %v2595_v7  ;;  %v1894_v4 = vadd.f32 %v1612_v53, %v4620_v42  ;;  %v1324_v42 = vld [vmem:[%s6040_s0 + $0x222] sm:$0xff] }
 0x250   :  { %v3632_v12 = vpop.f32.mrf.mxu0  ;;  %v3800_v8 = vpop.f32.mrf.mxu1  ;;  %v1372_v47 = vpack.c.bf16 %v1325_v36, %v1324_v42 }
 0x251   :  { %v2764_v50 = vmax.f32 %v2683_v32, 0.0  ;;  %v2596_v59 = vadd.f32 %v2314_v1, %v1894_v4  ;;  %v2029_v4 = vld [vmem:[%s6040_s0 + $0x23b] sm:$0xff] }
 0x252   :  { %v1617_v16 = vpop.f32.mrf.mxu0  ;;  %3730 = vmatmul.mubr.msk.bf16.gmra.mxu0 %vm279_vm1, %v1371_v40  ;;  %v2319_v0 = vpop.f32.mrf.mxu1  ;;  %3898 = vmatmul.mubr.msk.bf16.gmra.mxu1 %vm279_vm1, %v2073_v5  ;;  %v1327_v40 = vld [vmem:[%s6040_s0 + $0x23a] sm:$0xff] }
 0x253   :  { %2845 = vst [vmem:[%s6042_s3 + $0x70] sm:$0xff] %v2764_v50  ;;  %v2684_v33 = vadd.f32 %v5354_v61, %v2596_v59  ;;  %v1895_v49 = vadd.f32 %v1617_v16, %v4632_v51  ;;  %3733 = vmatprep.mubr.msk.bf16.mxu0 %vm3945_vm0, %v6053_v24  ;;  %3901 = vmatprep.mubr.msk.bf16.mxu1 %vm3945_vm0, %v6053_v24  ;;  %v2026_v51 = vld [vmem:[%s6040_s0 + $0x223] sm:$0xff] }
 0x254   :  { %v3635_v57 = vpop.f32.mrf.mxu0  ;;  %v3803_v31 = vpop.f32.mrf.mxu1  ;;  %v2074_v23 = vpack.c.bf16 %v2027_v21, %v2026_v51 }
 0x255   :  { %v2765_v41 = vmax.f32 %v2684_v33, 0.0  ;;  %v2597_v37 = vadd.f32 %v2319_v0, %v1895_v49  ;;  %v1329_v31 = vld [vmem:[%s6040_s0 + $0x24a] sm:$0xff] }
 0x256   :  { %v1620_v26 = vpop.f32.mrf.mxu0  ;;  %v2322_v15 = vpop.f32.mrf.mxu1 }
 0x257   :  { %2846 = vst [vmem:[%s6042_s3 + $0x78] sm:$0xff] %v2765_v41  ;;  %v2685_v39 = vadd.f32 %v5354_v61, %v2597_v37  ;;  %v1896_v48 = vadd.f32 %v1620_v26, %v4642_v63  ;;  %v1326_v63 = vld [vmem:[%s6040_s0 + $0x232] sm:$0xff] }
 0x258   :  { %v3636_v13 = vpop.f32.mrf.mxu0  ;;  %v3804_v22 = vpop.f32.mrf.mxu1  ;;  %v1373_v59 = vpack.c.bf16 %v1327_v40, %v1326_v63 }
 0x259   :  { %v2766_v62 = vmax.f32 %v2685_v39, 0.0  ;;  %v2598_v30 = vadd.f32 %v2322_v15, %v1896_v48 }
 0x25a   :  { %v1625_v46 = vpop.f32.mrf.mxu0  ;;  %3734 = vmatmul.mubr.msk.bf16.gmra.mxu0 %vm279_vm1, %v1372_v47  ;;  %v2327_v53 = vpop.f32.mrf.mxu1  ;;  %3902 = vmatmul.mubr.msk.bf16.gmra.mxu1 %vm279_vm1, %v2074_v23  ;;  %v2031_v47 = vld [vmem:[%s6040_s0 + $0x24b] sm:$0xff] }
 0x25b   :  { %2847 = vst [vmem:[%s6042_s3 + $0x80] sm:$0xff] %v2766_v62  ;;  %v2686_v7 = vadd.f32 %v5354_v61, %v2598_v30  ;;  %v1897_v6 = vadd.f32 %v1625_v46, %v4654_v9  ;;  %3737 = vmatprep.mubr.msk.bf16.mxu0 %vm3945_vm0, %v6053_v24  ;;  %3905 = vmatprep.mubr.msk.bf16.mxu1 %vm3945_vm0, %v6053_v24  ;;  %v2028_v9 = vld [vmem:[%s6040_s0 + $0x233] sm:$0xff] }
 0x25c   :  { %v3639_v32 = vpop.f32.mrf.mxu0  ;;  %v3807_v12 = vpop.f32.mrf.mxu1  ;;  %v2075_v49 = vpack.c.bf16 %v2029_v4, %v2028_v9 }
 0x25d   :  { %v2767_v1 = vmax.f32 %v2686_v7, 0.0  ;;  %v2599_v5 = vadd.f32 %v2327_v53, %v1897_v6  ;;  %v2033_v12 = vld [vmem:[%s6040_s0 + $0x25b] sm:$0xff] }
 0x25e   :  { %v1628_v50 = vpop.f32.mrf.mxu0  ;;  %v2330_v33 = vpop.f32.mrf.mxu1 }
 0x25f   :  { %2848 = vst [vmem:[%s6042_s3 + $0x88] sm:$0xff] %v2767_v1  ;;  %v2687_v8 = vadd.f32 %v5354_v61, %v2599_v5  ;;  %v1898_v16 = vadd.f32 %v1628_v50, %v4664_v20  ;;  %v1328_v20 = vld [vmem:[%s6040_s0 + $0x242] sm:$0xff]  ;;  %v1331_v1 = vld [vmem:[%s6040_s0 + $0x25a] sm:$0xff] }
 0x260   :  { %v3640_v0 = vpop.f32.mrf.mxu0  ;;  %v3808_v57 = vpop.f32.mrf.mxu1  ;;  %v1374_v13 = vpack.c.bf16 %v1329_v31, %v1328_v20 }
 0x261   :  { %v2768_v42 = vmax.f32 %v2687_v8, 0.0  ;;  %v2600_v36 = vadd.f32 %v2330_v33, %v1898_v16 }
 0x262   :  { %v1633_v51 = vpop.f32.mrf.mxu0  ;;  %3738 = vmatmul.mubr.msk.bf16.gmra.mxu0 %vm279_vm1, %v1373_v59  ;;  %v2335_v37 = vpop.f32.mrf.mxu1  ;;  %3906 = vmatmul.mubr.msk.bf16.gmra.mxu1 %vm279_vm1, %v2075_v49 }
 0x263   :  { %2849 = vst [vmem:[%s6042_s3 + $0x90] sm:$0xff] %v2768_v42  ;;  %v2688_v21 = vadd.f32 %v5354_v61, %v2600_v36  ;;  %v1899_v41 = vadd.f32 %v1633_v51, %v4676_v29  ;;  %3741 = vmatprep.mubr.msk.bf16.mxu0 %vm3945_vm0, %v6053_v24  ;;  %3909 = vmatprep.mubr.msk.bf16.mxu1 %vm3945_vm0, %v6053_v24  ;;  %v2030_v29 = vld [vmem:[%s6040_s0 + $0x243] sm:$0xff] }
 0x264   :  { %v3643_v26 = vpop.f32.mrf.mxu0  ;;  %v3811_v15 = vpop.f32.mrf.mxu1  ;;  %v2076_v46 = vpack.c.bf16 %v2031_v47, %v2030_v29  ;;  %v1333_v29 = vld [vmem:[%s6040_s0 + $0x26a] sm:$0xff] }
 0x265   :  { %v2769_v39 = vmax.f32 %v2688_v21, 0.0  ;;  %v2601_v48 = vadd.f32 %v2335_v37, %v1899_v41 }
 0x266   :  { %v1636_v23 = vpop.f32.mrf.mxu0  ;;  %v2338_v22 = vpop.f32.mrf.mxu1 }
 0x267   :  { %2850 = vst [vmem:[%s6042_s3 + $0x98] sm:$0xff] %v2769_v39  ;;  %v2689_v62 = vadd.f32 %v5354_v61, %v2601_v48  ;;  %v1900_v30 = vadd.f32 %v1636_v23, %v4686_v43  ;;  %v1330_v43 = vld [vmem:[%s6040_s0 + $0x252] sm:$0xff] }
 0x268   :  { %v3644_v7 = vpop.f32.mrf.mxu0  ;;  %v3812_v63 = vpop.f32.mrf.mxu1  ;;  %v1375_v33 = vpack.c.bf16 %v1331_v1, %v1330_v43  ;;  %v2035_v39 = vld [vmem:[%s6040_s0 + $0x26b] sm:$0xff]  ;;  %v1335_v1 = vld [vmem:[%s6040_s0 + $0x27a] sm:$0xff] }
 0x269   :  { %v2770_v6 = vmax.f32 %v2689_v62, 0.0  ;;  %v2602_v53 = vadd.f32 %v2338_v22, %v1900_v30 }
 0x26a   :  { %v1641_v40 = vpop.f32.mrf.mxu0  ;;  %3742 = vmatmul.mubr.msk.bf16.gmra.mxu0 %vm279_vm1, %v1374_v13  ;;  %v2343_v4 = vpop.f32.mrf.mxu1  ;;  %3910 = vmatmul.mubr.msk.bf16.gmra.mxu1 %vm279_vm1, %v2076_v46 }
 0x26b   :  { %2851 = vst [vmem:[%s6042_s3 + $0xa0] sm:$0xff] %v2770_v6  ;;  %v2690_v32 = vadd.f32 %v5354_v61, %v2602_v53  ;;  %v1901_v9 = vadd.f32 %v1641_v40, %v4698_v54  ;;  %3745 = vmatprep.mubr.msk.bf16.mxu0 %vm3945_vm0, %v6053_v24  ;;  %3913 = vmatprep.mubr.msk.bf16.mxu1 %vm3945_vm0, %v6053_v24  ;;  %v2032_v54 = vld [vmem:[%s6040_s0 + $0x253] sm:$0xff] }
 0x26c   :  { %v3647_v5 = vpop.f32.mrf.mxu0  ;;  %v3815_v8 = vpop.f32.mrf.mxu1  ;;  %v2077_v36 = vpack.c.bf16 %v2033_v12, %v2032_v54  ;;  %v2037_v54 = vld [vmem:[%s6040_s0 + $0x27b] sm:$0xff] }
 0x26d   :  { %v2771_v50 = vmax.f32 %v2690_v32, 0.0  ;;  %v2603_v59 = vadd.f32 %v2343_v4, %v1901_v9 }
 0x26e   :  { %v1644_v16 = vpop.f32.mrf.mxu0  ;;  %v2346_v42 = vpop.f32.mrf.mxu1 }
 0x26f   :  { %2852 = vst [vmem:[%s6042_s3 + $0xa8] sm:$0xff] %v2771_v50  ;;  %v2691_v49 = vadd.f32 %v5354_v61, %v2603_v59  ;;  %v1902_v0 = vadd.f32 %v1644_v16, %v4708_v3  ;;  %v1332_v3 = vld [vmem:[%s6040_s0 + $0x262] sm:$0xff] }
 0x270   :  { %v3648_v57 = vpop.f32.mrf.mxu0  ;;  %v3816_v41 = vpop.f32.mrf.mxu1  ;;  %v1376_v62 = vpack.c.bf16 %v1333_v29, %v1332_v3  ;;  %v2039_v29 = vld [vmem:[%s6040_s0 + $0x28b] sm:$0xff] }
 0x271   :  { %v2772_v51 = vmax.f32 %v2691_v49, 0.0  ;;  %v2604_v21 = vadd.f32 %v2346_v42, %v1902_v0 }
 0x272   :  { %v1649_v37 = vpop.f32.mrf.mxu0  ;;  %3746 = vmatmul.mubr.msk.bf16.gmra.mxu0 %vm279_vm1, %v1375_v33  ;;  %v2351_v26 = vpop.f32.mrf.mxu1  ;;  %3914 = vmatmul.mubr.msk.bf16.gmra.mxu1 %vm279_vm1, %v2077_v36 }
 0x273   :  { %2853 = vst [vmem:[%s6042_s3 + $0xb0] sm:$0xff] %v2772_v51  ;;  %v2692_v20 = vadd.f32 %v5354_v61, %v2604_v21  ;;  %v1903_v31 = vadd.f32 %v1649_v37, %v4720_v14  ;;  %3749 = vmatprep.mubr.msk.bf16.mxu0 %vm3945_vm0, %v6053_v24  ;;  %3917 = vmatprep.mubr.msk.bf16.mxu1 %vm3945_vm0, %v6053_v24  ;;  %v2034_v14 = vld [vmem:[%s6040_s0 + $0x263] sm:$0xff] }
 0x274   :  { %v3651_v47 = vpop.f32.mrf.mxu0  ;;  %v3819_v23 = vpop.f32.mrf.mxu1  ;;  %v2078_v7 = vpack.c.bf16 %v2035_v39, %v2034_v14 }
 0x275   :  { %v2773_v48 = vmax.f32 %v2692_v20, 0.0  ;;  %v2605_v15 = vadd.f32 %v2351_v26, %v1903_v31  ;;  %v1337_v26 = vld [vmem:[%s6040_s0 + $0x28a] sm:$0xff] }
 0x276   :  { %v1652_v13 = vpop.f32.mrf.mxu0  ;;  %v2354_v46 = vpop.f32.mrf.mxu1 }
 0x277   :  { %2854 = vst [vmem:[%s6042_s3 + $0xb8] sm:$0xff] %v2773_v48  ;;  %v2693_v30 = vadd.f32 %v5354_v61, %v2605_v15  ;;  %v1904_v22 = vadd.f32 %v1652_v13, %v4730_v27  ;;  %v1334_v27 = vld [vmem:[%s6040_s0 + $0x272] sm:$0xff] }
 0x278   :  { %v3652_v6 = vpop.f32.mrf.mxu0  ;;  %v3820_v40 = vpop.f32.mrf.mxu1  ;;  %v1377_v16 = vpack.c.bf16 %v1335_v1, %v1334_v27 }
 0x279   :  { %v2774_v53 = vmax.f32 %v2693_v30, 0.0  ;;  %v2606_v63 = vadd.f32 %v2354_v46, %v1904_v22 }
 0x27a   :  { %v1657_v32 = vpop.f32.mrf.mxu0  ;;  %3750 = vmatmul.mubr.msk.bf16.gmra.mxu0 %vm279_vm1, %v1376_v62  ;;  %v2359_v43 = vpop.f32.mrf.mxu1  ;;  %3918 = vmatmul.mubr.msk.bf16.gmra.mxu1 %vm279_vm1, %v2078_v7 }
 0x27b   :  { %2855 = vst [vmem:[%s6042_s3 + $0xc0] sm:$0xff] %v2774_v53  ;;  %v2694_v9 = vadd.f32 %v5354_v61, %v2606_v63  ;;  %v1905_v4 = vadd.f32 %v1657_v32, %v4742_v38  ;;  %3753 = vmatprep.mubr.msk.bf16.mxu0 %vm3945_vm0, %v6053_v24  ;;  %3921 = vmatprep.mubr.msk.bf16.mxu1 %vm3945_vm0, %v6053_v24  ;;  %v2036_v38 = vld [vmem:[%s6040_s0 + $0x273] sm:$0xff] }
 0x27c   :  { %v3655_v5 = vpop.f32.mrf.mxu0  ;;  %v3823_v59 = vpop.f32.mrf.mxu1  ;;  %v2079_v42 = vpack.c.bf16 %v2037_v54, %v2036_v38 }
 0x27d   :  { %v2775_v12 = vmax.f32 %v2694_v9, 0.0  ;;  %v2607_v50 = vadd.f32 %v2359_v43, %v1905_v4  ;;  %v2040_v4 = vld [vmem:[%s6040_s0 + $0x293] sm:$0xff] }
 0x27e   :  { %v1660_v8 = vpop.f32.mrf.mxu0  ;;  %v2362_v0 = vpop.f32.mrf.mxu1 }
 0x27f   :  { %2856 = vst [vmem:[%s6042_s3 + $0xc8] sm:$0xff] %v2775_v12  ;;  %v2695_v33 = vadd.f32 %v5354_v61, %v2607_v50  ;;  %v1906_v49 = vadd.f32 %v1660_v8, %v4752_v55  ;;  %v1336_v55 = vld [vmem:[%s6040_s0 + $0x282] sm:$0xff]  ;;  %v2081_v50 = vpack.c.bf16 %v2040_v4, %v2040_v4 }
 0x280   :  { %v3656_v36 = vpop.f32.mrf.mxu0  ;;  %v3824_v21 = vpop.f32.mrf.mxu1  ;;  %v1378_v15 = vpack.c.bf16 %v1337_v26, %v1336_v55 }
 0x281   :  { %v2776_v57 = vmax.f32 %v2695_v33, 0.0  ;;  %v2608_v51 = vadd.f32 %v2362_v0, %v1906_v49 }
 0x282   :  { %v1665_v41 = vpop.f32.mrf.mxu0  ;;  %3754 = vmatmul.mubr.msk.bf16.gmra.mxu0 %vm279_vm1, %v1377_v16  ;;  %v2367_v31 = vpop.f32.mrf.mxu1  ;;  %3922 = vmatmul.mubr.msk.bf16.gmra.mxu1 %vm279_vm1, %v2079_v42 }
 0x283   :  { %2857 = vst [vmem:[%s6042_s3 + $0xd0] sm:$0xff] %v2776_v57  ;;  %v2696_v37 = vadd.f32 %v5354_v61, %v2608_v51  ;;  %v1907_v20 = vadd.f32 %v1665_v41, %v4764_v2  ;;  %3757 = vmatprep.mubr.msk.bf16.mxu0 %vm3945_vm0, %v6053_v24  ;;  %3925 = vmatprep.mubr.msk.bf16.mxu1 %vm3945_vm0, %v6053_v24  ;;  %v2038_v2 = vld [vmem:[%s6040_s0 + $0x283] sm:$0xff] }
 0x284   :  { %v3659_v3 = vpop.f32.mrf.mxu0  ;;  %v3827_v39 = vpop.f32.mrf.mxu1  ;;  %v2080_v30 = vpack.c.bf16 %v2039_v29, %v2038_v2 }
 0x285   :  { %v2777_v47 = vmax.f32 %v2696_v37, 0.0  ;;  %v2609_v14 = vadd.f32 %v2367_v31, %v1907_v20 }
 0x286   :  { %v1668_v48 = vpop.f32.mrf.mxu0  ;;  %v2370_v62 = vpop.f32.mrf.mxu1 }
 0x287   :  { %2858 = vst [vmem:[%s6042_s3 + $0xd8] sm:$0xff] %v2777_v47  ;;  %v2697_v23 = vadd.f32 %v5354_v61, %v2609_v14  ;;  %v1908_v13 = vadd.f32 %v1668_v48, %v4774_v18  ;;  %v1338_v18 = vld [vmem:[%s6040_s0 + $0x292] sm:$0xff] }
 0x288   :  { %v3660_v22 = vpop.f32.mrf.mxu0  ;;  %v3828_v6 = vpop.f32.mrf.mxu1  ;;  %v1379_v5 = vpack.c.bf16 %v1338_v18, %v1338_v18 }
 0x289   :  { %v2778_v46 = vmax.f32 %v2697_v23, 0.0  ;;  %v2610_v7 = vadd.f32 %v2370_v62, %v1908_v13 }
 0x28a   :  { %v1673_v53 = vpop.f32.mrf.mxu0  ;;  %3758 = vmatmul.mubr.msk.bf16.gmra.mxu0 %vm279_vm1, %v1378_v15  ;;  %v2375_v32 = vpop.f32.mrf.mxu1  ;;  %3926 = vmatmul.mubr.msk.bf16.gmra.mxu1 %vm279_vm1, %v2080_v30 }
 0x28b   :  { %2859 = vst [vmem:[%s6042_s3 + $0xe0] sm:$0xff] %v2778_v46  ;;  %v2698_v63 = vadd.f32 %v5354_v61, %v2610_v7  ;;  %v1909_v40 = vadd.f32 %v1673_v53, %v4783_v28  ;;  %3761 = vmatprep.mubr.msk.bf16.mxu0 %vm3945_vm0, %v6053_v24  ;;  %3929 = vmatprep.mubr.msk.bf16.mxu1 %vm3945_vm0, %v6053_v24 }
 0x28c   :  { %v3663_v9 = vpop.f32.mrf.mxu0  ;;  %v3831_v27 = vpop.f32.mrf.mxu1 }
 0x28d   :  { %v2779_v43 = vmax.f32 %v2698_v63, 0.0  ;;  %v2611_v28 = vadd.f32 %v2375_v32, %v1909_v40 }
 0x28e   :  { %v1676_v1 = vpop.f32.mrf.mxu0  ;;  %v2378_v12 = vpop.f32.mrf.mxu1 }
 0x28f   :  { %2860 = vst [vmem:[%s6042_s3 + $0xe8] sm:$0xff] %v2779_v43  ;;  %v2699_v38 = vadd.f32 %v5354_v61, %v2611_v28  ;;  %v1910_v54 = vadd.f32 %v1676_v1, %v4790_v44 }
 0x290   :  { %v3664_v24 = vpop.f32.mrf.mxu0  ;;  %v3832_v16 = vpop.f32.mrf.mxu1 }
 0x291   :  { %v2780_v59 = vmax.f32 %v2699_v38, 0.0  ;;  %v2612_v8 = vadd.f32 %v2378_v12, %v1910_v54 }
 0x292   :  { %v1681_v33 = vpop.f32.mrf.mxu0  ;;  %3762 = vmatmul.mubr.msk.bf16.gmra.mxu0 %vm279_vm1, %v1379_v5  ;;  %v2383_v42 = vpop.f32.mrf.mxu1  ;;  %3930 = vmatmul.mubr.msk.bf16.gmra.mxu1 %vm279_vm1, %v2081_v50 }
 0x293   :  { %2861 = vst [vmem:[%s6042_s3 + $0xf0] sm:$0xff] %v2780_v59  ;;  %v2700_v49 = vadd.f32 %v5354_v61, %v2612_v8  ;;  %v1911_v0 = vadd.f32 %v1681_v33, %v4802_v58 }
 0x294   :  { %v3667_v44 = vpop.f32.mrf.mxu0  ;;  %v3835_v51 = vpop.f32.mrf.mxu1 }
 0x295   :  { %v2781_v36 = vmax.f32 %v2700_v49, 0.0  ;;  %v2613_v57 = vadd.f32 %v2383_v42, %v1911_v0  ;;  %v5828_v51 = vld [vmem:[%s6041_s2] ss:$0 sm:$0xff] }
 0x296   :  { %v1684_v21 = vpop.f32.mrf.mxu0  ;;  %v2386_v20 = vpop.f32.mrf.mxu1 }
 0x297   :  { %2862 = vst [vmem:[%s6042_s3 + $0xf8] sm:$0xff] %v2781_v36  ;;  %v2701_v41 = vadd.f32 %v5354_v61, %v2613_v57  ;;  %v1912_v37 = vadd.f32 %v1684_v21, %v4812_v11 }
 0x298   :  { %v3668_v31 = vpop.f32.mrf.mxu0  ;;  %v3836_v26 = vpop.f32.mrf.mxu1 }
 0x299   :  { %v2782_v55 = vmax.f32 %v2701_v41, 0.0  ;;  %v2614_v58 = vadd.f32 %v2386_v20, %v1912_v37 }
 0x29a   :  { %v1689_v3 = vpop.f32.mrf.mxu0  ;;  %v2391_v47 = vpop.f32.mrf.mxu1 }
 0x29b   :  { %2863 = vst [vmem:[%s6042_s3 + $0x100] sm:$0xff] %v2782_v55  ;;  %v2702_v2 = vadd.f32 %v5354_v61, %v2614_v58  ;;  %v1913_v29 = vadd.f32 %v1689_v3, %v4824_v25 }
 0x29c   :  { %v3671_v14 = vpop.f32.mrf.mxu0  ;;  %v3839_v15 = vpop.f32.mrf.mxu1 }
 0x29d   :  { %v2783_v39 = vmax.f32 %v2702_v2, 0.0  ;;  %v2615_v48 = vadd.f32 %v2391_v47, %v1913_v29 }
 0x29e   :  { %v1692_v11 = vpop.f32.mrf.mxu0  ;;  %v2394_v62 = vpop.f32.mrf.mxu1 }
 0x29f   :  { %2864 = vst [vmem:[%s6042_s3 + $0x108] sm:$0xff] %v2783_v39  ;;  %v2703_v23 = vadd.f32 %v5354_v61, %v2615_v48  ;;  %v1914_v13 = vadd.f32 %v1692_v11, %v4834_v45 }
 0x2a0   :  { %v3672_v30 = vpop.f32.mrf.mxu0  ;;  %v3840_v7 = vpop.f32.mrf.mxu1 }
 0x2a1   :  { %v2784_v22 = vmax.f32 %v2703_v23, 0.0  ;;  %v2616_v46 = vadd.f32 %v2394_v62, %v1914_v13 }
 0x2a2   :  { %v1697_v25 = vpop.f32.mrf.mxu0  ;;  %v2399_v63 = vpop.f32.mrf.mxu1 }
 0x2a3   :  { %2865 = vst [vmem:[%s6042_s3 + $0x110] sm:$0xff] %v2784_v22  ;;  %v2704_v6 = vadd.f32 %v5354_v61, %v2616_v46  ;;  %v1915_v53 = vadd.f32 %v1697_v25, %v4846_v60 }
 0x2a4   :  { %v3675_v40 = vpop.f32.mrf.mxu0  ;;  %v3843_v9 = vpop.f32.mrf.mxu1 }
 0x2a5   :  { %v2785_v32 = vmax.f32 %v2704_v6, 0.0  ;;  %v2617_v18 = vadd.f32 %v2399_v63, %v1915_v53  ;;  %v6083_v40 = vld [vmem:[#allocation2_spill] sm:$0xff] }
 0x2a6   :  { %v1700_v45 = vpop.f32.mrf.mxu0  ;;  %v2402_v28 = vpop.f32.mrf.mxu1 }
 0x2a7   :  { %2866 = vst [vmem:[%s6042_s3 + $0x118] sm:$0xff] %v2785_v32  ;;  %v2705_v4 = vadd.f32 %v5354_v61, %v2617_v18  ;;  %v1916_v43 = vadd.f32 %v1700_v45, %v4856_v17 }
 0x2a8   :  { %v3676_v27 = vpop.f32.mrf.mxu0  ;;  %v3844_v38 = vpop.f32.mrf.mxu1 }
 0x2a9   :  { %v2786_v1 = vmax.f32 %v2705_v4, 0.0  ;;  %v2618_v5 = vadd.f32 %v2402_v28, %v1916_v43  ;;  %v6084_v27 = vld [vmem:[#allocation3_spill] sm:$0xff] }
 0x2aa   :  { %v1705_v60 = vpop.f32.mrf.mxu0  ;;  %v2407_v50 = vpop.f32.mrf.mxu1 }
 0x2ab   :  { %2867 = vst [vmem:[%s6042_s3 + $0x120] sm:$0xff] %v2786_v1  ;;  %v2706_v54 = vadd.f32 %v5354_v61, %v2618_v5  ;;  %v1917_v12 = vadd.f32 %v1705_v60, %v4868_v34 }
 0x2ac   :  { %v3679_v24 = vpop.f32.mrf.mxu0  ;;  %v3847_v16 = vpop.f32.mrf.mxu1 }
 0x2ad   :  { %v2787_v59 = vmax.f32 %v2706_v54, 0.0  ;;  %v2619_v8 = vadd.f32 %v2407_v50, %v1917_v12 }
 0x2ae   :  { %v1708_v17 = vpop.f32.mrf.mxu0  ;;  %v2410_v0 = vpop.f32.mrf.mxu1 }
 0x2af   :  { %2868 = vst [vmem:[%s6042_s3 + $0x128] sm:$0xff] %v2787_v59  ;;  %v2707_v33 = vadd.f32 %v5354_v61, %v2619_v8  ;;  %v1918_v49 = vadd.f32 %v1708_v17, %v4878_v56  ;;  %v6085_v59 = vld [vmem:[#allocation4_spill] sm:$0xff] }
 0x2b0   :  { %v3680_v42 = vpop.f32.mrf.mxu0  ;;  %v3848_v57 = vpop.f32.mrf.mxu1 }
 0x2b1   :  { %v2788_v44 = vmax.f32 %v2707_v33, 0.0  ;;  %v2620_v36 = vadd.f32 %v2410_v0, %v1918_v49 }
 0x2b2   :  { %v1713_v34 = vpop.f32.mrf.mxu0  ;;  %v2415_v56 = vpop.f32.mrf.mxu1 }
 0x2b3   :  { %2869 = vst [vmem:[%s6042_s3 + $0x130] sm:$0xff] %v2788_v44  ;;  %v2708_v21 = vadd.f32 %v5828_v51, %v2620_v36  ;;  %v1919_v61 = vadd.f32 %v1713_v34, %v4890_v10  ;;  %v6086_v36 = vld [vmem:[#allocation5_spill] sm:$0xff] }
 0x2b4   :  { %v3683_v41 = vpop.f32.mrf.mxu0  ;;  %v3851_v31 = vpop.f32.mrf.mxu1 }
 0x2b5   :  { %v2789_v37 = vmax.f32 %v2708_v21, 0.0  ;;  %v2621_v20 = vadd.f32 %v2415_v56, %v1919_v61  ;;  %v6087_v31 = vld [vmem:[#allocation6_spill] sm:$0xff] }
 0x2b6   :  { %v1716_v55 = vpop.f32.mrf.mxu0  ;;  %v2418_v3 = vpop.f32.mrf.mxu1 }
 0x2b7   :  { %2870 = vst [vmem:[%s6042_s3 + $0x138] sm:$0xff] %v2789_v37  ;;  %v2709_v58 = vadd.f32 %v5828_v51, %v2621_v20  ;;  %v1920_v26 = vadd.f32 %v1716_v55, %v4900_v35 }
 0x2b8   :  { %v3684_v2 = vpop.f32.mrf.mxu0  ;;  %v3852_v14 = vpop.f32.mrf.mxu1 }
 0x2b9   :  { %v2790_v29 = vmax.f32 %v2709_v58, 0.0  ;;  %v2622_v47 = vadd.f32 %v2418_v3, %v1920_v26 }
 0x2ba   :  { %v1721_v10 = vpop.f32.mrf.mxu0  ;;  %v2423_v15 = vpop.f32.mrf.mxu1 }
 0x2bb   :  { %2871 = vst [vmem:[%s6042_s3 + $0x140] sm:$0xff] %v2790_v29  ;;  %v2710_v39 = vadd.f32 %v5828_v51, %v2622_v47  ;;  %v1921_v48 = vadd.f32 %v1721_v10, %v4912_v52  ;;  %v6088_v10 = vld [vmem:[#allocation7_spill] sm:$0xff] }
 0x2bc   :  { %v3687_v11 = vpop.f32.mrf.mxu0  ;;  %v3855_v62 = vpop.f32.mrf.mxu1 }
 0x2bd   :  { %v2791_v23 = vmax.f32 %v2710_v39, 0.0  ;;  %v2623_v13 = vadd.f32 %v2423_v15, %v1921_v48 }
 0x2be   :  { %v1724_v35 = vpop.f32.mrf.mxu0  ;;  %v2426_v46 = vpop.f32.mrf.mxu1 }
 0x2bf   :  { %2872 = vst [vmem:[%s6042_s3 + $0x148] sm:$0xff] %v2791_v23  ;;  %v2711_v30 = vadd.f32 %v5828_v51, %v2623_v13  ;;  %v1922_v22 = vadd.f32 %v1724_v35, %v4922_v19 }
 0x2c0   :  { %v3688_v7 = vpop.f32.mrf.mxu0  ;;  %v3856_v53 = vpop.f32.mrf.mxu1 }
 0x2c1   :  { %v2792_v25 = vmax.f32 %v2711_v30, 0.0  ;;  %v2624_v6 = vadd.f32 %v2426_v46, %v1922_v22  ;;  %v6089_v30 = vld [vmem:[#allocation8_spill] sm:$0xff] }
 0x2c2   :  { %v1729_v52 = vpop.f32.mrf.mxu0  ;;  %v2431_v18 = vpop.f32.mrf.mxu1 }
 0x2c3   :  { %2873 = vst [vmem:[%s6042_s3 + $0x150] sm:$0xff] %v2792_v25  ;;  %v2712_v63 = vadd.f32 %v5828_v51, %v2624_v6  ;;  %v1923_v32 = vadd.f32 %v1729_v52, %v6083_v40  ;;  %v6090_v40 = vld [vmem:[#allocation9_spill] sm:$0xff] }
 0x2c4   :  { %v3691_v9 = vpop.f32.mrf.mxu0  ;;  %v3859_v43 = vpop.f32.mrf.mxu1 }
 0x2c5   :  { %v2793_v45 = vmax.f32 %v2712_v63, 0.0  ;;  %v2625_v4 = vadd.f32 %v2431_v18, %v1923_v32 }
 0x2c6   :  { %v1732_v19 = vpop.f32.mrf.mxu0  ;;  %v2434_v5 = vpop.f32.mrf.mxu1 }
 0x2c7   :  { %2874 = vst [vmem:[%s6042_s3 + $0x158] sm:$0xff] %v2793_v45  ;;  %v2713_v28 = vadd.f32 %v5828_v51, %v2625_v4  ;;  %v1924_v1 = vadd.f32 %v1732_v19, %v6084_v27  ;;  %v6091_v27 = vld [vmem:[#allocation10_spill] sm:$0xff] }
 0x2c8   :  { %v3692_v38 = vpop.f32.mrf.mxu0  ;;  %v3860_v12 = vpop.f32.mrf.mxu1 }
 0x2c9   :  { %v2794_v60 = vmax.f32 %v2713_v28, 0.0  ;;  %v2626_v54 = vadd.f32 %v2434_v5, %v1924_v1 }
 0x2ca   :  { %v1737_v50 = vpop.f32.mrf.mxu0  ;;  %v2439_v16 = vpop.f32.mrf.mxu1 }
 0x2cb   :  { %2875 = vst [vmem:[%s6042_s3 + $0x160] sm:$0xff] %v2794_v60  ;;  %v2714_v24 = vadd.f32 %v5828_v51, %v2626_v54  ;;  %v1925_v8 = vadd.f32 %v1737_v50, %v6085_v59  ;;  %v6092_v59 = vld [vmem:[#allocation11_spill] sm:$0xff] }
 0x2cc   :  { %v3695_v17 = vpop.f32.mrf.mxu0  ;;  %v3863_v0 = vpop.f32.mrf.mxu1 }
 0x2cd   :  { %v2795_v33 = vmax.f32 %v2714_v24, 0.0  ;;  %v2627_v49 = vadd.f32 %v2439_v16, %v1925_v8 }
 0x2ce   :  { %v1740_v42 = vpop.f32.mrf.mxu0  ;;  %v2442_v34 = vpop.f32.mrf.mxu1 }
 0x2cf   :  { %2876 = vst [vmem:[%s6042_s3 + $0x168] sm:$0xff] %v2795_v33  ;;  %v2715_v44 = vadd.f32 %v5828_v51, %v2627_v49  ;;  %v1926_v57 = vadd.f32 %v1740_v42, %v6086_v36  ;;  %v6093_v36 = vld [vmem:[#allocation12_spill] sm:$0xff] }
 0x2d0   :  { %v3696_v21 = vpop.f32.mrf.mxu0  ;;  %v3864_v41 = vpop.f32.mrf.mxu1 }
 0x2d1   :  { %v2796_v61 = vmax.f32 %v2715_v44, 0.0  ;;  %v2628_v56 = vadd.f32 %v2442_v34, %v1926_v57 }
 0x2d2   :  { %v1745_v37 = vpop.f32.mrf.mxu0  ;;  %v2447_v58 = vpop.f32.mrf.mxu1 }
 0x2d3   :  { %2877 = vst [vmem:[%s6042_s3 + $0x170] sm:$0xff] %v2796_v61  ;;  %v2716_v20 = vadd.f32 %v5828_v51, %v2628_v56  ;;  %v1927_v55 = vadd.f32 %v1745_v37, %v6087_v31  ;;  %v6094_v31 = vld [vmem:[#allocation13_spill] sm:$0xff] }
 0x2d4   :  { %v3699_v26 = vpop.f32.mrf.mxu0  ;;  %v3867_v29 = vpop.f32.mrf.mxu1 }
 0x2d5   :  { %v2797_v3 = vmax.f32 %v2716_v20, 0.0  ;;  %v2629_v2 = vadd.f32 %v2447_v58, %v1927_v55 }
 0x2d6   :  { %v1748_v47 = vpop.f32.mrf.mxu0  ;;  %v2450_v48 = vpop.f32.mrf.mxu1 }
 0x2d7   :  { %2878 = vst [vmem:[%s6042_s3 + $0x178] sm:$0xff] %v2797_v3  ;;  %v2717_v14 = vadd.f32 %v5828_v51, %v2629_v2  ;;  %v1928_v39 = vadd.f32 %v1748_v47, %v6088_v10  ;;  %v6095_v10 = vld [vmem:[#allocation14_spill] sm:$0xff] }
 0x2d8   :  { %v3700_v15 = vpop.f32.mrf.mxu0  ;;  %v3868_v13 = vpop.f32.mrf.mxu1 }
 0x2d9   :  { %v2798_v11 = vmax.f32 %v2717_v14, 0.0  ;;  %v2630_v23 = vadd.f32 %v2450_v48, %v1928_v39 }
 0x2da   :  { %v1753_v62 = vpop.f32.mrf.mxu0  ;;  %v2455_v46 = vpop.f32.mrf.mxu1 }
 0x2db   :  { %2879 = vst [vmem:[%s6042_s3 + $0x180] sm:$0xff] %v2798_v11  ;;  %v2718_v35 = vadd.f32 %v5828_v51, %v2630_v23  ;;  %v1929_v22 = vadd.f32 %v1753_v62, %v6089_v30  ;;  %v6096_v30 = vld [vmem:[#allocation15_spill] sm:$0xff] }
 0x2dc   :  { %v3703_v7 = vpop.f32.mrf.mxu0  ;;  %v3871_v53 = vpop.f32.mrf.mxu1 }
 0x2dd   :  { %v2799_v25 = vmax.f32 %v2718_v35, 0.0  ;;  %v2631_v6 = vadd.f32 %v2455_v46, %v1929_v22 }
 0x2de   :  { %v1756_v52 = vpop.f32.mrf.mxu0  ;;  %v2458_v18 = vpop.f32.mrf.mxu1 }
 0x2df   :  { %2880 = vst [vmem:[%s6042_s3 + $0x188] sm:$0xff] %v2799_v25  ;;  %v2719_v63 = vadd.f32 %v5828_v51, %v2631_v6  ;;  %v1930_v32 = vadd.f32 %v1756_v52, %v6090_v40  ;;  %v6097_v40 = vld [vmem:[#allocation16_spill] sm:$0xff] }
 0x2e0   :  { %v3704_v9 = vpop.f32.mrf.mxu0  ;;  %v3872_v43 = vpop.f32.mrf.mxu1 }
 0x2e1   :  { %v2800_v45 = vmax.f32 %v2719_v63, 0.0  ;;  %v2632_v4 = vadd.f32 %v2458_v18, %v1930_v32 }
 0x2e2   :  { %v1761_v19 = vpop.f32.mrf.mxu0  ;;  %v2463_v5 = vpop.f32.mrf.mxu1 }
 0x2e3   :  { %2881 = vst [vmem:[%s6042_s3 + $0x190] sm:$0xff] %v2800_v45  ;;  %v2720_v28 = vadd.f32 %v5828_v51, %v2632_v4  ;;  %v1931_v1 = vadd.f32 %v1761_v19, %v6091_v27  ;;  %v6098_v27 = vld [vmem:[#allocation17_spill] sm:$0xff] }
 0x2e4   :  { %v3707_v38 = vpop.f32.mrf.mxu0  ;;  %v3875_v12 = vpop.f32.mrf.mxu1 }
 0x2e5   :  { %v2801_v60 = vmax.f32 %v2720_v28, 0.0  ;;  %v2633_v54 = vadd.f32 %v2463_v5, %v1931_v1 }
 0x2e6   :  { %v1764_v50 = vpop.f32.mrf.mxu0  ;;  %v2466_v16 = vpop.f32.mrf.mxu1 }
 0x2e7   :  { %2882 = vst [vmem:[%s6042_s3 + $0x198] sm:$0xff] %v2801_v60  ;;  %v2721_v24 = vadd.f32 %v5828_v51, %v2633_v54  ;;  %v1932_v8 = vadd.f32 %v1764_v50, %v6092_v59  ;;  %v6099_v59 = vld [vmem:[#allocation18_spill] sm:$0xff] }
 0x2e8   :  { %v3708_v17 = vpop.f32.mrf.mxu0  ;;  %v3876_v0 = vpop.f32.mrf.mxu1 }
 0x2e9   :  { %v2802_v33 = vmax.f32 %v2721_v24, 0.0  ;;  %v2634_v49 = vadd.f32 %v2466_v16, %v1932_v8 }
 0x2ea   :  { %v1769_v42 = vpop.f32.mrf.mxu0  ;;  %v2471_v34 = vpop.f32.mrf.mxu1 }
 0x2eb   :  { %2883 = vst [vmem:[%s6042_s3 + $0x1a0] sm:$0xff] %v2802_v33  ;;  %v2722_v44 = vadd.f32 %v5828_v51, %v2634_v49  ;;  %v1933_v57 = vadd.f32 %v1769_v42, %v6093_v36  ;;  %v6100_v36 = vld [vmem:[#allocation19_spill] sm:$0xff] }
 0x2ec   :  { %v3711_v21 = vpop.f32.mrf.mxu0  ;;  %v3879_v41 = vpop.f32.mrf.mxu1 }
 0x2ed   :  { %v2803_v61 = vmax.f32 %v2722_v44, 0.0  ;;  %v2635_v56 = vadd.f32 %v2471_v34, %v1933_v57 }
 0x2ee   :  { %v1772_v37 = vpop.f32.mrf.mxu0  ;;  %v2474_v58 = vpop.f32.mrf.mxu1 }
 0x2ef   :  { %2884 = vst [vmem:[%s6042_s3 + $0x1a8] sm:$0xff] %v2803_v61  ;;  %v2723_v20 = vadd.f32 %v5828_v51, %v2635_v56  ;;  %v1934_v55 = vadd.f32 %v1772_v37, %v6094_v31  ;;  %v6101_v31 = vld [vmem:[#allocation20_spill] sm:$0xff] }
 0x2f0   :  { %v3712_v26 = vpop.f32.mrf.mxu0  ;;  %v3880_v29 = vpop.f32.mrf.mxu1 }
 0x2f1   :  { %v2804_v3 = vmax.f32 %v2723_v20, 0.0  ;;  %v2636_v2 = vadd.f32 %v2474_v58, %v1934_v55 }
 0x2f2   :  { %v1777_v47 = vpop.f32.mrf.mxu0  ;;  %v2479_v48 = vpop.f32.mrf.mxu1 }
 0x2f3   :  { %2885 = vst [vmem:[%s6042_s3 + $0x1b0] sm:$0xff] %v2804_v3  ;;  %v2724_v14 = vadd.f32 %v5828_v51, %v2636_v2  ;;  %v1935_v39 = vadd.f32 %v1777_v47, %v6095_v10  ;;  %v6102_v10 = vld [vmem:[#allocation21_spill] sm:$0xff] }
 0x2f4   :  { %v3715_v15 = vpop.f32.mrf.mxu0  ;;  %v3883_v13 = vpop.f32.mrf.mxu1 }
 0x2f5   :  { %v2805_v11 = vmax.f32 %v2724_v14, 0.0  ;;  %v2637_v23 = vadd.f32 %v2479_v48, %v1935_v39 }
 0x2f6   :  { %v1780_v62 = vpop.f32.mrf.mxu0  ;;  %v2482_v46 = vpop.f32.mrf.mxu1 }
 0x2f7   :  { %2886 = vst [vmem:[%s6042_s3 + $0x1b8] sm:$0xff] %v2805_v11  ;;  %v2725_v35 = vadd.f32 %v5828_v51, %v2637_v23  ;;  %v1936_v22 = vadd.f32 %v1780_v62, %v6096_v30  ;;  %v6103_v30 = vld [vmem:[#allocation22_spill] sm:$0xff] }
 0x2f8   :  { %v3716_v7 = vpop.f32.mrf.mxu0  ;;  %v3884_v53 = vpop.f32.mrf.mxu1 }
 0x2f9   :  { %v2806_v25 = vmax.f32 %v2725_v35, 0.0  ;;  %v2638_v6 = vadd.f32 %v2482_v46, %v1936_v22 }
 0x2fa   :  { %v1785_v52 = vpop.f32.mrf.mxu0  ;;  %v2487_v18 = vpop.f32.mrf.mxu1 }
 0x2fb   :  { %2887 = vst [vmem:[%s6042_s3 + $0x1c0] sm:$0xff] %v2806_v25  ;;  %v2726_v63 = vadd.f32 %v5828_v51, %v2638_v6  ;;  %v1937_v32 = vadd.f32 %v1785_v52, %v6097_v40  ;;  %v6104_v40 = vld [vmem:[#allocation23_spill] sm:$0xff] }
 0x2fc   :  { %v3719_v9 = vpop.f32.mrf.mxu0  ;;  %v3887_v43 = vpop.f32.mrf.mxu1 }
 0x2fd   :  { %v2807_v45 = vmax.f32 %v2726_v63, 0.0  ;;  %v2639_v4 = vadd.f32 %v2487_v18, %v1937_v32 }
 0x2fe   :  { %v1788_v19 = vpop.f32.mrf.mxu0  ;;  %v2490_v5 = vpop.f32.mrf.mxu1 }
 0x2ff   :  { %2888 = vst [vmem:[%s6042_s3 + $0x1c8] sm:$0xff] %v2807_v45  ;;  %v2727_v28 = vadd.f32 %v5828_v51, %v2639_v4  ;;  %v1938_v1 = vadd.f32 %v1788_v19, %v6098_v27  ;;  %v6105_v27 = vld [vmem:[#allocation24_spill] sm:$0xff] }
 0x300   :  { %v3720_v38 = vpop.f32.mrf.mxu0  ;;  %v3888_v12 = vpop.f32.mrf.mxu1 }
 0x301   :  { %v2808_v60 = vmax.f32 %v2727_v28, 0.0  ;;  %v2640_v54 = vadd.f32 %v2490_v5, %v1938_v1 }
 0x302   :  { %v1793_v50 = vpop.f32.mrf.mxu0  ;;  %v2495_v16 = vpop.f32.mrf.mxu1 }
 0x303   :  { %2889 = vst [vmem:[%s6042_s3 + $0x1d0] sm:$0xff] %v2808_v60  ;;  %v2728_v24 = vadd.f32 %v5828_v51, %v2640_v54  ;;  %v1939_v8 = vadd.f32 %v1793_v50, %v6099_v59  ;;  %v6106_v59 = vld [vmem:[#allocation25_spill] sm:$0xff] }
 0x304   :  { %v3723_v17 = vpop.f32.mrf.mxu0  ;;  %v3891_v0 = vpop.f32.mrf.mxu1 }
 0x305   :  { %v2809_v33 = vmax.f32 %v2728_v24, 0.0  ;;  %v2641_v49 = vadd.f32 %v2495_v16, %v1939_v8 }
 0x306   :  { %v1796_v42 = vpop.f32.mrf.mxu0  ;;  %v2498_v34 = vpop.f32.mrf.mxu1 }
 0x307   :  { %2890 = vst [vmem:[%s6042_s3 + $0x1d8] sm:$0xff] %v2809_v33  ;;  %v2729_v44 = vadd.f32 %v5828_v51, %v2641_v49  ;;  %v1940_v57 = vadd.f32 %v1796_v42, %v6100_v36  ;;  %v6107_v36 = vld [vmem:[#allocation26_spill] sm:$0xff] }
 0x308   :  { %v3724_v21 = vpop.f32.mrf.mxu0  ;;  %v3892_v41 = vpop.f32.mrf.mxu1 }
 0x309   :  { %v2810_v61 = vmax.f32 %v2729_v44, 0.0  ;;  %v2642_v56 = vadd.f32 %v2498_v34, %v1940_v57 }
 0x30a   :  { %v1801_v37 = vpop.f32.mrf.mxu0  ;;  %v2503_v58 = vpop.f32.mrf.mxu1 }
 0x30b   :  { %2891 = vst [vmem:[%s6042_s3 + $0x1e0] sm:$0xff] %v2810_v61  ;;  %v2730_v20 = vadd.f32 %v5828_v51, %v2642_v56  ;;  %v1941_v55 = vadd.f32 %v1801_v37, %v6101_v31  ;;  %v6108_v31 = vld [vmem:[#allocation27_spill] sm:$0xff] }
 0x30c   :  { %v3727_v26 = vpop.f32.mrf.mxu0  ;;  %v3895_v29 = vpop.f32.mrf.mxu1 }
 0x30d   :  { %v2811_v3 = vmax.f32 %v2730_v20, 0.0  ;;  %v2643_v2 = vadd.f32 %v2503_v58, %v1941_v55 }
 0x30e   :  { %v1804_v47 = vpop.f32.mrf.mxu0  ;;  %v2506_v48 = vpop.f32.mrf.mxu1 }
 0x30f   :  { %2892 = vst [vmem:[%s6042_s3 + $0x1e8] sm:$0xff] %v2811_v3  ;;  %v2731_v14 = vadd.f32 %v5828_v51, %v2643_v2  ;;  %v1942_v39 = vadd.f32 %v1804_v47, %v6102_v10  ;;  %v6109_v10 = vld [vmem:[#allocation28_spill] sm:$0xff] }
 0x310   :  { %v3728_v15 = vpop.f32.mrf.mxu0  ;;  %v3896_v13 = vpop.f32.mrf.mxu1 }
 0x311   :  { %v2812_v11 = vmax.f32 %v2731_v14, 0.0  ;;  %v2644_v23 = vadd.f32 %v2506_v48, %v1942_v39 }
 0x312   :  { %v1809_v62 = vpop.f32.mrf.mxu0  ;;  %v2511_v46 = vpop.f32.mrf.mxu1 }
 0x313   :  { %2893 = vst [vmem:[%s6042_s3 + $0x1f0] sm:$0xff] %v2812_v11  ;;  %v2732_v35 = vadd.f32 %v5828_v51, %v2644_v23  ;;  %v1943_v22 = vadd.f32 %v1809_v62, %v6103_v30  ;;  %v6110_v30 = vld [vmem:[#allocation29_spill] sm:$0xff] }
 0x314   :  { %v3731_v7 = vpop.f32.mrf.mxu0  ;;  %v3899_v53 = vpop.f32.mrf.mxu1 }
 0x315   :  { %v2813_v25 = vmax.f32 %v2732_v35, 0.0  ;;  %v2645_v6 = vadd.f32 %v2511_v46, %v1943_v22 }
 0x316   :  { %v1812_v52 = vpop.f32.mrf.mxu0  ;;  %v2514_v18 = vpop.f32.mrf.mxu1 }
 0x317   :  { %2894 = vst [vmem:[%s6042_s3 + $0x1f8] sm:$0xff] %v2813_v25  ;;  %v2733_v63 = vadd.f32 %v5828_v51, %v2645_v6  ;;  %v1944_v32 = vadd.f32 %v1812_v52, %v6104_v40  ;;  %v6111_v40 = vld [vmem:[#allocation30_spill] sm:$0xff] }
 0x318   :  { %v3732_v9 = vpop.f32.mrf.mxu0  ;;  %v3900_v43 = vpop.f32.mrf.mxu1 }
 0x319   :  { %v2814_v45 = vmax.f32 %v2733_v63, 0.0  ;;  %v2646_v4 = vadd.f32 %v2514_v18, %v1944_v32 }
 0x31a   :  { %v1817_v19 = vpop.f32.mrf.mxu0  ;;  %v2519_v5 = vpop.f32.mrf.mxu1 }
 0x31b   :  { %2895 = vst [vmem:[%s6042_s3 + $0x200] sm:$0xff] %v2814_v45  ;;  %v2734_v28 = vadd.f32 %v5828_v51, %v2646_v4  ;;  %v1945_v1 = vadd.f32 %v1817_v19, %v6105_v27  ;;  %v6112_v27 = vld [vmem:[#allocation31_spill] sm:$0xff] }
 0x31c   :  { %v3735_v38 = vpop.f32.mrf.mxu0  ;;  %v3903_v12 = vpop.f32.mrf.mxu1 }
 0x31d   :  { %v2815_v60 = vmax.f32 %v2734_v28, 0.0  ;;  %v2647_v54 = vadd.f32 %v2519_v5, %v1945_v1 }
 0x31e   :  { %v1820_v50 = vpop.f32.mrf.mxu0  ;;  %v2522_v16 = vpop.f32.mrf.mxu1 }
 0x31f   :  { %2896 = vst [vmem:[%s6042_s3 + $0x208] sm:$0xff] %v2815_v60  ;;  %v2735_v24 = vadd.f32 %v5828_v51, %v2647_v54  ;;  %v1946_v8 = vadd.f32 %v1820_v50, %v6106_v59  ;;  %v6113_v59 = vld [vmem:[#allocation32_spill] sm:$0xff] }
 0x320   :  { %v3736_v17 = vpop.f32.mrf.mxu0  ;;  %v3904_v0 = vpop.f32.mrf.mxu1 }
 0x321   :  { %v2816_v33 = vmax.f32 %v2735_v24, 0.0  ;;  %v2648_v49 = vadd.f32 %v2522_v16, %v1946_v8 }
 0x322   :  { %v1825_v42 = vpop.f32.mrf.mxu0  ;;  %v2527_v34 = vpop.f32.mrf.mxu1 }
 0x323   :  { %2897 = vst [vmem:[%s6042_s3 + $0x210] sm:$0xff] %v2816_v33  ;;  %v2736_v44 = vadd.f32 %v5828_v51, %v2648_v49  ;;  %v1947_v57 = vadd.f32 %v1825_v42, %v6107_v36  ;;  %v6114_v36 = vld [vmem:[#allocation33_spill] sm:$0xff] }
 0x324   :  { %v3739_v21 = vpop.f32.mrf.mxu0  ;;  %v3907_v41 = vpop.f32.mrf.mxu1 }
 0x325   :  { %v2817_v61 = vmax.f32 %v2736_v44, 0.0  ;;  %v2649_v56 = vadd.f32 %v2527_v34, %v1947_v57 }
 0x326   :  { %v1828_v37 = vpop.f32.mrf.mxu0  ;;  %v2530_v58 = vpop.f32.mrf.mxu1 }
 0x327   :  { %2898 = vst [vmem:[%s6042_s3 + $0x218] sm:$0xff] %v2817_v61  ;;  %v2737_v20 = vadd.f32 %v5828_v51, %v2649_v56  ;;  %v1948_v55 = vadd.f32 %v1828_v37, %v6108_v31  ;;  %v6115_v31 = vld [vmem:[#allocation34_spill] sm:$0xff] }
 0x328   :  { %v3740_v26 = vpop.f32.mrf.mxu0  ;;  %v3908_v29 = vpop.f32.mrf.mxu1 }
 0x329   :  { %v2818_v3 = vmax.f32 %v2737_v20, 0.0  ;;  %v2650_v2 = vadd.f32 %v2530_v58, %v1948_v55 }
 0x32a   :  { %v1833_v47 = vpop.f32.mrf.mxu0  ;;  %v2535_v48 = vpop.f32.mrf.mxu1 }
 0x32b   :  { %2899 = vst [vmem:[%s6042_s3 + $0x220] sm:$0xff] %v2818_v3  ;;  %v2738_v14 = vadd.f32 %v5828_v51, %v2650_v2  ;;  %v1949_v39 = vadd.f32 %v1833_v47, %v6109_v10  ;;  %v6116_v10 = vld [vmem:[#allocation35_spill] sm:$0xff] }
 0x32c   :  { %v3743_v15 = vpop.f32.mrf.mxu0  ;;  %v3911_v13 = vpop.f32.mrf.mxu1 }
 0x32d   :  { %v2819_v11 = vmax.f32 %v2738_v14, 0.0  ;;  %v2651_v23 = vadd.f32 %v2535_v48, %v1949_v39 }
 0x32e   :  { %v1836_v62 = vpop.f32.mrf.mxu0  ;;  %v2538_v46 = vpop.f32.mrf.mxu1 }
 0x32f   :  { %2900 = vst [vmem:[%s6042_s3 + $0x228] sm:$0xff] %v2819_v11  ;;  %v2739_v35 = vadd.f32 %v5828_v51, %v2651_v23  ;;  %v1950_v22 = vadd.f32 %v1836_v62, %v6110_v30  ;;  %v6117_v30 = vld [vmem:[#allocation36_spill] sm:$0xff] }
 0x330   :  { %v3744_v7 = vpop.f32.mrf.mxu0  ;;  %v3912_v53 = vpop.f32.mrf.mxu1 }
 0x331   :  { %v2820_v25 = vmax.f32 %v2739_v35, 0.0  ;;  %v2652_v6 = vadd.f32 %v2538_v46, %v1950_v22 }
 0x332   :  { %v1841_v52 = vpop.f32.mrf.mxu0  ;;  %v2543_v18 = vpop.f32.mrf.mxu1 }
 0x333   :  { %2901 = vst [vmem:[%s6042_s3 + $0x230] sm:$0xff] %v2820_v25  ;;  %v2740_v63 = vadd.f32 %v5828_v51, %v2652_v6  ;;  %v1951_v32 = vadd.f32 %v1841_v52, %v6111_v40  ;;  %v6118_v40 = vld [vmem:[#allocation37_spill] sm:$0xff] }
 0x334   :  { %v3747_v9 = vpop.f32.mrf.mxu0  ;;  %v3915_v43 = vpop.f32.mrf.mxu1 }
 0x335   :  { %v2821_v45 = vmax.f32 %v2740_v63, 0.0  ;;  %v2653_v4 = vadd.f32 %v2543_v18, %v1951_v32 }
 0x336   :  { %v1844_v19 = vpop.f32.mrf.mxu0  ;;  %v2546_v5 = vpop.f32.mrf.mxu1 }
 0x337   :  { %2902 = vst [vmem:[%s6042_s3 + $0x238] sm:$0xff] %v2821_v45  ;;  %v2741_v28 = vadd.f32 %v5828_v51, %v2653_v4  ;;  %v1952_v1 = vadd.f32 %v1844_v19, %v6112_v27  ;;  %v6119_v27 = vld [vmem:[#allocation38_spill] sm:$0xff] }
 0x338   :  { %v3748_v38 = vpop.f32.mrf.mxu0  ;;  %v3916_v12 = vpop.f32.mrf.mxu1 }
 0x339   :  { %v2822_v60 = vmax.f32 %v2741_v28, 0.0  ;;  %v2654_v54 = vadd.f32 %v2546_v5, %v1952_v1 }
 0x33a   :  { %v1849_v50 = vpop.f32.mrf.mxu0  ;;  %v2551_v16 = vpop.f32.mrf.mxu1 }
 0x33b   :  { %2903 = vst [vmem:[%s6042_s3 + $0x240] sm:$0xff] %v2822_v60  ;;  %v2742_v24 = vadd.f32 %v5828_v51, %v2654_v54  ;;  %v1953_v8 = vadd.f32 %v1849_v50, %v6113_v59 }
 0x33c   :  { %v3751_v17 = vpop.f32.mrf.mxu0  ;;  %v3919_v0 = vpop.f32.mrf.mxu1 }
 0x33d   :  { %v2823_v33 = vmax.f32 %v2742_v24, 0.0  ;;  %v2655_v49 = vadd.f32 %v2551_v16, %v1953_v8 }
 0x33e   :  { %v1852_v42 = vpop.f32.mrf.mxu0  ;;  %v2554_v34 = vpop.f32.mrf.mxu1 }
 0x33f   :  { %2904 = vst [vmem:[%s6042_s3 + $0x248] sm:$0xff] %v2823_v33  ;;  %v2743_v44 = vadd.f32 %v5828_v51, %v2655_v49  ;;  %v1954_v57 = vadd.f32 %v1852_v42, %v6114_v36 }
 0x340   :  { %v3752_v21 = vpop.f32.mrf.mxu0  ;;  %v3920_v41 = vpop.f32.mrf.mxu1 }
 0x341   :  { %v2824_v61 = vmax.f32 %v2743_v44, 0.0  ;;  %v2656_v56 = vadd.f32 %v2554_v34, %v1954_v57 }
 0x342   :  { %v1857_v37 = vpop.f32.mrf.mxu0  ;;  %v2559_v58 = vpop.f32.mrf.mxu1 }
 0x343   :  { %2905 = vst [vmem:[%s6042_s3 + $0x250] sm:$0xff] %v2824_v61  ;;  %v2744_v20 = vadd.f32 %v5828_v51, %v2656_v56  ;;  %v1955_v55 = vadd.f32 %v1857_v37, %v6115_v31 }
 0x344   :  { %v3755_v26 = vpop.f32.mrf.mxu0  ;;  %v3923_v29 = vpop.f32.mrf.mxu1 }
 0x345   :  { %v2825_v3 = vmax.f32 %v2744_v20, 0.0  ;;  %v2657_v2 = vadd.f32 %v2559_v58, %v1955_v55 }
 0x346   :  { %v1860_v47 = vpop.f32.mrf.mxu0  ;;  %v2562_v48 = vpop.f32.mrf.mxu1 }
 0x347   :  { %2906 = vst [vmem:[%s6042_s3 + $0x258] sm:$0xff] %v2825_v3  ;;  %v2745_v14 = vadd.f32 %v5828_v51, %v2657_v2  ;;  %v1956_v39 = vadd.f32 %v1860_v47, %v6116_v10 }
 0x348   :  { %v3756_v15 = vpop.f32.mrf.mxu0  ;;  %v3924_v13 = vpop.f32.mrf.mxu1 }
 0x349   :  { %v2826_v11 = vmax.f32 %v2745_v14, 0.0  ;;  %v2658_v23 = vadd.f32 %v2562_v48, %v1956_v39 }
 0x34a   :  { %v1865_v62 = vpop.f32.mrf.mxu0  ;;  %v2567_v46 = vpop.f32.mrf.mxu1 }
 0x34b   :  { %2907 = vst [vmem:[%s6042_s3 + $0x260] sm:$0xff] %v2826_v11  ;;  %v2746_v35 = vadd.f32 %v5828_v51, %v2658_v23  ;;  %v1957_v22 = vadd.f32 %v1865_v62, %v6117_v30 }
 0x34c   :  { %v3759_v7 = vpop.f32.mrf.mxu0  ;;  %v3927_v53 = vpop.f32.mrf.mxu1 }
 0x34d   :  { %v2827_v25 = vmax.f32 %v2746_v35, 0.0  ;;  %v2659_v6 = vadd.f32 %v2567_v46, %v1957_v22 }
 0x34e   :  { %v1868_v52 = vpop.f32.mrf.mxu0  ;;  %v2570_v18 = vpop.f32.mrf.mxu1 }
 0x34f   :  { %2908 = vst [vmem:[%s6042_s3 + $0x268] sm:$0xff] %v2827_v25  ;;  %v2747_v63 = vadd.f32 %v5828_v51, %v2659_v6  ;;  %v1958_v32 = vadd.f32 %v1868_v52, %v6118_v40 }
 0x350   :  { %v3760_v9 = vpop.f32.mrf.mxu0  ;;  %v3928_v43 = vpop.f32.mrf.mxu1 }
 0x351   :  { %v2828_v45 = vmax.f32 %v2747_v63, 0.0  ;;  %v2660_v4 = vadd.f32 %v2570_v18, %v1958_v32 }
 0x352   :  { %v1873_v19 = vpop.f32.mrf.mxu0  ;;  %v2575_v5 = vpop.f32.mrf.mxu1 }
 0x353   :  { %2909 = vst [vmem:[%s6042_s3 + $0x270] sm:$0xff] %v2828_v45  ;;  %v2748_v28 = vadd.f32 %v5828_v51, %v2660_v4  ;;  %v1959_v1 = vadd.f32 %v1873_v19, %v6119_v27 }
 0x354   :  { %v3763_v38 = vpop.f32.mrf.mxu0  ;;  %v3931_v12 = vpop.f32.mrf.mxu1 }
 0x355   :  { %v2829_v60 = vmax.f32 %v2748_v28, 0.0  ;;  %v2661_v54 = vadd.f32 %v2575_v5, %v1959_v1 }
 0x356   :  { %v1876_v50 = vpop.f32.mrf.mxu0  ;;  %v2578_v59 = vpop.f32.mrf.mxu1 }
 0x357   :  { %2910 = vst [vmem:[%s6042_s3 + $0x278] sm:$0xff] %v2829_v60  ;;  %v2749_v24 = vadd.f32 %v5828_v51, %v2661_v54 }
 0x358   :  { %v3764_v8 = vpop.f32.mrf.mxu0  ;;  %v3932_v17 = vpop.f32.mrf.mxu1 }
 0x359   :  { %v2830_v16 = vmax.f32 %v2749_v24, 0.0 }
 0x35b   :  { %2911 = vst [vmem:[%s6042_s3 + $0x280] sm:$0xff] %v2830_v16 }

// kernel: conv_decoder_forward.9
= control target key start
LH: loop header
LB: loop body
LE: loop exit
PB: predicated region body
PF: predicated region fallthrough
CT: control target
= control target key end

     0   :  { %s2358_s28 = smov 127   ;;  %s2359_s16 = smov 93   ;;  %vm921_vm0 = vcmask 760832   ;;  %vm620_vm1 = vcmask 769024   ;;  %vm319_vm2 = vcmask 1039360   ;;  %vm2363_vm3 = vmmov 0   ;;  %s3921_s0 = inlined_call_operand.vmem [shape: f32[32,2354], index: 0, kind: input, shape index: {}]   ;;  %s3922_s1 = inlined_call_operand.vmem [shape: bf16[4,128], index: 1, kind: input, shape index: {}]   ;;  %s3923_s2 = inlined_call_operand.vmem [shape: f32[4,1], index: 2, kind: input, shape index: {}]   ;;  %s3924_s3 = inlined_call_operand.vmem [shape: f32[4,2312], index: 3, kind: output, shape index: {}]  }
   0x1   :  { %v2387_v0 = vld [vmem:[%s3921_s0 + $0x20] sm:$0xff]  ;;  %v2392_v1 = vld [vmem:[%s3921_s0 + $0x28] sm:$0xff]  ;;  %v2409_v5 = vld [vmem:[%s3921_s0 + $0x30] sm:$0xff]  ;;  %s2360_s30 = smov 94   ;;  %vm1683_vm4 = vcmask 60416  }
   0x2   :  { %v2397_v2 = vld [vmem:[%s3921_s0] sm:$0xff]  ;;  %v1734_v3 = vpack.i.bf16 %v2392_v1, %v2387_v0  ;;  %v2404_v4 = vld [vmem:[%s3921_s0 + $0x8] sm:$0xff]  ;;  %v2414_v6 = vld [vmem:[%s3921_s0 + $0x38] sm:$0xff] }
   0x3   :  { %v1724_v7 = vpack.i.bf16 %v2404_v4, %v2397_v2  ;;  %v2421_v8 = vld [vmem:[%s3921_s0 + $0x10] sm:$0xff]  ;;  %v2426_v9 = vld [vmem:[%s3921_s0 + $0x18] sm:$0xff]  ;;  %v1739_v10 = vpack.i.bf16 %v2414_v6, %v2409_v5  ;;  %v2447_v14 = vld [vmem:[%s3921_s0 + $0x40] sm:$0xff] }
   0x4   :  { %1735 = vrot.lane.b32.xlu1 %v1734_v3, %s2358_s28  ;;  %v1729_v11 = vpack.i.bf16 %v2426_v9, %v2421_v8  ;;  %v2437_v12 = vld [vmem:[%s3921_s0 + $0x50] sm:$0xff]  ;;  %v2442_v13 = vld [vmem:[%s3921_s0 + $0x58] sm:$0xff]  ;;  %v2452_v15 = vld [vmem:[%s3921_s0 + $0x48] sm:$0xff]  ;;  %v1799_v44 = vpack.i.bf16 %v2421_v8, %v2404_v4  ;;  %v1809_v48 = vpack.i.bf16 %v2426_v9, %v2397_v2 }
   0x5   :  { %1725 = vrot.lane.b32.xlu0 %v1724_v7, %s2358_s28  ;;  %v1749_v16 = vpack.i.bf16 %v2442_v13, %v2437_v12  ;;  %v1744_v17 = vpack.i.bf16 %v2452_v15, %v2447_v14  ;;  %v2463_v18 = vld [vmem:[%s3921_s0 + $0x70] sm:$0xff]  ;;  %v2468_v19 = vld [vmem:[%s3921_s0 + $0x78] sm:$0xff]  ;;  %v2473_v20 = vld [vmem:[%s3921_s0 + $0x60] sm:$0xff] }
   0x6   :  { %v2478_v21 = vld [vmem:[%s3921_s0 + $0x68] sm:$0xff]  ;;  %v1759_v22 = vpack.i.bf16 %v2468_v19, %v2463_v18  ;;  %v2489_v24 = vld [vmem:[%s3921_s0 + $0x90] sm:$0xff]  ;;  %v2494_v25 = vld [vmem:[%s3921_s0 + $0x98] sm:$0xff] }
   0x7   :  { %v1754_v23 = vpack.i.bf16 %v2478_v21, %v2473_v20  ;;  %v2499_v26 = vld [vmem:[%s3921_s0 + $0x80] sm:$0xff]  ;;  %v2504_v27 = vld [vmem:[%s3921_s0 + $0x88] sm:$0xff]  ;;  %v1769_v28 = vpack.i.bf16 %v2494_v25, %v2489_v24  ;;  %v2515_v30 = vld [vmem:[%s3921_s0 + $0x1d0] sm:$0xff]  ;;  %v1814_v53 = vpack.i.bf16 %v2494_v25, %v2387_v0 }
   0x8   :  { %1740 = vrot.lane.b32.xlu1 %v1739_v10, %s2358_s28  ;;  %v1764_v29 = vpack.i.bf16 %v2504_v27, %v2499_v26  ;;  %v2520_v31 = vld [vmem:[%s3921_s0 + $0x1d8] sm:$0xff]  ;;  %v2530_v33 = vld [vmem:[%s3921_s0 + $0x140] sm:$0xff]  ;;  %v57_v36 = vld [vmem:[%s3921_s0 + $0x150] sm:$0xff] }
   0x9   :  { %1730 = vrot.lane.b32.xlu0 %v1729_v11, %s2358_s28  ;;  %v2525_v32 = vld [vmem:[%s3921_s0 + $0x138] sm:$0xff]  ;;  %v1779_v34 = vpack.i.bf16 %v2520_v31, %v2515_v30  ;;  %v2544_v37 = vld [vmem:[%s3921_s0 + $0x1c8] sm:$0xff]  ;;  %v2549_v38 = vld [vmem:[%s3921_s0 + $0x130] sm:$0xff] }
   0xa   :  { %v1774_v35 = vpack.i.bf16 %v2530_v33, %v2525_v32  ;;  %v2554_v39 = vld [vmem:[%s3921_s0 + $0x148] sm:$0xff]  ;;  %v1789_v40 = vpack.i.bf16 %v2544_v37, %v57_v36  ;;  %v2564_v42 = vld [vmem:[%s3921_s0 + $0x1e0] sm:$0xff]  ;;  %v2593_v50 = vld [vmem:[%s3921_s0 + $0xb0] sm:$0xff] }
   0xb   :  { %v1784_v41 = vpack.i.bf16 %v2554_v39, %v2549_v38  ;;  %v76_v43 = vld [vmem:[%s3921_s0 + $0x1e8] sm:$0xff]  ;;  %v2577_v46 = vld [vmem:[%s3921_s0 + $0xa0] sm:$0xff]  ;;  %v38_v51 = vld [vmem:[%s3921_s0 + $0xb8] sm:$0xff] }
   0xc   :  { %1750 = vrot.lane.b32.xlu1 %v1749_v16, %s2358_s28  ;;  %v1794_v45 = vpack.i.bf16 %v76_v43, %v2564_v42  ;;  %v2582_v47 = vld [vmem:[%s3921_s0 + $0xa8] sm:$0xff]  ;;  %v1819_v52 = vpack.i.bf16 %v38_v51, %v2593_v50  ;;  %v58_v55 = vld [vmem:[%s3921_s0 + $0x158] sm:$0xff]  ;;  %v59_v56 = vld [vmem:[%s3921_s0 + $0x160] sm:$0xff]  ;;  %v3925_v16 = vmov 0  }
   0xd   :  { %1745 = vrot.lane.b32.xlu0 %v1744_v17, %s2358_s28  ;;  %v1804_v49 = vpack.i.bf16 %v2582_v47, %v2577_v46  ;;  %v1909_v58 = vpack.i.bf16 %v59_v56, %v58_v55  ;;  %v60_v60 = vld [vmem:[%s3921_s0 + $0x168] sm:$0xff]  ;;  %v61_v61 = vld [vmem:[%s3921_s0 + $0x170] sm:$0xff]  ;;  %v78_v0 = vld [vmem:[%s3921_s0 + $0x1f8] sm:$0xff]  ;;  %1261 = vmatprep.mubr.bf16.mxu0 %v3925_v16  ;;  %v1929_v17 = vpack.i.bf16 %v2409_v5, %v2392_v1 }
   0xe   :  { %v77_v63 = vld [vmem:[%s3921_s0 + $0x1f0] sm:$0xff]  ;;  %v1919_v3 = vpack.i.bf16 %v61_v61, %v60_v60  ;;  %v79_v10 = vld [vmem:[%s3921_s0 + $0x200] sm:$0xff]  ;;  %v80_v11 = vld [vmem:[%s3921_s0 + $0x208] sm:$0xff]  ;;  %1302 = vmatprep.mubr.bf16.mxu1 %v3925_v16  ;;  %2294 = vset.pattern.permute.xlu0 %v3925_v16 }
   0xf   :  { %v1914_v7 = vpack.i.bf16 %v78_v0, %v77_v63  ;;  %v41_v1 = vld [vmem:[%s3921_s0 + $0xd0] sm:$0xff]  ;;  %v42_v5 = vld [vmem:[%s3921_s0 + $0xd8] sm:$0xff]  ;;  %v84_v55 = vld [vmem:[%s3921_s0 + $0x228] sm:$0xff] }
  0x10   :  { %1760 = vrot.lane.b32.xlu1 %v1759_v22, %s2358_s28  ;;  %v1924_v22 = vpack.i.bf16 %v80_v11, %v79_v10  ;;  %v43_v63 = vld [vmem:[%s3921_s0 + $0xe0] sm:$0xff]  ;;  %v44_v0 = vld [vmem:[%s3921_s0 + $0xe8] sm:$0xff]  ;;  %v45_v10 = vld [vmem:[%s3921_s0 + $0xf0] sm:$0xff] }
  0x11   :  { %1755 = vrot.lane.b32.xlu0 %v1754_v23, %s2358_s28  ;;  %v39_v23 = vld [vmem:[%s3921_s0 + $0xc0] sm:$0xff]  ;;  %v46_v11 = vld [vmem:[%s3921_s0 + $0xf8] sm:$0xff] }
  0x14   :  { %1770 = vrot.lane.b32.xlu1 %v1769_v28, %s2358_s28  ;;  %v40_v28 = vld [vmem:[%s3921_s0 + $0xc8] sm:$0xff] }
  0x15   :  { %1765 = vrot.lane.b32.xlu0 %v1764_v29, %s2358_s28  ;;  %v1939_v29 = vpack.i.bf16 %v2447_v14, %v2414_v6  ;;  %v62_v6 = vld [vmem:[%s3921_s0 + $0x178] sm:$0xff]  ;;  %v63_v14 = vld [vmem:[%s3921_s0 + $0x180] sm:$0xff] }
  0x16   :  { %v2699_v36 = vpack.i.bf16 %v63_v14, %v62_v6 }
  0x18   :  { %1780 = vrot.lane.b32.xlu1 %v1779_v34, %s2359_s16 }
  0x19   :  { %1775 = vrot.lane.b32.xlu0 %v1774_v35, %s2359_s16 }
  0x1c   :  { %1790 = vrot.lane.b32.xlu1 %v1789_v40, %s2359_s16 }
  0x1d   :  { %1785 = vrot.lane.b32.xlu0 %v1784_v41, %s2359_s16 }
  0x20   :  { %1800 = vrot.lane.b32.xlu1 %v1799_v44, %s2359_s16 }
  0x21   :  { %1795 = vrot.lane.b32.xlu0 %v1794_v45, %s2359_s16 }
  0x24   :  { %1810 = vrot.lane.b32.xlu1 %v1809_v48, %s2359_s16 }
  0x25   :  { %1805 = vrot.lane.b32.xlu0 %v1804_v49, %s2359_s16 }
  0x28   :  { %1820 = vrot.lane.b32.xlu1 %v1819_v52, %s2359_s16 }
  0x29   :  { %1815 = vrot.lane.b32.xlu0 %v1814_v53, %s2359_s16 }
  0x2c   :  { %1830 = vrot.lane.b32.xlu1 %v1779_v34, %s2360_s30 }
  0x2d   :  { %1825 = vrot.lane.b32.xlu0 %v1774_v35, %s2360_s30 }
  0x30   :  { %1840 = vrot.lane.b32.xlu1 %v1789_v40, %s2360_s30 }
  0x31   :  { %1835 = vrot.lane.b32.xlu0 %v1784_v41, %s2360_s30 }
  0x34   :  { %1850 = vrot.lane.b32.xlu1 %v1799_v44, %s2360_s30  ;;  %v81_v44 = vld [vmem:[%s3921_s0 + $0x210] sm:$0xff] }
  0x35   :  { %1845 = vrot.lane.b32.xlu0 %v1794_v45, %s2360_s30 }
  0x38   :  { %1860 = vrot.lane.b32.xlu1 %v1809_v48, %s2360_s30 }
  0x39   :  { %1855 = vrot.lane.b32.xlu0 %v1804_v49, %s2360_s30 }
  0x3c   :  { %1870 = vrot.lane.b32.xlu1 %v1819_v52, %s2360_s30 }
  0x3d   :  { %1865 = vrot.lane.b32.xlu0 %v1814_v53, %s2360_s30  ;;  %v83_v53 = vld [vmem:[%s3921_s0 + $0x220] sm:$0xff] }
  0x3e   :  { %v2741_v60 = vpack.i.bf16 %v84_v55, %v83_v53 }
  0x40   :  { %1880 = vrot.lane.b32.xlu1 %v1779_v34, %s2358_s28  ;;  %v1934_v34 = vpack.i.bf16 %v40_v28, %v39_v23 }
  0x41   :  { %1875 = vrot.lane.b32.xlu0 %v1774_v35, %s2358_s28  ;;  %v1944_v35 = vpack.i.bf16 %v42_v5, %v41_v1 }
  0x44   :  { %1890 = vrot.lane.b32.xlu1 %v1789_v40, %s2358_s28  ;;  %v64_v40 = vld [vmem:[%s3921_s0 + $0x188] sm:$0xff] }
  0x45   :  { %1885 = vrot.lane.b32.xlu0 %v1784_v41, %s2358_s28  ;;  %v65_v41 = vld [vmem:[%s3921_s0 + $0x190] sm:$0xff] }
  0x48   :  { %1900 = vrot.lane.b32.xlu1 %v1804_v49, %s2358_s28  ;;  %v2720_v49 = vpack.i.bf16 %v65_v41, %v64_v40 }
  0x49   :  { %1895 = vrot.lane.b32.xlu0 %v1794_v45, %s2358_s28  ;;  %v82_v45 = vld [vmem:[%s3921_s0 + $0x218] sm:$0xff] }
  0x4a   :  { %v2723_v51 = vpack.i.bf16 %v82_v45, %v81_v44 }
  0x4c   :  { %1910 = vrot.lane.b32.xlu1 %v1909_v58, %s2359_s16 }
  0x4d   :  { %1905 = vrot.lane.b32.xlu0 %v1819_v52, %s2358_s28 }
  0x50   :  { %1920 = vrot.lane.b32.xlu1 %v1919_v3, %s2359_s16 }
  0x51   :  { %1915 = vrot.lane.b32.xlu0 %v1914_v7, %s2359_s16 }
  0x54   :  { %1930 = vrot.lane.b32.xlu1 %v1929_v17, %s2359_s16 }
  0x55   :  { %1925 = vrot.lane.b32.xlu0 %v1924_v22, %s2359_s16 }
  0x58   :  { %1940 = vrot.lane.b32.xlu1 %v1939_v29, %s2359_s16 }
  0x59   :  { %1935 = vrot.lane.b32.xlu0 %v1934_v34, %s2359_s16 }
  0x5c   :  { %1950 = vrot.lane.b32.xlu1 %v1909_v58, %s2360_s30 }
  0x5d   :  { %1945 = vrot.lane.b32.xlu0 %v1944_v35, %s2359_s16 }
  0x60   :  { %1960 = vrot.lane.b32.xlu1 %v1919_v3, %s2360_s30 }
  0x61   :  { %1955 = vrot.lane.b32.xlu0 %v1914_v7, %s2360_s30 }
  0x64   :  { %1970 = vrot.lane.b32.xlu1 %v1929_v17, %s2360_s30 }
  0x65   :  { %1965 = vrot.lane.b32.xlu0 %v1924_v22, %s2360_s30 }
  0x68   :  { %1980 = vrot.lane.b32.xlu1 %v1939_v29, %s2360_s30 }
  0x69   :  { %1975 = vrot.lane.b32.xlu0 %v1934_v34, %s2360_s30 }
  0x6c   :  { %1990 = vrot.lane.b32.xlu1 %v1909_v58, %s2358_s28  ;;  %v2039_v58 = vpack.i.bf16 %v2437_v12, %v2452_v15  ;;  %v2049_v12 = vpack.i.bf16 %v2473_v20, %v2442_v13  ;;  %v2758_v15 = vpack.i.bf16 %v44_v0, %v43_v63  ;;  %v2773_v13 = vpack.i.bf16 %v46_v11, %v45_v10 }
  0x6d   :  { %1985 = vrot.lane.b32.xlu0 %v1944_v35, %s2360_s30 }
  0x70   :  { %2000 = vrot.lane.b32.xlu1 %v1919_v3, %s2358_s28 }
  0x71   :  { %1995 = vrot.lane.b32.xlu0 %v1914_v7, %s2358_s28 }
  0x74   :  { %2010 = vrot.lane.b32.xlu1 %v1934_v34, %s2358_s28 }
  0x75   :  { %2005 = vrot.lane.b32.xlu0 %v1924_v22, %s2358_s28 }
  0x76   :  { %v2708_v43 = vpop.permute.xlu1 %1735 }
  0x77   :  { %v2716_v48 = vpop.permute.xlu0 %1725 }
  0x78   :  { %2020 = vrot.lane.b32.xlu1 %v2699_v36, %s2359_s16 }
  0x79   :  { %2015 = vrot.lane.b32.xlu0 %v1944_v35, %s2358_s28 }
  0x7a   :  { %v2725_v52 = vpop.permute.xlu1 %1740 }
  0x7b   :  { %v2733_v56 = vpop.permute.xlu0 %1730 }
  0x7c   :  { %2030 = vrot.lane.b32.xlu1 %v2720_v49, %s2359_s16 }
  0x7d   :  { %2025 = vrot.lane.b32.xlu0 %v2723_v51, %s2359_s16 }
  0x7e   :  { %v2743_v61 = vpop.permute.xlu1 %1750 }
  0x7f   :  { %v2751_v3 = vpop.permute.xlu0 %1745 }
  0x80   :  { %2040 = vrot.lane.b32.xlu1 %v2039_v58, %s2359_s16 }
  0x81   :  { %2035 = vrot.lane.b32.xlu0 %v2741_v60, %s2359_s16 }
  0x82   :  { %v2760_v7 = vpop.permute.xlu1 %1760 }
  0x83   :  { %3940 = vst [vmem:[#allocation2_spill] sm:$0xff] %v2760_v7  ;;  %v2768_v17 = vpop.permute.xlu0 %1755 }
  0x84   :  { %3941 = vst [vmem:[#allocation3_spill] sm:$0xff] %v2768_v17  ;;  %2050 = vrot.lane.b32.xlu1 %v2049_v12, %s2359_s16 }
  0x85   :  { %2045 = vrot.lane.b32.xlu0 %v2758_v15, %s2359_s16 }
  0x86   :  { %v2775_v20 = vpop.permute.xlu1 %1770 }
  0x87   :  { %3942 = vst [vmem:[#allocation4_spill] sm:$0xff] %v2775_v20  ;;  %v2777_v22 = vpop.permute.xlu0 %1765 }
  0x88   :  { %3943 = vst [vmem:[#allocation5_spill] sm:$0xff] %v2777_v22  ;;  %2060 = vrot.lane.b32.xlu1 %v2699_v36, %s2360_s30 }
  0x89   :  { %2055 = vrot.lane.b32.xlu0 %v2773_v13, %s2359_s16 }
  0x8a   :  { %v1781_v23 = vpop.permute.xlu1 %1780 }
  0x8b   :  { %v1783_v28 = vunpack.i.h.bf16 %v1781_v23  ;;  %v1782_v29 = vunpack.i.l.bf16 %v1781_v23  ;;  %v1776_v34 = vpop.permute.xlu0 %1775 }
  0x8c   :  { %v1778_v1 = vunpack.i.h.bf16 %v1776_v34  ;;  %v1777_v5 = vunpack.i.l.bf16 %v1776_v34  ;;  %2070 = vrot.lane.b32.xlu1 %v2720_v49, %s2360_s30 }
  0x8d   :  { %2065 = vrot.lane.b32.xlu0 %v2723_v51, %s2360_s30  ;;  %v977_v35 = vsel %vm921_vm0, %v1782_v29, %v1783_v28 }
  0x8e   :  { %v2788_v6 = vpop.permute.xlu1 %1790  ;;  %v959_v14 = vsel %vm921_vm0, %v1777_v5, %v1778_v1 }
  0x8f   :  { %v1793_v40 = vunpack.i.h.bf16 %v2788_v6  ;;  %v1786_v41 = vpop.permute.xlu0 %1785  ;;  %v1204_v44 = vpack.c.bf16 %v977_v35, %v959_v14  ;;  %v3928_v55 = vunpack.i.l.bf16 %v2788_v6 }
  0x90   :  { %v1787_v45 = vunpack.i.l.bf16 %v1786_v41  ;;  %2080 = vrot.lane.b32.xlu1 %v2039_v58, %s2360_s30  ;;  %v1788_v63 = vunpack.i.h.bf16 %v1786_v41 }
  0x91   :  { %2075 = vrot.lane.b32.xlu0 %v2741_v60, %s2360_s30  ;;  %1229 = vmatprep.subr.bf16.mxu0 %v1204_v44  ;;  %v976_v53 = vsel %vm921_vm0, %v1793_v40, %v1782_v29 }
  0x92   :  { %v1801_v0 = vpop.permute.xlu1 %1800  ;;  %v958_v10 = vsel %vm921_vm0, %v1787_v45, %v1777_v5  ;;  %v961_v5 = vsel %vm921_vm0, %v1788_v63, %v3928_v55  ;;  %v960_v41 = vsel %vm921_vm0, %v1778_v1, %v1788_v63 }
  0x93   :  { %v2798_v11 = vpop.permute.xlu0 %1795  ;;  %v1203_v23 = vpack.c.bf16 %v976_v53, %v958_v10  ;;  %v1803_v34 = vunpack.i.h.bf16 %v1801_v0  ;;  %v1802_v35 = vunpack.i.l.bf16 %v1801_v0 }
  0x94   :  { %v3929_v14 = vunpack.i.h.bf16 %v2798_v11  ;;  %v1797_v58 = vunpack.i.l.bf16 %v2798_v11  ;;  %2090 = vrot.lane.b32.xlu1 %v2049_v12, %s2360_s30 }
  0x95   :  { %2085 = vrot.lane.b32.xlu0 %v2758_v15, %s2360_s30  ;;  %1230 = vmatpush1.bf16.msra.mxu0 %v1203_v23  ;;  %v923_v23 = vsel %vm921_vm0, %v1802_v35, %v1803_v34 }
  0x96   :  { %v1811_v29 = vpop.permute.xlu1 %1810  ;;  %v979_v40 = vsel %vm921_vm0, %v1797_v58, %v3929_v14  ;;  %v978_v44 = vsel %vm921_vm0, %v1783_v28, %v1797_v58 }
  0x97   :  { %v1806_v45 = vpop.permute.xlu0 %1805  ;;  %v1206_v53 = vpack.c.bf16 %v979_v40, %v961_v5  ;;  %v1205_v12 = vpack.c.bf16 %v978_v44, %v960_v41  ;;  %v1813_v16 = vunpack.i.h.bf16 %v1811_v29  ;;  %v1812_v62 = vunpack.i.l.bf16 %v1811_v29 }
  0x98   :  { %v1808_v0 = vunpack.i.h.bf16 %v1806_v45  ;;  %v1807_v10 = vunpack.i.l.bf16 %v1806_v45  ;;  %2100 = vrot.lane.b32.xlu1 %v2699_v36, %s2358_s28 }
  0x99   :  { %2095 = vrot.lane.b32.xlu0 %v2773_v13, %s2360_s30  ;;  %1270 = vmatprep.subr.bf16.mxu1 %v1206_v53  ;;  %v924_v44 = vsel %vm921_vm0, %v1803_v34, %v1813_v16  ;;  %v66_v53 = vld [vmem:[%s3921_s0 + $0x198] sm:$0xff] }
  0x9a   :  { %1271 = vmatpush1.bf16.msra.mxu1 %v1205_v12  ;;  %v2818_v1 = vpop.permute.xlu1 %1820  ;;  %v941_v28 = vsel %vm921_vm0, %v1807_v10, %v1808_v0 }
  0x9b   :  { %v3927_v63 = vunpack.i.h.bf16 %v2818_v1  ;;  %v1822_v58 = vunpack.i.l.bf16 %v2818_v1  ;;  %v2823_v5 = vpop.permute.xlu0 %1815  ;;  %v1185_v36 = vpack.c.bf16 %v941_v28, %v923_v23 }
  0x9c   :  { %v1818_v40 = vunpack.i.h.bf16 %v2823_v5  ;;  %v3932_v41 = vunpack.i.l.bf16 %v2823_v5  ;;  %2110 = vrot.lane.b32.xlu1 %v2720_v49, %s2358_s28  ;;  %v67_v49 = vld [vmem:[%s3921_s0 + $0x1a0] sm:$0xff] }
  0x9d   :  { %2105 = vrot.lane.b32.xlu0 %v2723_v51, %s2358_s28  ;;  %1231 = vmatprep.subr.bf16.mxu0 %v1185_v36  ;;  %v943_v29 = vsel %vm921_vm0, %v1822_v58, %v3927_v63  ;;  %v942_v45 = vsel %vm921_vm0, %v1808_v0, %v1822_v58  ;;  %v922_v51 = vsel %vm921_vm0, %v1812_v62, %v1802_v35  ;;  %v69_v35 = vld [vmem:[%s3921_s0 + $0x1b0] sm:$0xff] }
  0x9e   :  { %v1831_v12 = vpop.permute.xlu1 %1830  ;;  %v940_v23 = vsel %vm921_vm0, %v1818_v40, %v1807_v10  ;;  %v925_v34 = vsel %vm921_vm0, %v1813_v16, %v3932_v41  ;;  %v1186_v28 = vpack.c.bf16 %v942_v45, %v924_v44  ;;  %v2849_v57 = vpack.i.bf16 %v67_v49, %v66_v53  ;;  %v68_v16 = vld [vmem:[%s3921_s0 + $0x1a8] sm:$0xff] }
  0x9f   :  { %v1833_v0 = vunpack.i.h.bf16 %v1831_v12  ;;  %v1832_v58 = vunpack.i.l.bf16 %v1831_v12  ;;  %v1826_v36 = vpop.permute.xlu0 %1825  ;;  %v1184_v63 = vpack.c.bf16 %v940_v23, %v922_v51  ;;  %v1187_v55 = vpack.c.bf16 %v943_v29, %v925_v34 }
  0xa0   :  { %v1828_v14 = vunpack.i.h.bf16 %v1826_v36  ;;  %v1827_v59 = vunpack.i.l.bf16 %v1826_v36  ;;  %2120 = vrot.lane.b32.xlu1 %v2758_v15, %s2358_s28  ;;  %v88_v36 = vld [vmem:[%s3921_s0 + $0x248] sm:$0xff] }
  0xa1   :  { %2115 = vrot.lane.b32.xlu0 %v2741_v60, %s2358_s28  ;;  %1232 = vmatpush1.bf16.msra.mxu0 %v1184_v63  ;;  %v676_v62 = vsel %vm620_vm1, %v1832_v58, %v1833_v0  ;;  %v85_v60 = vld [vmem:[%s3921_s0 + $0x230] sm:$0xff]  ;;  %v86_v63 = vld [vmem:[%s3921_s0 + $0x238] sm:$0xff] }
  0xa2   :  { %1272 = vmatprep.subr.bf16.mxu1 %v1187_v55  ;;  %v2860_v10 = vpop.permute.xlu1 %1840  ;;  %v658_v15 = vsel %vm620_vm1, %v1827_v59, %v1828_v14  ;;  %v2872_v55 = vpack.i.bf16 %v69_v35, %v68_v16  ;;  %v2876_v53 = vpack.i.bf16 %v86_v63, %v85_v60 }
  0xa3   :  { %1273 = vmatpush1.bf16.msra.mxu1 %v1186_v28  ;;  %v1843_v40 = vunpack.i.h.bf16 %v2860_v10  ;;  %v1836_v29 = vpop.permute.xlu0 %1835  ;;  %v1166_v44 = vpack.c.bf16 %v676_v62, %v658_v15  ;;  %v3931_v12 = vunpack.i.l.bf16 %v2860_v10  ;;  %v87_v28 = vld [vmem:[%s3921_s0 + $0x240] sm:$0xff] }
  0xa4   :  { %v1837_v45 = vunpack.i.l.bf16 %v1836_v29  ;;  %2130 = vrot.lane.b32.xlu1 %v2849_v57, %s2359_s16  ;;  %v1838_v51 = vunpack.i.h.bf16 %v1836_v29  ;;  %v2899_v60 = vpack.i.bf16 %v88_v36, %v87_v28 }
  0xa5   :  { %2125 = vrot.lane.b32.xlu0 %v2773_v13, %s2358_s28  ;;  %1233 = vmatprep.subr.bf16.mxu0 %v1166_v44  ;;  %v675_v49 = vsel %vm620_vm1, %v1843_v40, %v1832_v58  ;;  %v2891_v58 = vpack.i.bf16 %v2463_v18, %v2478_v21  ;;  %v47_v44 = vld [vmem:[%s3921_s0 + $0x100] sm:$0xff] }
  0xa6   :  { %v1851_v23 = vpop.permute.xlu1 %1850  ;;  %v657_v34 = vsel %vm620_vm1, %v1837_v45, %v1827_v59  ;;  %v660_v18 = vsel %vm620_vm1, %v1838_v51, %v3931_v12  ;;  %v659_v40 = vsel %vm620_vm1, %v1828_v14, %v1838_v51  ;;  %v48_v45 = vld [vmem:[%s3921_s0 + $0x108] sm:$0xff]  ;;  %v2919_v14 = vpack.i.bf16 %v2499_v26, %v2468_v19 }
  0xa7   :  { %v2887_v13 = vpop.permute.xlu0 %1845  ;;  %v1165_v62 = vpack.c.bf16 %v675_v49, %v657_v34  ;;  %v1853_v16 = vunpack.i.h.bf16 %v1851_v23  ;;  %v1852_v35 = vunpack.i.l.bf16 %v1851_v23 }
  0xa8   :  { %v3930_v15 = vunpack.i.h.bf16 %v2887_v13  ;;  %v1847_v59 = vunpack.i.l.bf16 %v2887_v13  ;;  %2140 = vrot.lane.b32.xlu1 %v2872_v55, %s2359_s16 }
  0xa9   :  { %2135 = vrot.lane.b32.xlu0 %v2876_v53, %s2359_s16  ;;  %1234 = vmatpush1.bf16.msra.mxu0 %v1165_v62  ;;  %v2924_v62 = vpack.i.bf16 %v48_v45, %v47_v44 }
  0xaa   :  { %v1861_v63 = vpop.permute.xlu1 %1860  ;;  %v678_v21 = vsel %vm620_vm1, %v1847_v59, %v3930_v15  ;;  %v677_v29 = vsel %vm620_vm1, %v1833_v0, %v1847_v59  ;;  %v622_v0 = vsel %vm620_vm1, %v1852_v35, %v1853_v16  ;;  %v49_v59 = vld [vmem:[%s3921_s0 + $0x110] sm:$0xff] }
  0xab   :  { %v1856_v49 = vpop.permute.xlu0 %1855  ;;  %v1168_v23 = vpack.c.bf16 %v678_v21, %v660_v18  ;;  %v1167_v34 = vpack.c.bf16 %v677_v29, %v659_v40  ;;  %v1863_v51 = vunpack.i.h.bf16 %v1861_v63  ;;  %v50_v18 = vld [vmem:[%s3921_s0 + $0x118] sm:$0xff]  ;;  %v1862_v21 = vunpack.i.l.bf16 %v1861_v63 }
  0xac   :  { %v1858_v28 = vunpack.i.h.bf16 %v1856_v49  ;;  %v1857_v36 = vunpack.i.l.bf16 %v1856_v49  ;;  %2150 = vrot.lane.b32.xlu1 %v2891_v58, %s2359_s16  ;;  %v2943_v63 = vpack.i.bf16 %v50_v18, %v49_v59 }
  0xad   :  { %2145 = vrot.lane.b32.xlu0 %v2899_v60, %s2359_s16  ;;  %1274 = vmatprep.subr.bf16.mxu1 %v1168_v23  ;;  %v623_v15 = vsel %vm620_vm1, %v1853_v16, %v1863_v51  ;;  %v621_v12 = vsel %vm620_vm1, %v1862_v21, %v1852_v35  ;;  %v1732_v21 = vunpack.i.l.bf16 %v2733_v56 }
  0xae   :  { %1275 = vmatpush1.bf16.msra.mxu1 %v1167_v34  ;;  %v2932_v19 = vpop.permute.xlu1 %1870  ;;  %v640_v26 = vsel %vm620_vm1, %v1857_v36, %v1858_v28 }
  0xaf   :  { %v3936_v40 = vunpack.i.h.bf16 %v2932_v19  ;;  %v1872_v29 = vunpack.i.l.bf16 %v2932_v19  ;;  %v2937_v44 = vpop.permute.xlu0 %1865  ;;  %v1147_v45 = vpack.c.bf16 %v640_v26, %v622_v0 }
  0xb0   :  { %v1868_v49 = vunpack.i.h.bf16 %v2937_v44  ;;  %v3937_v23 = vunpack.i.l.bf16 %v2937_v44  ;;  %2160 = vrot.lane.b32.xlu1 %v2919_v14, %s2359_s16 }
  0xb1   :  { %2155 = vrot.lane.b32.xlu0 %v2924_v62, %s2359_s16  ;;  %1235 = vmatprep.subr.bf16.mxu0 %v1147_v45  ;;  %v642_v34 = vsel %vm620_vm1, %v1872_v29, %v3936_v40  ;;  %v641_v0 = vsel %vm620_vm1, %v1858_v28, %v1872_v29  ;;  %v1728_v28 = vunpack.i.h.bf16 %v2716_v48 }
  0xb2   :  { %v1881_v26 = vpop.permute.xlu1 %1880  ;;  %v639_v41 = vsel %vm620_vm1, %v1868_v49, %v1857_v36  ;;  %v624_v59 = vsel %vm620_vm1, %v1863_v51, %v3937_v23  ;;  %v1148_v18 = vpack.c.bf16 %v641_v0, %v623_v15  ;;  %v1727_v15 = vunpack.i.l.bf16 %v2716_v48 }
  0xb3   :  { %v1883_v54 = vunpack.i.h.bf16 %v1881_v26  ;;  %v1882_v45 = vunpack.i.l.bf16 %v1881_v26  ;;  %v1876_v22 = vpop.permute.xlu0 %1875  ;;  %v1146_v7 = vpack.c.bf16 %v639_v41, %v621_v12  ;;  %v1149_v17 = vpack.c.bf16 %v642_v34, %v624_v59 }
  0xb4   :  { %v1878_v40 = vunpack.i.h.bf16 %v1876_v22  ;;  %v1877_v16 = vunpack.i.l.bf16 %v1876_v22  ;;  %2170 = vrot.lane.b32.xlu1 %v2849_v57, %s2360_s30  ;;  %v320_v26 = vsel %vm319_vm2, %v1727_v15, %v1728_v28  ;;  %v1773_v59 = vunpack.i.h.bf16 %v2775_v20 }
  0xb5   :  { %2165 = vrot.lane.b32.xlu0 %v2943_v63, %s2359_s16  ;;  %1236 = vmatpush1.bf16.msra.mxu0 %v1146_v7  ;;  %v375_v35 = vsel %vm319_vm2, %v1882_v45, %v1883_v54  ;;  %v1733_v15 = vunpack.i.h.bf16 %v2733_v56 }
  0xb6   :  { %1276 = vmatprep.subr.bf16.mxu1 %v1149_v17  ;;  %v2964_v36 = vpop.permute.xlu1 %1890  ;;  %v357_v41 = vsel %vm319_vm2, %v1877_v16, %v1878_v40 }
  0xb7   :  { %1277 = vmatpush1.bf16.msra.mxu1 %v1148_v18  ;;  %v1893_v22 = vunpack.i.h.bf16 %v2964_v36  ;;  %v1886_v12 = vpop.permute.xlu0 %1885  ;;  %v1128_v51 = vpack.c.bf16 %v375_v35, %v357_v41  ;;  %v3938_v7 = vunpack.i.l.bf16 %v2964_v36 }
  0xb8   :  { %v1888_v29 = vunpack.i.h.bf16 %v1886_v12  ;;  %v1887_v49 = vunpack.i.l.bf16 %v1886_v12  ;;  %2180 = vrot.lane.b32.xlu1 %v2872_v55, %s2360_s30 }
  0xb9   :  { %2175 = vrot.lane.b32.xlu0 %v2876_v53, %s2360_s30  ;;  %1237 = vmatprep.subr.bf16.mxu0 %v1128_v51  ;;  %v374_v48 = vsel %vm319_vm2, %v1893_v22, %v1882_v45  ;;  %v321_v45 = vsel %vm319_vm2, %v1728_v28, %v1732_v21 }
  0xba   :  { %v1901_v34 = vpop.permute.xlu1 %1900  ;;  %v356_v0 = vsel %vm319_vm2, %v1887_v49, %v1877_v16  ;;  %v359_v16 = vsel %vm319_vm2, %v1888_v29, %v3938_v7 }
  0xbb   :  { %v1903_v18 = vunpack.i.h.bf16 %v1901_v34  ;;  %v1902_v35 = vunpack.i.l.bf16 %v1901_v34  ;;  %v2979_v41 = vpop.permute.xlu0 %1895  ;;  %v1127_v12 = vpack.c.bf16 %v374_v48, %v356_v0  ;;  %v358_v48 = vsel %vm319_vm2, %v1878_v40, %v1888_v29 }
  0xbc   :  { %v1898_v23 = vunpack.i.h.bf16 %v2979_v41  ;;  %v1897_v51 = vunpack.i.l.bf16 %v2979_v41  ;;  %2190 = vrot.lane.b32.xlu1 %v2891_v58, %s2360_s30  ;;  %v3944_v40 = vunpack.i.l.bf16 %v2708_v43 }
  0xbd   :  { %2185 = vrot.lane.b32.xlu0 %v2899_v60, %s2360_s30  ;;  %1238 = vmatpush1.bf16.msra.mxu0 %v1127_v12  ;;  %v339_v22 = vsel %vm319_vm2, %v1902_v35, %v1903_v18  ;;  %v338_v49 = vsel %vm319_vm2, %v1773_v59, %v1902_v35 }
  0xbe   :  { %v2995_v34 = vpop.permute.xlu1 %1910  ;;  %v1109_v58 = vpack.c.bf16 %v339_v22, %v321_v45  ;;  %v377_v28 = vsel %vm319_vm2, %v1897_v51, %v1898_v23  ;;  %v1108_v0 = vpack.c.bf16 %v338_v49, %v320_v26  ;;  %v376_v56 = vsel %vm319_vm2, %v1883_v54, %v1897_v51 }
  0xbf   :  { %v3001_v7 = vpop.permute.xlu0 %1905  ;;  %v1130_v17 = vpack.c.bf16 %v377_v28, %v359_v16  ;;  %v1129_v12 = vpack.c.bf16 %v376_v56, %v358_v48  ;;  %v323_v54 = vsel %vm319_vm2, %v1733_v15, %v3944_v40  ;;  %v1913_v29 = vunpack.i.h.bf16 %v2995_v34 }
  0xc0   :  { %v1908_v20 = vunpack.i.h.bf16 %v3001_v7  ;;  %v1907_v59 = vunpack.i.l.bf16 %v3001_v7  ;;  %2200 = vrot.lane.b32.xlu1 %v2919_v14, %s2360_s30  ;;  %1239 = vmatprep.subr.bf16.mxu0 %v1109_v58  ;;  %v322_v14 = vsel %vm319_vm2, %v1732_v21, %v1733_v15  ;;  %v1071_v49 = vpack.c.bf16 %v2577_v46, %v2404_v4 }
  0xc1   :  { %2195 = vrot.lane.b32.xlu0 %v2924_v62, %s2360_s30  ;;  %1278 = vmatprep.subr.bf16.mxu1 %v1130_v17  ;;  %v3945_v17 = vpack.c.bf16 %v2515_v30, %v2525_v32  ;;  %v1912_v48 = vunpack.i.l.bf16 %v2995_v34  ;;  %v3946_v30 = vpack.c.bf16 %v2544_v37, %v2549_v38  ;;  %v1070_v4 = vpack.c.bf16 %v2494_v25, %v2397_v2 }
  0xc2   :  { %1240 = vmatpush1.bf16.msra.mxu0 %v1108_v0  ;;  %1279 = vmatpush1.bf16.msra.mxu1 %v1129_v12  ;;  %v3013_v26 = vpop.permute.xlu1 %1920  ;;  %v341_v35 = vsel %vm319_vm2, %v1907_v59, %v1908_v20  ;;  %v340_v51 = vsel %vm319_vm2, %v1903_v18, %v1907_v59  ;;  %v3947_v37 = vpack.c.bf16 %v2564_v42, %v2554_v39  ;;  %v3948_v2 = vunpack.i.h.bf16 %v2798_v11  ;;  %v70_v39 = vld [vmem:[%s3921_s0 + $0x1b8] sm:$0xff] }
  0xc3   :  { %v1916_v45 = vpop.permute.xlu0 %1915  ;;  %1241 = vmatprep.subr.bf16.mxu0 %v3945_v17  ;;  %v1111_v16 = vpack.c.bf16 %v341_v35, %v323_v54  ;;  %v1110_v22 = vpack.c.bf16 %v340_v51, %v322_v14  ;;  %v1923_v21 = vunpack.i.h.bf16 %v3013_v26  ;;  %v963_v46 = vsel %vm921_vm0, %v1912_v48, %v1913_v29  ;;  %v3080_v35 = vld [vmem:[%s3922_s1] sm:$0x3] }
  0xc4   :  { %v1918_v58 = vunpack.i.h.bf16 %v1916_v45  ;;  %v1917_v28 = vunpack.i.l.bf16 %v1916_v45  ;;  %2210 = vrot.lane.b32.xlu1 %v2849_v57, %s2358_s28  ;;  %v1922_v18 = vunpack.i.l.bf16 %v3013_v26  ;;  %v1073_v38 = vpack.c.bf16 %v2593_v50, %v2426_v9  ;;  %v71_v9 = vld [vmem:[%s3921_s0 + $0x1c0] sm:$0xff] }
  0xc5   :  { %2205 = vrot.lane.b32.xlu0 %v2943_v63, %s2360_s30  ;;  %1280 = vmatprep.subr.bf16.mxu1 %v1111_v16  ;;  %v1072_v11 = vpack.c.bf16 %v2582_v47, %v2421_v8  ;;  %v3949_v59 = vunpack.i.l.bf16 %v2788_v6  ;;  %v3950_v40 = vpack.c.bf16 %v2520_v31, %v2530_v33  ;;  %v3088_v31 = vpack.i.bf16 %v71_v9, %v70_v39 }
  0xc6   :  { %1242 = vmatpush1.bf16.msra.mxu0 %v3946_v30  ;;  %1281 = vmatpush1.bf16.msra.mxu1 %v1110_v22  ;;  %v3034_v32 = vpop.permute.xlu1 %1930  ;;  %v981_v57 = vsel %vm921_vm0, %v1917_v28, %v1918_v58  ;;  %v980_v25 = vsel %vm921_vm0, %v3948_v2, %v1917_v28  ;;  %v965_v8 = vsel %vm921_vm0, %v1922_v18, %v1923_v21  ;;  %v3951_v17 = vunpack.i.l.bf16 %v2823_v5 }
  0xc7   :  { %v3043_v15 = vpop.permute.xlu0 %1925  ;;  %1243 = vmatprep.subr.bf16.mxu0 %v1071_v49  ;;  %1282 = vmatprep.subr.bf16.mxu1 %v3947_v37  ;;  %v1933_v0 = vunpack.i.h.bf16 %v3034_v32  ;;  %v1932_v42 = vunpack.i.l.bf16 %v3034_v32  ;;  %v1208_v50 = vpack.c.bf16 %v981_v57, %v963_v46  ;;  %v2249_v49 = vpack.i.bf16 %v2489_v24, %v2504_v27  ;;  %v90_v24 = vld [vmem:[%s3921_s0 + $0x258] sm:$0xff] }
  0xc8   :  { %v1928_v56 = vunpack.i.h.bf16 %v3043_v15  ;;  %v1927_v12 = vunpack.i.l.bf16 %v3043_v15  ;;  %2220 = vrot.lane.b32.xlu1 %v2872_v55, %s2358_s28  ;;  %v962_v55 = vsel %vm921_vm0, %v3949_v59, %v1912_v48  ;;  %v964_v27 = vsel %vm921_vm0, %v1913_v29, %v1922_v18 }
  0xc9   :  { %2215 = vrot.lane.b32.xlu0 %v2876_v53, %s2358_s28  ;;  %v1207_v6 = vpack.c.bf16 %v980_v25, %v962_v55  ;;  %v927_v45 = vsel %vm921_vm0, %v1932_v42, %v1933_v0  ;;  %v926_v16 = vsel %vm921_vm0, %v3951_v17, %v1932_v42  ;;  %v3953_v46 = vmov 0  }
  0xca   :  { %1244 = vmatpush1.bf16.msra.mxu0 %v1070_v4  ;;  %1283 = vmatpush1.bf16.msra.mxu1 %v3950_v40  ;;  %v3075_v54 = vpop.permute.xlu1 %1940  ;;  %v983_v47 = vsel %vm921_vm0, %v1927_v12, %v1928_v56  ;;  %v982_v48 = vsel %vm921_vm0, %v1918_v58, %v1927_v12 }
  0xcb   :  { %v1936_v53 = vpop.permute.xlu0 %1935  ;;  %1311 = vmatprep.subr.bf16.mxu0 %v1208_v50  ;;  %1284 = vmatprep.subr.bf16.mxu1 %v1073_v38  ;;  %v1943_v33 = vunpack.i.h.bf16 %v3075_v54  ;;  %v1210_v22 = vpack.c.bf16 %v983_v47, %v965_v8  ;;  %v1942_v28 = vunpack.i.l.bf16 %v3075_v54  ;;  %v1209_v29 = vpack.c.bf16 %v982_v48, %v964_v27 }
  0xcc   :  { %v1938_v14 = vunpack.i.h.bf16 %v1936_v53  ;;  %v1937_v51 = vunpack.i.l.bf16 %v1936_v53  ;;  %2230 = vrot.lane.b32.xlu1 %v2924_v62, %s2358_s28  ;;  %v3952_v62 = vunpack.i.h.bf16 %v2818_v1 }
  0xcd   :  { %2225 = vrot.lane.b32.xlu0 %v2899_v60, %s2358_s28  ;;  %1262 = vmatmul.mubr.bf16.vlgmr.msra.gmra.mxu0 %v3080_v35  ;;  %v89_v60 = vld [vmem:[%s3921_s0 + $0x250] sm:$0xff]  ;;  %v929_v34 = vsel %vm921_vm0, %v1942_v28, %v1943_v33  ;;  %v928_v2 = vsel %vm921_vm0, %v1933_v0, %v1942_v28  ;;  %v52_v0 = vld [vmem:[%s3921_s0 + $0x128] sm:$0xff] }
  0xce   :  { %v944_v30 = vsel %vm921_vm0, %v3952_v62, %v1937_v51  ;;  %1285 = vmatpush1.bf16.msra.mxu1 %v1072_v11  ;;  %1312 = vmatpush1.bf16.msra.mxu0 %v1207_v6  ;;  %v1951_v5 = vpop.permute.xlu1 %1950  ;;  %v945_v32 = vsel %vm921_vm0, %v1937_v51, %v1938_v14  ;;  %v3129_v18 = vpack.i.bf16 %v90_v24, %v89_v60  ;;  %v3954_v6 = vunpack.i.l.bf16 %v2860_v10  ;;  %v2295_v10 = vld [vmem:[%s3921_s0 + $0x90] sm:$0xff]  ;;  %v2296_v28 = vld [vmem:[%s3921_s0 + $0x88] sm:$0xff] }
  0xcf   :  { %v1188_v1 = vpack.c.bf16 %v944_v30, %v926_v16  ;;  %v3117_v58 = vpop.permute.xlu0 %1945  ;;  %1352 = vmatprep.subr.bf16.mxu1 %v1210_v22  ;;  %v1189_v4 = vpack.c.bf16 %v945_v32, %v927_v45  ;;  %1343 = vmatprep.mubr.bf16.mxu0 %v3953_v46  ;;  %v1953_v57 = vunpack.i.h.bf16 %v1951_v5  ;;  %v1952_v25 = vunpack.i.l.bf16 %v1951_v5 }
  0xd0   :  { %v1948_v37 = vunpack.i.h.bf16 %v3117_v58  ;;  %v1947_v38 = vunpack.i.l.bf16 %v3117_v58  ;;  %2240 = vrot.lane.b32.xlu1 %v3088_v31, %s2359_s16  ;;  %v3955_v51 = vunpack.i.h.bf16 %v2887_v13  ;;  %v2269_v62 = vpack.i.bf16 %v2295_v10, %v2296_v28 }
  0xd1   :  { %2235 = vrot.lane.b32.xlu0 %v2943_v63, %s2358_s28  ;;  %1313 = vmatprep.subr.bf16.mxu0 %v1189_v4  ;;  %v51_v63 = vld [vmem:[%s3921_s0 + $0x120] sm:$0xff]  ;;  %v662_v8 = vsel %vm620_vm1, %v1952_v25, %v1953_v57  ;;  %v661_v53 = vsel %vm620_vm1, %v3954_v6, %v1952_v25 }
  0xd2   :  { %v946_v12 = vsel %vm921_vm0, %v1938_v14, %v1947_v38  ;;  %1303 = vmatmul.mubr.bf16.vlgmr.msra.gmra.mxu1 %v3080_v35  ;;  %1314 = vmatpush1.bf16.msra.mxu0 %v1188_v1  ;;  %v3134_v39 = vpop.permute.xlu1 %1960  ;;  %v947_v9 = vsel %vm921_vm0, %v1947_v38, %v1948_v37  ;;  %v3151_v47 = vpack.i.bf16 %v52_v0, %v51_v63 }
  0xd3   :  { %v1190_v42 = vpack.c.bf16 %v946_v12, %v928_v2  ;;  %1353 = vmatpush1.bf16.msra.mxu1 %v1209_v29  ;;  %v1956_v50 = vpop.permute.xlu0 %1955  ;;  %v1191_v11 = vpack.c.bf16 %v947_v9, %v929_v34  ;;  %1384 = vmatprep.mubr.bf16.mxu1 %v3953_v46  ;;  %v1963_v59 = vunpack.i.h.bf16 %v3134_v39  ;;  %v1962_v14 = vunpack.i.l.bf16 %v3134_v39 }
  0xd4   :  { %v1958_v55 = vunpack.i.h.bf16 %v1956_v50  ;;  %v1957_v40 = vunpack.i.l.bf16 %v1956_v50  ;;  %2250 = vrot.lane.b32.xlu1 %v2249_v49, %s2359_s16  ;;  %v3956_v9 = vunpack.i.l.bf16 %v2937_v44 }
  0xd5   :  { %2245 = vrot.lane.b32.xlu0 %v3129_v18, %s2359_s16  ;;  %1354 = vmatprep.subr.bf16.mxu1 %v1191_v11  ;;  %v664_v32 = vsel %vm620_vm1, %v1962_v14, %v1963_v59  ;;  %v663_v60 = vsel %vm620_vm1, %v1953_v57, %v1962_v14 }
  0xd6   :  { %v679_v45 = vsel %vm620_vm1, %v3955_v51, %v1957_v40  ;;  %v1971_v17 = vpop.permute.xlu1 %1970  ;;  %v680_v16 = vsel %vm620_vm1, %v1957_v40, %v1958_v55  ;;  %v1738_v51 = vunpack.i.h.bf16 %v2708_v43 }
  0xd7   :  { %v1169_v22 = vpack.c.bf16 %v679_v45, %v661_v53  ;;  %1355 = vmatpush1.bf16.msra.mxu1 %v1190_v42  ;;  %v3161_v49 = vpop.permute.xlu0 %1965  ;;  %v1170_v48 = vpack.c.bf16 %v680_v16, %v662_v8  ;;  %v1973_v13 = vunpack.i.h.bf16 %v1971_v17  ;;  %v1972_v24 = vunpack.i.l.bf16 %v1971_v17 }
  0xd8   :  { %v1968_v30 = vunpack.i.h.bf16 %v3161_v49  ;;  %v1967_v5 = vunpack.i.l.bf16 %v3161_v49  ;;  %2260 = vrot.lane.b32.xlu1 %v3088_v31, %s2360_s30  ;;  %v3957_v42 = vunpack.i.h.bf16 %v2932_v19 }
  0xd9   :  { %2255 = vrot.lane.b32.xlu0 %v3151_v47, %s2359_s16  ;;  %1315 = vmatprep.subr.bf16.mxu0 %v1170_v48  ;;  %v626_v57 = vsel %vm620_vm1, %v1972_v24, %v1973_v13  ;;  %v625_v63 = vsel %vm620_vm1, %v3956_v9, %v1972_v24  ;;  %v1742_v48 = vunpack.i.l.bf16 %v2725_v52  ;;  %v3958_v24 = vunpack.i.l.bf16 %v2708_v43 }
  0xda   :  { %v681_v27 = vsel %vm620_vm1, %v1958_v55, %v1967_v5  ;;  %1316 = vmatpush1.bf16.msra.mxu0 %v1169_v22  ;;  %v3180_v1 = vpop.permute.xlu1 %1980  ;;  %v682_v4 = vsel %vm620_vm1, %v1967_v5, %v1968_v30 }
  0xdb   :  { %v1171_v38 = vpack.c.bf16 %v681_v27, %v663_v60  ;;  %v1976_v34 = vpop.permute.xlu0 %1975  ;;  %v1172_v29 = vpack.c.bf16 %v682_v4, %v664_v32  ;;  %v1983_v2 = vunpack.i.h.bf16 %v3180_v1  ;;  %v1982_v0 = vunpack.i.l.bf16 %v3180_v1 }
  0xdc   :  { %v1978_v25 = vunpack.i.h.bf16 %v1976_v34  ;;  %v1977_v12 = vunpack.i.l.bf16 %v1976_v34  ;;  %2270 = vrot.lane.b32.xlu1 %v2269_v62, %s2360_s30  ;;  %v324_v27 = vsel %vm319_vm2, %v3958_v24, %v1738_v51  ;;  %v3959_v34 = vunpack.i.l.bf16 %v2964_v36 }
  0xdd   :  { %2265 = vrot.lane.b32.xlu0 %v3129_v18, %s2360_s30  ;;  %1356 = vmatprep.subr.bf16.mxu1 %v1172_v29  ;;  %v628_v19 = vsel %vm620_vm1, %v1982_v0, %v1983_v2  ;;  %v627_v45 = vsel %vm620_vm1, %v1973_v13, %v1982_v0 }
  0xde   :  { %v643_v50 = vsel %vm620_vm1, %v3957_v42, %v1977_v12  ;;  %1357 = vmatpush1.bf16.msra.mxu1 %v1171_v38  ;;  %v1991_v11 = vpop.permute.xlu1 %1990  ;;  %v644_v55 = vsel %vm620_vm1, %v1977_v12, %v1978_v25  ;;  %v1743_v38 = vunpack.i.h.bf16 %v2725_v52  ;;  %v1223_v12 = vld [vmem:[%s3923_s2] sm:$0xf]  ;;  %v1747_v42 = vunpack.i.l.bf16 %v2751_v3 }
  0xdf   :  { %v1150_v40 = vpack.c.bf16 %v643_v50, %v625_v63  ;;  %v3198_v8 = vpop.permute.xlu0 %1985  ;;  %v1151_v6 = vpack.c.bf16 %v644_v55, %v626_v57  ;;  %v1993_v53 = vunpack.i.h.bf16 %v1991_v11  ;;  %v1992_v17 = vunpack.i.l.bf16 %v1991_v11 }
  0xe0   :  { %v1988_v14 = vunpack.i.h.bf16 %v3198_v8  ;;  %v1987_v44 = vunpack.i.l.bf16 %v3198_v8  ;;  %2280 = vrot.lane.b32.xlu1 %v3088_v31, %s2358_s28  ;;  %v1748_v8 = vunpack.i.h.bf16 %v2751_v3 }
  0xe1   :  { %2275 = vrot.lane.b32.xlu0 %v3151_v47, %s2360_s30  ;;  %1317 = vmatprep.subr.bf16.mxu0 %v1151_v6  ;;  %v361_v13 = vsel %vm319_vm2, %v1992_v17, %v1993_v53  ;;  %v360_v29 = vsel %vm319_vm2, %v3959_v34, %v1992_v17  ;;  %v2298_v17 = vld [vmem:[%s3921_s0 + $0x1f0] sm:$0xff] }
  0xe2   :  { %v645_v16 = vsel %vm620_vm1, %v1978_v25, %v1987_v44  ;;  %1318 = vmatpush1.bf16.msra.mxu0 %v1150_v40  ;;  %v3212_v22 = vpop.permute.xlu1 %2000  ;;  %v646_v31 = vsel %vm620_vm1, %v1987_v44, %v1988_v14 }
  0xe3   :  { %v1152_v10 = vpack.c.bf16 %v645_v16, %v627_v45  ;;  %v1996_v28 = vpop.permute.xlu0 %1995  ;;  %v1153_v62 = vpack.c.bf16 %v646_v31, %v628_v19  ;;  %v2003_v5 = vunpack.i.h.bf16 %v3212_v22  ;;  %v2002_v4 = vunpack.i.l.bf16 %v3212_v22 }
  0xe4   :  { %v1998_v32 = vunpack.i.h.bf16 %v1996_v28  ;;  %v1997_v60 = vunpack.i.l.bf16 %v1996_v28  ;;  %2290 = vrot.lane.b32.xlu1 %v3151_v47, %s2358_s28  ;;  %v326_v28 = vsel %vm319_vm2, %v1742_v48, %v1743_v38 }
  0xe5   :  { %2285 = vrot.lane.b32.xlu0 %v3129_v18, %s2358_s28  ;;  %1358 = vmatprep.subr.bf16.mxu1 %v1153_v62  ;;  %v363_v0 = vsel %vm319_vm2, %v2002_v4, %v2003_v5  ;;  %v362_v50 = vsel %vm319_vm2, %v1993_v53, %v2002_v4  ;;  %v2299_v62 = vld [vmem:[%s3921_s0 + $0x150] sm:$0xff] }
  0xe6   :  { %v378_v47 = vsel %vm319_vm2, %v1898_v23, %v1997_v60  ;;  %1359 = vmatpush1.bf16.msra.mxu1 %v1152_v10  ;;  %v2011_v43 = vpop.permute.xlu1 %2010  ;;  %v379_v25 = vsel %vm319_vm2, %v1997_v60, %v1998_v32  ;;  %v325_v23 = vsel %vm319_vm2, %v1738_v51, %v1742_v48  ;;  %v327_v48 = vsel %vm319_vm2, %v1743_v38, %v1747_v42  ;;  %v2303_v38 = vld [vmem:[%s3921_s0 + $0x168] sm:$0xff] }
  0xe7   :  { %v1131_v18 = vpack.c.bf16 %v378_v47, %v360_v29  ;;  %v2013_v57 = vunpack.i.h.bf16 %v2011_v43  ;;  %v2012_v9 = vunpack.i.l.bf16 %v2011_v43  ;;  %v3239_v52 = vpop.permute.xlu0 %2005  ;;  %v1132_v36 = vpack.c.bf16 %v379_v25, %v361_v13  ;;  %v2301_v43 = vld [vmem:[%s3921_s0 + $0x28] sm:$0xff]  ;;  %v2302_v25 = vld [vmem:[%s3921_s0 + $0xc0] sm:$0xff] }
  0xe8   :  { %v2008_v63 = vunpack.i.h.bf16 %v3239_v52  ;;  %v2007_v41 = vunpack.i.l.bf16 %v3239_v52 }
  0xe9   :  { %v342_v11 = vsel %vm319_vm2, %v1908_v20, %v2012_v9  ;;  %1319 = vmatprep.subr.bf16.mxu0 %v1132_v36  ;;  %v343_v55 = vsel %vm319_vm2, %v2012_v9, %v2013_v57  ;;  %1226 = vperm.xlu0 %2294, %v1223_v12   ;;  %v2297_v20 = vld [vmem:[%s3921_s0 + $0x158] sm:$0xff]  ;;  %v1075_v12 = vpack.c.bf16 %v2302_v25, %v2301_v43 }
  0xea   :  { %v1112_v40 = vpack.c.bf16 %v342_v11, %v324_v27  ;;  %v380_v6 = vsel %vm319_vm2, %v1998_v32, %v2007_v41  ;;  %1320 = vmatpush1.bf16.msra.mxu0 %v1131_v18  ;;  %v3254_v44 = vpop.permute.xlu1 %2020  ;;  %v1113_v19 = vpack.c.bf16 %v343_v55, %v325_v23  ;;  %v381_v51 = vsel %vm319_vm2, %v2007_v41, %v2008_v63  ;;  %v2300_v32 = vld [vmem:[%s3921_s0 + $0x1e8] sm:$0xff]  ;;  %v2304_v18 = vld [vmem:[%s3921_s0 + $0x200] sm:$0xff] }
  0xeb   :  { %v1133_v53 = vpack.c.bf16 %v380_v6, %v362_v50  ;;  %v3259_v45 = vpop.permute.xlu0 %2015  ;;  %v1134_v7 = vpack.c.bf16 %v381_v51, %v363_v0  ;;  %v1094_v16 = vpack.c.bf16 %v2298_v17, %v2297_v20  ;;  %v1093_v60 = vpack.c.bf16 %v2300_v32, %v2299_v62  ;;  %v2305_v23 = vld [vmem:[%s3921_s0 + $0x20] sm:$0xff]  ;;  %v2306_v0 = vld [vmem:[%s3921_s0 + $0xb8] sm:$0xff] }
  0xec   :  { %v2018_v31 = vunpack.i.h.bf16 %v3259_v45  ;;  %v2017_v10 = vunpack.i.l.bf16 %v3259_v45  ;;  %1321 = vmatprep.subr.bf16.mxu0 %v1113_v19  ;;  %v2023_v13 = vunpack.i.h.bf16 %v3254_v44  ;;  %v2022_v9 = vunpack.i.l.bf16 %v3254_v44  ;;  %v2308_v6 = vld [vmem:[%s3921_s0 + $0x1f8] sm:$0xff] }
  0xed   :  { %1360 = vmatprep.subr.bf16.mxu1 %v1134_v7  ;;  %v1074_v50 = vpack.c.bf16 %v2306_v0, %v2305_v23  ;;  %v2309_v17 = vld [vmem:[%s3921_s0 + $0x38] sm:$0xff] }
  0xee   :  { %v344_v24 = vsel %vm319_vm2, %v2013_v57, %v2017_v10  ;;  %1322 = vmatpush1.bf16.msra.mxu0 %v1112_v40  ;;  %1361 = vmatpush1.bf16.msra.mxu1 %v1133_v53  ;;  %v3278_v27 = vpop.permute.xlu1 %2030  ;;  %v345_v4 = vsel %vm319_vm2, %v2017_v10, %v2018_v31  ;;  %v1096_v57 = vpack.c.bf16 %v2304_v18, %v2303_v38  ;;  %v2307_v40 = vld [vmem:[%s3921_s0 + $0x160] sm:$0xff] }
  0xef   :  { %v1114_v34 = vpack.c.bf16 %v344_v24, %v326_v28  ;;  %v2026_v29 = vpop.permute.xlu0 %2025  ;;  %1323 = vmatprep.subr.bf16.mxu0 %v1094_v16  ;;  %v1115_v47 = vpack.c.bf16 %v345_v4, %v327_v48  ;;  %v2033_v11 = vunpack.i.h.bf16 %v3278_v27  ;;  %v1095_v19 = vpack.c.bf16 %v2308_v6, %v2307_v40  ;;  %v2310_v16 = vld [vmem:[%s3921_s0 + $0xd0] sm:$0xff] }
  0xf0   :  { %v2028_v36 = vunpack.i.h.bf16 %v2026_v29  ;;  %v2027_v41 = vunpack.i.l.bf16 %v2026_v29  ;;  %v967_v51 = vsel %vm921_vm0, %v2022_v9, %v2023_v13  ;;  %v1077_v10 = vpack.c.bf16 %v2310_v16, %v2309_v17  ;;  %v2311_v4 = vld [vmem:[%s3921_s0 + $0x30] sm:$0xff] }
  0xf1   :  { %1362 = vmatprep.subr.bf16.mxu1 %v1115_v47  ;;  %v2032_v28 = vunpack.i.l.bf16 %v3278_v27  ;;  %v966_v15 = vsel %vm921_vm0, %v1923_v21, %v2022_v9 }
  0xf2   :  { %1324 = vmatpush1.bf16.msra.mxu0 %v1093_v60  ;;  %1363 = vmatpush1.bf16.msra.mxu1 %v1114_v34  ;;  %v2041_v55 = vpop.permute.xlu1 %2040  ;;  %v985_v53 = vsel %vm921_vm0, %v2027_v41, %v2028_v36  ;;  %v984_v62 = vsel %vm921_vm0, %v1928_v56, %v2027_v41  ;;  %v2312_v34 = vld [vmem:[%s3921_s0 + $0xc8] sm:$0xff] }
  0xf3   :  { %v2043_v7 = vunpack.i.h.bf16 %v2041_v55  ;;  %v3316_v20 = vpop.permute.xlu0 %2035  ;;  %1325 = vmatprep.subr.bf16.mxu0 %v1075_v12  ;;  %1364 = vmatprep.subr.bf16.mxu1 %v1096_v57  ;;  %v2042_v24 = vunpack.i.l.bf16 %v2041_v55  ;;  %v1212_v48 = vpack.c.bf16 %v985_v53, %v967_v51  ;;  %v1076_v29 = vpack.c.bf16 %v2312_v34, %v2311_v4 }
  0xf4   :  { %v2038_v32 = vunpack.i.h.bf16 %v3316_v20  ;;  %v2037_v60 = vunpack.i.l.bf16 %v3316_v20  ;;  %v969_v47 = vsel %vm921_vm0, %v2032_v28, %v2033_v11  ;;  %v1211_v25 = vpack.c.bf16 %v984_v62, %v966_v15 }
  0xf5   :  { %v931_v26 = vsel %vm921_vm0, %v2042_v24, %v2043_v7  ;;  %v968_v9 = vsel %vm921_vm0, %v2023_v13, %v2032_v28  ;;  %v930_v23 = vsel %vm921_vm0, %v1943_v33, %v2042_v24 }
  0xf6   :  { %1326 = vmatpush1.bf16.msra.mxu0 %v1074_v50  ;;  %1365 = vmatpush1.bf16.msra.mxu1 %v1095_v19  ;;  %v3339_v56 = vpop.permute.xlu1 %2050  ;;  %v987_v43 = vsel %vm921_vm0, %v2037_v60, %v2038_v32  ;;  %v986_v21 = vsel %vm921_vm0, %v2028_v36, %v2037_v60 }
  0xf7   :  { %v2046_v12 = vpop.permute.xlu0 %2045  ;;  %1393 = vmatprep.subr.bf16.mxu0 %v1212_v48  ;;  %1366 = vmatprep.subr.bf16.mxu1 %v1077_v10  ;;  %v2053_v38 = vunpack.i.h.bf16 %v3339_v56  ;;  %v1214_v41 = vpack.c.bf16 %v987_v43, %v969_v47  ;;  %v2052_v0 = vunpack.i.l.bf16 %v3339_v56  ;;  %v1213_v55 = vpack.c.bf16 %v986_v21, %v968_v9 }
  0xf8   :  { %v2048_v18 = vunpack.i.h.bf16 %v2046_v12  ;;  %v2047_v57 = vunpack.i.l.bf16 %v2046_v12 }
  0xf9   :  { %1344 = vmatmul.mubr.bf16.vlgmr.msra.gmra.mxu0 %v3080_v35  ;;  %v932_v19 = vsel %vm921_vm0, %v2043_v7, %v2052_v0 }
  0xfa   :  { %v948_v36 = vsel %vm921_vm0, %v1948_v37, %v2047_v57  ;;  %1367 = vmatpush1.bf16.msra.mxu1 %v1076_v29  ;;  %1394 = vmatpush1.bf16.msra.mxu0 %v1211_v25  ;;  %v2061_v50 = vpop.permute.xlu1 %2060  ;;  %v949_v44 = vsel %vm921_vm0, %v2047_v57, %v2048_v18  ;;  %v933_v37 = vsel %vm921_vm0, %v2052_v0, %v2053_v38 }
  0xfb   :  { %v1192_v13 = vpack.c.bf16 %v948_v36, %v930_v23  ;;  %v3362_v40 = vpop.permute.xlu0 %2055  ;;  %1434 = vmatprep.subr.bf16.mxu1 %v1214_v41  ;;  %v1193_v6 = vpack.c.bf16 %v949_v44, %v931_v26  ;;  %1425 = vmatprep.mubr.bf16.mxu0 %v3953_v46  ;;  %v2063_v54 = vunpack.i.h.bf16 %v2061_v50  ;;  %v2062_v51 = vunpack.i.l.bf16 %v2061_v50 }
  0xfc   :  { %v2058_v33 = vunpack.i.h.bf16 %v3362_v40  ;;  %v2057_v58 = vunpack.i.l.bf16 %v3362_v40 }
  0xfd   :  { %1395 = vmatprep.subr.bf16.mxu0 %v1193_v6  ;;  %1385 = vmatmul.mubr.bf16.vlgmr.msra.gmra.mxu1 %v3080_v35  ;;  %v666_v48 = vsel %vm620_vm1, %v2062_v51, %v2063_v54  ;;  %v665_v4 = vsel %vm620_vm1, %v1963_v59, %v2062_v51 }
  0xfe   :  { %v950_v53 = vsel %vm921_vm0, %v2048_v18, %v2057_v58  ;;  %1396 = vmatpush1.bf16.msra.mxu0 %v1192_v13  ;;  %1435 = vmatpush1.bf16.msra.mxu1 %v1213_v55  ;;  %v3373_v17 = vpop.permute.xlu1 %2070  ;;  %v951_v16 = vsel %vm921_vm0, %v2057_v58, %v2058_v33 }
  0xff   :  { %v1194_v10 = vpack.c.bf16 %v950_v53, %v932_v19  ;;  %v2066_v28 = vpop.permute.xlu0 %2065  ;;  %v1195_v62 = vpack.c.bf16 %v951_v16, %v933_v37  ;;  %1466 = vmatprep.mubr.bf16.mxu1 %v3953_v46  ;;  %v2073_v60 = vunpack.i.h.bf16 %v3373_v17  ;;  %v2072_v34 = vunpack.i.l.bf16 %v3373_v17 }
 0x100   :  { %v2068_v24 = vunpack.i.h.bf16 %v2066_v28  ;;  %v2067_v7 = vunpack.i.l.bf16 %v2066_v28 }
 0x101   :  { %1436 = vmatprep.subr.bf16.mxu1 %v1195_v62  ;;  %v668_v59 = vsel %vm620_vm1, %v2072_v34, %v2073_v60  ;;  %v667_v49 = vsel %vm620_vm1, %v2063_v54, %v2072_v34 }
 0x102   :  { %v683_v29 = vsel %vm620_vm1, %v1968_v30, %v2067_v7  ;;  %1437 = vmatpush1.bf16.msra.mxu1 %v1194_v10  ;;  %v2081_v15 = vpop.permute.xlu1 %2080  ;;  %v684_v47 = vsel %vm620_vm1, %v2067_v7, %v2068_v24 }
 0x103   :  { %v1173_v43 = vpack.c.bf16 %v683_v29, %v665_v4  ;;  %v3389_v25 = vpop.permute.xlu0 %2075  ;;  %v1174_v12 = vpack.c.bf16 %v684_v47, %v666_v48  ;;  %v2083_v26 = vunpack.i.h.bf16 %v2081_v15  ;;  %v2082_v30 = vunpack.i.l.bf16 %v2081_v15 }
 0x104   :  { %v2078_v21 = vunpack.i.h.bf16 %v3389_v25  ;;  %v2077_v39 = vunpack.i.l.bf16 %v3389_v25  ;;  %v1752_v48 = vunpack.i.l.bf16 %v2743_v61 }
 0x105   :  { %1397 = vmatprep.subr.bf16.mxu0 %v1174_v12  ;;  %v630_v55 = vsel %vm620_vm1, %v2082_v30, %v2083_v26  ;;  %v629_v13 = vsel %vm620_vm1, %v1983_v2, %v2082_v30 }
 0x106   :  { %v685_v18 = vsel %vm620_vm1, %v2068_v24, %v2077_v39  ;;  %1398 = vmatpush1.bf16.msra.mxu0 %v1173_v43  ;;  %v3398_v57 = vpop.permute.xlu1 %2090  ;;  %v686_v9 = vsel %vm620_vm1, %v2077_v39, %v2078_v21 }
 0x107   :  { %v1175_v41 = vpack.c.bf16 %v685_v18, %v667_v49  ;;  %v2086_v23 = vpop.permute.xlu0 %2085  ;;  %v1176_v0 = vpack.c.bf16 %v686_v9, %v668_v59  ;;  %v2093_v36 = vunpack.i.h.bf16 %v3398_v57  ;;  %v2092_v6 = vunpack.i.l.bf16 %v3398_v57 }
 0x108   :  { %v2088_v50 = vunpack.i.h.bf16 %v2086_v23  ;;  %v2087_v44 = vunpack.i.l.bf16 %v2086_v23  ;;  %v328_v59 = vsel %vm319_vm2, %v1747_v42, %v1748_v8 }
 0x109   :  { %1438 = vmatprep.subr.bf16.mxu1 %v1176_v0  ;;  %v632_v2 = vsel %vm620_vm1, %v2092_v6, %v2093_v36 }
 0x10a   :  { %v647_v54 = vsel %vm620_vm1, %v1988_v14, %v2087_v44  ;;  %1439 = vmatpush1.bf16.msra.mxu1 %v1175_v41  ;;  %v2101_v58 = vpop.permute.xlu1 %2100  ;;  %v648_v37 = vsel %vm620_vm1, %v2087_v44, %v2088_v50  ;;  %v631_v14 = vsel %vm620_vm1, %v2083_v26, %v2092_v6  ;;  %v1753_v26 = vunpack.i.h.bf16 %v2743_v61 }
 0x10b   :  { %v1154_v19 = vpack.c.bf16 %v647_v54, %v629_v13  ;;  %v3413_v51 = vpop.permute.xlu0 %2095  ;;  %v1155_v53 = vpack.c.bf16 %v648_v37, %v630_v55  ;;  %v2103_v16 = vunpack.i.h.bf16 %v2101_v58  ;;  %v2102_v28 = vunpack.i.l.bf16 %v2101_v58 }
 0x10c   :  { %v2098_v10 = vunpack.i.h.bf16 %v3413_v51  ;;  %v2097_v1 = vunpack.i.l.bf16 %v3413_v51 }
 0x10d   :  { %1399 = vmatprep.subr.bf16.mxu0 %v1155_v53  ;;  %v365_v12 = vsel %vm319_vm2, %v2102_v28, %v2103_v16  ;;  %v364_v49 = vsel %vm319_vm2, %v2003_v5, %v2102_v28  ;;  %v329_v5 = vsel %vm319_vm2, %v1748_v8, %v1752_v48  ;;  %v330_v28 = vsel %vm319_vm2, %v1752_v48, %v1753_v26  ;;  %v2315_v48 = vld [vmem:[%s3921_s0 + $0x170] sm:$0xff] }
 0x10e   :  { %v649_v62 = vsel %vm620_vm1, %v2088_v50, %v2097_v1  ;;  %1400 = vmatpush1.bf16.msra.mxu0 %v1154_v19  ;;  %v3423_v24 = vpop.permute.xlu1 %2110  ;;  %v650_v7 = vsel %vm620_vm1, %v2097_v1, %v2098_v10  ;;  %v2314_v1 = vld [vmem:[%s3921_s0 + $0x210] sm:$0xff] }
 0x10f   :  { %v1156_v4 = vpack.c.bf16 %v649_v62, %v631_v14  ;;  %v2106_v34 = vpop.permute.xlu0 %2105  ;;  %v1157_v29 = vpack.c.bf16 %v650_v7, %v632_v2  ;;  %v2113_v15 = vunpack.i.h.bf16 %v3423_v24  ;;  %v2112_v39 = vunpack.i.l.bf16 %v3423_v24 }
 0x110   :  { %v2108_v47 = vunpack.i.h.bf16 %v2106_v34  ;;  %v2107_v43 = vunpack.i.l.bf16 %v2106_v34 }
 0x111   :  { %1440 = vmatprep.subr.bf16.mxu1 %v1157_v29  ;;  %v367_v52 = vsel %vm319_vm2, %v2112_v39, %v2113_v15  ;;  %v366_v44 = vsel %vm319_vm2, %v2103_v16, %v2112_v39 }
 0x112   :  { %v382_v30 = vsel %vm319_vm2, %v2008_v63, %v2107_v43  ;;  %1441 = vmatpush1.bf16.msra.mxu1 %v1156_v4  ;;  %v2121_v18 = vpop.permute.xlu1 %2120  ;;  %v383_v9 = vsel %vm319_vm2, %v2107_v43, %v2108_v47  ;;  %v3960_v63 = vld [vmem:[#allocation3_spill] sm:$0xff] }
 0x113   :  { %v1135_v61 = vpack.c.bf16 %v382_v30, %v364_v49  ;;  %v2123_v41 = vunpack.i.h.bf16 %v2121_v18  ;;  %v2122_v23 = vunpack.i.l.bf16 %v2121_v18  ;;  %v3443_v0 = vpop.permute.xlu0 %2115  ;;  %v1136_v3 = vpack.c.bf16 %v383_v9, %v365_v12  ;;  %v2318_v49 = vld [vmem:[%s3921_s0 + $0xe0] sm:$0xff]  ;;  %v2319_v18 = vld [vmem:[%s3921_s0 + $0x188] sm:$0xff] }
 0x114   :  { %v2118_v42 = vunpack.i.h.bf16 %v3443_v0  ;;  %v2117_v22 = vunpack.i.l.bf16 %v3443_v0  ;;  %v1757_v50 = vunpack.i.l.bf16 %v3960_v63  ;;  %v2320_v9 = vld [vmem:[%s3921_s0 + $0x220] sm:$0xff]  ;;  %v1758_v51 = vunpack.i.h.bf16 %v3960_v63 }
 0x115   :  { %v346_v55 = vsel %vm319_vm2, %v2018_v31, %v2122_v23  ;;  %1401 = vmatprep.subr.bf16.mxu0 %v1136_v3  ;;  %v347_v13 = vsel %vm319_vm2, %v2122_v23, %v2123_v41  ;;  %v2313_v31 = vld [vmem:[%s3921_s0 + $0x178] sm:$0xff] }
 0x116   :  { %v1116_v6 = vpack.c.bf16 %v346_v55, %v328_v59  ;;  %v384_v54 = vsel %vm319_vm2, %v2108_v47, %v2117_v22  ;;  %1402 = vmatpush1.bf16.msra.mxu0 %v1135_v61  ;;  %v3458_v58 = vpop.permute.xlu1 %2130  ;;  %v1117_v37 = vpack.c.bf16 %v347_v13, %v329_v5  ;;  %v385_v19 = vsel %vm319_vm2, %v2117_v22, %v2118_v42  ;;  %v2316_v47 = vld [vmem:[%s3921_s0 + $0x208] sm:$0xff]  ;;  %v2321_v22 = vld [vmem:[%s3921_s0 + $0x40] sm:$0xff]  ;;  %v2322_v5 = vld [vmem:[%s3921_s0 + $0xd8] sm:$0xff] }
 0x117   :  { %v1137_v53 = vpack.c.bf16 %v384_v54, %v366_v44  ;;  %v3463_v16 = vpop.permute.xlu0 %2125  ;;  %v1138_v45 = vpack.c.bf16 %v385_v19, %v367_v52  ;;  %v1098_v2 = vpack.c.bf16 %v2314_v1, %v2313_v31  ;;  %v331_v62 = vsel %vm319_vm2, %v1753_v26, %v1757_v50  ;;  %v2317_v59 = vld [vmem:[%s3921_s0 + $0x48] sm:$0xff]  ;;  %v2323_v13 = vld [vmem:[%s3921_s0 + $0x180] sm:$0xff]  ;;  %v2325_v31 = vld [vmem:[%s3921_s0 + $0x58] sm:$0xff] }
 0x118   :  { %v2128_v8 = vunpack.i.h.bf16 %v3463_v16  ;;  %v2127_v14 = vunpack.i.l.bf16 %v3463_v16  ;;  %1403 = vmatprep.subr.bf16.mxu0 %v1117_v37  ;;  %v2133_v7 = vunpack.i.h.bf16 %v3458_v58  ;;  %v1097_v43 = vpack.c.bf16 %v2316_v47, %v2315_v48  ;;  %v2326_v1 = vld [vmem:[%s3921_s0 + $0xf0] sm:$0xff] }
 0x119   :  { %1442 = vmatprep.subr.bf16.mxu1 %v1138_v45  ;;  %v1079_v30 = vpack.c.bf16 %v2318_v49, %v2317_v59  ;;  %v1100_v61 = vpack.c.bf16 %v2320_v9, %v2319_v18  ;;  %v1078_v52 = vpack.c.bf16 %v2322_v5, %v2321_v22  ;;  %v2327_v47 = vld [vmem:[%s3921_s0 + $0x50] sm:$0xff] }
 0x11a   :  { %v348_v4 = vsel %vm319_vm2, %v2123_v41, %v2127_v14  ;;  %1404 = vmatpush1.bf16.msra.mxu0 %v1116_v6  ;;  %1443 = vmatpush1.bf16.msra.mxu1 %v1137_v53  ;;  %v3479_v34 = vpop.permute.xlu1 %2140  ;;  %v349_v29 = vsel %vm319_vm2, %v2127_v14, %v2128_v8  ;;  %v2132_v41 = vunpack.i.l.bf16 %v3458_v58  ;;  %v2324_v6 = vld [vmem:[%s3921_s0 + $0x218] sm:$0xff] }
 0x11b   :  { %v1118_v12 = vpack.c.bf16 %v348_v4, %v330_v28  ;;  %v2136_v26 = vpop.permute.xlu0 %2135  ;;  %1405 = vmatprep.subr.bf16.mxu0 %v1098_v2  ;;  %v1119_v39 = vpack.c.bf16 %v349_v29, %v331_v62  ;;  %v2143_v44 = vunpack.i.h.bf16 %v3479_v34  ;;  %v1099_v54 = vpack.c.bf16 %v2324_v6, %v2323_v13 }
 0x11c   :  { %v2138_v23 = vunpack.i.h.bf16 %v2136_v26  ;;  %v2137_v3 = vunpack.i.l.bf16 %v2136_v26  ;;  %v971_v37 = vsel %vm921_vm0, %v2132_v41, %v2133_v7  ;;  %v1081_v2 = vpack.c.bf16 %v2326_v1, %v2325_v31 }
 0x11d   :  { %1444 = vmatprep.subr.bf16.mxu1 %v1119_v39  ;;  %v2142_v14 = vunpack.i.l.bf16 %v3479_v34  ;;  %v970_v20 = vsel %vm921_vm0, %v2033_v11, %v2132_v41 }
 0x11e   :  { %1406 = vmatpush1.bf16.msra.mxu0 %v1097_v43  ;;  %1445 = vmatpush1.bf16.msra.mxu1 %v1118_v12  ;;  %v2151_v55 = vpop.permute.xlu1 %2150  ;;  %v989_v19 = vsel %vm921_vm0, %v2137_v3, %v2138_v23  ;;  %v988_v28 = vsel %vm921_vm0, %v2038_v32, %v2137_v3  ;;  %v2328_v43 = vld [vmem:[%s3921_s0 + $0xe8] sm:$0xff] }
 0x11f   :  { %v2153_v53 = vunpack.i.h.bf16 %v2151_v55  ;;  %v3520_v45 = vpop.permute.xlu0 %2145  ;;  %1407 = vmatprep.subr.bf16.mxu0 %v1079_v30  ;;  %1446 = vmatprep.subr.bf16.mxu1 %v1100_v61  ;;  %v2152_v29 = vunpack.i.l.bf16 %v2151_v55  ;;  %v1216_v48 = vpack.c.bf16 %v989_v19, %v971_v37  ;;  %v1080_v12 = vpack.c.bf16 %v2328_v43, %v2327_v47 }
 0x120   :  { %v2148_v62 = vunpack.i.h.bf16 %v3520_v45  ;;  %v2147_v4 = vunpack.i.l.bf16 %v3520_v45  ;;  %v973_v26 = vsel %vm921_vm0, %v2142_v14, %v2143_v44  ;;  %v1215_v59 = vpack.c.bf16 %v988_v28, %v970_v20  ;;  %v2343_v45 = vld [vmem:[%s3921_s0 + $0x70] sm:$0xff] }
 0x121   :  { %v935_v27 = vsel %vm921_vm0, %v2152_v29, %v2153_v53  ;;  %v972_v61 = vsel %vm921_vm0, %v2133_v7, %v2142_v14  ;;  %v934_v3 = vsel %vm921_vm0, %v2053_v38, %v2152_v29 }
 0x122   :  { %1408 = vmatpush1.bf16.msra.mxu0 %v1078_v52  ;;  %1447 = vmatpush1.bf16.msra.mxu1 %v1099_v54  ;;  %v3543_v32 = vpop.permute.xlu1 %2160  ;;  %v991_v39 = vsel %vm921_vm0, %v2147_v4, %v2148_v62  ;;  %v990_v11 = vsel %vm921_vm0, %v2138_v23, %v2147_v4 }
 0x123   :  { %v2156_v49 = vpop.permute.xlu0 %2155  ;;  %1475 = vmatprep.subr.bf16.mxu0 %v1216_v48  ;;  %1448 = vmatprep.subr.bf16.mxu1 %v1081_v2  ;;  %v2163_v30 = vunpack.i.h.bf16 %v3543_v32  ;;  %v1218_v41 = vpack.c.bf16 %v991_v39, %v973_v26  ;;  %v2162_v22 = vunpack.i.l.bf16 %v3543_v32  ;;  %v1217_v52 = vpack.c.bf16 %v990_v11, %v972_v61 }
 0x124   :  { %v2158_v18 = vunpack.i.h.bf16 %v2156_v49  ;;  %v2157_v9 = vunpack.i.l.bf16 %v2156_v49 }
 0x125   :  { %1426 = vmatmul.mubr.bf16.vlgmr.msra.gmra.mxu0 %v3080_v35  ;;  %v936_v6 = vsel %vm921_vm0, %v2153_v53, %v2162_v22 }
 0x126   :  { %v952_v23 = vsel %vm921_vm0, %v2058_v33, %v2157_v9  ;;  %1449 = vmatpush1.bf16.msra.mxu1 %v1080_v12  ;;  %1476 = vmatpush1.bf16.msra.mxu0 %v1215_v59  ;;  %v2171_v5 = vpop.permute.xlu1 %2170  ;;  %v953_v58 = vsel %vm921_vm0, %v2157_v9, %v2158_v18  ;;  %v937_v33 = vsel %vm921_vm0, %v2162_v22, %v2163_v30 }
 0x127   :  { %v1196_v7 = vpack.c.bf16 %v952_v23, %v934_v3  ;;  %v3566_v55 = vpop.permute.xlu0 %2165  ;;  %1516 = vmatprep.subr.bf16.mxu1 %v1218_v41  ;;  %v1197_v13 = vpack.c.bf16 %v953_v58, %v935_v27  ;;  %1507 = vmatprep.mubr.bf16.mxu0 %v3953_v46  ;;  %v2173_v56 = vunpack.i.h.bf16 %v2171_v5  ;;  %v2172_v54 = vunpack.i.l.bf16 %v2171_v5 }
 0x128   :  { %v2168_v38 = vunpack.i.h.bf16 %v3566_v55  ;;  %v2167_v40 = vunpack.i.l.bf16 %v3566_v55 }
 0x129   :  { %1477 = vmatprep.subr.bf16.mxu0 %v1197_v13  ;;  %1467 = vmatmul.mubr.bf16.vlgmr.msra.gmra.mxu1 %v3080_v35  ;;  %v670_v4 = vsel %vm620_vm1, %v2172_v54, %v2173_v56  ;;  %v669_v29 = vsel %vm620_vm1, %v2073_v60, %v2172_v54 }
 0x12a   :  { %v954_v37 = vsel %vm921_vm0, %v2158_v18, %v2167_v40  ;;  %1478 = vmatpush1.bf16.msra.mxu0 %v1196_v7  ;;  %1517 = vmatpush1.bf16.msra.mxu1 %v1217_v52  ;;  %v3577_v19 = vpop.permute.xlu1 %2180  ;;  %v955_v31 = vsel %vm921_vm0, %v2167_v40, %v2168_v38 }
 0x12b   :  { %v1198_v1 = vpack.c.bf16 %v954_v37, %v936_v6  ;;  %v2176_v2 = vpop.permute.xlu0 %2175  ;;  %v1199_v14 = vpack.c.bf16 %v955_v31, %v937_v33  ;;  %1548 = vmatprep.mubr.bf16.mxu1 %v3953_v46  ;;  %v2183_v35 = vunpack.i.h.bf16 %v3577_v19  ;;  %v2182_v48 = vunpack.i.l.bf16 %v3577_v19 }
 0x12c   :  { %v2178_v28 = vunpack.i.h.bf16 %v2176_v2  ;;  %v2177_v53 = vunpack.i.l.bf16 %v2176_v2 }
 0x12d   :  { %1518 = vmatprep.subr.bf16.mxu1 %v1199_v14  ;;  %v672_v60 = vsel %vm620_vm1, %v2182_v48, %v2183_v35  ;;  %v671_v25 = vsel %vm620_vm1, %v2173_v56, %v2182_v48 }
 0x12e   :  { %v687_v47 = vsel %vm620_vm1, %v2078_v21, %v2177_v53  ;;  %1519 = vmatpush1.bf16.msra.mxu1 %v1198_v1  ;;  %v2191_v43 = vpop.permute.xlu1 %2190  ;;  %v688_v12 = vsel %vm620_vm1, %v2177_v53, %v2178_v28 }
 0x12f   :  { %v1177_v20 = vpack.c.bf16 %v687_v47, %v669_v29  ;;  %v3593_v26 = vpop.permute.xlu0 %2185  ;;  %v1178_v39 = vpack.c.bf16 %v688_v12, %v670_v4  ;;  %v2193_v59 = vunpack.i.h.bf16 %v2191_v43  ;;  %v2192_v21 = vunpack.i.l.bf16 %v2191_v43 }
 0x130   :  { %v2188_v49 = vunpack.i.h.bf16 %v3593_v26  ;;  %v2187_v17 = vunpack.i.l.bf16 %v3593_v26 }
 0x131   :  { %1479 = vmatprep.subr.bf16.mxu0 %v1178_v39  ;;  %v634_v5 = vsel %vm620_vm1, %v2192_v21, %v2193_v59  ;;  %v633_v58 = vsel %vm620_vm1, %v2093_v36, %v2192_v21 }
 0x132   :  { %v689_v27 = vsel %vm620_vm1, %v2178_v28, %v2187_v17  ;;  %1480 = vmatpush1.bf16.msra.mxu0 %v1177_v20  ;;  %v3602_v11 = vpop.permute.xlu1 %2200  ;;  %v690_v18 = vsel %vm620_vm1, %v2187_v17, %v2188_v49  ;;  %v3961_v28 = vld [vmem:[#allocation2_spill] sm:$0xff]  ;;  %v332_v17 = vsel %vm319_vm2, %v1757_v50, %v1758_v51 }
 0x133   :  { %v1179_v9 = vpack.c.bf16 %v689_v27, %v671_v25  ;;  %v2196_v61 = vpop.permute.xlu0 %2195  ;;  %v1180_v41 = vpack.c.bf16 %v690_v18, %v672_v60  ;;  %v2203_v3 = vunpack.i.h.bf16 %v3602_v11  ;;  %v2202_v52 = vunpack.i.l.bf16 %v3602_v11 }
 0x134   :  { %v2198_v22 = vunpack.i.h.bf16 %v2196_v61  ;;  %v2197_v23 = vunpack.i.l.bf16 %v2196_v61  ;;  %v1762_v53 = vunpack.i.l.bf16 %v3961_v28  ;;  %v1763_v39 = vunpack.i.h.bf16 %v3961_v28  ;;  %v2331_v28 = vld [vmem:[%s3921_s0 + $0x190] sm:$0xff] }
 0x135   :  { %1520 = vmatprep.subr.bf16.mxu1 %v1180_v41  ;;  %v636_v36 = vsel %vm620_vm1, %v2202_v52, %v2203_v3 }
 0x136   :  { %v651_v7 = vsel %vm620_vm1, %v2098_v10, %v2197_v23  ;;  %1521 = vmatpush1.bf16.msra.mxu1 %v1179_v9  ;;  %v2211_v13 = vpop.permute.xlu1 %2210  ;;  %v652_v56 = vsel %vm620_vm1, %v2197_v23, %v2198_v22  ;;  %v635_v10 = vsel %vm620_vm1, %v2193_v59, %v2202_v52 }
 0x137   :  { %v1158_v40 = vpack.c.bf16 %v651_v7, %v633_v58  ;;  %v3617_v33 = vpop.permute.xlu0 %2205  ;;  %v1159_v6 = vpack.c.bf16 %v652_v56, %v634_v5  ;;  %v2213_v54 = vunpack.i.h.bf16 %v2211_v13  ;;  %v2212_v31 = vunpack.i.l.bf16 %v2211_v13 }
 0x138   :  { %v2208_v37 = vunpack.i.h.bf16 %v3617_v33  ;;  %v2207_v57 = vunpack.i.l.bf16 %v3617_v33 }
 0x139   :  { %1481 = vmatprep.subr.bf16.mxu0 %v1159_v6  ;;  %v369_v20 = vsel %vm319_vm2, %v2212_v31, %v2213_v54  ;;  %v368_v60 = vsel %vm319_vm2, %v2113_v15, %v2212_v31  ;;  %v333_v15 = vsel %vm319_vm2, %v1758_v51, %v1762_v53 }
 0x13a   :  { %v653_v1 = vsel %vm620_vm1, %v2198_v22, %v2207_v57  ;;  %1482 = vmatpush1.bf16.msra.mxu0 %v1158_v40  ;;  %v3627_v2 = vpop.permute.xlu1 %2220  ;;  %v654_v14 = vsel %vm620_vm1, %v2207_v57, %v2208_v37  ;;  %v2330_v57 = vld [vmem:[%s3921_s0 + $0x230] sm:$0xff] }
 0x13b   :  { %v1160_v4 = vpack.c.bf16 %v653_v1, %v635_v10  ;;  %v2216_v29 = vpop.permute.xlu0 %2215  ;;  %v1161_v48 = vpack.c.bf16 %v654_v14, %v636_v36  ;;  %v2223_v47 = vunpack.i.h.bf16 %v3627_v2  ;;  %v2222_v59 = vunpack.i.l.bf16 %v3627_v2 }
 0x13c   :  { %v2218_v43 = vunpack.i.h.bf16 %v2216_v29  ;;  %v2217_v12 = vunpack.i.l.bf16 %v2216_v29  ;;  %v334_v1 = vsel %vm319_vm2, %v1762_v53, %v1763_v39 }
 0x13d   :  { %1522 = vmatprep.subr.bf16.mxu1 %v1161_v48  ;;  %v371_v0 = vsel %vm319_vm2, %v2222_v59, %v2223_v47  ;;  %v370_v23 = vsel %vm319_vm2, %v2213_v54, %v2222_v59 }
 0x13e   :  { %v386_v25 = vsel %vm319_vm2, %v2118_v42, %v2217_v12  ;;  %1523 = vmatpush1.bf16.msra.mxu1 %v1160_v4  ;;  %v2231_v21 = vpop.permute.xlu1 %2230  ;;  %v387_v27 = vsel %vm319_vm2, %v2217_v12, %v2218_v43  ;;  %v3962_v42 = vld [vmem:[#allocation5_spill] sm:$0xff]  ;;  %v2332_v4 = vld [vmem:[%s3921_s0 + $0x228] sm:$0xff] }
 0x13f   :  { %v1139_v18 = vpack.c.bf16 %v386_v25, %v368_v60  ;;  %v2233_v9 = vunpack.i.h.bf16 %v2231_v21  ;;  %v2232_v61 = vunpack.i.l.bf16 %v2231_v21  ;;  %v3647_v41 = vpop.permute.xlu0 %2225  ;;  %v1140_v63 = vpack.c.bf16 %v387_v27, %v369_v20  ;;  %v2333_v20 = vld [vmem:[%s3921_s0 + $0x68] sm:$0xff] }
 0x140   :  { %v2228_v50 = vunpack.i.h.bf16 %v3647_v41  ;;  %v2227_v24 = vunpack.i.l.bf16 %v3647_v41  ;;  %v1767_v22 = vunpack.i.l.bf16 %v3962_v42  ;;  %v1101_v29 = vpack.c.bf16 %v2332_v4, %v2331_v28  ;;  %v2335_v27 = vld [vmem:[%s3921_s0 + $0x1a8] sm:$0xff] }
 0x141   :  { %v350_v5 = vsel %vm319_vm2, %v2128_v8, %v2232_v61  ;;  %1483 = vmatprep.subr.bf16.mxu0 %v1140_v63  ;;  %v351_v58 = vsel %vm319_vm2, %v2232_v61, %v2233_v9  ;;  %v2329_v8 = vld [vmem:[%s3921_s0 + $0x198] sm:$0xff] }
 0x142   :  { %v1120_v52 = vpack.c.bf16 %v350_v5, %v332_v17  ;;  %v388_v7 = vsel %vm319_vm2, %v2218_v43, %v2227_v24  ;;  %1484 = vmatpush1.bf16.msra.mxu0 %v1139_v18  ;;  %v3662_v13 = vpop.permute.xlu1 %2240  ;;  %v1121_v56 = vpack.c.bf16 %v351_v58, %v333_v15  ;;  %v389_v40 = vsel %vm319_vm2, %v2227_v24, %v2228_v50  ;;  %v2336_v18 = vld [vmem:[%s3921_s0 + $0x240] sm:$0xff]  ;;  %v2338_v5 = vld [vmem:[%s3921_s0 + $0xf8] sm:$0xff] }
 0x143   :  { %v1141_v6 = vpack.c.bf16 %v388_v7, %v370_v23  ;;  %v3667_v54 = vpop.permute.xlu0 %2235  ;;  %v1142_v16 = vpack.c.bf16 %v389_v40, %v371_v0  ;;  %v1102_v36 = vpack.c.bf16 %v2330_v57, %v2329_v8  ;;  %v2243_v51 = vunpack.i.h.bf16 %v3662_v13  ;;  %v2337_v23 = vld [vmem:[%s3921_s0 + $0x60] sm:$0xff]  ;;  %v2340_v7 = vld [vmem:[%s3921_s0 + $0x238] sm:$0xff]  ;;  %v2342_v8 = vld [vmem:[%s3921_s0 + $0x110] sm:$0xff] }
 0x144   :  { %v2238_v10 = vunpack.i.h.bf16 %v3667_v54  ;;  %v2237_v31 = vunpack.i.l.bf16 %v3667_v54  ;;  %1485 = vmatprep.subr.bf16.mxu0 %v1121_v56  ;;  %v335_v14 = vsel %vm319_vm2, %v1763_v39, %v1767_v22  ;;  %v2242_v48 = vunpack.i.l.bf16 %v3662_v13  ;;  %v2334_v39 = vld [vmem:[%s3921_s0 + $0x100] sm:$0xff]  ;;  %v2347_v54 = vld [vmem:[%s3921_s0 + $0x250] sm:$0xff] }
 0x145   :  { %1524 = vmatprep.subr.bf16.mxu1 %v1142_v16  ;;  %v1083_v59 = vpack.c.bf16 %v2334_v39, %v2333_v20  ;;  %v1082_v58 = vpack.c.bf16 %v2338_v5, %v2337_v23  ;;  %v2341_v16 = vld [vmem:[%s3921_s0 + $0x78] sm:$0xff]  ;;  %v2362_v5 = vmov 0.0  }
 0x146   :  { %v352_v43 = vsel %vm319_vm2, %v2233_v9, %v2237_v31  ;;  %1486 = vmatpush1.bf16.msra.mxu0 %v1120_v52  ;;  %1525 = vmatpush1.bf16.msra.mxu1 %v1141_v6  ;;  %v3690_v53 = vpop.permute.xlu1 %2250  ;;  %v353_v12 = vsel %vm319_vm2, %v2237_v31, %v2238_v10  ;;  %v1104_v9 = vpack.c.bf16 %v2336_v18, %v2335_v27  ;;  %v2339_v52 = vld [vmem:[%s3921_s0 + $0x1a0] sm:$0xff] }
 0x147   :  { %v1122_v17 = vpack.c.bf16 %v352_v43, %v334_v1  ;;  %v2253_v60 = vunpack.i.h.bf16 %v3690_v53  ;;  %v2246_v25 = vpop.permute.xlu0 %2245  ;;  %1487 = vmatprep.subr.bf16.mxu0 %v1102_v36  ;;  %v1123_v21 = vpack.c.bf16 %v353_v12, %v335_v14  ;;  %v975_v24 = vsel %vm921_vm0, %v2242_v48, %v2243_v51  ;;  %v3767_v18 = vld [vmem:[%s3922_s1] sm:$0x3] }
 0x148   :  { %v2248_v61 = vunpack.i.h.bf16 %v2246_v25  ;;  %v2247_v63 = vunpack.i.l.bf16 %v2246_v25  ;;  %v2252_v15 = vunpack.i.l.bf16 %v3690_v53  ;;  %v1103_v56 = vpack.c.bf16 %v2340_v7, %v2339_v52 }
 0x149   :  { %1526 = vmatprep.subr.bf16.mxu1 %v1123_v21  ;;  %v1085_v57 = vpack.c.bf16 %v2342_v8, %v2341_v16 }
 0x14a   :  { %1488 = vmatpush1.bf16.msra.mxu0 %v1101_v29  ;;  %1527 = vmatpush1.bf16.msra.mxu1 %v1122_v17  ;;  %v3712_v0 = vpop.permute.xlu1 %2260  ;;  %v993_v40 = vsel %vm921_vm0, %v2247_v63, %v2248_v61  ;;  %v939_v31 = vsel %vm921_vm0, %v2252_v15, %v2253_v60  ;;  %v992_v1 = vsel %vm921_vm0, %v2148_v62, %v2247_v63  ;;  %v2344_v62 = vld [vmem:[%s3921_s0 + $0x108] sm:$0xff] }
 0x14b   :  { %v3727_v6 = vpop.permute.xlu0 %2255  ;;  %1489 = vmatprep.subr.bf16.mxu0 %v1083_v59  ;;  %1528 = vmatprep.subr.bf16.mxu1 %v1104_v9  ;;  %v1220_v36 = vpack.c.bf16 %v993_v40, %v975_v24  ;;  %v2263_v14 = vunpack.i.h.bf16 %v3712_v0  ;;  %v974_v29 = vsel %vm921_vm0, %v2143_v44, %v2242_v48  ;;  %v2262_v43 = vunpack.i.l.bf16 %v3712_v0 }
 0x14c   :  { %v2258_v28 = vunpack.i.h.bf16 %v3727_v6  ;;  %v2257_v4 = vunpack.i.l.bf16 %v3727_v6  ;;  %v1084_v20 = vpack.c.bf16 %v2344_v62, %v2343_v45  ;;  %v1219_v34 = vpack.c.bf16 %v992_v1, %v974_v29 }
 0x14d   :  { %v674_v21 = vsel %vm620_vm1, %v2262_v43, %v2263_v14  ;;  %v938_v55 = vsel %vm921_vm0, %v2163_v30, %v2252_v15 }
 0x14e   :  { %1490 = vmatpush1.bf16.msra.mxu0 %v1082_v58  ;;  %1529 = vmatpush1.bf16.msra.mxu1 %v1103_v56  ;;  %v3748_v12 = vpop.permute.xlu1 %2270  ;;  %v957_v39 = vsel %vm921_vm0, %v2257_v4, %v2258_v28  ;;  %v956_v27 = vsel %vm921_vm0, %v2168_v38, %v2257_v4  ;;  %v1221_v38 = vpack.c.bf16 %v2248_v61, %v2243_v51 }
 0x14f   :  { %v2266_v59 = vpop.permute.xlu0 %2265  ;;  %1530 = vmatprep.subr.bf16.mxu1 %v1085_v57  ;;  %1557 = vmatprep.subr.bf16.mxu0 %v1220_v36  ;;  %v1201_v44 = vpack.c.bf16 %v957_v39, %v939_v31  ;;  %v2273_v48 = vunpack.i.h.bf16 %v3748_v12  ;;  %v2272_v9 = vunpack.i.l.bf16 %v3748_v12  ;;  %v1200_v52 = vpack.c.bf16 %v956_v27, %v938_v55  ;;  %v3963_v31 = vld [vmem:[#allocation4_spill] sm:$0xff]  ;;  %v2351_v39 = vld [vmem:[%s3921_s0 + $0x120] sm:$0xff] }
 0x150   :  { %v2268_v17 = vunpack.i.h.bf16 %v2266_v59  ;;  %v2267_v25 = vunpack.i.l.bf16 %v2266_v59  ;;  %v673_v51 = vsel %vm620_vm1, %v2183_v35, %v2262_v43  ;;  %v1772_v1 = vunpack.i.l.bf16 %v3963_v31 }
 0x151   :  { %1508 = vmatmul.mubr.bf16.vlgmr.msra.gmra.mxu0 %v3767_v18  ;;  %v638_v40 = vsel %vm620_vm1, %v2272_v9, %v2273_v48  ;;  %v637_v53 = vsel %vm620_vm1, %v2203_v3, %v2272_v9  ;;  %v2356_v9 = vld [vmem:[%s3921_s0 + $0x90] sm:$0xff] }
 0x152   :  { %1531 = vmatpush1.bf16.msra.mxu1 %v1084_v20  ;;  %1558 = vmatpush1.bf16.msra.mxu0 %v1219_v34  ;;  %v3771_v63 = vpop.permute.xlu1 %2280  ;;  %v692_v24 = vsel %vm620_vm1, %v2267_v25, %v2268_v17  ;;  %v691_v32 = vsel %vm620_vm1, %v2188_v49, %v2267_v25  ;;  %v1202_v49 = vpack.c.bf16 %v2258_v28, %v2253_v60  ;;  %v2350_v20 = vld [vmem:[%s3921_s0 + $0x88] sm:$0xff]  ;;  %v2354_v25 = vld [vmem:[%s3921_s0 + $0x1c0] sm:$0xff] }
 0x153   :  { %v2276_v23 = vpop.permute.xlu0 %2275  ;;  %1559 = vmatprep.subr.bf16.mxu0 %v1201_v44  ;;  %1698 = vmatprep.subr.bf16.mxu1 %v2362_v5  ;;  %v1182_v58 = vpack.c.bf16 %v692_v24, %v674_v21  ;;  %v2283_v30 = vunpack.i.h.bf16 %v3771_v63  ;;  %v2282_v61 = vunpack.i.l.bf16 %v3771_v63  ;;  %v1181_v6 = vpack.c.bf16 %v691_v32, %v673_v51  ;;  %v2352_v44 = vld [vmem:[%s3921_s0 + $0x80] sm:$0xff]  ;;  %v2355_v21 = vld [vmem:[%s3921_s0 + $0x258] sm:$0xff]  ;;  %v2357_v63 = vld [vmem:[%s3921_s0 + $0x128] sm:$0xff] }
 0x154   :  { %v2278_v7 = vunpack.i.h.bf16 %v2276_v23  ;;  %v2277_v56 = vunpack.i.l.bf16 %v2276_v23  ;;  %1589 = vmatprep.mubr.bf16.mxu0 %v3953_v46  ;;  %v1183_v60 = vpack.c.bf16 %v2268_v17, %v2263_v14  ;;  %v1087_v34 = vpack.c.bf16 %v2351_v39, %v2350_v20 }
 0x155   :  { %1549 = vmatmul.mubr.bf16.vlgmr.msra.gmra.mxu1 %v3767_v18  ;;  %v373_v8 = vsel %vm319_vm2, %v2282_v61, %v2283_v30  ;;  %v372_v3 = vsel %vm319_vm2, %v2223_v47, %v2282_v61  ;;  %v2346_v47 = vld [vmem:[%s3921_s0 + $0x1b8] sm:$0xff]  ;;  %v1107_v27 = vpack.c.bf16 %v2355_v21, %v2354_v25  ;;  %v1088_v24 = vpack.c.bf16 %v2357_v63, %v2356_v9 }
 0x156   :  { %1560 = vmatpush1.bf16.msra.mxu0 %v1200_v52  ;;  %1699 = vmatpush3.bf16.msra.mxu1 %v1221_v38  ;;  %v656_v13 = vsel %vm620_vm1, %v2277_v56, %v2278_v7  ;;  %v2291_v15 = vpop.permute.xlu1 %2290  ;;  %v655_v19 = vsel %vm620_vm1, %v2208_v37, %v2277_v56  ;;  %v1768_v37 = vunpack.i.h.bf16 %v3962_v42  ;;  %v1164_v0 = vpack.c.bf16 %v2278_v7, %v2273_v48  ;;  %v2348_v42 = vld [vmem:[%s3921_s0 + $0x1b0] sm:$0xff]  ;;  %v2353_v48 = vld [vmem:[%s3921_s0 + $0x118] sm:$0xff] }
 0x157   :  { %v2286_v46 = vpop.permute.xlu0 %2285  ;;  %1561 = vmatprep.subr.bf16.mxu0 %v1182_v58  ;;  %1700 = vmatprep.subr.bf16.mxu1 %v2362_v5  ;;  %v1163_v26 = vpack.c.bf16 %v656_v13, %v638_v40  ;;  %v2293_v57 = vunpack.i.h.bf16 %v2291_v15  ;;  %v2292_v36 = vunpack.i.l.bf16 %v2291_v15  ;;  %v1162_v28 = vpack.c.bf16 %v655_v19, %v637_v53 }
 0x158   :  { %v2288_v16 = vunpack.i.h.bf16 %v2286_v46  ;;  %1714 = vmatprep.mubr.msk.bf16.mxu1 %vm2363_vm3, %v2362_v5  ;;  %v2287_v35 = vunpack.i.l.bf16 %v2286_v46  ;;  %v337_v43 = vsel %vm319_vm2, %v1768_v37, %v1772_v1  ;;  %v336_v2 = vsel %vm319_vm2, %v1767_v22, %v1768_v37  ;;  %v2349_v22 = vld [vmem:[%s3921_s0 + $0x248] sm:$0xff] }
 0x159   :  { %v355_v11 = vsel %vm319_vm2, %v2292_v36, %v2293_v57  ;;  %v354_v41 = vsel %vm319_vm2, %v2238_v10, %v2292_v36  ;;  %v1106_v12 = vpack.c.bf16 %v2347_v54, %v2346_v47  ;;  %v1105_v62 = vpack.c.bf16 %v2349_v22, %v2348_v42 }
 0x15a   :  { %1562 = vmatpush1.bf16.msra.mxu0 %v1181_v6  ;;  %1701 = vmatpush3.bf16.msra.mxu1 %v1202_v49  ;;  %v391_v33 = vsel %vm319_vm2, %v2287_v35, %v2288_v16  ;;  %v390_v29 = vsel %vm319_vm2, %v2228_v50, %v2287_v35  ;;  %v1125_v50 = vpack.c.bf16 %v355_v11, %v337_v43 }
 0x15b   :  { %1563 = vmatprep.subr.bf16.mxu0 %v1163_v26  ;;  %1702 = vmatprep.subr.bf16.mxu1 %v2362_v5  ;;  %v1144_v4 = vpack.c.bf16 %v391_v33, %v373_v8  ;;  %v1143_v14 = vpack.c.bf16 %v390_v29, %v372_v3  ;;  %v1124_v10 = vpack.c.bf16 %v354_v41, %v336_v2 }
 0x15c   :  { %v1145_v45 = vpack.c.bf16 %v2288_v16, %v2283_v30  ;;  %v1126_v59 = vpack.c.bf16 %v2293_v57, %v1772_v1  ;;  %v1086_v17 = vpack.c.bf16 %v2353_v48, %v2352_v44 }
 0x15e   :  { %1564 = vmatpush1.bf16.msra.mxu0 %v1162_v28  ;;  %1703 = vmatpush3.bf16.msra.mxu1 %v1183_v60 }
 0x15f   :  { %1565 = vmatprep.subr.bf16.mxu0 %v1144_v4  ;;  %1704 = vmatprep.subr.bf16.mxu1 %v2362_v5 }
 0x162   :  { %1566 = vmatpush1.bf16.msra.mxu0 %v1143_v14  ;;  %1705 = vmatpush3.bf16.msra.mxu1 %v1164_v0 }
 0x163   :  { %1567 = vmatprep.subr.bf16.mxu0 %v1125_v50  ;;  %1706 = vmatprep.subr.bf16.mxu1 %v2362_v5 }
 0x164   :  { %v3870_v55 = vpop.permute.xlu0 %1226 }
 0x166   :  { %1568 = vmatpush1.bf16.msra.mxu0 %v1124_v10  ;;  %1707 = vmatpush3.bf16.msra.mxu1 %v1145_v45 }
 0x167   :  { %1569 = vmatprep.subr.bf16.mxu0 %v1106_v12  ;;  %1708 = vmatprep.subr.bf16.mxu1 %v2362_v5 }
 0x16a   :  { %1570 = vmatpush1.bf16.msra.mxu0 %v1105_v62  ;;  %1709 = vmatpush3.bf16.msra.mxu1 %v1126_v59 }
 0x16b   :  { %1571 = vmatprep.subr.bf16.mxu0 %v1087_v34  ;;  %1710 = vmatprep.subr.bf16.mxu1 %v2362_v5 }
 0x16e   :  { %1572 = vmatpush1.bf16.msra.mxu0 %v1086_v17  ;;  %1711 = vmatpush3.bf16.msra.mxu1 %v1107_v27 }
 0x16f   :  { %1712 = vmatprep.subr.bf16.mxu1 %v2362_v5 }
 0x171   :  { %1590 = vmatmul.mubr.bf16.vlgmr.msra.gmra.mxu0 %v3767_v18 }
 0x172   :  { %1713 = vmatpush3.bf16.msra.mxu1 %v1088_v24 }
 0x175   :  { %1715 = vmatmul.mubr.bf16.vlgmr.msra.gmra.mxu1 %v3767_v18 }
 0x18d   :  { %v1263_v38 = vpop.f32.mrf.mxu0 }
 0x18e   :  { %v1264_v23 = vadd.f32 %v1263_v38, %v3870_v55 }
 0x18f   :  { %v1265_v58 = vpop.f32.mrf.mxu0 }
 0x190   :  { %v1266_v52 = vadd.f32 %v1265_v58, %v3870_v55 }
 0x191   :  { %v1267_v7 = vpop.f32.mrf.mxu0 }
 0x192   :  { %v1304_v56 = vpop.f32.mrf.mxu1  ;;  %v1656_v40 = vcombine.low %v1264_v23, %v1266_v52 }
 0x193   :  { %v1268_v32 = vpop.f32.mrf.mxu0  ;;  %v1305_v30 = vadd.f32 %v1304_v56, %v3870_v55 }
 0x194   :  { %v1306_v5 = vpop.f32.mrf.mxu1  ;;  %1674 = vst [vmem:[%s3924_s3] sm:$0xff] %v1656_v40 }
 0x195   :  { %v1307_v18 = vadd.f32 %v1306_v5, %v3870_v55 }
 0x196   :  { %v1308_v13 = vpop.f32.mrf.mxu1 }
 0x197   :  { %v1657_v51 = vcombine.low %v1305_v30, %v1307_v18 }
 0x198   :  { %v1309_v61 = vpop.f32.mrf.mxu1 }
 0x199   :  { %1675 = vst [vmem:[%s3924_s3 + $0x8] sm:$0xff] %v1657_v51 }
 0x1b9   :  { %v1345_v15 = vpop.f32.mrf.mxu0 }
 0x1ba   :  { %v1346_v46 = vadd.f32 %v1345_v15, %v3870_v55 }
 0x1bb   :  { %v1347_v26 = vpop.f32.mrf.mxu0 }
 0x1bc   :  { %v1348_v49 = vadd.f32 %v1347_v26, %v3870_v55 }
 0x1bd   :  { %v1386_v6 = vpop.f32.mrf.mxu1  ;;  %v1349_v16 = vpop.f32.mrf.mxu0 }
 0x1be   :  { %v1387_v19 = vadd.f32 %v1386_v6, %v3870_v55  ;;  %v1658_v35 = vcombine.low %v1346_v46, %v1348_v49 }
 0x1bf   :  { %v1388_v8 = vpop.f32.mrf.mxu1  ;;  %v1350_v57 = vpop.f32.mrf.mxu0 }
 0x1c0   :  { %1676 = vst [vmem:[%s3924_s3 + $0x10] sm:$0xff] %v1658_v35  ;;  %v1389_v36 = vadd.f32 %v1388_v8, %v3870_v55 }
 0x1c1   :  { %v1390_v31 = vpop.f32.mrf.mxu1 }
 0x1c2   :  { %v1659_v1 = vcombine.low %v1387_v19, %v1389_v36 }
 0x1c3   :  { %v1391_v53 = vpop.f32.mrf.mxu1 }
 0x1c4   :  { %1677 = vst [vmem:[%s3924_s3 + $0x18] sm:$0xff] %v1659_v1 }
 0x1e5   :  { %v1427_v33 = vpop.f32.mrf.mxu0 }
 0x1e6   :  { %v1428_v37 = vadd.f32 %v1427_v33, %v3870_v55 }
 0x1e7   :  { %v1429_v60 = vpop.f32.mrf.mxu0 }
 0x1e8   :  { %v1430_v28 = vadd.f32 %v1429_v60, %v3870_v55 }
 0x1e9   :  { %v1468_v4 = vpop.f32.mrf.mxu1  ;;  %v1431_v29 = vpop.f32.mrf.mxu0 }
 0x1ea   :  { %v1469_v11 = vadd.f32 %v1468_v4, %v3870_v55  ;;  %v1660_v3 = vcombine.low %v1428_v37, %v1430_v28 }
 0x1eb   :  { %v1470_v0 = vpop.f32.mrf.mxu1  ;;  %v1432_v14 = vpop.f32.mrf.mxu0 }
 0x1ec   :  { %1678 = vst [vmem:[%s3924_s3 + $0x20] sm:$0xff] %v1660_v3  ;;  %v1471_v43 = vadd.f32 %v1470_v0, %v3870_v55 }
 0x1ed   :  { %v1472_v41 = vpop.f32.mrf.mxu1 }
 0x1ee   :  { %v1661_v50 = vcombine.low %v1469_v11, %v1471_v43 }
 0x1ef   :  { %v1473_v2 = vpop.f32.mrf.mxu1 }
 0x1f0   :  { %1679 = vst [vmem:[%s3924_s3 + $0x28] sm:$0xff] %v1661_v50 }
 0x211   :  { %v1509_v47 = vpop.f32.mrf.mxu0 }
 0x212   :  { %v1510_v54 = vadd.f32 %v1509_v47, %v3870_v55 }
 0x213   :  { %v1511_v12 = vpop.f32.mrf.mxu0 }
 0x214   :  { %v1512_v10 = vadd.f32 %v1511_v12, %v3870_v55 }
 0x215   :  { %v1513_v45 = vpop.f32.mrf.mxu0  ;;  %v1550_v42 = vpop.f32.mrf.mxu1 }
 0x216   :  { %v1662_v22 = vcombine.low %v1510_v54, %v1512_v10  ;;  %v1551_v62 = vadd.f32 %v1550_v42, %v3870_v55 }
 0x217   :  { %v1514_v20 = vpop.f32.mrf.mxu0  ;;  %v1552_v39 = vpop.f32.mrf.mxu1 }
 0x218   :  { %1680 = vst [vmem:[%s3924_s3 + $0x30] sm:$0xff] %v1662_v22  ;;  %v1553_v34 = vadd.f32 %v1552_v39, %v3870_v55 }
 0x219   :  { %v1554_v59 = vpop.f32.mrf.mxu1 }
 0x21a   :  { %v1663_v44 = vcombine.low %v1551_v62, %v1553_v34 }
 0x21b   :  { %v1555_v48 = vpop.f32.mrf.mxu1 }
 0x21c   :  { %1681 = vst [vmem:[%s3924_s3 + $0x38] sm:$0xff] %v1663_v44 }
 0x231   :  { %v1591_v17 = vpop.f32.mrf.mxu0 }
 0x232   :  { %v1592_v25 = vadd.f32 %v1591_v17, %v3870_v55 }
 0x233   :  { %v1593_v21 = vpop.f32.mrf.mxu0 }
 0x234   :  { %v1594_v27 = vadd.f32 %v1593_v21, %v3870_v55 }
 0x235   :  { %v1595_v9 = vpop.f32.mrf.mxu0  ;;  %v1632_v63 = vpop.f32.mrf.mxu1 }
 0x236   :  { %v1664_v24 = vcombine.low %v1592_v25, %v1594_v27  ;;  %v1633_v38 = vadd.f32 %v1632_v63, %v3870_v55 }
 0x237   :  { %v1596_v23 = vpop.f32.mrf.mxu0  ;;  %v1716_v58 = vpop.f32.mrf.mxu1 }
 0x238   :  { %1682 = vst [vmem:[%s3924_s3 + $0x40] sm:$0xff] %v1664_v24  ;;  %1684 = vst.msk [vmem:[%s3924_s3 + $0x48] sm:$0xf] %vm1683_vm4, %v1633_v38 }
 0x239   :  { %v1635_v52 = vpop.f32.mrf.mxu1 }
 0x23b   :  { %v1717_v7 = vpop.f32.mrf.mxu1 }

</bundles_post_ra>
